<compile_context>
chip_gen: v5e
topology: v5e:2x2
jax: 0.10.0
libtpu: 0.0.40
codegen_flags: <defaults>
</compile_context>

<pallas_src>
import functools

import jax
import jax.numpy as jnp
from jax import lax
from jax.experimental import pallas as pl
from jax.experimental.pallas import tpu as pltpu


def _conv_bn_relu_kernel(x_ref, w_ref, shift_ref, o_ref, *, tap_offsets):
    """x_ref: (LP, Cin) bf16 flat padded slice; w_ref: (9, Cin, Cpad) bf16;
    shift_ref: (1, Cpad) f32; o_ref: (M, Cpad) f32."""
    m_out = o_ref.shape[0]

    # Tap 0 initializes the f32 accumulator (the resident output block).
    d0 = tap_offsets[0]
    o_ref[...] = jnp.dot(x_ref[d0:d0 + m_out, :], w_ref[0],
                         preferred_element_type=jnp.float32)
    # Remaining 8 taps: row-shifted slices of the same VMEM block.
    for k in range(1, 9):
        d = tap_offsets[k]
        o_ref[...] += jnp.dot(x_ref[d:d + m_out, :], w_ref[k],
                              preferred_element_type=jnp.float32)

    # Fused eval-mode BN shift (conv bias folded in) + ReLU.
    o_ref[...] = jnp.maximum(o_ref[...] + shift_ref[...], 0.0).astype(o_ref.dtype)


def conv_1x3x3_forward(x_ncdhw, weight, bias, gamma, beta, run_mean, run_var,
                       eps=1e-5):
    N, Cin, D, H, W = x_ncdhw.shape
    Cout = weight.shape[0]
    ND = N * D
    Hp, Wp = H + 2, W + 2
    SL = Hp * Wp                         # flat length of one padded slice
    margin = 2 * Wp + 2                  # largest tap row-shift
    LP = SL + margin
    Cpad = max(128, ((Cout + 127) // 128) * 128)

    # ---- input: channels-last, pad H/W by 1, flatten each slice row-major,
    #      append a zero margin so every tap shift stays in bounds ----------
    xt = jnp.transpose(x_ncdhw, (0, 2, 3, 4, 1))           # (N, D, H, W, Cin)
    xp = jnp.pad(xt, ((0, 0), (0, 0), (1, 1), (1, 1), (0, 0)))
    xf = xp.reshape(ND, SL, Cin)
    xf = jnp.pad(xf, ((0, 0), (0, margin), (0, 0))).astype(jnp.bfloat16)

    # ---- weights: (Cout, Cin, 1, 3, 3) -> (9, Cin, Cpad), fold BN scale ----
    inv_std = 1.0 / jnp.sqrt(run_var + eps)
    scale = gamma * inv_std                                 # (Cout,)
    shift = (bias - run_mean) * scale + beta                # (Cout,)
    w = jnp.transpose(weight[:, :, 0, :, :], (2, 3, 1, 0))  # (3, 3, Cin, Cout)
    w = (w * scale[None, None, None, :]).reshape(9, Cin, Cout)
    w = jnp.pad(w, ((0, 0), (0, 0), (0, Cpad - Cout))).astype(jnp.bfloat16)
    shift_p = jnp.pad(shift, (0, Cpad - Cout)).reshape(1, Cpad).astype(jnp.float32)

    # tap (kh, kw) -> row shift inside the flattened padded slice
    tap_offsets = tuple(kh * Wp + kw for kh in range(3) for kw in range(3))

    flops = 2 * ND * SL * 9 * Cin * Cpad
    bytes_accessed = (xf.size * 2 + w.size * 2 + shift_p.size * 4
                      + ND * SL * Cpad * 4)

    out = pl.pallas_call(
        functools.partial(_conv_bn_relu_kernel, tap_offsets=tap_offsets),
        out_shape=jax.ShapeDtypeStruct((ND, SL, Cpad), jnp.float32),
        grid=(ND,),
        in_specs=[
            pl.BlockSpec((None, LP, Cin), lambda i: (i, 0, 0)),
            pl.BlockSpec((9, Cin, Cpad), lambda i: (0, 0, 0)),
            pl.BlockSpec((1, Cpad), lambda i: (0, 0)),
        ],
        out_specs=pl.BlockSpec((None, SL, Cpad), lambda i: (i, 0, 0)),
        compiler_params=pltpu.CompilerParams(
            dimension_semantics=("parallel",),
            vmem_limit_bytes=32 * 1024 * 1024),
        cost_estimate=pl.CostEstimate(
            flops=flops, transcendentals=0, bytes_accessed=bytes_accessed),
    )(xf, w, shift_p)

    # ---- un-flatten: keep valid pixels / channels, back to NCDHW ----------
    out = out.reshape(N, D, Hp, Wp, Cpad)[:, :, :H, :W, :Cout]
    return jnp.transpose(out, (0, 4, 1, 2, 3))              # (N, Cout, D, H, W)


def conv_1x3x3_reference(x, weight, bias, gamma, beta, rm, rv, eps=1e-5):
    y = lax.conv_general_dilated(
        x, weight, window_strides=(1, 1, 1),
        padding=((0, 0), (1, 1), (1, 1)),
        dimension_numbers=("NCDHW", "OIDHW", "NCDHW"))
    y = y + bias.reshape(1, -1, 1, 1, 1)
    y = (y - rm.reshape(1, -1, 1, 1, 1)) / jnp.sqrt(
        rv.reshape(1, -1, 1, 1, 1) + eps)
    y = y * gamma.reshape(1, -1, 1, 1, 1) + beta.reshape(1, -1, 1, 1, 1)
    return jnp.maximum(y, 0.0)


if __name__ == "__main__":
    key = jax.random.PRNGKey(0)
    k_x, k_w, k_b, k_g, k_be, k_rm, k_rv = jax.random.split(key, 7)

    N, Cin, Cout = 2, 16, 16
    D, H, W = 4, 32, 32

    x = jax.random.normal(k_x, (N, Cin, D, H, W), dtype=jnp.float32)
    weight = 0.1 * jax.random.normal(k_w, (Cout, Cin, 1, 3, 3), jnp.float32)
    bias = 0.1 * jax.random.normal(k_b, (Cout,), jnp.float32)
    gamma = 1.0 + 0.1 * jax.random.normal(k_g, (Cout,), jnp.float32)
    beta = 0.1 * jax.random.normal(k_be, (Cout,), jnp.float32)
    run_mean = 0.05 * jax.random.normal(k_rm, (Cout,), jnp.float32)
    run_var = jax.random.uniform(k_rv, (Cout,), jnp.float32,
                                 minval=0.5, maxval=1.5)

    fwd = jax.jit(conv_1x3x3_forward)
    out = jax.block_until_ready(
        fwd(x, weight, bias, gamma, beta, run_mean, run_var))

    ref = jax.block_until_ready(
        conv_1x3x3_reference(x, weight, bias, gamma, beta, run_mean, run_var))

    assert out.shape == (N, Cout, D, H, W), out.shape
    max_err = float(jnp.max(jnp.abs(out - ref)))
    # bf16 MXU inputs with f32 accumulation: loose tolerance vs f32 reference.
    assert max_err < 5e-2, max_err
    print("KERNEL_OK")
</pallas_src>

<mosaic_0001>
module attributes {stable_mosaic.version = 11 : i64} {
  func.func @_conv_bn_relu_kernel(%arg0: i32, %arg1: memref<1x1226x16xbf16, #tpu.memory_space<vmem>>, %arg2: memref<9x16x128xbf16, #tpu.memory_space<vmem>>, %arg3: memref<1x128xf32, #tpu.memory_space<vmem>>, %arg4: memref<1x1156x128xf32, #tpu.memory_space<vmem>>) attributes {dimension_semantics = [#tpu.dimension_semantics<parallel>], iteration_bounds = array<i64: 8>, scalar_prefetch = 0 : i64, scratch_operands = 0 : i64, tpu.core_type = #tpu.core_type<tc>, window_params = [{transform_indices = @transform_0, window_bounds = array<i64: 1, 1226, 16>}, {pipeline_mode = #tpu.pipeline_mode<synchronous>, transform_indices = @transform_1, window_bounds = array<i64: 9, 16, 128>}, {pipeline_mode = #tpu.pipeline_mode<synchronous>, transform_indices = @transform_2, window_bounds = array<i64: 1, 128>}, {transform_indices = @transform_3, window_bounds = array<i64: 1, 1156, 128>}]} {
    %c0 = arith.constant 0 : index
    %c0_0 = arith.constant 0 : index
    %c0_1 = arith.constant 0 : index
    %0 = vector.load %arg1[%c0, %c0_0, %c0_1] : memref<1x1226x16xbf16, #tpu.memory_space<vmem>>, vector<1x1156x16xbf16>
    %1 = vector.shape_cast %0 : vector<1x1156x16xbf16> to vector<1156x16xbf16>
    %c0_2 = arith.constant 0 : index
    %c0_3 = arith.constant 0 : index
    %c0_4 = arith.constant 0 : index
    %2 = vector.load %arg2[%c0_2, %c0_3, %c0_4] : memref<9x16x128xbf16, #tpu.memory_space<vmem>>, vector<1x16x128xbf16>
    %3 = vector.shape_cast %2 : vector<1x16x128xbf16> to vector<16x128xbf16>
    %cst = arith.constant dense<0.000000e+00> : vector<1156x128xf32>
    %4 = tpu.matmul %1, %3, %cst {dimension_numbers = #tpu.dot_dimension_numbers<[1], [0], [0], [1], [0, 0, 1, 1], [], []>} : vector<1156x16xbf16>, vector<16x128xbf16>, vector<1156x128xf32> -> vector<1156x128xf32>
    %c0_5 = arith.constant 0 : index
    %c0_6 = arith.constant 0 : index
    %c0_7 = arith.constant 0 : index
    %5 = vector.load %arg4[%c0_5, %c0_6, %c0_7] : memref<1x1156x128xf32, #tpu.memory_space<vmem>>, vector<1x1156x128xf32>
    %6 = vector.shape_cast %5 : vector<1x1156x128xf32> to vector<1156x128xf32>
    %7 = vector.shape_cast %4 : vector<1156x128xf32> to vector<1x1156x128xf32>
    tpu.vector_store %arg4[%c0_5, %c0_6, %c0_7], %7 {strides = array<i32>} : memref<1x1156x128xf32, #tpu.memory_space<vmem>>, vector<1x1156x128xf32>,
    %c0_8 = arith.constant 0 : index
    %c0_9 = arith.constant 0 : index
    %c0_10 = arith.constant 0 : index
    %8 = vector.load %arg4[%c0_8, %c0_9, %c0_10] : memref<1x1156x128xf32, #tpu.memory_space<vmem>>, vector<1x1156x128xf32>
    %9 = vector.shape_cast %8 : vector<1x1156x128xf32> to vector<1156x128xf32>
    %c0_11 = arith.constant 0 : index
    %c1 = arith.constant 1 : index
    %c0_12 = arith.constant 0 : index
    %10 = vector.load %arg1[%c0_11, %c1, %c0_12] : memref<1x1226x16xbf16, #tpu.memory_space<vmem>>, vector<1x1156x16xbf16>
    %11 = vector.shape_cast %10 : vector<1x1156x16xbf16> to vector<1156x16xbf16>
    %c1_13 = arith.constant 1 : index
    %c0_14 = arith.constant 0 : index
    %c0_15 = arith.constant 0 : index
    %12 = vector.load %arg2[%c1_13, %c0_14, %c0_15] : memref<9x16x128xbf16, #tpu.memory_space<vmem>>, vector<1x16x128xbf16>
    %13 = vector.shape_cast %12 : vector<1x16x128xbf16> to vector<16x128xbf16>
    %cst_16 = arith.constant dense<0.000000e+00> : vector<1156x128xf32>
    %14 = tpu.matmul %11, %13, %cst_16 {dimension_numbers = #tpu.dot_dimension_numbers<[1], [0], [0], [1], [0, 0, 1, 1], [], []>} : vector<1156x16xbf16>, vector<16x128xbf16>, vector<1156x128xf32> -> vector<1156x128xf32>
    %15 = arith.addf %9, %14 : vector<1156x128xf32>
    %c0_17 = arith.constant 0 : index
    %c0_18 = arith.constant 0 : index
    %c0_19 = arith.constant 0 : index
    %16 = vector.load %arg4[%c0_17, %c0_18, %c0_19] : memref<1x1156x128xf32, #tpu.memory_space<vmem>>, vector<1x1156x128xf32>
    %17 = vector.shape_cast %16 : vector<1x1156x128xf32> to vector<1156x128xf32>
    %18 = vector.shape_cast %15 : vector<1156x128xf32> to vector<1x1156x128xf32>
    tpu.vector_store %arg4[%c0_17, %c0_18, %c0_19], %18 {strides = array<i32>} : memref<1x1156x128xf32, #tpu.memory_space<vmem>>, vector<1x1156x128xf32>,
    %c0_20 = arith.constant 0 : index
    %c0_21 = arith.constant 0 : index
    %c0_22 = arith.constant 0 : index
    %19 = vector.load %arg4[%c0_20, %c0_21, %c0_22] : memref<1x1156x128xf32, #tpu.memory_space<vmem>>, vector<1x1156x128xf32>
    %20 = vector.shape_cast %19 : vector<1x1156x128xf32> to vector<1156x128xf32>
    %c0_23 = arith.constant 0 : index
    %c2 = arith.constant 2 : index
    %c0_24 = arith.constant 0 : index
    %21 = vector.load %arg1[%c0_23, %c2, %c0_24] : memref<1x1226x16xbf16, #tpu.memory_space<vmem>>, vector<1x1156x16xbf16>
    %22 = vector.shape_cast %21 : vector<1x1156x16xbf16> to vector<1156x16xbf16>
    %c2_25 = arith.constant 2 : index
    %c0_26 = arith.constant 0 : index
    %c0_27 = arith.constant 0 : index
    %23 = vector.load %arg2[%c2_25, %c0_26, %c0_27] : memref<9x16x128xbf16, #tpu.memory_space<vmem>>, vector<1x16x128xbf16>
    %24 = vector.shape_cast %23 : vector<1x16x128xbf16> to vector<16x128xbf16>
    %cst_28 = arith.constant dense<0.000000e+00> : vector<1156x128xf32>
    %25 = tpu.matmul %22, %24, %cst_28 {dimension_numbers = #tpu.dot_dimension_numbers<[1], [0], [0], [1], [0, 0, 1, 1], [], []>} : vector<1156x16xbf16>, vector<16x128xbf16>, vector<1156x128xf32> -> vector<1156x128xf32>
    %26 = arith.addf %20, %25 : vector<1156x128xf32>
    %c0_29 = arith.constant 0 : index
    %c0_30 = arith.constant 0 : index
    %c0_31 = arith.constant 0 : index
    %27 = vector.load %arg4[%c0_29, %c0_30, %c0_31] : memref<1x1156x128xf32, #tpu.memory_space<vmem>>, vector<1x1156x128xf32>
    %28 = vector.shape_cast %27 : vector<1x1156x128xf32> to vector<1156x128xf32>
    %29 = vector.shape_cast %26 : vector<1156x128xf32> to vector<1x1156x128xf32>
    tpu.vector_store %arg4[%c0_29, %c0_30, %c0_31], %29 {strides = array<i32>} : memref<1x1156x128xf32, #tpu.memory_space<vmem>>, vector<1x1156x128xf32>,
    %c0_32 = arith.constant 0 : index
    %c0_33 = arith.constant 0 : index
    %c0_34 = arith.constant 0 : index
    %30 = vector.load %arg4[%c0_32, %c0_33, %c0_34] : memref<1x1156x128xf32, #tpu.memory_space<vmem>>, vector<1x1156x128xf32>
    %31 = vector.shape_cast %30 : vector<1x1156x128xf32> to vector<1156x128xf32>
    %c0_35 = arith.constant 0 : index
    %c34 = arith.constant 34 : index
    %c0_36 = arith.constant 0 : index
    %32 = vector.load %arg1[%c0_35, %c34, %c0_36] : memref<1x1226x16xbf16, #tpu.memory_space<vmem>>, vector<1x1156x16xbf16>
    %33 = vector.shape_cast %32 : vector<1x1156x16xbf16> to vector<1156x16xbf16>
    %c3 = arith.constant 3 : index
    %c0_37 = arith.constant 0 : index
    %c0_38 = arith.constant 0 : index
    %34 = vector.load %arg2[%c3, %c0_37, %c0_38] : memref<9x16x128xbf16, #tpu.memory_space<vmem>>, vector<1x16x128xbf16>
    %35 = vector.shape_cast %34 : vector<1x16x128xbf16> to vector<16x128xbf16>
    %cst_39 = arith.constant dense<0.000000e+00> : vector<1156x128xf32>
    %36 = tpu.matmul %33, %35, %cst_39 {dimension_numbers = #tpu.dot_dimension_numbers<[1], [0], [0], [1], [0, 0, 1, 1], [], []>} : vector<1156x16xbf16>, vector<16x128xbf16>, vector<1156x128xf32> -> vector<1156x128xf32>
    %37 = arith.addf %31, %36 : vector<1156x128xf32>
    %c0_40 = arith.constant 0 : index
    %c0_41 = arith.constant 0 : index
    %c0_42 = arith.constant 0 : index
    %38 = vector.load %arg4[%c0_40, %c0_41, %c0_42] : memref<1x1156x128xf32, #tpu.memory_space<vmem>>, vector<1x1156x128xf32>
    %39 = vector.shape_cast %38 : vector<1x1156x128xf32> to vector<1156x128xf32>
    %40 = vector.shape_cast %37 : vector<1156x128xf32> to vector<1x1156x128xf32>
    tpu.vector_store %arg4[%c0_40, %c0_41, %c0_42], %40 {strides = array<i32>} : memref<1x1156x128xf32, #tpu.memory_space<vmem>>, vector<1x1156x128xf32>,
    %c0_43 = arith.constant 0 : index
    %c0_44 = arith.constant 0 : index
    %c0_45 = arith.constant 0 : index
    %41 = vector.load %arg4[%c0_43, %c0_44, %c0_45] : memref<1x1156x128xf32, #tpu.memory_space<vmem>>, vector<1x1156x128xf32>
    %42 = vector.shape_cast %41 : vector<1x1156x128xf32> to vector<1156x128xf32>
    %c0_46 = arith.constant 0 : index
    %c35 = arith.constant 35 : index
    %c0_47 = arith.constant 0 : index
    %43 = vector.load %arg1[%c0_46, %c35, %c0_47] : memref<1x1226x16xbf16, #tpu.memory_space<vmem>>, vector<1x1156x16xbf16>
    %44 = vector.shape_cast %43 : vector<1x1156x16xbf16> to vector<1156x16xbf16>
    %c4 = arith.constant 4 : index
    %c0_48 = arith.constant 0 : index
    %c0_49 = arith.constant 0 : index
    %45 = vector.load %arg2[%c4, %c0_48, %c0_49] : memref<9x16x128xbf16, #tpu.memory_space<vmem>>, vector<1x16x128xbf16>
    %46 = vector.shape_cast %45 : vector<1x16x128xbf16> to vector<16x128xbf16>
    %cst_50 = arith.constant dense<0.000000e+00> : vector<1156x128xf32>
    %47 = tpu.matmul %44, %46, %cst_50 {dimension_numbers = #tpu.dot_dimension_numbers<[1], [0], [0], [1], [0, 0, 1, 1], [], []>} : vector<1156x16xbf16>, vector<16x128xbf16>, vector<1156x128xf32> -> vector<1156x128xf32>
    %48 = arith.addf %42, %47 : vector<1156x128xf32>
    %c0_51 = arith.constant 0 : index
    %c0_52 = arith.constant 0 : index
    %c0_53 = arith.constant 0 : index
    %49 = vector.load %arg4[%c0_51, %c0_52, %c0_53] : memref<1x1156x128xf32, #tpu.memory_space<vmem>>, vector<1x1156x128xf32>
    %50 = vector.shape_cast %49 : vector<1x1156x128xf32> to vector<1156x128xf32>
    %51 = vector.shape_cast %48 : vector<1156x128xf32> to vector<1x1156x128xf32>
    tpu.vector_store %arg4[%c0_51, %c0_52, %c0_53], %51 {strides = array<i32>} : memref<1x1156x128xf32, #tpu.memory_space<vmem>>, vector<1x1156x128xf32>,
    %c0_54 = arith.constant 0 : index
    %c0_55 = arith.constant 0 : index
    %c0_56 = arith.constant 0 : index
    %52 = vector.load %arg4[%c0_54, %c0_55, %c0_56] : memref<1x1156x128xf32, #tpu.memory_space<vmem>>, vector<1x1156x128xf32>
    %53 = vector.shape_cast %52 : vector<1x1156x128xf32> to vector<1156x128xf32>
    %c0_57 = arith.constant 0 : index
    %c36 = arith.constant 36 : index
    %c0_58 = arith.constant 0 : index
    %54 = vector.load %arg1[%c0_57, %c36, %c0_58] : memref<1x1226x16xbf16, #tpu.memory_space<vmem>>, vector<1x1156x16xbf16>
    %55 = vector.shape_cast %54 : vector<1x1156x16xbf16> to vector<1156x16xbf16>
    %c5 = arith.constant 5 : index
    %c0_59 = arith.constant 0 : index
    %c0_60 = arith.constant 0 : index
    %56 = vector.load %arg2[%c5, %c0_59, %c0_60] : memref<9x16x128xbf16, #tpu.memory_space<vmem>>, vector<1x16x128xbf16>
    %57 = vector.shape_cast %56 : vector<1x16x128xbf16> to vector<16x128xbf16>
    %cst_61 = arith.constant dense<0.000000e+00> : vector<1156x128xf32>
    %58 = tpu.matmul %55, %57, %cst_61 {dimension_numbers = #tpu.dot_dimension_numbers<[1], [0], [0], [1], [0, 0, 1, 1], [], []>} : vector<1156x16xbf16>, vector<16x128xbf16>, vector<1156x128xf32> -> vector<1156x128xf32>
    %59 = arith.addf %53, %58 : vector<1156x128xf32>
    %c0_62 = arith.constant 0 : index
    %c0_63 = arith.constant 0 : index
    %c0_64 = arith.constant 0 : index
    %60 = vector.load %arg4[%c0_62, %c0_63, %c0_64] : memref<1x1156x128xf32, #tpu.memory_space<vmem>>, vector<1x1156x128xf32>
    %61 = vector.shape_cast %60 : vector<1x1156x128xf32> to vector<1156x128xf32>
    %62 = vector.shape_cast %59 : vector<1156x128xf32> to vector<1x1156x128xf32>
    tpu.vector_store %arg4[%c0_62, %c0_63, %c0_64], %62 {strides = array<i32>} : memref<1x1156x128xf32, #tpu.memory_space<vmem>>, vector<1x1156x128xf32>,
    %c0_65 = arith.constant 0 : index
    %c0_66 = arith.constant 0 : index
    %c0_67 = arith.constant 0 : index
    %63 = vector.load %arg4[%c0_65, %c0_66, %c0_67] : memref<1x1156x128xf32, #tpu.memory_space<vmem>>, vector<1x1156x128xf32>
    %64 = vector.shape_cast %63 : vector<1x1156x128xf32> to vector<1156x128xf32>
    %c0_68 = arith.constant 0 : index
    %c68 = arith.constant 68 : index
    %c0_69 = arith.constant 0 : index
    %65 = vector.load %arg1[%c0_68, %c68, %c0_69] : memref<1x1226x16xbf16, #tpu.memory_space<vmem>>, vector<1x1156x16xbf16>
    %66 = vector.shape_cast %65 : vector<1x1156x16xbf16> to vector<1156x16xbf16>
    %c6 = arith.constant 6 : index
    %c0_70 = arith.constant 0 : index
    %c0_71 = arith.constant 0 : index
    %67 = vector.load %arg2[%c6, %c0_70, %c0_71] : memref<9x16x128xbf16, #tpu.memory_space<vmem>>, vector<1x16x128xbf16>
    %68 = vector.shape_cast %67 : vector<1x16x128xbf16> to vector<16x128xbf16>
    %cst_72 = arith.constant dense<0.000000e+00> : vector<1156x128xf32>
    %69 = tpu.matmul %66, %68, %cst_72 {dimension_numbers = #tpu.dot_dimension_numbers<[1], [0], [0], [1], [0, 0, 1, 1], [], []>} : vector<1156x16xbf16>, vector<16x128xbf16>, vector<1156x128xf32> -> vector<1156x128xf32>
    %70 = arith.addf %64, %69 : vector<1156x128xf32>
    %c0_73 = arith.constant 0 : index
    %c0_74 = arith.constant 0 : index
    %c0_75 = arith.constant 0 : index
    %71 = vector.load %arg4[%c0_73, %c0_74, %c0_75] : memref<1x1156x128xf32, #tpu.memory_space<vmem>>, vector<1x1156x128xf32>
    %72 = vector.shape_cast %71 : vector<1x1156x128xf32> to vector<1156x128xf32>
    %73 = vector.shape_cast %70 : vector<1156x128xf32> to vector<1x1156x128xf32>
    tpu.vector_store %arg4[%c0_73, %c0_74, %c0_75], %73 {strides = array<i32>} : memref<1x1156x128xf32, #tpu.memory_space<vmem>>, vector<1x1156x128xf32>,
    %c0_76 = arith.constant 0 : index
    %c0_77 = arith.constant 0 : index
    %c0_78 = arith.constant 0 : index
    %74 = vector.load %arg4[%c0_76, %c0_77, %c0_78] : memref<1x1156x128xf32, #tpu.memory_space<vmem>>, vector<1x1156x128xf32>
    %75 = vector.shape_cast %74 : vector<1x1156x128xf32> to vector<1156x128xf32>
    %c0_79 = arith.constant 0 : index
    %c69 = arith.constant 69 : index
    %c0_80 = arith.constant 0 : index
    %76 = vector.load %arg1[%c0_79, %c69, %c0_80] : memref<1x1226x16xbf16, #tpu.memory_space<vmem>>, vector<1x1156x16xbf16>
    %77 = vector.shape_cast %76 : vector<1x1156x16xbf16> to vector<1156x16xbf16>
    %c7 = arith.constant 7 : index
    %c0_81 = arith.constant 0 : index
    %c0_82 = arith.constant 0 : index
    %78 = vector.load %arg2[%c7, %c0_81, %c0_82] : memref<9x16x128xbf16, #tpu.memory_space<vmem>>, vector<1x16x128xbf16>
    %79 = vector.shape_cast %78 : vector<1x16x128xbf16> to vector<16x128xbf16>
    %cst_83 = arith.constant dense<0.000000e+00> : vector<1156x128xf32>
    %80 = tpu.matmul %77, %79, %cst_83 {dimension_numbers = #tpu.dot_dimension_numbers<[1], [0], [0], [1], [0, 0, 1, 1], [], []>} : vector<1156x16xbf16>, vector<16x128xbf16>, vector<1156x128xf32> -> vector<1156x128xf32>
    %81 = arith.addf %75, %80 : vector<1156x128xf32>
    %c0_84 = arith.constant 0 : index
    %c0_85 = arith.constant 0 : index
    %c0_86 = arith.constant 0 : index
    %82 = vector.load %arg4[%c0_84, %c0_85, %c0_86] : memref<1x1156x128xf32, #tpu.memory_space<vmem>>, vector<1x1156x128xf32>
    %83 = vector.shape_cast %82 : vector<1x1156x128xf32> to vector<1156x128xf32>
    %84 = vector.shape_cast %81 : vector<1156x128xf32> to vector<1x1156x128xf32>
    tpu.vector_store %arg4[%c0_84, %c0_85, %c0_86], %84 {strides = array<i32>} : memref<1x1156x128xf32, #tpu.memory_space<vmem>>, vector<1x1156x128xf32>,
    %c0_87 = arith.constant 0 : index
    %c0_88 = arith.constant 0 : index
    %c0_89 = arith.constant 0 : index
    %85 = vector.load %arg4[%c0_87, %c0_88, %c0_89] : memref<1x1156x128xf32, #tpu.memory_space<vmem>>, vector<1x1156x128xf32>
    %86 = vector.shape_cast %85 : vector<1x1156x128xf32> to vector<1156x128xf32>
    %c0_90 = arith.constant 0 : index
    %c70 = arith.constant 70 : index
    %c0_91 = arith.constant 0 : index
    %87 = vector.load %arg1[%c0_90, %c70, %c0_91] : memref<1x1226x16xbf16, #tpu.memory_space<vmem>>, vector<1x1156x16xbf16>
    %88 = vector.shape_cast %87 : vector<1x1156x16xbf16> to vector<1156x16xbf16>
    %c8 = arith.constant 8 : index
    %c0_92 = arith.constant 0 : index
    %c0_93 = arith.constant 0 : index
    %89 = vector.load %arg2[%c8, %c0_92, %c0_93] : memref<9x16x128xbf16, #tpu.memory_space<vmem>>, vector<1x16x128xbf16>
    %90 = vector.shape_cast %89 : vector<1x16x128xbf16> to vector<16x128xbf16>
    %cst_94 = arith.constant dense<0.000000e+00> : vector<1156x128xf32>
    %91 = tpu.matmul %88, %90, %cst_94 {dimension_numbers = #tpu.dot_dimension_numbers<[1], [0], [0], [1], [0, 0, 1, 1], [], []>} : vector<1156x16xbf16>, vector<16x128xbf16>, vector<1156x128xf32> -> vector<1156x128xf32>
    %92 = arith.addf %86, %91 : vector<1156x128xf32>
    %c0_95 = arith.constant 0 : index
    %c0_96 = arith.constant 0 : index
    %c0_97 = arith.constant 0 : index
    %93 = vector.load %arg4[%c0_95, %c0_96, %c0_97] : memref<1x1156x128xf32, #tpu.memory_space<vmem>>, vector<1x1156x128xf32>
    %94 = vector.shape_cast %93 : vector<1x1156x128xf32> to vector<1156x128xf32>
    %95 = vector.shape_cast %92 : vector<1156x128xf32> to vector<1x1156x128xf32>
    tpu.vector_store %arg4[%c0_95, %c0_96, %c0_97], %95 {strides = array<i32>} : memref<1x1156x128xf32, #tpu.memory_space<vmem>>, vector<1x1156x128xf32>,
    %c0_98 = arith.constant 0 : index
    %c0_99 = arith.constant 0 : index
    %c0_100 = arith.constant 0 : index
    %96 = vector.load %arg4[%c0_98, %c0_99, %c0_100] : memref<1x1156x128xf32, #tpu.memory_space<vmem>>, vector<1x1156x128xf32>
    %97 = vector.shape_cast %96 : vector<1x1156x128xf32> to vector<1156x128xf32>
    %c0_101 = arith.constant 0 : index
    %c0_102 = arith.constant 0 : index
    %98 = vector.load %arg3[%c0_101, %c0_102] : memref<1x128xf32, #tpu.memory_space<vmem>>, vector<1x128xf32>
    %99 = vector.broadcast %98 : vector<1x128xf32> to vector<1156x128xf32>
    %100 = arith.addf %97, %99 : vector<1156x128xf32>
    %cst_103 = arith.constant 0.000000e+00 : f32
    %101 = vector.broadcast %cst_103 : f32 to vector<1156x128xf32>
    %102 = arith.maximumf %100, %101 : vector<1156x128xf32>
    %c0_104 = arith.constant 0 : index
    %c0_105 = arith.constant 0 : index
    %c0_106 = arith.constant 0 : index
    %103 = vector.load %arg4[%c0_104, %c0_105, %c0_106] : memref<1x1156x128xf32, #tpu.memory_space<vmem>>, vector<1x1156x128xf32>
    %104 = vector.shape_cast %103 : vector<1x1156x128xf32> to vector<1156x128xf32>
    %105 = vector.shape_cast %102 : vector<1156x128xf32> to vector<1x1156x128xf32>
    tpu.vector_store %arg4[%c0_104, %c0_105, %c0_106], %105 {strides = array<i32>} : memref<1x1156x128xf32, #tpu.memory_space<vmem>>, vector<1x1156x128xf32>,
    return
  }
  func.func @transform_0(%arg0: i32) -> (i32, i32, i32) {
    %c0_i32 = arith.constant 0 : i32
    %c0_i32_0 = arith.constant 0 : i32
    %c0_i32_1 = arith.constant 0 : i32
    return %arg0, %c0_i32, %c0_i32_0 : i32, i32, i32
  }
  func.func @transform_1(%arg0: i32) -> (i32, i32, i32) {
    %c0_i32 = arith.constant 0 : i32
    %c0_i32_0 = arith.constant 0 : i32
    %c0_i32_1 = arith.constant 0 : i32
    %c0_i32_2 = arith.constant 0 : i32
    return %c0_i32, %c0_i32_0, %c0_i32_1 : i32, i32, i32
  }
  func.func @transform_2(%arg0: i32) -> (i32, i32) {
    %c0_i32 = arith.constant 0 : i32
    %c0_i32_0 = arith.constant 0 : i32
    %c0_i32_1 = arith.constant 0 : i32
    return %c0_i32, %c0_i32_0 : i32, i32
  }
  func.func @transform_3(%arg0: i32) -> (i32, i32, i32) {
    %c0_i32 = arith.constant 0 : i32
    %c0_i32_0 = arith.constant 0 : i32
    %c0_i32_1 = arith.constant 0 : i32
    return %arg0, %c0_i32, %c0_i32_0 : i32, i32, i32
  }
}

</mosaic_0001>

<bundles_post_ra>
// kernel: conv_1x3x3_forward.1
= control target key start
LH: loop header
LB: loop body
LE: loop exit
PB: predicated region body
PF: predicated region fallthrough
CT: control target
= control target key end

     0   :  { %s21073_s12 = smov 0   ;;  %s25806_s0 = inlined_call_operand.vmem [shape: bf16[8,1226,16], index: 0, kind: input, shape index: {}]   ;;  %s25807_s1 = inlined_call_operand.vmem [shape: bf16[9,16,128], index: 1, kind: input, shape index: {}]   ;;  %s25808_s2 = inlined_call_operand.vmem [shape: f32[1,128], index: 2, kind: input, shape index: {}]   ;;  %s25809_s3 = inlined_call_operand.vmem [shape: f32[8,1156,128], index: 3, kind: output, shape index: {}]  }
   0x1 LB: > { %s17049_s13 = sadd.s32 4294967295, %s21051_s12   ;;  %p17053_p0 = scmp.ge.s32.totalorder %s21051_s12, 1  ;;  %s21051_s12 = sphi %s21073_s12, %s13_s12  }
   0x2   : > { %p137_p1 = scmp.lt.s32.totalorder %s21051_s12, 9 }
   0x4   : > { %p138_p2 = pnand %p17053_p0, %p137_p1 }
   0x5   : > { %p161_p3 = scmp.lt.s32.totalorder (!%p138_p2), %s17049_s13, 7 }
   0x6   : > { %141 = sbr.rel (%p138_p2) target bundleno = 2812 (0xafc), region = 32 }
   0xb   : > { %v20439_v0 = vld [vmem:[%s25807_s1] sm:$0xff]  ;;  %v20512_v1 = vld [vmem:[%s25807_s1 + $0x8] sm:$0xff]  ;;  %v20585_v2 = vld [vmem:[%s25807_s1 + $0x10] sm:$0xff]  ;;  %s25811_s13 = smov (!%p161_p3, %s17049_s13), 7  ;;  %vm688_vm0 = vcmask 130048   ;;  %vm4210_vm1 = vcmask 1046528  }
   0xc   : > { %v20731_v3 = vld [vmem:[%s25807_s1 + $0x20] sm:$0xff]  ;;  %21026 = vmatpush.bf16.msra.mxu1 %v20439_v0  ;;  %21027 = vmatpush.bf16.msra.mxu2 %v20439_v0  ;;  %s21029_s22 = smul.u32 616, %s25811_s13  ;;  %v20658_v11 = vld [vmem:[%s25807_s1 + $0x18] sm:$0xff]  ;;  %vm2082_vm2 = vsmask.f32 7424  ;;  %vm9790_vm5 = vcmask 1045504  }
   0xd   : > { %915 = vmatpush.bf16.msra.mxu0 %v20439_v0  ;;  %21028 = vmatpush.bf16.msra.mxu3 %v20439_v0  ;;  %s21030_s28 = smul.u32 1160, %s25811_s13  ;;  %vm7589_vm3 = vsmask.f32 6400  ;;  %vm13172_vm4 = vsmask.f32 5376  ;;  %vm15376_vm6 = vcmask 1044480  }
   0xe   : > { %s21099_s25 = scalar_lea.vmem %s25806_s0, %s21029_s22 }
   0xf   : > { %v20386_v4 = vld [vmem:[%s21099_s25 + $0x98] sm:$0xff]  ;;  %v20405_v5 = vld [vmem:[%s21099_s25 + $0x130] sm:$0xff]  ;;  %v20367_v6 = vld [vmem:[%s21099_s25] sm:$0xff]  ;;  %s21170_s4 = scalar_lea.vmem %s25809_s3, %s21030_s28 }
  0x10   : > { %2898 = vmatpush.bf16.msrb.mxu1 %v20512_v1  ;;  %4588 = vmatpush.bf16.msrb.mxu2 %v20585_v2  ;;  %v20387_v7 = vld [vmem:[%s21099_s25 + $0xa0] sm:$0xff]  ;;  %v20406_v8 = vld [vmem:[%s21099_s25 + $0x138] sm:$0xff]  ;;  %v20368_v9 = vld [vmem:[%s21099_s25 + $0x8] sm:$0xff] }
  0x11   : > { %8478 = vmatpush.bf16.msrb.mxu0 %v20731_v3  ;;  %17367 = vmatmul.msk.bf16.vlgmr.msra.gmra.mxu1 %vm688_vm0, %v20386_v4  ;;  %v20424_v10 = vld [vmem:[%s21099_s25 + $0x1c8] sm:$0xff]  ;;  %v20407_v13 = vld [vmem:[%s21099_s25 + $0x140] sm:$0xff]  ;;  %v20369_v14 = vld [vmem:[%s21099_s25 + $0x10] sm:$0xff] }
  0x12   : > { %17386 = vmatmul.msk.bf16.vlgmr.msra.gmra.mxu2 %vm688_vm0, %v20405_v5  ;;  %17348 = vmatmul.msk.bf16.vlgmr.msra.gmra.mxu0 %vm688_vm0, %v20367_v6  ;;  %v20388_v12 = vld [vmem:[%s21099_s25 + $0xa8] sm:$0xff]  ;;  %v20425_v15 = vld [vmem:[%s21099_s25 + $0x1d0] sm:$0xff]  ;;  %v20370_v18 = vld [vmem:[%s21099_s25 + $0x18] sm:$0xff] }
  0x13   : > { %17405 = vmatmul.msk.bf16.vlgmr.msra.gmra.mxu3 %vm688_vm0, %v20424_v10  ;;  %v20389_v16 = vld [vmem:[%s21099_s25 + $0xb0] sm:$0xff]  ;;  %v20408_v17 = vld [vmem:[%s21099_s25 + $0x148] sm:$0xff]  ;;  %v20426_v19 = vld [vmem:[%s21099_s25 + $0x1d8] sm:$0xff] }
  0x14   : > { %6277 = vmatpush.bf16.msrb.mxu3 %v20658_v11  ;;  %v20390_v20 = vld [vmem:[%s21099_s25 + $0xb8] sm:$0xff]  ;;  %v20409_v21 = vld [vmem:[%s21099_s25 + $0x150] sm:$0xff]  ;;  %v20371_v22 = vld [vmem:[%s21099_s25 + $0x20] sm:$0xff] }
  0x15   : > { %v20427_v23 = vld [vmem:[%s21099_s25 + $0x1e0] sm:$0xff]  ;;  %v20410_v25 = vld [vmem:[%s21099_s25 + $0x158] sm:$0xff]  ;;  %v20372_v26 = vld [vmem:[%s21099_s25 + $0x28] sm:$0xff] }
  0x16   : > { %v20391_v24 = vld [vmem:[%s21099_s25 + $0xc0] sm:$0xff]  ;;  %v20428_v27 = vld [vmem:[%s21099_s25 + $0x1e8] sm:$0xff]  ;;  %v20373_v30 = vld [vmem:[%s21099_s25 + $0x30] sm:$0xff] }
  0x17   : > { %v20392_v28 = vld [vmem:[%s21099_s25 + $0xc8] sm:$0xff]  ;;  %v20411_v29 = vld [vmem:[%s21099_s25 + $0x160] sm:$0xff]  ;;  %v20429_v31 = vld [vmem:[%s21099_s25 + $0x1f0] sm:$0xff] }
  0x18   : > { %v20393_v32 = vld [vmem:[%s21099_s25 + $0xd0] sm:$0xff]  ;;  %v20412_v33 = vld [vmem:[%s21099_s25 + $0x168] sm:$0xff]  ;;  %v20374_v34 = vld [vmem:[%s21099_s25 + $0x38] sm:$0xff] }
  0x19   : > { %v20430_v35 = vld [vmem:[%s21099_s25 + $0x1f8] sm:$0xff]  ;;  %v20413_v37 = vld [vmem:[%s21099_s25 + $0x170] sm:$0xff]  ;;  %v20375_v39 = vld [vmem:[%s21099_s25 + $0x40] sm:$0xff] }
  0x1a   : > { %v20394_v36 = vld [vmem:[%s21099_s25 + $0xd8] sm:$0xff]  ;;  %v20431_v41 = vld [vmem:[%s21099_s25 + $0x200] sm:$0xff]  ;;  %v20376_v49 = vld [vmem:[%s21099_s25 + $0x48] sm:$0xff] }
  0x1b   : > { %v20395_v46 = vld [vmem:[%s21099_s25 + $0xe0] sm:$0xff]  ;;  %v20414_v47 = vld [vmem:[%s21099_s25 + $0x178] sm:$0xff]  ;;  %v20432_v51 = vld [vmem:[%s21099_s25 + $0x208] sm:$0xff] }
  0x1c   : > { %v20396_v57 = vld [vmem:[%s21099_s25 + $0xe8] sm:$0xff]  ;;  %v20415_v58 = vld [vmem:[%s21099_s25 + $0x180] sm:$0xff]  ;;  %v20377_v60 = vld [vmem:[%s21099_s25 + $0x50] sm:$0xff] }
  0x1d   : > { %v20433_v63 = vld [vmem:[%s21099_s25 + $0x210] sm:$0xff]  ;;  %v20416_v6 = vld [vmem:[%s21099_s25 + $0x188] sm:$0xff]  ;;  %v20434_v11 = vld [vmem:[%s21099_s25 + $0x218] sm:$0xff] }
  0x1e   : > { %v20397_v5 = vld [vmem:[%s21099_s25 + $0xf0] sm:$0xff] }
  0x21   : > { %17368 = vmatmul.msk.bf16.gmra.mxu1 %vm688_vm0, %v20387_v7 }
  0x22   : > { %17387 = vmatmul.msk.bf16.gmra.mxu2 %vm688_vm0, %v20406_v8  ;;  %17349 = vmatmul.msk.bf16.gmra.mxu0 %vm688_vm0, %v20368_v9  ;;  %v20378_v8 = vld [vmem:[%s21099_s25 + $0x58] sm:$0xff] }
  0x23   : > { %17406 = vmatmul.msk.bf16.gmra.mxu3 %vm688_vm0, %v20425_v15 }
  0x31   : > { %17369 = vmatmul.msk.bf16.gmra.mxu1 %vm688_vm0, %v20388_v12 }
  0x32   : > { %17388 = vmatmul.msk.bf16.gmra.mxu2 %vm688_vm0, %v20407_v13  ;;  %17350 = vmatmul.msk.bf16.gmra.mxu0 %vm688_vm0, %v20369_v14 }
  0x33   : > { %17407 = vmatmul.msk.bf16.gmra.mxu3 %vm688_vm0, %v20426_v19 }
  0x41   : > { %17370 = vmatmul.msk.bf16.gmra.mxu1 %vm688_vm0, %v20389_v16 }
  0x42   : > { %17389 = vmatmul.msk.bf16.gmra.mxu2 %vm688_vm0, %v20408_v17  ;;  %17351 = vmatmul.msk.bf16.gmra.mxu0 %vm688_vm0, %v20370_v18  ;;  %v20398_v17 = vld [vmem:[%s21099_s25 + $0xf8] sm:$0xff]  ;;  %v20417_v18 = vld [vmem:[%s21099_s25 + $0x190] sm:$0xff] }
  0x43   : > { %17408 = vmatmul.msk.bf16.gmra.mxu3 %vm688_vm0, %v20427_v23  ;;  %v20435_v23 = vld [vmem:[%s21099_s25 + $0x220] sm:$0xff] }
  0x51   : > { %17371 = vmatmul.msk.bf16.gmra.mxu1 %vm688_vm0, %v20390_v20  ;;  %v20379_v20 = vld [vmem:[%s21099_s25 + $0x60] sm:$0xff] }
  0x52   : > { %17390 = vmatmul.msk.bf16.gmra.mxu2 %vm688_vm0, %v20409_v21  ;;  %17352 = vmatmul.msk.bf16.gmra.mxu0 %vm688_vm0, %v20371_v22 }
  0x53   : > { %17409 = vmatmul.msk.bf16.gmra.mxu3 %vm688_vm0, %v20428_v27 }
  0x61   : > { %17372 = vmatmul.msk.bf16.gmra.mxu1 %vm688_vm0, %v20391_v24 }
  0x62   : > { %17391 = vmatmul.msk.bf16.gmra.mxu2 %vm688_vm0, %v20410_v25  ;;  %17353 = vmatmul.msk.bf16.gmra.mxu0 %vm688_vm0, %v20372_v26 }
  0x63   : > { %17410 = vmatmul.msk.bf16.gmra.mxu3 %vm688_vm0, %v20429_v31 }
  0x71   : > { %17373 = vmatmul.msk.bf16.gmra.mxu1 %vm688_vm0, %v20392_v28 }
  0x72   : > { %17392 = vmatmul.msk.bf16.gmra.mxu2 %vm688_vm0, %v20411_v29  ;;  %17354 = vmatmul.msk.bf16.gmra.mxu0 %vm688_vm0, %v20373_v30  ;;  %v20399_v29 = vld [vmem:[%s21099_s25 + $0x100] sm:$0xff]  ;;  %v20418_v30 = vld [vmem:[%s21099_s25 + $0x198] sm:$0xff] }
  0x73   : > { %17411 = vmatmul.msk.bf16.gmra.mxu3 %vm688_vm0, %v20430_v35  ;;  %v20436_v35 = vld [vmem:[%s21099_s25 + $0x228] sm:$0xff] }
  0x81   : > { %17374 = vmatmul.msk.bf16.gmra.mxu1 %vm688_vm0, %v20393_v32  ;;  %v20380_v32 = vld [vmem:[%s21099_s25 + $0x68] sm:$0xff] }
  0x82   : > { %17393 = vmatmul.msk.bf16.gmra.mxu2 %vm688_vm0, %v20412_v33  ;;  %17355 = vmatmul.msk.bf16.gmra.mxu0 %vm688_vm0, %v20374_v34 }
  0x83   : > { %17412 = vmatmul.msk.bf16.gmra.mxu3 %vm688_vm0, %v20431_v41  ;;  %v20400_v41 = vld [vmem:[%s21099_s25 + $0x108] sm:$0xff] }
  0x8e   : > { %v1012_v38 = vpop.f32.mrf.mxu1 }
  0x8f   : > { %1319 = vst [vmem:[%s21170_s4 + $0x130] sm:$0xff] %v1012_v38  ;;  %v917_v40 = vpop.f32.mrf.mxu0 }
  0x90   : > { %1281 = vst [vmem:[%s21170_s4] sm:$0xff] %v917_v40 }
  0x91   : > { %17375 = vmatmul.msk.bf16.gmra.mxu1 %vm688_vm0, %v20394_v36 }
  0x92   : > { %17394 = vmatmul.msk.bf16.gmra.mxu2 %vm688_vm0, %v20413_v37  ;;  %17356 = vmatmul.msk.bf16.gmra.mxu0 %vm688_vm0, %v20375_v39 }
  0x93   : > { %17413 = vmatmul.msk.bf16.gmra.mxu3 %vm688_vm0, %v20432_v51 }
  0x95   : > { %v1107_v42 = vpop.f32.mrf.mxu2 }
  0x96   : > { %1357 = vst [vmem:[%s21170_s4 + $0x260] sm:$0xff] %v1107_v42  ;;  %v1014_v43 = vpop.f32.mrf.mxu1  ;;  %v1202_v54 = vpop.f32.mrf.mxu3  ;;  %v20419_v42 = vld [vmem:[%s21099_s25 + $0x1a0] sm:$0xff] }
  0x97   : > { %1320 = vst [vmem:[%s21170_s4 + $0x138] sm:$0xff] %v1014_v43  ;;  %v919_v44 = vpop.f32.mrf.mxu0 }
  0x98   : > { %1282 = vst [vmem:[%s21170_s4 + $0x8] sm:$0xff] %v919_v44  ;;  %v20381_v44 = vld [vmem:[%s21099_s25 + $0x70] sm:$0xff] }
  0x99   : > { %1395 = vst [vmem:[%s21170_s4 + $0x390] sm:$0xff] %v1202_v54  ;;  %v20420_v54 = vld [vmem:[%s21099_s25 + $0x1a8] sm:$0xff] }
  0x9d   : > { %v1109_v45 = vpop.f32.mrf.mxu2 }
  0x9e   : > { %1358 = vst [vmem:[%s21170_s4 + $0x268] sm:$0xff] %v1109_v45  ;;  %v1017_v48 = vpop.f32.mrf.mxu1  ;;  %v1204_v61 = vpop.f32.mrf.mxu3 }
  0x9f   : > { %1321 = vst [vmem:[%s21170_s4 + $0x140] sm:$0xff] %v1017_v48  ;;  %v922_v50 = vpop.f32.mrf.mxu0 }
  0xa0   : > { %1283 = vst [vmem:[%s21170_s4 + $0x10] sm:$0xff] %v922_v50 }
  0xa1   : > { %17376 = vmatmul.msk.bf16.gmra.mxu1 %vm688_vm0, %v20395_v46  ;;  %1396 = vst [vmem:[%s21170_s4 + $0x398] sm:$0xff] %v1204_v61 }
  0xa2   : > { %17395 = vmatmul.msk.bf16.gmra.mxu2 %vm688_vm0, %v20414_v47  ;;  %17357 = vmatmul.msk.bf16.gmra.mxu0 %vm688_vm0, %v20376_v49  ;;  %v20437_v47 = vld [vmem:[%s21099_s25 + $0x230] sm:$0xff] }
  0xa3   : > { %17414 = vmatmul.msk.bf16.gmra.mxu3 %vm688_vm0, %v20433_v63 }
  0xa5   : > { %v1112_v52 = vpop.f32.mrf.mxu2 }
  0xa6   : > { %1359 = vst [vmem:[%s21170_s4 + $0x270] sm:$0xff] %v1112_v52  ;;  %v1019_v53 = vpop.f32.mrf.mxu1  ;;  %v1207_v2 = vpop.f32.mrf.mxu3 }
  0xa7   : > { %1322 = vst [vmem:[%s21170_s4 + $0x148] sm:$0xff] %v1019_v53  ;;  %v924_v55 = vpop.f32.mrf.mxu0  ;;  %v20401_v53 = vld [vmem:[%s21099_s25 + $0x110] sm:$0xff] }
  0xa8   : > { %1284 = vst [vmem:[%s21170_s4 + $0x18] sm:$0xff] %v924_v55 }
  0xa9   : > { %1397 = vst [vmem:[%s21170_s4 + $0x3a0] sm:$0xff] %v1207_v2  ;;  %v20421_v2 = vld [vmem:[%s21099_s25 + $0x1b0] sm:$0xff] }
  0xad   : > { %v1114_v56 = vpop.f32.mrf.mxu2 }
  0xae   : > { %1360 = vst [vmem:[%s21170_s4 + $0x278] sm:$0xff] %v1114_v56  ;;  %v1022_v59 = vpop.f32.mrf.mxu1  ;;  %v1209_v9 = vpop.f32.mrf.mxu3  ;;  %v20382_v56 = vld [vmem:[%s21099_s25 + $0x78] sm:$0xff] }
  0xaf   : > { %1323 = vst [vmem:[%s21170_s4 + $0x150] sm:$0xff] %v1022_v59  ;;  %v927_v62 = vpop.f32.mrf.mxu0  ;;  %v20438_v59 = vld [vmem:[%s21099_s25 + $0x238] sm:$0xff] }
  0xb0   : > { %1285 = vst [vmem:[%s21170_s4 + $0x20] sm:$0xff] %v927_v62 }
  0xb1   : > { %17377 = vmatmul.msk.bf16.gmra.mxu1 %vm688_vm0, %v20396_v57  ;;  %1398 = vst [vmem:[%s21170_s4 + $0x3a8] sm:$0xff] %v1209_v9 }
  0xb2   : > { %17396 = vmatmul.msk.bf16.gmra.mxu2 %vm688_vm0, %v20415_v58  ;;  %17358 = vmatmul.msk.bf16.gmra.mxu0 %vm688_vm0, %v20377_v60 }
  0xb3   : > { %17415 = vmatmul.msk.bf16.gmra.mxu3 %vm688_vm0, %v20434_v11 }
  0xb5   : > { %v1117_v0 = vpop.f32.mrf.mxu2 }
  0xb6   : > { %1361 = vst [vmem:[%s21170_s4 + $0x280] sm:$0xff] %v1117_v0  ;;  %v1024_v1 = vpop.f32.mrf.mxu1  ;;  %v1212_v14 = vpop.f32.mrf.mxu3 }
  0xb7   : > { %1324 = vst [vmem:[%s21170_s4 + $0x158] sm:$0xff] %v1024_v1  ;;  %v929_v3 = vpop.f32.mrf.mxu0  ;;  %v20402_v1 = vld [vmem:[%s21099_s25 + $0x118] sm:$0xff] }
  0xb8   : > { %1286 = vst [vmem:[%s21170_s4 + $0x28] sm:$0xff] %v929_v3 }
  0xb9   : > { %1399 = vst [vmem:[%s21170_s4 + $0x3b0] sm:$0xff] %v1212_v14 }
  0xbd   : > { %v1119_v4 = vpop.f32.mrf.mxu2 }
  0xbe   : > { %1362 = vst [vmem:[%s21170_s4 + $0x288] sm:$0xff] %v1119_v4  ;;  %v1027_v7 = vpop.f32.mrf.mxu1  ;;  %v1214_v21 = vpop.f32.mrf.mxu3  ;;  %v20383_v4 = vld [vmem:[%s21099_s25 + $0x80] sm:$0xff] }
  0xbf   : > { %1325 = vst [vmem:[%s21170_s4 + $0x160] sm:$0xff] %v1027_v7  ;;  %v932_v10 = vpop.f32.mrf.mxu0 }
  0xc0   : > { %1287 = vst [vmem:[%s21170_s4 + $0x30] sm:$0xff] %v932_v10 }
  0xc1   : > { %17378 = vmatmul.msk.bf16.gmra.mxu1 %vm688_vm0, %v20397_v5  ;;  %1400 = vst [vmem:[%s21170_s4 + $0x3b8] sm:$0xff] %v1214_v21 }
  0xc2   : > { %17397 = vmatmul.msk.bf16.gmra.mxu2 %vm688_vm0, %v20416_v6  ;;  %17359 = vmatmul.msk.bf16.gmra.mxu0 %vm688_vm0, %v20378_v8  ;;  %v316_v6 = vld [vmem:[%s21099_s25 + $0x240] sm:$0x3] }
  0xc3   : > { %17416 = vmatmul.msk.bf16.gmra.mxu3 %vm688_vm0, %v20435_v23  ;;  %v608_v8 = vunpack.c.l.b16 %v316_v6 }
  0xc5   : > { %v1122_v12 = vpop.f32.mrf.mxu2  ;;  %v681_v9 = vpack.c.b16 %v608_v8, %v608_v8 }
  0xc6   : > { %1363 = vst [vmem:[%s21170_s4 + $0x290] sm:$0xff] %v1122_v12  ;;  %v1029_v13 = vpop.f32.mrf.mxu1  ;;  %v1217_v26 = vpop.f32.mrf.mxu3 }
  0xc7   : > { %1326 = vst [vmem:[%s21170_s4 + $0x168] sm:$0xff] %v1029_v13  ;;  %v934_v15 = vpop.f32.mrf.mxu0 }
  0xc8   : > { %1288 = vst [vmem:[%s21170_s4 + $0x38] sm:$0xff] %v934_v15  ;;  %v20403_v15 = vld [vmem:[%s21099_s25 + $0x120] sm:$0xff] }
  0xc9   : > { %1401 = vst [vmem:[%s21170_s4 + $0x3c0] sm:$0xff] %v1217_v26  ;;  %v20804_v26 = vld [vmem:[%s25807_s1 + $0x28] sm:$0xff] }
  0xca   : > { %10168 = vmatpush.bf16.msra.mxu1 %v20804_v26 }
  0xcd   : > { %v1124_v16 = vpop.f32.mrf.mxu2 }
  0xce   : > { %1364 = vst [vmem:[%s21170_s4 + $0x298] sm:$0xff] %v1124_v16  ;;  %v1032_v19 = vpop.f32.mrf.mxu1  ;;  %v1219_v33 = vpop.f32.mrf.mxu3  ;;  %v20422_v16 = vld [vmem:[%s21099_s25 + $0x1b8] sm:$0xff] }
  0xcf   : > { %1327 = vst [vmem:[%s21170_s4 + $0x170] sm:$0xff] %v1032_v19  ;;  %v937_v22 = vpop.f32.mrf.mxu0 }
  0xd0   : > { %1289 = vst [vmem:[%s21170_s4 + $0x40] sm:$0xff] %v937_v22  ;;  %v20587_v22 = vld [vmem:[%s21099_s25 + $0x18] sm:$0xff] }
  0xd1   : > { %17379 = vmatmul.msk.bf16.gmra.mxu1 %vm688_vm0, %v20398_v17  ;;  %1402 = vst [vmem:[%s21170_s4 + $0x3c8] sm:$0xff] %v1219_v33  ;;  %v18159_v17 = vld [vmem:[%s21099_s25 + $0x10] sm:$0xe] }
  0xd2   : > { %17398 = vmatmul.msk.bf16.gmra.mxu2 %vm688_vm0, %v20417_v18  ;;  %17360 = vmatmul.msk.bf16.gmra.mxu0 %vm688_vm0, %v20379_v20  ;;  %v20586_v18 = vld [vmem:[%s21099_s25 + $0x10] sm:$0xf0]  ;;  %v20384_v20 = vld [vmem:[%s21099_s25 + $0x88] sm:$0xff] }
  0xd3   : > { %17417 = vmatmul.msk.bf16.gmra.mxu3 %vm688_vm0, %v20436_v35  ;;  %v18526_v35 = vld [vmem:[%s21099_s25 + $0x10] sm:$0xe] }
  0xd5   : > { %v1127_v24 = vpop.f32.mrf.mxu2 }
  0xd6   : > { %1365 = vst [vmem:[%s21170_s4 + $0x2a0] sm:$0xff] %v1127_v24  ;;  %v1034_v25 = vpop.f32.mrf.mxu1  ;;  %v1222_v38 = vpop.f32.mrf.mxu3  ;;  %v18160_v24 = vor.u32 %v20586_v18, %v18159_v17  ;;  %v20589_v18 = vld [vmem:[%s21099_s25 + $0x28] sm:$0xff] }
  0xd7   : > { %1328 = vst [vmem:[%s21170_s4 + $0x178] sm:$0xff] %v1034_v25  ;;  %v939_v27 = vpop.f32.mrf.mxu0  ;;  %v5901_v25 = vrot.slane %v20587_v22, 1  ;;  %v20661_v22 = vld [vmem:[%s21099_s25 + $0x20] sm:$0xff] }
  0xd8   : > { %1290 = vst [vmem:[%s21170_s4 + $0x48] sm:$0xff] %v939_v27  ;;  %v5900_v27 = vrot.slane %v18160_v24, 1  ;;  %v20442_v24 = vld [vmem:[%s21099_s25 + $0x10] sm:$0xff]  ;;  %v7608_v26 = vshrl.u32 %v20661_v22, 16 }
  0xd9   : > { %1403 = vst [vmem:[%s21170_s4 + $0x3d0] sm:$0xff] %v1222_v38  ;;  %v20423_v38 = vld [vmem:[%s21099_s25 + $0x1c0] sm:$0xff] }
  0xdd   : > { %v1129_v28 = vpop.f32.mrf.mxu2 }
  0xde   : > { %1366 = vst [vmem:[%s21170_s4 + $0x2a8] sm:$0xff] %v1129_v28  ;;  %v1037_v31 = vpop.f32.mrf.mxu1  ;;  %v1224_v45 = vpop.f32.mrf.mxu3  ;;  %v5902_v28 = vsel %vm4210_vm1, %v5900_v27, %v5901_v25  ;;  %v7611_v27 = vshll.u32 %v20661_v22, 16  ;;  %v20517_v22 = vld [vmem:[%s21099_s25 + $0x20] sm:$0xff] }
  0xdf   : > { %1329 = vst [vmem:[%s21170_s4 + $0x180] sm:$0xff] %v1037_v31  ;;  %v942_v34 = vpop.f32.mrf.mxu0 }
  0xe0   : > { %1291 = vst [vmem:[%s21170_s4 + $0x50] sm:$0xff] %v942_v34 }
  0xe1   : > { %17380 = vmatmul.msk.bf16.gmra.mxu1 %vm688_vm0, %v20399_v29  ;;  %1404 = vst [vmem:[%s21170_s4 + $0x3d8] sm:$0xff] %v1224_v45  ;;  %v20951_v45 = vld [vmem:[%s25807_s1 + $0x38] sm:$0xff] }
  0xe2   : > { %17399 = vmatmul.msk.bf16.gmra.mxu2 %vm688_vm0, %v20418_v30  ;;  %17361 = vmatmul.msk.bf16.gmra.mxu0 %vm688_vm0, %v20380_v32  ;;  %v20877_v30 = vld [vmem:[%s25807_s1 + $0x30] sm:$0xff] }
  0xe3   : > { %17418 = vmatmul.msk.bf16.gmra.mxu3 %vm688_vm0, %v20437_v47  ;;  %11857 = vmatpush.bf16.msra.mxu2 %v20877_v30 }
  0xe4   : > { %14061 = vmatpush.bf16.msra.mxu3 %v20951_v45 }
  0xe5   : > { %v1132_v36 = vpop.f32.mrf.mxu2 }
  0xe6   : > { %1367 = vst [vmem:[%s21170_s4 + $0x2b0] sm:$0xff] %v1132_v36  ;;  %v1039_v37 = vpop.f32.mrf.mxu1  ;;  %v1227_v50 = vpop.f32.mrf.mxu3  ;;  %v20659_v36 = vld [vmem:[%s21099_s25 + $0x10] sm:$0xf0] }
  0xe7   : > { %1330 = vst [vmem:[%s21170_s4 + $0x188] sm:$0xff] %v1039_v37  ;;  %v944_v39 = vpop.f32.mrf.mxu0  ;;  %v20404_v37 = vld [vmem:[%s21099_s25 + $0x128] sm:$0xff]  ;;  %v18527_v47 = vor.u32 %v20659_v36, %v18526_v35  ;;  %v7610_v35 = vrot.slane %v7608_v26, 1  ;;  %v7613_v36 = vrot.slane %v7611_v27, 2 }
  0xe8   : > { %1292 = vst [vmem:[%s21170_s4 + $0x58] sm:$0xff] %v944_v39 }
  0xe9   : > { %1405 = vst [vmem:[%s21170_s4 + $0x3e0] sm:$0xff] %v1227_v50 }
  0xed   : > { %v1134_v40 = vpop.f32.mrf.mxu2 }
  0xee   : > { %1368 = vst [vmem:[%s21170_s4 + $0x2b8] sm:$0xff] %v1134_v40  ;;  %v1042_v43 = vpop.f32.mrf.mxu1  ;;  %v1229_v57 = vpop.f32.mrf.mxu3  ;;  %v20440_v40 = vld [vmem:[%s21099_s25] sm:$0xff] }
  0xef   : > { %1331 = vst [vmem:[%s21170_s4 + $0x190] sm:$0xff] %v1042_v43  ;;  %v947_v46 = vpop.f32.mrf.mxu0  ;;  %v21345_v43 = vld [vmem:[%s21099_s25 + $0x20] sm:$0xff]  ;;  %v2086_v50 = vshll.u32 %v20440_v40, 16 }
  0xf0   : > { %1293 = vst [vmem:[%s21170_s4 + $0x60] sm:$0xff] %v947_v46  ;;  %v20660_v46 = vld [vmem:[%s21099_s25 + $0x18] sm:$0xff] }
  0xf1   : > { %17381 = vmatmul.msk.bf16.gmra.mxu1 %vm688_vm0, %v20400_v41  ;;  %1406 = vst [vmem:[%s21170_s4 + $0x3e8] sm:$0xff] %v1229_v57  ;;  %v20385_v41 = vld [vmem:[%s21099_s25 + $0x90] sm:$0xff]  ;;  %v7602_v57 = vshll.u32 %v20660_v46, 16 }
  0xf2   : > { %17400 = vmatmul.msk.bf16.gmra.mxu2 %vm688_vm0, %v20419_v42  ;;  %17362 = vmatmul.msk.bf16.gmra.mxu0 %vm688_vm0, %v20381_v44 }
  0xf3   : > { %17419 = vmatmul.msk.bf16.gmra.mxu3 %vm688_vm0, %v20438_v59  ;;  %v7604_v6 = vrot.slane %v7602_v57, 2  ;;  %v2103_v57 = vshrl.u32 %v20442_v24, 16 }
  0xf5   : > { %v1137_v48 = vpop.f32.mrf.mxu2 }
  0xf6   : > { %1369 = vst [vmem:[%s21170_s4 + $0x2c0] sm:$0xff] %v1137_v48  ;;  %v1044_v49 = vpop.f32.mrf.mxu1  ;;  %v1232_v62 = vpop.f32.mrf.mxu3  ;;  %v5903_v48 = vrot.slane %v21345_v43, 1 }
  0xf7   : > { %1332 = vst [vmem:[%s21170_s4 + $0x198] sm:$0xff] %v1044_v49  ;;  %v949_v51 = vpop.f32.mrf.mxu0  ;;  %v21358_v49 = vld [vmem:[%s21099_s25 + $0x8] sm:$0xff] }
  0xf8   : > { %1294 = vst [vmem:[%s21170_s4 + $0x68] sm:$0xff] %v949_v51  ;;  %v17792_v51 = vld [vmem:[%s21099_s25] sm:$0xe]  ;;  %v2095_v30 = vshrl.u32 %v21358_v49, 16 }
  0xf9   : > { %1407 = vst [vmem:[%s21170_s4 + $0x3f0] sm:$0xff] %v1232_v62  ;;  %v2091_v62 = vshll.u32 %v21358_v49, 16  ;;  %v20662_v49 = vld [vmem:[%s21099_s25 + $0x28] sm:$0xff] }
  0xfb   : > { %v2093_v8 = vrot.slane %v2091_v62, 1 }
  0xfd   : > { %v1139_v52 = vpop.f32.mrf.mxu2 }
  0xfe   : > { %1370 = vst [vmem:[%s21170_s4 + $0x2c8] sm:$0xff] %v1139_v52  ;;  %v1047_v55 = vpop.f32.mrf.mxu1  ;;  %v1234_v5 = vpop.f32.mrf.mxu3  ;;  %v5904_v52 = vsel %vm4210_vm1, %v5901_v25, %v5903_v48 }
  0xff   : > { %1333 = vst [vmem:[%s21170_s4 + $0x1a0] sm:$0xff] %v1047_v55  ;;  %v952_v58 = vpop.f32.mrf.mxu0  ;;  %v7594_v55 = vshll.u32 %v18527_v47, 16 }
 0x100   : > { %1295 = vst [vmem:[%s21170_s4 + $0x70] sm:$0xff] %v952_v58 }
 0x101   : > { %17382 = vmatmul.msk.bf16.gmra.mxu1 %vm688_vm0, %v20401_v53  ;;  %1408 = vst [vmem:[%s21170_s4 + $0x3f8] sm:$0xff] %v1234_v5  ;;  %v20513_v53 = vld [vmem:[%s21099_s25] sm:$0xf0] }
 0x102   : > { %17401 = vmatmul.msk.bf16.gmra.mxu2 %vm688_vm0, %v20420_v54  ;;  %17363 = vmatmul.msk.bf16.gmra.mxu0 %vm688_vm0, %v20382_v56  ;;  %v7591_v54 = vshrl.u32 %v18527_v47, 16  ;;  %v7599_v56 = vshrl.u32 %v20660_v46, 16  ;;  %v20590_v46 = vld [vmem:[%s21099_s25 + $0x30] sm:$0xff] }
 0x103   : > { %17420 = vmatmul.msk.bf16.gmra.mxu3 %vm688_vm0, %v681_v9 }
 0x104   : > { %v7601_v5 = vrot.slane %v7599_v56, 1 }
 0x105   : > { %v1142_v60 = vpop.f32.mrf.mxu2 }
 0x106   : > { %1371 = vst [vmem:[%s21170_s4 + $0x2d0] sm:$0xff] %v1142_v60  ;;  %v1049_v61 = vpop.f32.mrf.mxu1  ;;  %v1237_v12 = vpop.f32.mrf.mxu3  ;;  %v2084_v60 = vshrl.u32 %v20440_v40, 16  ;;  %v7614_v40 = vor.u32 %v7613_v36, %v7610_v35  ;;  %v20592_v36 = vld [vmem:[%s21099_s25 + $0x40] sm:$0xff] }
 0x107   : > { %1334 = vst [vmem:[%s21170_s4 + $0x1a8] sm:$0xff] %v1049_v61  ;;  %v954_v63 = vpop.f32.mrf.mxu0  ;;  %v2088_v61 = vrot.slane %v2086_v50, 1  ;;  %v5907_v50 = vrot.slane %v20590_v46, 1 }
 0x108   : > { %1296 = vst [vmem:[%s21170_s4 + $0x78] sm:$0xff] %v954_v63  ;;  %v21368_v63 = vld [vmem:[%s21099_s25 + $0x8] sm:$0xff] }
 0x109   : > { %1409 = vst [vmem:[%s21170_s4 + $0x400] sm:$0xff] %v1237_v12  ;;  %v7605_v12 = vor.u32 %v7604_v6, %v7601_v5 }
 0x10d   : > { %v1144_v0 = vpop.f32.mrf.mxu2 }
 0x10e   : > { %1372 = vst [vmem:[%s21170_s4 + $0x2d8] sm:$0xff] %v1144_v0  ;;  %v1052_v3 = vpop.f32.mrf.mxu1  ;;  %v1239_v21 = vpop.f32.mrf.mxu3  ;;  %v17793_v0 = vor.u32 %v20513_v53, %v17792_v51  ;;  %v20443_v51 = vld [vmem:[%s21099_s25 + $0x18] sm:$0xff]  ;;  %v7617_v53 = vshrl.u32 %v20662_v49, 16 }
 0x10f   : > { %1335 = vst [vmem:[%s21170_s4 + $0x1b0] sm:$0xff] %v1052_v3  ;;  %v957_v7 = vpop.f32.mrf.mxu0  ;;  %v7593_v3 = vrot.slane %v7591_v54, 1  ;;  %v7620_v54 = vshll.u32 %v20662_v49, 16  ;;  %v20518_v49 = vld [vmem:[%s21099_s25 + $0x28] sm:$0xff] }
 0x110   : > { %1297 = vst [vmem:[%s21170_s4 + $0x80] sm:$0xff] %v957_v7  ;;  %v2089_v7 = vor.u32 %v2088_v61, %v2084_v60  ;;  %v4211_v9 = vrot.slane %v17793_v0, 1  ;;  %v7619_v62 = vrot.slane %v7617_v53, 1 }
 0x111   : > { %17383 = vmatmul.msk.bf16.gmra.mxu1 %vm688_vm0, %v20402_v1  ;;  %1410 = vst [vmem:[%s21170_s4 + $0x408] sm:$0xff] %v1239_v21  ;;  %v21025_v21 = vld [vmem:[%s25807_s1 + $0x40] sm:$0xff] }
 0x112   : > { %17402 = vmatmul.msk.bf16.gmra.mxu2 %vm688_vm0, %v20421_v2  ;;  %17364 = vmatmul.msk.bf16.gmra.mxu0 %vm688_vm0, %v20383_v4  ;;  %v7596_v4 = vrot.slane %v7594_v55, 2 }
 0x113   : > { %18449 = vmatmul.msk.bf16.vlgmr.msrb.gmra.mxu3 %vm688_vm0, %v5902_v28  ;;  %15754 = vmatpush.bf16.msra.mxu0 %v21025_v21 }
 0x115   : > { %v1147_v10 = vpop.f32.mrf.mxu2 }
 0x116   : > { %1373 = vst [vmem:[%s21170_s4 + $0x2e0] sm:$0xff] %v1147_v10  ;;  %v1054_v11 = vpop.f32.mrf.mxu1  ;;  %v1242_v32 = vpop.f32.mrf.mxu3  ;;  %v4212_v10 = vrot.slane %v21368_v63, 1  ;;  %v7622_v63 = vrot.slane %v7620_v54, 2 }
 0x117   : > { %1336 = vst [vmem:[%s21170_s4 + $0x1b8] sm:$0xff] %v1054_v11  ;;  %v959_v13 = vpop.f32.mrf.mxu0  ;;  %v7597_v11 = vor.u32 %v7596_v4, %v7593_v3 }
 0x118   : > { %1298 = vst [vmem:[%s21170_s4 + $0x88] sm:$0xff] %v959_v13  ;;  %v7623_v3 = vor.u32 %v7622_v63, %v7619_v62  ;;  %v20593_v63 = vld [vmem:[%s21099_s25 + $0x48] sm:$0xff] }
 0x119   : > { %1411 = vst [vmem:[%s21170_s4 + $0x410] sm:$0xff] %v1242_v32  ;;  %v20515_v32 = vld [vmem:[%s21099_s25 + $0x10] sm:$0xff] }
 0x11d   : > { %v1149_v14 = vpop.f32.mrf.mxu2 }
 0x11e   : > { %1374 = vst [vmem:[%s21170_s4 + $0x2e8] sm:$0xff] %v1149_v14  ;;  %v1057_v19 = vpop.f32.mrf.mxu1  ;;  %v1244_v42 = vpop.f32.mrf.mxu3 }
 0x11f   : > { %1337 = vst [vmem:[%s21170_s4 + $0x1c0] sm:$0xff] %v1057_v19  ;;  %v962_v23 = vpop.f32.mrf.mxu0 }
 0x120   : > { %1299 = vst [vmem:[%s21170_s4 + $0x90] sm:$0xff] %v962_v23  ;;  %v5905_v23 = vrot.slane %v20589_v18, 1 }
 0x121   : > { %17384 = vmatmul.msk.bf16.gmra.mxu1 %vm688_vm0, %v20403_v15  ;;  %1412 = vst [vmem:[%s21170_s4 + $0x418] sm:$0xff] %v1244_v42  ;;  %v2094_v15 = vsel %vm2082_vm2, %v2089_v7, %v2093_v8 }
 0x122   : > { %17403 = vmatmul.msk.bf16.gmra.mxu2 %vm688_vm0, %v20422_v16  ;;  %17365 = vmatmul.msk.bf16.gmra.mxu0 %vm688_vm0, %v20384_v20  ;;  %v4213_v16 = vsel %vm4210_vm1, %v4211_v9, %v4212_v10  ;;  %v7606_v20 = vsel %vm7589_vm3, %v7597_v11, %v7605_v12  ;;  %v5906_v25 = vsel %vm4210_vm1, %v5903_v48, %v5905_v23  ;;  %v20591_v9 = vld [vmem:[%s21099_s25 + $0x38] sm:$0xff] }
 0x123   : > { %18450 = vmatmul.msk.bf16.gmra.mxu3 %vm688_vm0, %v5904_v52  ;;  %v7615_v48 = vsel %vm7589_vm3, %v7605_v12, %v7614_v40  ;;  %v5908_v52 = vsel %vm4210_vm1, %v5905_v23, %v5907_v50  ;;  %v7624_v11 = vsel %vm7589_vm3, %v7614_v40, %v7623_v3  ;;  %v20663_v12 = vld [vmem:[%s21099_s25 + $0x30] sm:$0xff]  ;;  %v5911_v40 = vrot.slane %v20592_v36, 1 }
 0x125   : > { %v1152_v29 = vpop.f32.mrf.mxu2 }
 0x126   : > { %1375 = vst [vmem:[%s21170_s4 + $0x2f0] sm:$0xff] %v1152_v29  ;;  %v1059_v31 = vpop.f32.mrf.mxu1  ;;  %v1247_v1 = vpop.f32.mrf.mxu3 }
 0x127   : > { %1338 = vst [vmem:[%s21170_s4 + $0x1c8] sm:$0xff] %v1059_v31  ;;  %v964_v33 = vpop.f32.mrf.mxu0  ;;  %v2099_v31 = vshll.u32 %v20442_v24, 16 }
 0x128   : > { %1300 = vst [vmem:[%s21170_s4 + $0x98] sm:$0xff] %v964_v33 }
 0x129   : > { %1413 = vst [vmem:[%s21170_s4 + $0x420] sm:$0xff] %v1247_v1 }
 0x12d   : > { %v1154_v34 = vpop.f32.mrf.mxu2 }
 0x12e   : > { %1376 = vst [vmem:[%s21170_s4 + $0x2f8] sm:$0xff] %v1154_v34  ;;  %v1062_v39 = vpop.f32.mrf.mxu1  ;;  %v1249_v17 = vpop.f32.mrf.mxu3 }
 0x12f   : > { %1339 = vst [vmem:[%s21170_s4 + $0x1d0] sm:$0xff] %v1062_v39  ;;  %v967_v44 = vpop.f32.mrf.mxu0  ;;  %v4214_v39 = vrot.slane %v20515_v32, 1 }
 0x130   : > { %1301 = vst [vmem:[%s21170_s4 + $0xa0] sm:$0xff] %v967_v44 }
 0x131   : > { %17385 = vmatmul.msk.bf16.gmra.mxu1 %vm688_vm0, %v20404_v37  ;;  %1414 = vst [vmem:[%s21170_s4 + $0x428] sm:$0xff] %v1249_v17  ;;  %v2097_v37 = vor.u32 %v2095_v30, %v2093_v8  ;;  %v4215_v44 = vsel %vm4210_vm1, %v4212_v10, %v4214_v39  ;;  %v7629_v17 = vshll.u32 %v20663_v12, 16 }
 0x132   : > { %17404 = vmatmul.msk.bf16.gmra.mxu2 %vm688_vm0, %v20423_v38  ;;  %17366 = vmatmul.msk.bf16.gmra.mxu0 %vm688_vm0, %v20385_v41  ;;  %v2101_v38 = vrot.slane %v2099_v31, 1 }
 0x133   : > { %18451 = vmatmul.msk.bf16.gmra.mxu3 %vm688_vm0, %v5906_v25  ;;  %v7631_v26 = vrot.slane %v7629_v17, 2 }
 0x134   : > { %v2102_v43 = vsel %vm2082_vm2, %v2097_v37, %v2101_v38  ;;  %v2105_v0 = vor.u32 %v2103_v57, %v2101_v38 }
 0x135   : > { %v1157_v58 = vpop.f32.mrf.mxu2 }
 0x136   : > { %1377 = vst [vmem:[%s21170_s4 + $0x300] sm:$0xff] %v1157_v58  ;;  %v1064_v59 = vpop.f32.mrf.mxu1  ;;  %v1252_v33 = vpop.f32.mrf.mxu3  ;;  %v2107_v58 = vshll.u32 %v20443_v51, 16 }
 0x137   : > { %1340 = vst [vmem:[%s21170_s4 + $0x1d8] sm:$0xff] %v1064_v59  ;;  %v969_v2 = vpop.f32.mrf.mxu0  ;;  %v20516_v59 = vld [vmem:[%s21099_s25 + $0x18] sm:$0xff] }
 0x138   : > { %1302 = vst [vmem:[%s21170_s4 + $0xa8] sm:$0xff] %v969_v2  ;;  %v2109_v1 = vrot.slane %v2107_v58, 1  ;;  %v4216_v2 = vrot.slane %v20516_v59, 1 }
 0x139   : > { %1415 = vst [vmem:[%s21170_s4 + $0x430] sm:$0xff] %v1252_v33 }
 0x13a   : > { %v2110_v6 = vsel %vm2082_vm2, %v2105_v0, %v2109_v1  ;;  %v4217_v7 = vsel %vm4210_vm1, %v4214_v39, %v4216_v2  ;;  %v20664_v39 = vld [vmem:[%s21099_s25 + $0x38] sm:$0xff] }
 0x13d   : > { %v1159_v13 = vpop.f32.mrf.mxu2 }
 0x13e   : > { %1378 = vst [vmem:[%s21170_s4 + $0x308] sm:$0xff] %v1159_v13  ;;  %v1067_v14 = vpop.f32.mrf.mxu1  ;;  %v1254_v45 = vpop.f32.mrf.mxu3  ;;  %v5909_v13 = vrot.slane %v20591_v9, 1 }
 0x13f   : > { %1341 = vst [vmem:[%s21170_s4 + $0x1e0] sm:$0xff] %v1067_v14  ;;  %v972_v19 = vpop.f32.mrf.mxu0  ;;  %v20444_v14 = vld [vmem:[%s21099_s25 + $0x20] sm:$0xff] }
 0x140   : > { %1303 = vst [vmem:[%s21170_s4 + $0xb0] sm:$0xff] %v972_v19  ;;  %v2115_v21 = vshll.u32 %v20444_v14, 16 }
 0x141   : > { %17715 = vmatmul.msk.bf16.vlgmr.msrb.gmra.mxu1 %vm688_vm0, %v2094_v15  ;;  %1416 = vst [vmem:[%s21170_s4 + $0x438] sm:$0xff] %v1254_v45  ;;  %v5910_v15 = vsel %vm4210_vm1, %v5907_v50, %v5909_v13 }
 0x142   : > { %18082 = vmatmul.msk.bf16.vlgmr.msrb.gmra.mxu2 %vm688_vm0, %v4213_v16  ;;  %18816 = vmatmul.msk.bf16.vlgmr.msrb.gmra.mxu0 %vm688_vm0, %v7606_v20  ;;  %v7626_v16 = vshrl.u32 %v20663_v12, 16  ;;  %v2111_v20 = vshrl.u32 %v20443_v51, 16  ;;  %v20519_v12 = vld [vmem:[%s21099_s25 + $0x30] sm:$0xff] }
 0x143   : > { %18452 = vmatmul.msk.bf16.gmra.mxu3 %vm688_vm0, %v5908_v52 }
 0x144   : > { %v7628_v25 = vrot.slane %v7626_v16, 1  ;;  %v2113_v27 = vor.u32 %v2111_v20, %v2109_v1 }
 0x145   : > { %v1162_v28 = vpop.f32.mrf.mxu2 }
 0x146   : > { %1379 = vst [vmem:[%s21170_s4 + $0x310] sm:$0xff] %v1162_v28  ;;  %v1069_v29 = vpop.f32.mrf.mxu1  ;;  %v1257_v60 = vpop.f32.mrf.mxu3  ;;  %v2117_v28 = vrot.slane %v2115_v21, 1  ;;  %v7632_v30 = vor.u32 %v7631_v26, %v7628_v25  ;;  %v20594_v26 = vld [vmem:[%s21099_s25 + $0x50] sm:$0xff] }
 0x147   : > { %1342 = vst [vmem:[%s21170_s4 + $0x1e8] sm:$0xff] %v1069_v29  ;;  %v974_v34 = vpop.f32.mrf.mxu0  ;;  %v4218_v29 = vrot.slane %v20517_v22, 1 }
 0x148   : > { %1304 = vst [vmem:[%s21170_s4 + $0xb8] sm:$0xff] %v974_v34  ;;  %v2118_v33 = vsel %vm2082_vm2, %v2113_v27, %v2117_v28  ;;  %v7633_v38 = vsel %vm7589_vm3, %v7623_v3, %v7632_v30  ;;  %v5913_v3 = vrot.slane %v20593_v63, 1 }
 0x149   : > { %1417 = vst [vmem:[%s21170_s4 + $0x440] sm:$0xff] %v1257_v60  ;;  %v4219_v34 = vsel %vm4210_vm1, %v4216_v2, %v4218_v29  ;;  %v20665_v2 = vld [vmem:[%s21099_s25 + $0x40] sm:$0xff] }
 0x14d   : > { %v1164_v41 = vpop.f32.mrf.mxu2 }
 0x14e   : > { %1380 = vst [vmem:[%s21170_s4 + $0x318] sm:$0xff] %v1164_v41  ;;  %v1072_v42 = vpop.f32.mrf.mxu1  ;;  %v1259_v8 = vpop.f32.mrf.mxu3  ;;  %v20445_v41 = vld [vmem:[%s21099_s25 + $0x28] sm:$0xff] }
 0x14f   : > { %1343 = vst [vmem:[%s21170_s4 + $0x1f0] sm:$0xff] %v1072_v42  ;;  %v977_v47 = vpop.f32.mrf.mxu0  ;;  %v5912_v42 = vsel %vm4210_vm1, %v5909_v13, %v5911_v40 }
 0x150   : > { %1305 = vst [vmem:[%s21170_s4 + $0xc0] sm:$0xff] %v977_v47  ;;  %v2119_v47 = vshrl.u32 %v20444_v14, 16 }
 0x151   : > { %17716 = vmatmul.msk.bf16.gmra.mxu1 %vm688_vm0, %v2102_v43  ;;  %1418 = vst [vmem:[%s21170_s4 + $0x448] sm:$0xff] %v1259_v8  ;;  %v7635_v43 = vshrl.u32 %v20664_v39, 16 }
 0x152   : > { %18083 = vmatmul.msk.bf16.gmra.mxu2 %vm688_vm0, %v4215_v44  ;;  %18817 = vmatmul.msk.bf16.gmra.mxu0 %vm688_vm0, %v7615_v48  ;;  %v7638_v44 = vshll.u32 %v20664_v39, 16  ;;  %v2123_v48 = vshll.u32 %v20445_v41, 16  ;;  %v2121_v54 = vor.u32 %v2119_v47, %v2117_v28  ;;  %v20520_v39 = vld [vmem:[%s21099_s25 + $0x38] sm:$0xff] }
 0x153   : > { %18453 = vmatmul.msk.bf16.gmra.mxu3 %vm688_vm0, %v5910_v15  ;;  %v7637_v52 = vrot.slane %v7635_v43, 1 }
 0x154   : > { %v7640_v53 = vrot.slane %v7638_v44, 2 }
 0x155   : > { %v1167_v55 = vpop.f32.mrf.mxu2 }
 0x156   : > { %1381 = vst [vmem:[%s21170_s4 + $0x320] sm:$0xff] %v1167_v55  ;;  %v1074_v56 = vpop.f32.mrf.mxu1  ;;  %v1262_v23 = vpop.f32.mrf.mxu3  ;;  %v2125_v55 = vrot.slane %v2123_v48, 1  ;;  %v7641_v57 = vor.u32 %v7640_v53, %v7637_v52  ;;  %v20595_v53 = vld [vmem:[%s21099_s25 + $0x58] sm:$0xff] }
 0x157   : > { %1344 = vst [vmem:[%s21170_s4 + $0x1f8] sm:$0xff] %v1074_v56  ;;  %v979_v61 = vpop.f32.mrf.mxu0  ;;  %v4220_v56 = vrot.slane %v20518_v49, 1 }
 0x158   : > { %1306 = vst [vmem:[%s21170_s4 + $0xc8] sm:$0xff] %v979_v61  ;;  %v2126_v60 = vsel %vm2082_vm2, %v2121_v54, %v2125_v55  ;;  %v7642_v1 = vsel %vm7589_vm3, %v7632_v30, %v7641_v57  ;;  %v5915_v30 = vrot.slane %v20594_v26, 1 }
 0x159   : > { %1419 = vst [vmem:[%s21170_s4 + $0x450] sm:$0xff] %v1262_v23  ;;  %v4221_v61 = vsel %vm4210_vm1, %v4218_v29, %v4220_v56  ;;  %v20666_v29 = vld [vmem:[%s21099_s25 + $0x48] sm:$0xff] }
 0x15d   : > { %v1169_v4 = vpop.f32.mrf.mxu2 }
 0x15e   : > { %1382 = vst [vmem:[%s21170_s4 + $0x328] sm:$0xff] %v1169_v4  ;;  %v1077_v5 = vpop.f32.mrf.mxu1  ;;  %v1264_v35 = vpop.f32.mrf.mxu3  ;;  %v20446_v4 = vld [vmem:[%s21099_s25 + $0x30] sm:$0xff] }
 0x15f   : > { %1345 = vst [vmem:[%s21170_s4 + $0x200] sm:$0xff] %v1077_v5  ;;  %v982_v10 = vpop.f32.mrf.mxu0  ;;  %v5914_v5 = vsel %vm4210_vm1, %v5911_v40, %v5913_v3 }
 0x160   : > { %1307 = vst [vmem:[%s21170_s4 + $0xd0] sm:$0xff] %v982_v10  ;;  %v2127_v10 = vshrl.u32 %v20445_v41, 16 }
 0x161   : > { %17717 = vmatmul.msk.bf16.gmra.mxu1 %vm688_vm0, %v2110_v6  ;;  %1420 = vst [vmem:[%s21170_s4 + $0x458] sm:$0xff] %v1264_v35  ;;  %v7644_v6 = vshrl.u32 %v20665_v2, 16 }
 0x162   : > { %18084 = vmatmul.msk.bf16.gmra.mxu2 %vm688_vm0, %v4217_v7  ;;  %18818 = vmatmul.msk.bf16.gmra.mxu0 %vm688_vm0, %v7624_v11  ;;  %v7647_v7 = vshll.u32 %v20665_v2, 16  ;;  %v2131_v11 = vshll.u32 %v20446_v4, 16  ;;  %v2129_v17 = vor.u32 %v2127_v10, %v2125_v55  ;;  %v20521_v2 = vld [vmem:[%s21099_s25 + $0x40] sm:$0xff] }
 0x163   : > { %18454 = vmatmul.msk.bf16.gmra.mxu3 %vm688_vm0, %v5912_v42  ;;  %v7646_v15 = vrot.slane %v7644_v6, 1 }
 0x164   : > { %v7649_v16 = vrot.slane %v7647_v7, 2 }
 0x165   : > { %v1172_v18 = vpop.f32.mrf.mxu2 }
 0x166   : > { %1383 = vst [vmem:[%s21170_s4 + $0x330] sm:$0xff] %v1172_v18  ;;  %v1079_v19 = vpop.f32.mrf.mxu1  ;;  %v1267_v50 = vpop.f32.mrf.mxu3  ;;  %v2133_v18 = vrot.slane %v2131_v11, 1  ;;  %v7650_v20 = vor.u32 %v7649_v16, %v7646_v15  ;;  %v20596_v15 = vld [vmem:[%s21099_s25 + $0x60] sm:$0xff] }
 0x167   : > { %1346 = vst [vmem:[%s21170_s4 + $0x208] sm:$0xff] %v1079_v19  ;;  %v984_v24 = vpop.f32.mrf.mxu0  ;;  %v4222_v19 = vrot.slane %v20519_v12, 1 }
 0x168   : > { %1308 = vst [vmem:[%s21170_s4 + $0xd8] sm:$0xff] %v984_v24  ;;  %v2134_v23 = vsel %vm2082_vm2, %v2129_v17, %v2133_v18  ;;  %v7651_v28 = vsel %vm7589_vm3, %v7641_v57, %v7650_v20  ;;  %v5917_v57 = vrot.slane %v20595_v53, 1 }
 0x169   : > { %1421 = vst [vmem:[%s21170_s4 + $0x460] sm:$0xff] %v1267_v50  ;;  %v4223_v24 = vsel %vm4210_vm1, %v4220_v56, %v4222_v19  ;;  %v20667_v56 = vld [vmem:[%s21099_s25 + $0x50] sm:$0xff] }
 0x16d   : > { %v1174_v31 = vpop.f32.mrf.mxu2 }
 0x16e   : > { %1384 = vst [vmem:[%s21170_s4 + $0x338] sm:$0xff] %v1174_v31  ;;  %v1082_v32 = vpop.f32.mrf.mxu1  ;;  %v1269_v62 = vpop.f32.mrf.mxu3  ;;  %v20447_v31 = vld [vmem:[%s21099_s25 + $0x38] sm:$0xff] }
 0x16f   : > { %1347 = vst [vmem:[%s21170_s4 + $0x210] sm:$0xff] %v1082_v32  ;;  %v987_v37 = vpop.f32.mrf.mxu0  ;;  %v5916_v32 = vsel %vm4210_vm1, %v5913_v3, %v5915_v30 }
 0x170   : > { %1309 = vst [vmem:[%s21170_s4 + $0xe0] sm:$0xff] %v987_v37  ;;  %v2135_v37 = vshrl.u32 %v20446_v4, 16 }
 0x171   : > { %17718 = vmatmul.msk.bf16.gmra.mxu1 %vm688_vm0, %v2118_v33  ;;  %1422 = vst [vmem:[%s21170_s4 + $0x468] sm:$0xff] %v1269_v62  ;;  %v7653_v33 = vshrl.u32 %v20666_v29, 16 }
 0x172   : > { %18085 = vmatmul.msk.bf16.gmra.mxu2 %vm688_vm0, %v4219_v34  ;;  %18819 = vmatmul.msk.bf16.gmra.mxu0 %vm688_vm0, %v7633_v38  ;;  %v7656_v34 = vshll.u32 %v20666_v29, 16  ;;  %v2139_v38 = vshll.u32 %v20447_v31, 16  ;;  %v2137_v44 = vor.u32 %v2135_v37, %v2133_v18  ;;  %v20522_v29 = vld [vmem:[%s21099_s25 + $0x48] sm:$0xff] }
 0x173   : > { %18455 = vmatmul.msk.bf16.gmra.mxu3 %vm688_vm0, %v5914_v5  ;;  %v7655_v42 = vrot.slane %v7653_v33, 1 }
 0x174   : > { %v7658_v43 = vrot.slane %v7656_v34, 2 }
 0x175   : > { %v1177_v45 = vpop.f32.mrf.mxu2 }
 0x176   : > { %1385 = vst [vmem:[%s21170_s4 + $0x340] sm:$0xff] %v1177_v45  ;;  %v1084_v46 = vpop.f32.mrf.mxu1  ;;  %v1272_v13 = vpop.f32.mrf.mxu3  ;;  %v2141_v45 = vrot.slane %v2139_v38, 1  ;;  %v7659_v47 = vor.u32 %v7658_v43, %v7655_v42  ;;  %v20597_v42 = vld [vmem:[%s21099_s25 + $0x68] sm:$0xff] }
 0x177   : > { %1348 = vst [vmem:[%s21170_s4 + $0x218] sm:$0xff] %v1084_v46  ;;  %v989_v51 = vpop.f32.mrf.mxu0  ;;  %v4224_v46 = vrot.slane %v20520_v39, 1 }
 0x178   : > { %1310 = vst [vmem:[%s21170_s4 + $0xe8] sm:$0xff] %v989_v51  ;;  %v2142_v50 = vsel %vm2082_vm2, %v2137_v44, %v2141_v45  ;;  %v7660_v55 = vsel %vm7589_vm3, %v7650_v20, %v7659_v47  ;;  %v5919_v20 = vrot.slane %v20596_v15, 1 }
 0x179   : > { %1423 = vst [vmem:[%s21170_s4 + $0x470] sm:$0xff] %v1272_v13  ;;  %v4225_v51 = vsel %vm4210_vm1, %v4222_v19, %v4224_v46  ;;  %v20668_v19 = vld [vmem:[%s21099_s25 + $0x58] sm:$0xff] }
 0x17d   : > { %v1179_v58 = vpop.f32.mrf.mxu2 }
 0x17e   : > { %1386 = vst [vmem:[%s21170_s4 + $0x348] sm:$0xff] %v1179_v58  ;;  %v1087_v59 = vpop.f32.mrf.mxu1  ;;  %v1274_v25 = vpop.f32.mrf.mxu3  ;;  %v20448_v58 = vld [vmem:[%s21099_s25 + $0x40] sm:$0xff] }
 0x17f   : > { %1349 = vst [vmem:[%s21170_s4 + $0x220] sm:$0xff] %v1087_v59  ;;  %v992_v0 = vpop.f32.mrf.mxu0  ;;  %v5918_v59 = vsel %vm4210_vm1, %v5915_v30, %v5917_v57 }
 0x180   : > { %1311 = vst [vmem:[%s21170_s4 + $0xf0] sm:$0xff] %v992_v0  ;;  %v2143_v0 = vshrl.u32 %v20447_v31, 16 }
 0x181   : > { %17719 = vmatmul.msk.bf16.gmra.mxu1 %vm688_vm0, %v2126_v60  ;;  %1424 = vst [vmem:[%s21170_s4 + $0x478] sm:$0xff] %v1274_v25  ;;  %v7662_v60 = vshrl.u32 %v20667_v56, 16 }
 0x182   : > { %18086 = vmatmul.msk.bf16.gmra.mxu2 %vm688_vm0, %v4221_v61  ;;  %18820 = vmatmul.msk.bf16.gmra.mxu0 %vm688_vm0, %v7642_v1  ;;  %v7665_v61 = vshll.u32 %v20667_v56, 16  ;;  %v2147_v1 = vshll.u32 %v20448_v58, 16  ;;  %v2145_v7 = vor.u32 %v2143_v0, %v2141_v45 }
 0x183   : > { %18456 = vmatmul.msk.bf16.gmra.mxu3 %vm688_vm0, %v5916_v32  ;;  %v7664_v4 = vrot.slane %v7662_v60, 1 }
 0x184   : > { %v7667_v5 = vrot.slane %v7665_v61, 2 }
 0x185   : > { %v1182_v8 = vpop.f32.mrf.mxu2 }
 0x186   : > { %1387 = vst [vmem:[%s21170_s4 + $0x350] sm:$0xff] %v1182_v8  ;;  %v1089_v9 = vpop.f32.mrf.mxu1  ;;  %v1277_v40 = vpop.f32.mrf.mxu3  ;;  %v2149_v8 = vrot.slane %v2147_v1, 1  ;;  %v7668_v10 = vor.u32 %v7667_v5, %v7664_v4 }
 0x187   : > { %1350 = vst [vmem:[%s21170_s4 + $0x228] sm:$0xff] %v1089_v9  ;;  %v994_v14 = vpop.f32.mrf.mxu0  ;;  %v4226_v9 = vrot.slane %v20521_v2, 1  ;;  %v1427_v2 = vld [vmem:[%s21170_s4 + $0x8] sm:$0xff] }
 0x188   : > { %1312 = vst [vmem:[%s21170_s4 + $0xf8] sm:$0xff] %v994_v14  ;;  %v2150_v13 = vsel %vm2082_vm2, %v2145_v7, %v2149_v8  ;;  %v7669_v17 = vsel %vm7589_vm3, %v7659_v47, %v7668_v10  ;;  %v5921_v47 = vrot.slane %v20597_v42, 1 }
 0x189   : > { %1425 = vst [vmem:[%s21170_s4 + $0x480] sm:$0xf] %v1277_v40  ;;  %v4227_v14 = vsel %vm4210_vm1, %v4224_v46, %v4226_v9  ;;  %v20669_v46 = vld [vmem:[%s21099_s25 + $0x60] sm:$0xff] }
 0x18a   : > { %v7683_v53 = vshll.u32 %v20669_v46, 16 }
 0x18d   : > { %v1184_v21 = vpop.f32.mrf.mxu2 }
 0x18e   : > { %1388 = vst [vmem:[%s21170_s4 + $0x358] sm:$0xff] %v1184_v21  ;;  %v1092_v22 = vpop.f32.mrf.mxu1  ;;  %v1279_v52 = vpop.f32.mrf.mxu3  ;;  %v20449_v21 = vld [vmem:[%s21099_s25 + $0x48] sm:$0xff] }
 0x18f   : > { %1351 = vst [vmem:[%s21170_s4 + $0x230] sm:$0xff] %v1092_v22  ;;  %v997_v27 = vpop.f32.mrf.mxu0  ;;  %v5920_v22 = vsel %vm4210_vm1, %v5917_v57, %v5919_v20  ;;  %v7680_v52 = vshrl.u32 %v20669_v46, 16  ;;  %v2159_v57 = vshrl.u32 %v20449_v21, 16 }
 0x190   : > { %1313 = vst [vmem:[%s21170_s4 + $0x100] sm:$0xff] %v997_v27  ;;  %v2151_v27 = vshrl.u32 %v20448_v58, 16 }
 0x191   : > { %17720 = vmatmul.msk.bf16.gmra.mxu1 %vm688_vm0, %v2134_v23  ;;  %v7671_v23 = vshrl.u32 %v20668_v19, 16 }
 0x192   : > { %18087 = vmatmul.msk.bf16.gmra.mxu2 %vm688_vm0, %v4223_v24  ;;  %18821 = vmatmul.msk.bf16.gmra.mxu0 %vm688_vm0, %v7651_v28  ;;  %v7674_v24 = vshll.u32 %v20668_v19, 16  ;;  %v2155_v28 = vshll.u32 %v20449_v21, 16  ;;  %v2153_v34 = vor.u32 %v2151_v27, %v2149_v8  ;;  %v20670_v19 = vld [vmem:[%s21099_s25 + $0x68] sm:$0xff] }
 0x193   : > { %18457 = vmatmul.msk.bf16.gmra.mxu3 %vm688_vm0, %v5918_v59  ;;  %v7673_v31 = vrot.slane %v7671_v23, 1  ;;  %v21559_v59 = vld [vmem:[%s21099_s25 + $0x50] sm:$0xff]  ;;  %v21579_v23 = vld [vmem:[%s21099_s25 + $0x58] sm:$0xff] }
 0x194   : > { %v7676_v32 = vrot.slane %v7674_v24, 2  ;;  %v4230_v5 = vrot.slane %v21559_v59, 1  ;;  %v1430_v59 = vld [vmem:[%s21170_s4 + $0x20] sm:$0xff] }
 0x195   : > { %v1187_v35 = vpop.f32.mrf.mxu2 }
 0x196   : > { %1389 = vst [vmem:[%s21170_s4 + $0x360] sm:$0xff] %v1187_v35  ;;  %v1094_v36 = vpop.f32.mrf.mxu1  ;;  %v21515_v6 = vpop.f32.mrf.mxu3  ;;  %v2157_v35 = vrot.slane %v2155_v28, 1  ;;  %v7677_v37 = vor.u32 %v7676_v32, %v7673_v31  ;;  %v2171_v31 = vshll.u32 %v21579_v23, 16  ;;  %v21588_v32 = vld [vmem:[%s21099_s25 + $0x58] sm:$0xff] }
 0x197   : > { %1352 = vst [vmem:[%s21170_s4 + $0x238] sm:$0xff] %v1094_v36  ;;  %v999_v41 = vpop.f32.mrf.mxu0  ;;  %v4228_v36 = vrot.slane %v20522_v29, 1 }
 0x198   : > { %1314 = vst [vmem:[%s21170_s4 + $0x108] sm:$0xff] %v999_v41  ;;  %v2158_v40 = vsel %vm2082_vm2, %v2153_v34, %v2157_v35  ;;  %v7678_v44 = vsel %vm7589_vm3, %v7668_v10, %v7677_v37  ;;  %v2173_v42 = vrot.slane %v2171_v31, 1 }
 0x199   : > { %v4229_v41 = vsel %vm4210_vm1, %v4226_v9, %v4228_v36 }
 0x19d   : > { %v1189_v48 = vpop.f32.mrf.mxu2 }
 0x19e   : > { %1390 = vst [vmem:[%s21170_s4 + $0x368] sm:$0xff] %v1189_v48  ;;  %v1097_v49 = vpop.f32.mrf.mxu1  ;;  %v21524_v18 = vpop.f32.mrf.mxu3  ;;  %v1426_v48 = vld [vmem:[%s21170_s4] sm:$0xff] }
 0x19f   : > { %1353 = vst [vmem:[%s21170_s4 + $0x240] sm:$0xff] %v1097_v49  ;;  %v1002_v54 = vpop.f32.mrf.mxu0  ;;  %v21552_v49 = vld [vmem:[%s21099_s25 + $0x50] sm:$0xff] }
 0x1a0   : > { %1315 = vst [vmem:[%s21170_s4 + $0x110] sm:$0xff] %v1002_v54  ;;  %v2163_v58 = vshll.u32 %v21552_v49, 16 }
 0x1a1   : > { %17721 = vmatmul.msk.bf16.gmra.mxu1 %vm688_vm0, %v2142_v50  ;;  %v5922_v50 = vsel %vm4210_vm1, %v5919_v20, %v5921_v47 }
 0x1a2   : > { %18088 = vmatmul.msk.bf16.gmra.mxu2 %vm688_vm0, %v4225_v51  ;;  %18822 = vmatmul.msk.bf16.gmra.mxu0 %vm688_vm0, %v7660_v55  ;;  %v2165_v4 = vrot.slane %v2163_v58, 1 }
 0x1a3   : > { %18458 = vmatmul.msk.bf16.gmra.mxu3 %vm688_vm0, %v5920_v22  ;;  %v1428_v22 = vld [vmem:[%s21170_s4 + $0x10] sm:$0xff] }
 0x1a5   : > { %v1192_v62 = vpop.f32.mrf.mxu2 }
 0x1a6   : > { %1391 = vst [vmem:[%s21170_s4 + $0x370] sm:$0xff] %v1192_v62  ;;  %v1099_v63 = vpop.f32.mrf.mxu1  ;;  %v21537_v33 = vpop.f32.mrf.mxu3  ;;  %v7682_v62 = vrot.slane %v7680_v52, 1 }
 0x1a7   : > { %1354 = vst [vmem:[%s21170_s4 + $0x248] sm:$0xff] %v1099_v63  ;;  %v1004_v3 = vpop.f32.mrf.mxu0  ;;  %v7685_v63 = vrot.slane %v7683_v53, 2 }
 0x1a8   : > { %1316 = vst [vmem:[%s21170_s4 + $0x118] sm:$0xff] %v1004_v3  ;;  %v2161_v3 = vor.u32 %v2159_v57, %v2157_v35 }
 0x1a9   : > { %v7686_v8 = vor.u32 %v7685_v63, %v7682_v62 }
 0x1ad   : > { %v1194_v11 = vpop.f32.mrf.mxu2 }
 0x1ae   : > { %1392 = vst [vmem:[%s21170_s4 + $0x378] sm:$0xff] %v1194_v11  ;;  %v1102_v12 = vpop.f32.mrf.mxu1  ;;  %v21545_v45 = vpop.f32.mrf.mxu3  ;;  %v2166_v11 = vsel %vm2082_vm2, %v2161_v3, %v2165_v4 }
 0x1af   : > { %1355 = vst [vmem:[%s21170_s4 + $0x250] sm:$0xff] %v1102_v12  ;;  %v1007_v16 = vpop.f32.mrf.mxu0  ;;  %v4231_v12 = vsel %vm4210_vm1, %v4228_v36, %v4230_v5 }
 0x1b0   : > { %1317 = vst [vmem:[%s21170_s4 + $0x120] sm:$0xff] %v1007_v16  ;;  %v7687_v16 = vsel %vm7589_vm3, %v7677_v37, %v7686_v8 }
 0x1b1   : > { %17722 = vmatmul.msk.bf16.gmra.mxu1 %vm688_vm0, %v2150_v13  ;;  %v20598_v13 = vld [vmem:[%s21099_s25 + $0x70] sm:$0xff] }
 0x1b2   : > { %18089 = vmatmul.msk.bf16.gmra.mxu2 %vm688_vm0, %v4227_v14  ;;  %18823 = vmatmul.msk.bf16.gmra.mxu0 %vm688_vm0, %v7669_v17  ;;  %v5923_v20 = vrot.slane %v20598_v13, 1  ;;  %v1431_v13 = vld [vmem:[%s21170_s4 + $0x28] sm:$0xff] }
 0x1b3   : > { %18459 = vmatmul.msk.bf16.gmra.mxu3 %vm688_vm0, %v5922_v50 }
 0x1b5   : > { %v1197_v25 = vpop.f32.mrf.mxu2 }
 0x1b6   : > { %1393 = vst [vmem:[%s21170_s4 + $0x380] sm:$0xff] %v1197_v25  ;;  %v1104_v26 = vpop.f32.mrf.mxu1  ;;  %v21562_v0 = vpop.f32.mrf.mxu3  ;;  %v7689_v25 = vshrl.u32 %v20670_v19, 16 }
 0x1b7   : > { %1356 = vst [vmem:[%s21170_s4 + $0x258] sm:$0xff] %v1104_v26  ;;  %v1009_v30 = vpop.f32.mrf.mxu0  ;;  %v7692_v26 = vshll.u32 %v20670_v19, 16 }
 0x1b8   : > { %1318 = vst [vmem:[%s21170_s4 + $0x128] sm:$0xff] %v1009_v30  ;;  %v2167_v30 = vshrl.u32 %v21552_v49, 16  ;;  %v7691_v36 = vrot.slane %v7689_v25, 1 }
 0x1b9   : > { %v7694_v37 = vrot.slane %v7692_v26, 2 }
 0x1bb   : > { %v7695_v46 = vor.u32 %v7694_v37, %v7691_v36 }
 0x1bd   : > { %v1199_v38 = vpop.f32.mrf.mxu2 }
 0x1be   : > { %1394 = vst [vmem:[%s21170_s4 + $0x388] sm:$0xff] %v1199_v38  ;;  %v2900_v39 = vpop.f32.mrf.mxu1  ;;  %v21572_v17 = vpop.f32.mrf.mxu3 }
 0x1bf   : > { %v8480_v43 = vpop.f32.mrf.mxu0  ;;  %v3264_v51 = vadd.f32 %v2900_v39, %v1426_v48 }
 0x1c1   : > { %17723 = vmatmul.msk.bf16.gmra.mxu1 %vm688_vm0, %v2158_v40  ;;  %v1429_v40 = vld [vmem:[%s21170_s4 + $0x18] sm:$0xff] }
 0x1c2   : > { %18090 = vmatmul.msk.bf16.gmra.mxu2 %vm688_vm0, %v4229_v41  ;;  %18824 = vmatmul.msk.bf16.gmra.mxu0 %vm688_vm0, %v7678_v44  ;;  %v2169_v41 = vor.u32 %v2167_v30, %v2165_v4  ;;  %v2175_v4 = vshrl.u32 %v21579_v23, 16 }
 0x1c4   : > { %v2174_v49 = vsel %vm2082_vm2, %v2169_v41, %v2173_v42 }
 0x1c5   : > { %v4590_v54 = vpop.f32.mrf.mxu2 }
 0x1c6   : > { %v4954_v55 = vadd.f32 %v4590_v54, %v3264_v51  ;;  %v2902_v56 = vpop.f32.mrf.mxu1  ;;  %v21591_v38 = vpop.f32.mrf.mxu3  ;;  %v20599_v51 = vld [vmem:[%s21099_s25 + $0x78] sm:$0xff]  ;;  %v7696_v54 = vsel %vm7589_vm3, %v7686_v8, %v7695_v46 }
 0x1c7   : > { %v8482_v61 = vpop.f32.mrf.mxu0  ;;  %v3265_v7 = vadd.f32 %v2902_v56, %v1427_v2  ;;  %v20671_v56 = vld [vmem:[%s21099_s25 + $0x70] sm:$0xff]  ;;  %v5925_v57 = vrot.slane %v20599_v51, 1  ;;  %v1433_v51 = vld [vmem:[%s21170_s4 + $0x38] sm:$0xff] }
 0x1c8   : > { %v6643_v60 = vadd.f32 %v21515_v6, %v4954_v55  ;;  %v7698_v62 = vshrl.u32 %v20671_v56, 16  ;;  %v7701_v63 = vshll.u32 %v20671_v56, 16 }
 0x1ca   : > { %v8844_v1 = vadd.f32 %v8480_v43, %v6643_v60  ;;  %v4232_v43 = vrot.slane %v21588_v32, 1  ;;  %v21608_v60 = vld [vmem:[%s21099_s25 + $0x60] sm:$0xff]  ;;  %v1432_v32 = vld [vmem:[%s21170_s4 + $0x30] sm:$0xff] }
 0x1cc   : > { %8989 = vst [vmem:[%s21170_s4] sm:$0xff] %v8844_v1  ;;  %v4233_v50 = vsel %vm4210_vm1, %v4230_v5, %v4232_v43  ;;  %v2179_v5 = vshll.u32 %v21608_v60, 16 }
 0x1cd   : > { %v4592_v9 = vpop.f32.mrf.mxu2 }
 0x1ce   : > { %v4955_v6 = vadd.f32 %v4592_v9, %v3265_v7  ;;  %v2905_v10 = vpop.f32.mrf.mxu1  ;;  %v21601_v55 = vpop.f32.mrf.mxu3  ;;  %v21617_v7 = vld [vmem:[%s21099_s25 + $0x60] sm:$0xff] }
 0x1cf   : > { %v8485_v15 = vpop.f32.mrf.mxu0  ;;  %v3266_v24 = vadd.f32 %v2905_v10, %v1428_v22  ;;  %v7703_v10 = vrot.slane %v7701_v63, 2 }
 0x1d0   : > { %v6644_v14 = vadd.f32 %v21524_v18, %v4955_v6  ;;  %v5924_v18 = vsel %vm4210_vm1, %v5921_v47, %v5923_v20  ;;  %v7700_v6 = vrot.slane %v7698_v62, 1 }
 0x1d1   : > { %17724 = vmatmul.msk.bf16.gmra.mxu1 %vm688_vm0, %v2166_v11  ;;  %18460 = vmatmul.msk.bf16.gmra.mxu3 %vm688_vm0, %v5924_v18 }
 0x1d2   : > { %18091 = vmatmul.msk.bf16.gmra.mxu2 %vm688_vm0, %v4231_v12  ;;  %v8845_v21 = vadd.f32 %v8482_v61, %v6644_v14  ;;  %18825 = vmatmul.msk.bf16.gmra.mxu0 %vm688_vm0, %v7687_v16  ;;  %v2177_v14 = vor.u32 %v2175_v4, %v2173_v42  ;;  %v4234_v16 = vrot.slane %v21617_v7, 1  ;;  %v2183_v42 = vshrl.u32 %v21608_v60, 16  ;;  %v1434_v7 = vld [vmem:[%s21170_s4 + $0x40] sm:$0xff] }
 0x1d4   : > { %8990 = vst [vmem:[%s21170_s4 + $0x8] sm:$0xff] %v8845_v21  ;;  %v4235_v18 = vsel %vm4210_vm1, %v4232_v43, %v4234_v16 }
 0x1d5   : > { %v4595_v27 = vpop.f32.mrf.mxu2 }
 0x1d6   : > { %v4956_v28 = vadd.f32 %v4595_v27, %v3266_v24  ;;  %v2907_v29 = vpop.f32.mrf.mxu1  ;;  %v21620_v11 = vpop.f32.mrf.mxu3  ;;  %v20600_v24 = vld [vmem:[%s21099_s25 + $0x80] sm:$0xff] }
 0x1d7   : > { %v8487_v35 = vpop.f32.mrf.mxu0  ;;  %v3267_v44 = vadd.f32 %v2907_v29, %v1429_v40  ;;  %v20672_v29 = vld [vmem:[%s21099_s25 + $0x78] sm:$0xff]  ;;  %v5927_v30 = vrot.slane %v20600_v24, 1  ;;  %v1435_v24 = vld [vmem:[%s21170_s4 + $0x48] sm:$0xff] }
 0x1d8   : > { %v6645_v34 = vadd.f32 %v21537_v33, %v4956_v28  ;;  %v7707_v36 = vshrl.u32 %v20672_v29, 16  ;;  %v7710_v37 = vshll.u32 %v20672_v29, 16 }
 0x1da   : > { %v8846_v39 = vadd.f32 %v8485_v15, %v6645_v34  ;;  %v2181_v15 = vrot.slane %v2179_v5, 1  ;;  %v21637_v34 = vld [vmem:[%s21099_s25 + $0x68] sm:$0xff] }
 0x1db   : > { %v2187_v43 = vshll.u32 %v21637_v34, 16 }
 0x1dc   : > { %8991 = vst [vmem:[%s21170_s4 + $0x10] sm:$0xff] %v8846_v39  ;;  %v2182_v23 = vsel %vm2082_vm2, %v2177_v14, %v2181_v15 }
 0x1dd   : > { %v4597_v47 = vpop.f32.mrf.mxu2 }
 0x1de   : > { %v4957_v33 = vadd.f32 %v4597_v47, %v3267_v44  ;;  %v2910_v48 = vpop.f32.mrf.mxu1  ;;  %v21630_v28 = vpop.f32.mrf.mxu3  ;;  %v21646_v44 = vld [vmem:[%s21099_s25 + $0x68] sm:$0xff] }
 0x1df   : > { %v8490_v53 = vpop.f32.mrf.mxu0  ;;  %v3268_v61 = vadd.f32 %v2910_v48, %v1430_v59  ;;  %v7712_v48 = vrot.slane %v7710_v37, 2 }
 0x1e0   : > { %v6646_v52 = vadd.f32 %v21545_v45, %v4957_v33  ;;  %v5926_v45 = vsel %vm4210_vm1, %v5923_v20, %v5925_v57  ;;  %v7704_v20 = vor.u32 %v7703_v10, %v7700_v6  ;;  %v7709_v33 = vrot.slane %v7707_v36, 1 }
 0x1e1   : > { %17725 = vmatmul.msk.bf16.gmra.mxu1 %vm688_vm0, %v2174_v49  ;;  %18461 = vmatmul.msk.bf16.gmra.mxu3 %vm688_vm0, %v5926_v45 }
 0x1e2   : > { %18092 = vmatmul.msk.bf16.gmra.mxu2 %vm688_vm0, %v4233_v50  ;;  %v8847_v58 = vadd.f32 %v8487_v35, %v6646_v52  ;;  %18826 = vmatmul.msk.bf16.gmra.mxu0 %vm688_vm0, %v7696_v54  ;;  %v7705_v27 = vsel %vm7589_vm3, %v7695_v46, %v7704_v20  ;;  %v2185_v52 = vor.u32 %v2183_v42, %v2181_v15  ;;  %v4236_v54 = vrot.slane %v21646_v44, 1  ;;  %v1436_v44 = vld [vmem:[%s21170_s4 + $0x50] sm:$0xff] }
 0x1e3   : > { %v2191_v15 = vshrl.u32 %v21637_v34, 16 }
 0x1e4   : > { %8992 = vst [vmem:[%s21170_s4 + $0x18] sm:$0xff] %v8847_v58  ;;  %v4237_v45 = vsel %vm4210_vm1, %v4234_v16, %v4236_v54 }
 0x1e5   : > { %v4600_v1 = vpop.f32.mrf.mxu2 }
 0x1e6   : > { %v4958_v2 = vadd.f32 %v4600_v1, %v3268_v61  ;;  %v2912_v3 = vpop.f32.mrf.mxu1  ;;  %v21649_v49 = vpop.f32.mrf.mxu3  ;;  %v20601_v61 = vld [vmem:[%s21099_s25 + $0x88] sm:$0xff] }
 0x1e7   : > { %v8492_v9 = vpop.f32.mrf.mxu0  ;;  %v3269_v19 = vadd.f32 %v2912_v3, %v1431_v13  ;;  %v20673_v3 = vld [vmem:[%s21099_s25 + $0x80] sm:$0xff]  ;;  %v5929_v4 = vrot.slane %v20601_v61, 1  ;;  %v1437_v61 = vld [vmem:[%s21170_s4 + $0x58] sm:$0xff] }
 0x1e8   : > { %v6647_v8 = vadd.f32 %v21562_v0, %v4958_v2  ;;  %v7716_v6 = vshrl.u32 %v20673_v3, 16  ;;  %v7719_v10 = vshll.u32 %v20673_v3, 16 }
 0x1ea   : > { %v8848_v12 = vadd.f32 %v8490_v53, %v6647_v8  ;;  %v2189_v53 = vrot.slane %v2187_v43, 1  ;;  %v21666_v8 = vld [vmem:[%s21099_s25 + $0x70] sm:$0xff] }
 0x1eb   : > { %v2195_v16 = vshll.u32 %v21666_v8, 16 }
 0x1ec   : > { %8993 = vst [vmem:[%s21170_s4 + $0x20] sm:$0xff] %v8848_v12  ;;  %v2190_v60 = vsel %vm2082_vm2, %v2185_v52, %v2189_v53 }
 0x1ed   : > { %v4602_v21 = vpop.f32.mrf.mxu2 }
 0x1ee   : > { %v4959_v0 = vadd.f32 %v4602_v21, %v3269_v19  ;;  %v2915_v22 = vpop.f32.mrf.mxu1  ;;  %v21659_v2 = vpop.f32.mrf.mxu3  ;;  %v21675_v19 = vld [vmem:[%s21099_s25 + $0x70] sm:$0xff] }
 0x1ef   : > { %v8495_v26 = vpop.f32.mrf.mxu0  ;;  %v3270_v35 = vadd.f32 %v2915_v22, %v1432_v32  ;;  %v7721_v22 = vrot.slane %v7719_v10, 2 }
 0x1f0   : > { %v6648_v25 = vadd.f32 %v21572_v17, %v4959_v0  ;;  %v5928_v17 = vsel %vm4210_vm1, %v5925_v57, %v5927_v30  ;;  %v7713_v57 = vor.u32 %v7712_v48, %v7709_v33  ;;  %v7718_v0 = vrot.slane %v7716_v6, 1 }
 0x1f1   : > { %17726 = vmatmul.msk.bf16.gmra.mxu1 %vm688_vm0, %v2182_v23  ;;  %18462 = vmatmul.msk.bf16.gmra.mxu3 %vm688_vm0, %v5928_v17 }
 0x1f2   : > { %18093 = vmatmul.msk.bf16.gmra.mxu2 %vm688_vm0, %v4235_v18  ;;  %v8849_v31 = vadd.f32 %v8492_v9, %v6648_v25  ;;  %18827 = vmatmul.msk.bf16.gmra.mxu0 %vm688_vm0, %v7705_v27  ;;  %v7714_v1 = vsel %vm7589_vm3, %v7704_v20, %v7713_v57  ;;  %v2193_v25 = vor.u32 %v2191_v15, %v2189_v53  ;;  %v4238_v27 = vrot.slane %v21675_v19, 1  ;;  %v1438_v19 = vld [vmem:[%s21170_s4 + $0x60] sm:$0xff] }
 0x1f3   : > { %v2199_v53 = vshrl.u32 %v21666_v8, 16 }
 0x1f4   : > { %8994 = vst [vmem:[%s21170_s4 + $0x28] sm:$0xff] %v8849_v31  ;;  %v4239_v17 = vsel %vm4210_vm1, %v4236_v54, %v4238_v27 }
 0x1f5   : > { %v4605_v39 = vpop.f32.mrf.mxu2 }
 0x1f6   : > { %v4960_v40 = vadd.f32 %v4605_v39, %v3270_v35  ;;  %v2917_v41 = vpop.f32.mrf.mxu1  ;;  %v21678_v23 = vpop.f32.mrf.mxu3  ;;  %v20602_v35 = vld [vmem:[%s21099_s25 + $0x90] sm:$0xff] }
 0x1f7   : > { %v8497_v47 = vpop.f32.mrf.mxu0  ;;  %v3271_v56 = vadd.f32 %v2917_v41, %v1433_v51  ;;  %v20674_v41 = vld [vmem:[%s21099_s25 + $0x88] sm:$0xff]  ;;  %v5931_v42 = vrot.slane %v20602_v35, 1 }
 0x1f8   : > { %v6649_v46 = vadd.f32 %v21591_v38, %v4960_v40  ;;  %v7725_v33 = vshrl.u32 %v20674_v41, 16  ;;  %v7728_v48 = vshll.u32 %v20674_v41, 16  ;;  %v1439_v35 = vld [vmem:[%s21170_s4 + $0x68] sm:$0xff] }
 0x1fa   : > { %v8850_v50 = vadd.f32 %v8495_v26, %v6649_v46  ;;  %v2197_v26 = vrot.slane %v2195_v16, 1  ;;  %v21695_v46 = vld [vmem:[%s21099_s25 + $0x78] sm:$0xff] }
 0x1fb   : > { %v2203_v54 = vshll.u32 %v21695_v46, 16 }
 0x1fc   : > { %8995 = vst [vmem:[%s21170_s4 + $0x30] sm:$0xff] %v8850_v50  ;;  %v2198_v34 = vsel %vm2082_vm2, %v2193_v25, %v2197_v26 }
 0x1fd   : > { %v4607_v58 = vpop.f32.mrf.mxu2 }
 0x1fe   : > { %v4961_v38 = vadd.f32 %v4607_v58, %v3271_v56  ;;  %v2920_v59 = vpop.f32.mrf.mxu1  ;;  %v21688_v40 = vpop.f32.mrf.mxu3  ;;  %v21704_v56 = vld [vmem:[%s21099_s25 + $0x78] sm:$0xff] }
 0x1ff   : > { %v8500_v63 = vpop.f32.mrf.mxu0  ;;  %v3272_v9 = vadd.f32 %v2920_v59, %v1434_v7  ;;  %v7730_v59 = vrot.slane %v7728_v48, 2 }
 0x200   : > { %v6650_v62 = vadd.f32 %v21601_v55, %v4961_v38  ;;  %v5930_v55 = vsel %vm4210_vm1, %v5927_v30, %v5929_v4  ;;  %v7722_v30 = vor.u32 %v7721_v22, %v7718_v0  ;;  %v7727_v38 = vrot.slane %v7725_v33, 1 }
 0x201   : > { %17727 = vmatmul.msk.bf16.gmra.mxu1 %vm688_vm0, %v2190_v60  ;;  %18463 = vmatmul.msk.bf16.gmra.mxu3 %vm688_vm0, %v5930_v55 }
 0x202   : > { %18094 = vmatmul.msk.bf16.gmra.mxu2 %vm688_vm0, %v4237_v45  ;;  %v8851_v5 = vadd.f32 %v8497_v47, %v6650_v62  ;;  %18828 = vmatmul.msk.bf16.gmra.mxu0 %vm688_vm0, %v7714_v1  ;;  %v7723_v39 = vsel %vm7589_vm3, %v7713_v57, %v7722_v30  ;;  %v2201_v62 = vor.u32 %v2199_v53, %v2197_v26  ;;  %v4240_v1 = vrot.slane %v21704_v56, 1  ;;  %v1440_v56 = vld [vmem:[%s21170_s4 + $0x70] sm:$0xff] }
 0x203   : > { %v2207_v26 = vshrl.u32 %v21695_v46, 16 }
 0x204   : > { %8996 = vst [vmem:[%s21170_s4 + $0x38] sm:$0xff] %v8851_v5  ;;  %v4241_v55 = vsel %vm4210_vm1, %v4238_v27, %v4240_v1 }
 0x205   : > { %v4610_v12 = vpop.f32.mrf.mxu2 }
 0x206   : > { %v4962_v13 = vadd.f32 %v4610_v12, %v3272_v9  ;;  %v2922_v14 = vpop.f32.mrf.mxu1  ;;  %v21707_v60 = vpop.f32.mrf.mxu3  ;;  %v20603_v9 = vld [vmem:[%s21099_s25 + $0x98] sm:$0xff] }
 0x207   : > { %v8502_v21 = vpop.f32.mrf.mxu0  ;;  %v3273_v29 = vadd.f32 %v2922_v14, %v1435_v24  ;;  %v20675_v14 = vld [vmem:[%s21099_s25 + $0x90] sm:$0xff]  ;;  %v5933_v15 = vrot.slane %v20603_v9, 1  ;;  %v1441_v9 = vld [vmem:[%s21170_s4 + $0x78] sm:$0xff] }
 0x208   : > { %v6651_v20 = vadd.f32 %v21620_v11, %v4962_v13  ;;  %v7734_v0 = vshrl.u32 %v20675_v14, 16  ;;  %v7737_v22 = vshll.u32 %v20675_v14, 16 }
 0x20a   : > { %v8852_v18 = vadd.f32 %v8500_v63, %v6651_v20  ;;  %v2205_v63 = vrot.slane %v2203_v54, 1  ;;  %v21724_v20 = vld [vmem:[%s21099_s25 + $0x80] sm:$0xff] }
 0x20b   : > { %v2211_v27 = vshll.u32 %v21724_v20, 16 }
 0x20c   : > { %8997 = vst [vmem:[%s21170_s4 + $0x40] sm:$0xff] %v8852_v18  ;;  %v2206_v8 = vsel %vm2082_vm2, %v2201_v62, %v2205_v63 }
 0x20d   : > { %v4612_v31 = vpop.f32.mrf.mxu2 }
 0x20e   : > { %v4963_v11 = vadd.f32 %v4612_v31, %v3273_v29  ;;  %v2925_v32 = vpop.f32.mrf.mxu1  ;;  %v21717_v13 = vpop.f32.mrf.mxu3  ;;  %v21733_v29 = vld [vmem:[%s21099_s25 + $0x80] sm:$0xff] }
 0x20f   : > { %v8505_v37 = vpop.f32.mrf.mxu0  ;;  %v3274_v47 = vadd.f32 %v2925_v32, %v1436_v44  ;;  %v7739_v32 = vrot.slane %v7737_v22, 2 }
 0x210   : > { %v6652_v36 = vadd.f32 %v21630_v28, %v4963_v11  ;;  %v5932_v28 = vsel %vm4210_vm1, %v5929_v4, %v5931_v42  ;;  %v7731_v4 = vor.u32 %v7730_v59, %v7727_v38  ;;  %v7736_v11 = vrot.slane %v7734_v0, 1 }
 0x211   : > { %17728 = vmatmul.msk.bf16.gmra.mxu1 %vm688_vm0, %v2198_v34  ;;  %18464 = vmatmul.msk.bf16.gmra.mxu3 %vm688_vm0, %v5932_v28 }
 0x212   : > { %18095 = vmatmul.msk.bf16.gmra.mxu2 %vm688_vm0, %v4239_v17  ;;  %v8853_v43 = vadd.f32 %v8502_v21, %v6652_v36  ;;  %18829 = vmatmul.msk.bf16.gmra.mxu0 %vm688_vm0, %v7723_v39  ;;  %v7732_v12 = vsel %vm7589_vm3, %v7722_v30, %v7731_v4  ;;  %v2209_v36 = vor.u32 %v2207_v26, %v2205_v63  ;;  %v4242_v39 = vrot.slane %v21733_v29, 1  ;;  %v1442_v29 = vld [vmem:[%s21170_s4 + $0x80] sm:$0xff] }
 0x213   : > { %v2215_v63 = vshrl.u32 %v21724_v20, 16 }
 0x214   : > { %8998 = vst [vmem:[%s21170_s4 + $0x48] sm:$0xff] %v8853_v43  ;;  %v4243_v28 = vsel %vm4210_vm1, %v4240_v1, %v4242_v39 }
 0x215   : > { %v4615_v50 = vpop.f32.mrf.mxu2 }
 0x216   : > { %v4964_v51 = vadd.f32 %v4615_v50, %v3274_v47  ;;  %v2927_v52 = vpop.f32.mrf.mxu1  ;;  %v21736_v34 = vpop.f32.mrf.mxu3  ;;  %v20604_v47 = vld [vmem:[%s21099_s25 + $0xa0] sm:$0xff] }
 0x217   : > { %v8507_v58 = vpop.f32.mrf.mxu0  ;;  %v3275_v3 = vadd.f32 %v2927_v52, %v1437_v61  ;;  %v20676_v52 = vld [vmem:[%s21099_s25 + $0x98] sm:$0xff]  ;;  %v5935_v53 = vrot.slane %v20604_v47, 1  ;;  %v1443_v47 = vld [vmem:[%s21170_s4 + $0x88] sm:$0xff] }
 0x218   : > { %v6653_v57 = vadd.f32 %v21649_v49, %v4964_v51  ;;  %v7743_v38 = vshrl.u32 %v20676_v52, 16  ;;  %v7746_v59 = vshll.u32 %v20676_v52, 16 }
 0x21a   : > { %v8854_v45 = vadd.f32 %v8505_v37, %v6653_v57  ;;  %v2213_v37 = vrot.slane %v2211_v27, 1  ;;  %v21753_v57 = vld [vmem:[%s21099_s25 + $0x88] sm:$0xff] }
 0x21b   : > { %v2219_v1 = vshll.u32 %v21753_v57, 16 }
 0x21c   : > { %8999 = vst [vmem:[%s21170_s4 + $0x50] sm:$0xff] %v8854_v45  ;;  %v2214_v46 = vsel %vm2082_vm2, %v2209_v36, %v2213_v37 }
 0x21d   : > { %v4617_v5 = vpop.f32.mrf.mxu2 }
 0x21e   : > { %v4965_v49 = vadd.f32 %v4617_v5, %v3275_v3  ;;  %v2930_v7 = vpop.f32.mrf.mxu1  ;;  %v21746_v51 = vpop.f32.mrf.mxu3  ;;  %v21762_v3 = vld [vmem:[%s21099_s25 + $0x88] sm:$0xff] }
 0x21f   : > { %v8510_v10 = vpop.f32.mrf.mxu0  ;;  %v3276_v21 = vadd.f32 %v2930_v7, %v1438_v19  ;;  %v7748_v7 = vrot.slane %v7746_v59, 2 }
 0x220   : > { %v6654_v6 = vadd.f32 %v21659_v2, %v4965_v49  ;;  %v5934_v2 = vsel %vm4210_vm1, %v5931_v42, %v5933_v15  ;;  %v7740_v42 = vor.u32 %v7739_v32, %v7736_v11  ;;  %v7745_v49 = vrot.slane %v7743_v38, 1 }
 0x221   : > { %17729 = vmatmul.msk.bf16.gmra.mxu1 %vm688_vm0, %v2206_v8  ;;  %18465 = vmatmul.msk.bf16.gmra.mxu3 %vm688_vm0, %v5934_v2 }
 0x222   : > { %18096 = vmatmul.msk.bf16.gmra.mxu2 %vm688_vm0, %v4241_v55  ;;  %v8855_v16 = vadd.f32 %v8507_v58, %v6654_v6  ;;  %18830 = vmatmul.msk.bf16.gmra.mxu0 %vm688_vm0, %v7732_v12  ;;  %v7741_v50 = vsel %vm7589_vm3, %v7731_v4, %v7740_v42  ;;  %v2217_v6 = vor.u32 %v2215_v63, %v2213_v37  ;;  %v4244_v12 = vrot.slane %v21762_v3, 1  ;;  %v1444_v3 = vld [vmem:[%s21170_s4 + $0x90] sm:$0xff] }
 0x223   : > { %v2223_v37 = vshrl.u32 %v21753_v57, 16 }
 0x224   : > { %9000 = vst [vmem:[%s21170_s4 + $0x58] sm:$0xff] %v8855_v16  ;;  %v4245_v2 = vsel %vm4210_vm1, %v4242_v39, %v4244_v12 }
 0x225   : > { %v4620_v18 = vpop.f32.mrf.mxu2 }
 0x226   : > { %v4966_v24 = vadd.f32 %v4620_v18, %v3276_v21  ;;  %v2932_v25 = vpop.f32.mrf.mxu1  ;;  %v21765_v8 = vpop.f32.mrf.mxu3  ;;  %v20605_v21 = vld [vmem:[%s21099_s25 + $0xa8] sm:$0xff] }
 0x227   : > { %v8512_v31 = vpop.f32.mrf.mxu0  ;;  %v3277_v41 = vadd.f32 %v2932_v25, %v1439_v35  ;;  %v20677_v25 = vld [vmem:[%s21099_s25 + $0xa0] sm:$0xff]  ;;  %v5937_v26 = vrot.slane %v20605_v21, 1  ;;  %v1445_v21 = vld [vmem:[%s21170_s4 + $0x98] sm:$0xff] }
 0x228   : > { %v6655_v30 = vadd.f32 %v21678_v23, %v4966_v24  ;;  %v7752_v11 = vshrl.u32 %v20677_v25, 16  ;;  %v7755_v32 = vshll.u32 %v20677_v25, 16 }
 0x22a   : > { %v8856_v17 = vadd.f32 %v8510_v10, %v6655_v30  ;;  %v2221_v10 = vrot.slane %v2219_v1, 1  ;;  %v21782_v30 = vld [vmem:[%s21099_s25 + $0x90] sm:$0xff] }
 0x22b   : > { %v2227_v39 = vshll.u32 %v21782_v30, 16 }
 0x22c   : > { %9001 = vst [vmem:[%s21170_s4 + $0x60] sm:$0xff] %v8856_v17  ;;  %v2222_v20 = vsel %vm2082_vm2, %v2217_v6, %v2221_v10 }
 0x22d   : > { %v4622_v43 = vpop.f32.mrf.mxu2 }
 0x22e   : > { %v4967_v23 = vadd.f32 %v4622_v43, %v3277_v41  ;;  %v2935_v44 = vpop.f32.mrf.mxu1  ;;  %v21775_v24 = vpop.f32.mrf.mxu3  ;;  %v21791_v41 = vld [vmem:[%s21099_s25 + $0x90] sm:$0xff] }
 0x22f   : > { %v8515_v48 = vpop.f32.mrf.mxu0  ;;  %v3278_v58 = vadd.f32 %v2935_v44, %v1440_v56  ;;  %v7757_v44 = vrot.slane %v7755_v32, 2 }
 0x230   : > { %v6656_v33 = vadd.f32 %v21688_v40, %v4967_v23  ;;  %v5936_v40 = vsel %vm4210_vm1, %v5933_v15, %v5935_v53  ;;  %v7749_v15 = vor.u32 %v7748_v7, %v7745_v49  ;;  %v7754_v23 = vrot.slane %v7752_v11, 1 }
 0x231   : > { %17730 = vmatmul.msk.bf16.gmra.mxu1 %vm688_vm0, %v2214_v46  ;;  %18466 = vmatmul.msk.bf16.gmra.mxu3 %vm688_vm0, %v5936_v40 }
 0x232   : > { %18097 = vmatmul.msk.bf16.gmra.mxu2 %vm688_vm0, %v4243_v28  ;;  %v8857_v54 = vadd.f32 %v8512_v31, %v6656_v33  ;;  %18831 = vmatmul.msk.bf16.gmra.mxu0 %vm688_vm0, %v7741_v50  ;;  %v7750_v18 = vsel %vm7589_vm3, %v7740_v42, %v7749_v15  ;;  %v2225_v33 = vor.u32 %v2223_v37, %v2221_v10  ;;  %v4246_v50 = vrot.slane %v21791_v41, 1  ;;  %v1446_v41 = vld [vmem:[%s21170_s4 + $0xa0] sm:$0xff] }
 0x233   : > { %v2231_v10 = vshrl.u32 %v21782_v30, 16 }
 0x234   : > { %9002 = vst [vmem:[%s21170_s4 + $0x68] sm:$0xff] %v8857_v54  ;;  %v4247_v40 = vsel %vm4210_vm1, %v4244_v12, %v4246_v50 }
 0x235   : > { %v4625_v45 = vpop.f32.mrf.mxu2 }
 0x236   : > { %v4968_v61 = vadd.f32 %v4625_v45, %v3278_v58  ;;  %v2937_v62 = vpop.f32.mrf.mxu1  ;;  %v21794_v46 = vpop.f32.mrf.mxu3  ;;  %v20606_v58 = vld [vmem:[%s21099_s25 + $0xb0] sm:$0xff] }
 0x237   : > { %v8517_v5 = vpop.f32.mrf.mxu0  ;;  %v3279_v14 = vadd.f32 %v2937_v62, %v1441_v9  ;;  %v20678_v62 = vld [vmem:[%s21099_s25 + $0xa8] sm:$0xff]  ;;  %v5939_v63 = vrot.slane %v20606_v58, 1 }
 0x238   : > { %v6657_v4 = vadd.f32 %v21707_v60, %v4968_v61  ;;  %v7761_v49 = vshrl.u32 %v20678_v62, 16  ;;  %v7764_v7 = vshll.u32 %v20678_v62, 16  ;;  %v1447_v58 = vld [vmem:[%s21170_s4 + $0xa8] sm:$0xff] }
 0x23a   : > { %v8858_v55 = vadd.f32 %v8515_v48, %v6657_v4  ;;  %v2229_v48 = vrot.slane %v2227_v39, 1  ;;  %v21811_v4 = vld [vmem:[%s21099_s25 + $0x98] sm:$0xff] }
 0x23b   : > { %v2235_v12 = vshll.u32 %v21811_v4, 16 }
 0x23c   : > { %9003 = vst [vmem:[%s21170_s4 + $0x70] sm:$0xff] %v8858_v55  ;;  %v2230_v57 = vsel %vm2082_vm2, %v2225_v33, %v2229_v48 }
 0x23d   : > { %v4627_v16 = vpop.f32.mrf.mxu2 }
 0x23e   : > { %v4969_v60 = vadd.f32 %v4627_v16, %v3279_v14  ;;  %v2940_v19 = vpop.f32.mrf.mxu1  ;;  %v21804_v61 = vpop.f32.mrf.mxu3  ;;  %v21820_v14 = vld [vmem:[%s21099_s25 + $0x98] sm:$0xff] }
 0x23f   : > { %v8520_v22 = vpop.f32.mrf.mxu0  ;;  %v3280_v31 = vadd.f32 %v2940_v19, %v1442_v29  ;;  %v7766_v19 = vrot.slane %v7764_v7, 2 }
 0x240   : > { %v6658_v0 = vadd.f32 %v21717_v13, %v4969_v60  ;;  %v5938_v13 = vsel %vm4210_vm1, %v5935_v53, %v5937_v26  ;;  %v7758_v53 = vor.u32 %v7757_v44, %v7754_v23  ;;  %v7763_v60 = vrot.slane %v7761_v49, 1 }
 0x241   : > { %17731 = vmatmul.msk.bf16.gmra.mxu1 %vm688_vm0, %v2222_v20  ;;  %18467 = vmatmul.msk.bf16.gmra.mxu3 %vm688_vm0, %v5938_v13 }
 0x242   : > { %18098 = vmatmul.msk.bf16.gmra.mxu2 %vm688_vm0, %v4245_v2  ;;  %v8859_v27 = vadd.f32 %v8517_v5, %v6658_v0  ;;  %18832 = vmatmul.msk.bf16.gmra.mxu0 %vm688_vm0, %v7750_v18  ;;  %v7759_v45 = vsel %vm7589_vm3, %v7749_v15, %v7758_v53  ;;  %v2233_v0 = vor.u32 %v2231_v10, %v2229_v48  ;;  %v4248_v18 = vrot.slane %v21820_v14, 1  ;;  %v1448_v14 = vld [vmem:[%s21170_s4 + $0xb0] sm:$0xff] }
 0x243   : > { %v2239_v48 = vshrl.u32 %v21811_v4, 16 }
 0x244   : > { %9004 = vst [vmem:[%s21170_s4 + $0x78] sm:$0xff] %v8859_v27  ;;  %v4249_v13 = vsel %vm4210_vm1, %v4246_v50, %v4248_v18 }
 0x245   : > { %v4630_v17 = vpop.f32.mrf.mxu2 }
 0x246   : > { %v4970_v35 = vadd.f32 %v4630_v17, %v3280_v31  ;;  %v2942_v36 = vpop.f32.mrf.mxu1  ;;  %v20607_v31 = vld [vmem:[%s21099_s25 + $0xb8] sm:$0xff] }
 0x247   : > { %v8522_v43 = vpop.f32.mrf.mxu0  ;;  %v3281_v52 = vadd.f32 %v2942_v36, %v1443_v47  ;;  %v20679_v36 = vld [vmem:[%s21099_s25 + $0xb0] sm:$0xff]  ;;  %v5941_v37 = vrot.slane %v20607_v31, 1  ;;  %v1449_v31 = vld [vmem:[%s21170_s4 + $0xb8] sm:$0xff] }
 0x248   : > { %v6659_v42 = vadd.f32 %v21736_v34, %v4970_v35  ;;  %v7770_v23 = vshrl.u32 %v20679_v36, 16  ;;  %v7773_v44 = vshll.u32 %v20679_v36, 16 }
 0x24a   : > { %v8860_v28 = vadd.f32 %v8520_v22, %v6659_v42  ;;  %v2237_v22 = vrot.slane %v2235_v12, 1  ;;  %v21840_v42 = vld [vmem:[%s21099_s25 + $0xa0] sm:$0xff] }
 0x24b   : > { %v2243_v50 = vshll.u32 %v21840_v42, 16 }
 0x24c   : > { %9005 = vst [vmem:[%s21170_s4 + $0x80] sm:$0xff] %v8860_v28  ;;  %v2238_v30 = vsel %vm2082_vm2, %v2233_v0, %v2237_v22 }
 0x24d   : > { %v4632_v54 = vpop.f32.mrf.mxu2 }
 0x24e   : > { %v4971_v34 = vadd.f32 %v4632_v54, %v3281_v52  ;;  %v2945_v56 = vpop.f32.mrf.mxu1  ;;  %v21849_v52 = vld [vmem:[%s21099_s25 + $0xa0] sm:$0xff] }
 0x24f   : > { %v8525_v59 = vpop.f32.mrf.mxu0  ;;  %v3282_v5 = vadd.f32 %v2945_v56, %v1444_v3  ;;  %v7775_v56 = vrot.slane %v7773_v44, 2 }
 0x250   : > { %v6660_v38 = vadd.f32 %v21746_v51, %v4971_v34  ;;  %v5940_v51 = vsel %vm4210_vm1, %v5937_v26, %v5939_v63  ;;  %v7767_v26 = vor.u32 %v7766_v19, %v7763_v60  ;;  %v7772_v34 = vrot.slane %v7770_v23, 1 }
 0x251   : > { %17732 = vmatmul.msk.bf16.gmra.mxu1 %vm688_vm0, %v2230_v57  ;;  %18468 = vmatmul.msk.bf16.gmra.mxu3 %vm688_vm0, %v5940_v51 }
 0x252   : > { %18099 = vmatmul.msk.bf16.gmra.mxu2 %vm688_vm0, %v4247_v40  ;;  %v8861_v1 = vadd.f32 %v8522_v43, %v6660_v38  ;;  %18833 = vmatmul.msk.bf16.gmra.mxu0 %vm688_vm0, %v7759_v45  ;;  %v7768_v17 = vsel %vm7589_vm3, %v7758_v53, %v7767_v26  ;;  %v2241_v38 = vor.u32 %v2239_v48, %v2237_v22  ;;  %v4250_v45 = vrot.slane %v21849_v52, 1  ;;  %v1450_v52 = vld [vmem:[%s21170_s4 + $0xc0] sm:$0xff] }
 0x253   : > { %v2247_v22 = vshrl.u32 %v21840_v42, 16 }
 0x254   : > { %9006 = vst [vmem:[%s21170_s4 + $0x88] sm:$0xff] %v8861_v1  ;;  %v21823_v20 = vpop.f32.mrf.mxu3  ;;  %v4251_v51 = vsel %vm4210_vm1, %v4248_v18, %v4250_v45 }
 0x255   : > { %v4635_v55 = vpop.f32.mrf.mxu2 }
 0x256   : > { %v4972_v9 = vadd.f32 %v4635_v55, %v3282_v5  ;;  %v2947_v6 = vpop.f32.mrf.mxu1  ;;  %v20608_v5 = vld [vmem:[%s21099_s25 + $0xc0] sm:$0xff] }
 0x257   : > { %v8527_v16 = vpop.f32.mrf.mxu0  ;;  %v3283_v25 = vadd.f32 %v2947_v6, %v1445_v21  ;;  %v20680_v6 = vld [vmem:[%s21099_s25 + $0xb8] sm:$0xff]  ;;  %v5943_v10 = vrot.slane %v20608_v5, 1  ;;  %v1451_v5 = vld [vmem:[%s21170_s4 + $0xc8] sm:$0xff] }
 0x258   : > { %v6661_v15 = vadd.f32 %v21765_v8, %v4972_v9  ;;  %v7779_v60 = vshrl.u32 %v20680_v6, 16  ;;  %v7782_v19 = vshll.u32 %v20680_v6, 16 }
 0x25a   : > { %v8862_v2 = vadd.f32 %v8525_v59, %v6661_v15  ;;  %v2245_v59 = vrot.slane %v2243_v50, 1  ;;  %v21869_v15 = vld [vmem:[%s21099_s25 + $0xa8] sm:$0xff] }
 0x25b   : > { %v2251_v18 = vshll.u32 %v21869_v15, 16 }
 0x25c   : > { %9007 = vst [vmem:[%s21170_s4 + $0x90] sm:$0xff] %v8862_v2  ;;  %v21833_v35 = vpop.f32.mrf.mxu3  ;;  %v2246_v4 = vsel %vm2082_vm2, %v2241_v38, %v2245_v59 }
 0x25d   : > { %v4637_v27 = vpop.f32.mrf.mxu2 }
 0x25e   : > { %v4973_v8 = vadd.f32 %v4637_v27, %v3283_v25  ;;  %v2950_v29 = vpop.f32.mrf.mxu1  ;;  %v21878_v25 = vld [vmem:[%s21099_s25 + $0xa8] sm:$0xff] }
 0x25f   : > { %v8530_v32 = vpop.f32.mrf.mxu0  ;;  %v3284_v43 = vadd.f32 %v2950_v29, %v1446_v41  ;;  %v7784_v29 = vrot.slane %v7782_v19, 2 }
 0x260   : > { %v6662_v11 = vadd.f32 %v21775_v24, %v4973_v8  ;;  %v5942_v24 = vsel %vm4210_vm1, %v5939_v63, %v5941_v37  ;;  %v7776_v63 = vor.u32 %v7775_v56, %v7772_v34  ;;  %v7781_v8 = vrot.slane %v7779_v60, 1 }
 0x261   : > { %17733 = vmatmul.msk.bf16.gmra.mxu1 %vm688_vm0, %v2238_v30  ;;  %18469 = vmatmul.msk.bf16.gmra.mxu3 %vm688_vm0, %v5942_v24 }
 0x262   : > { %18100 = vmatmul.msk.bf16.gmra.mxu2 %vm688_vm0, %v4249_v13  ;;  %v8863_v39 = vadd.f32 %v8527_v16, %v6662_v11  ;;  %18834 = vmatmul.msk.bf16.gmra.mxu0 %vm688_vm0, %v7768_v17  ;;  %v7777_v55 = vsel %vm7589_vm3, %v7767_v26, %v7776_v63  ;;  %v2249_v11 = vor.u32 %v2247_v22, %v2245_v59  ;;  %v4252_v17 = vrot.slane %v21878_v25, 1  ;;  %v1452_v25 = vld [vmem:[%s21170_s4 + $0xd0] sm:$0xff] }
 0x263   : > { %v2255_v59 = vshrl.u32 %v21869_v15, 16 }
 0x264   : > { %9008 = vst [vmem:[%s21170_s4 + $0x98] sm:$0xff] %v8863_v39  ;;  %v21852_v57 = vpop.f32.mrf.mxu3  ;;  %v4253_v24 = vsel %vm4210_vm1, %v4250_v45, %v4252_v17 }
 0x265   : > { %v4640_v28 = vpop.f32.mrf.mxu2 }
 0x266   : > { %v4974_v47 = vadd.f32 %v4640_v28, %v3284_v43  ;;  %v2952_v33 = vpop.f32.mrf.mxu1  ;;  %v20609_v43 = vld [vmem:[%s21099_s25 + $0xc8] sm:$0xff] }
 0x267   : > { %v8532_v54 = vpop.f32.mrf.mxu0  ;;  %v3285_v62 = vadd.f32 %v2952_v33, %v1447_v58  ;;  %v20681_v33 = vld [vmem:[%s21099_s25 + $0xc0] sm:$0xff]  ;;  %v5945_v48 = vrot.slane %v20609_v43, 1  ;;  %v1453_v43 = vld [vmem:[%s21170_s4 + $0xd8] sm:$0xff] }
 0x268   : > { %v6663_v53 = vadd.f32 %v21794_v46, %v4974_v47  ;;  %v7788_v34 = vshrl.u32 %v20681_v33, 16  ;;  %v7791_v56 = vshll.u32 %v20681_v33, 16 }
 0x26a   : > { %v8864_v40 = vadd.f32 %v8530_v32, %v6663_v53  ;;  %v2253_v32 = vrot.slane %v2251_v18, 1  ;;  %v21898_v53 = vld [vmem:[%s21099_s25 + $0xb0] sm:$0xff] }
 0x26b   : > { %v2259_v45 = vshll.u32 %v21898_v53, 16 }
 0x26c   : > { %9009 = vst [vmem:[%s21170_s4 + $0xa0] sm:$0xff] %v8864_v40  ;;  %v21862_v9 = vpop.f32.mrf.mxu3  ;;  %v2254_v42 = vsel %vm2082_vm2, %v2249_v11, %v2253_v32 }
 0x26d   : > { %v4642_v1 = vpop.f32.mrf.mxu2 }
 0x26e   : > { %v4975_v46 = vadd.f32 %v4642_v1, %v3285_v62  ;;  %v2955_v3 = vpop.f32.mrf.mxu1  ;;  %v21907_v62 = vld [vmem:[%s21099_s25 + $0xb0] sm:$0xff] }
 0x26f   : > { %v8535_v7 = vpop.f32.mrf.mxu0  ;;  %v3286_v16 = vadd.f32 %v2955_v3, %v1448_v14  ;;  %v7793_v3 = vrot.slane %v7791_v56, 2 }
 0x270   : > { %v6664_v49 = vadd.f32 %v21804_v61, %v4975_v46  ;;  %v5944_v61 = vsel %vm4210_vm1, %v5941_v37, %v5943_v10  ;;  %v7785_v37 = vor.u32 %v7784_v29, %v7781_v8  ;;  %v7790_v46 = vrot.slane %v7788_v34, 1 }
 0x271   : > { %17734 = vmatmul.msk.bf16.gmra.mxu1 %vm688_vm0, %v2246_v4  ;;  %18470 = vmatmul.msk.bf16.gmra.mxu3 %vm688_vm0, %v5944_v61 }
 0x272   : > { %18101 = vmatmul.msk.bf16.gmra.mxu2 %vm688_vm0, %v4251_v51  ;;  %v8865_v12 = vadd.f32 %v8532_v54, %v6664_v49  ;;  %18835 = vmatmul.msk.bf16.gmra.mxu0 %vm688_vm0, %v7777_v55  ;;  %v7786_v28 = vsel %vm7589_vm3, %v7776_v63, %v7785_v37  ;;  %v2257_v49 = vor.u32 %v2255_v59, %v2253_v32  ;;  %v4254_v55 = vrot.slane %v21907_v62, 1  ;;  %v1454_v62 = vld [vmem:[%s21170_s4 + $0xe0] sm:$0xff] }
 0x273   : > { %v2263_v32 = vshrl.u32 %v21898_v53, 16 }
 0x274   : > { %9010 = vst [vmem:[%s21170_s4 + $0xa8] sm:$0xff] %v8865_v12  ;;  %v21881_v30 = vpop.f32.mrf.mxu3  ;;  %v4255_v61 = vsel %vm4210_vm1, %v4252_v17, %v4254_v55 }
 0x275   : > { %v4645_v2 = vpop.f32.mrf.mxu2 }
 0x276   : > { %v4976_v21 = vadd.f32 %v4645_v2, %v3286_v16  ;;  %v2957_v0 = vpop.f32.mrf.mxu1  ;;  %v20610_v16 = vld [vmem:[%s21099_s25 + $0xd0] sm:$0xff] }
 0x277   : > { %v8537_v27 = vpop.f32.mrf.mxu0  ;;  %v3287_v36 = vadd.f32 %v2957_v0, %v1449_v31  ;;  %v20682_v0 = vld [vmem:[%s21099_s25 + $0xc8] sm:$0xff]  ;;  %v5947_v22 = vrot.slane %v20610_v16, 1 }
 0x278   : > { %v6665_v26 = vadd.f32 %v21823_v20, %v4976_v21  ;;  %v7797_v8 = vshrl.u32 %v20682_v0, 16  ;;  %v7800_v29 = vshll.u32 %v20682_v0, 16  ;;  %v1455_v16 = vld [vmem:[%s21170_s4 + $0xe8] sm:$0xff] }
 0x27a   : > { %v8866_v13 = vadd.f32 %v8535_v7, %v6665_v26  ;;  %v2261_v7 = vrot.slane %v2259_v45, 1  ;;  %v21927_v26 = vld [vmem:[%s21099_s25 + $0xb8] sm:$0xff] }
 0x27b   : > { %v2267_v17 = vshll.u32 %v21927_v26, 16 }
 0x27c   : > { %9011 = vst [vmem:[%s21170_s4 + $0xb0] sm:$0xff] %v8866_v13  ;;  %v21891_v47 = vpop.f32.mrf.mxu3  ;;  %v2262_v15 = vsel %vm2082_vm2, %v2257_v49, %v2261_v7 }
 0x27d   : > { %v4647_v39 = vpop.f32.mrf.mxu2 }
 0x27e   : > { %v4977_v20 = vadd.f32 %v4647_v39, %v3287_v36  ;;  %v2960_v41 = vpop.f32.mrf.mxu1  ;;  %v21936_v36 = vld [vmem:[%s21099_s25 + $0xb8] sm:$0xff] }
 0x27f   : > { %v8540_v44 = vpop.f32.mrf.mxu0  ;;  %v3288_v54 = vadd.f32 %v2960_v41, %v1450_v52  ;;  %v7802_v41 = vrot.slane %v7800_v29, 2 }
 0x280   : > { %v6666_v23 = vadd.f32 %v21833_v35, %v4977_v20  ;;  %v5946_v35 = vsel %vm4210_vm1, %v5943_v10, %v5945_v48  ;;  %v7794_v10 = vor.u32 %v7793_v3, %v7790_v46  ;;  %v7799_v20 = vrot.slane %v7797_v8, 1 }
 0x281   : > { %17735 = vmatmul.msk.bf16.gmra.mxu1 %vm688_vm0, %v2254_v42  ;;  %18471 = vmatmul.msk.bf16.gmra.mxu3 %vm688_vm0, %v5946_v35 }
 0x282   : > { %18102 = vmatmul.msk.bf16.gmra.mxu2 %vm688_vm0, %v4253_v24  ;;  %v8867_v50 = vadd.f32 %v8537_v27, %v6666_v23  ;;  %18836 = vmatmul.msk.bf16.gmra.mxu0 %vm688_vm0, %v7786_v28  ;;  %v7795_v2 = vsel %vm7589_vm3, %v7785_v37, %v7794_v10  ;;  %v2265_v23 = vor.u32 %v2263_v32, %v2261_v7  ;;  %v4256_v28 = vrot.slane %v21936_v36, 1  ;;  %v1456_v36 = vld [vmem:[%s21170_s4 + $0xf0] sm:$0xff] }
 0x283   : > { %v2271_v7 = vshrl.u32 %v21927_v26, 16 }
 0x284   : > { %9012 = vst [vmem:[%s21170_s4 + $0xb8] sm:$0xff] %v8867_v50  ;;  %v21910_v4 = vpop.f32.mrf.mxu3  ;;  %v4257_v35 = vsel %vm4210_vm1, %v4254_v55, %v4256_v28 }
 0x285   : > { %v4650_v40 = vpop.f32.mrf.mxu2 }
 0x286   : > { %v4978_v58 = vadd.f32 %v4650_v40, %v3288_v54  ;;  %v2962_v38 = vpop.f32.mrf.mxu1  ;;  %v20611_v54 = vld [vmem:[%s21099_s25 + $0xd8] sm:$0xff] }
 0x287   : > { %v8542_v1 = vpop.f32.mrf.mxu0  ;;  %v3289_v6 = vadd.f32 %v2962_v38, %v1451_v5  ;;  %v20683_v38 = vld [vmem:[%s21099_s25 + $0xd0] sm:$0xff]  ;;  %v5949_v59 = vrot.slane %v20611_v54, 1  ;;  %v1457_v54 = vld [vmem:[%s21170_s4 + $0xf8] sm:$0xff] }
 0x288   : > { %v6667_v63 = vadd.f32 %v21852_v57, %v4978_v58  ;;  %v7806_v46 = vshrl.u32 %v20683_v38, 16  ;;  %v7809_v3 = vshll.u32 %v20683_v38, 16 }
 0x28a   : > { %v8868_v51 = vadd.f32 %v8540_v44, %v6667_v63  ;;  %v2269_v44 = vrot.slane %v2267_v17, 1  ;;  %v21956_v63 = vld [vmem:[%s21099_s25 + $0xc0] sm:$0xff] }
 0x28b   : > { %v2275_v55 = vshll.u32 %v21956_v63, 16 }
 0x28c   : > { %9013 = vst [vmem:[%s21170_s4 + $0xc0] sm:$0xff] %v8868_v51  ;;  %v21920_v21 = vpop.f32.mrf.mxu3  ;;  %v2270_v53 = vsel %vm2082_vm2, %v2265_v23, %v2269_v44 }
 0x28d   : > { %v4652_v12 = vpop.f32.mrf.mxu2 }
 0x28e   : > { %v4979_v57 = vadd.f32 %v4652_v12, %v3289_v6  ;;  %v2965_v14 = vpop.f32.mrf.mxu1  ;;  %v21965_v6 = vld [vmem:[%s21099_s25 + $0xc0] sm:$0xff] }
 0x28f   : > { %v8545_v19 = vpop.f32.mrf.mxu0  ;;  %v3290_v27 = vadd.f32 %v2965_v14, %v1452_v25  ;;  %v7811_v14 = vrot.slane %v7809_v3, 2 }
 0x290   : > { %v6668_v60 = vadd.f32 %v21862_v9, %v4979_v57  ;;  %v5948_v9 = vsel %vm4210_vm1, %v5945_v48, %v5947_v22  ;;  %v7803_v48 = vor.u32 %v7802_v41, %v7799_v20  ;;  %v7808_v57 = vrot.slane %v7806_v46, 1 }
 0x291   : > { %17736 = vmatmul.msk.bf16.gmra.mxu1 %vm688_vm0, %v2262_v15  ;;  %18472 = vmatmul.msk.bf16.gmra.mxu3 %vm688_vm0, %v5948_v9 }
 0x292   : > { %18103 = vmatmul.msk.bf16.gmra.mxu2 %vm688_vm0, %v4255_v61  ;;  %v8869_v18 = vadd.f32 %v8542_v1, %v6668_v60  ;;  %18837 = vmatmul.msk.bf16.gmra.mxu0 %vm688_vm0, %v7795_v2  ;;  %v7804_v40 = vsel %vm7589_vm3, %v7794_v10, %v7803_v48  ;;  %v2273_v60 = vor.u32 %v2271_v7, %v2269_v44  ;;  %v4258_v2 = vrot.slane %v21965_v6, 1  ;;  %v1458_v6 = vld [vmem:[%s21170_s4 + $0x100] sm:$0xff] }
 0x293   : > { %v2279_v44 = vshrl.u32 %v21956_v63, 16 }
 0x294   : > { %9014 = vst [vmem:[%s21170_s4 + $0xc8] sm:$0xff] %v8869_v18  ;;  %v21939_v42 = vpop.f32.mrf.mxu3  ;;  %v4259_v9 = vsel %vm4210_vm1, %v4256_v28, %v4258_v2 }
 0x295   : > { %v4655_v13 = vpop.f32.mrf.mxu2 }
 0x296   : > { %v4980_v31 = vadd.f32 %v4655_v13, %v3290_v27  ;;  %v2967_v11 = vpop.f32.mrf.mxu1  ;;  %v20612_v27 = vld [vmem:[%s21099_s25 + $0xe0] sm:$0xff] }
 0x297   : > { %v8547_v39 = vpop.f32.mrf.mxu0  ;;  %v3291_v33 = vadd.f32 %v2967_v11, %v1453_v43  ;;  %v20684_v11 = vld [vmem:[%s21099_s25 + $0xd8] sm:$0xff]  ;;  %v5951_v32 = vrot.slane %v20612_v27, 1  ;;  %v1459_v27 = vld [vmem:[%s21170_s4 + $0x108] sm:$0xff] }
 0x298   : > { %v6669_v37 = vadd.f32 %v21881_v30, %v4980_v31  ;;  %v7815_v20 = vshrl.u32 %v20684_v11, 16  ;;  %v7818_v41 = vshll.u32 %v20684_v11, 16 }
 0x29a   : > { %v8870_v24 = vadd.f32 %v8545_v19, %v6669_v37  ;;  %v2277_v19 = vrot.slane %v2275_v55, 1  ;;  %v21985_v37 = vld [vmem:[%s21099_s25 + $0xc8] sm:$0xff] }
 0x29b   : > { %v2283_v28 = vshll.u32 %v21985_v37, 16 }
 0x29c   : > { %9015 = vst [vmem:[%s21170_s4 + $0xd0] sm:$0xff] %v8870_v24  ;;  %v21949_v58 = vpop.f32.mrf.mxu3  ;;  %v2278_v26 = vsel %vm2082_vm2, %v2273_v60, %v2277_v19 }
 0x29d   : > { %v4657_v50 = vpop.f32.mrf.mxu2 }
 0x29e   : > { %v4981_v30 = vadd.f32 %v4657_v50, %v3291_v33  ;;  %v2970_v52 = vpop.f32.mrf.mxu1  ;;  %v21994_v33 = vld [vmem:[%s21099_s25 + $0xc8] sm:$0xff] }
 0x29f   : > { %v8550_v56 = vpop.f32.mrf.mxu0  ;;  %v3292_v1 = vadd.f32 %v2970_v52, %v1454_v62  ;;  %v7820_v52 = vrot.slane %v7818_v41, 2 }
 0x2a0   : > { %v6670_v34 = vadd.f32 %v21891_v47, %v4981_v30  ;;  %v5950_v47 = vsel %vm4210_vm1, %v5947_v22, %v5949_v59  ;;  %v7812_v22 = vor.u32 %v7811_v14, %v7808_v57  ;;  %v7817_v30 = vrot.slane %v7815_v20, 1 }
 0x2a1   : > { %17737 = vmatmul.msk.bf16.gmra.mxu1 %vm688_vm0, %v2270_v53  ;;  %18473 = vmatmul.msk.bf16.gmra.mxu3 %vm688_vm0, %v5950_v47 }
 0x2a2   : > { %18104 = vmatmul.msk.bf16.gmra.mxu2 %vm688_vm0, %v4257_v35  ;;  %v8871_v45 = vadd.f32 %v8547_v39, %v6670_v34  ;;  %18838 = vmatmul.msk.bf16.gmra.mxu0 %vm688_vm0, %v7804_v40  ;;  %v7813_v13 = vsel %vm7589_vm3, %v7803_v48, %v7812_v22  ;;  %v2281_v34 = vor.u32 %v2279_v44, %v2277_v19  ;;  %v4260_v40 = vrot.slane %v21994_v33, 1  ;;  %v1460_v33 = vld [vmem:[%s21170_s4 + $0x110] sm:$0xff] }
 0x2a3   : > { %v2287_v19 = vshrl.u32 %v21985_v37, 16 }
 0x2a4   : > { %9016 = vst [vmem:[%s21170_s4 + $0xd8] sm:$0xff] %v8871_v45  ;;  %v21968_v15 = vpop.f32.mrf.mxu3  ;;  %v4261_v47 = vsel %vm4210_vm1, %v4258_v2, %v4260_v40 }
 0x2a5   : > { %v4660_v51 = vpop.f32.mrf.mxu2 }
 0x2a6   : > { %v4982_v5 = vadd.f32 %v4660_v51, %v3292_v1  ;;  %v2972_v49 = vpop.f32.mrf.mxu1  ;;  %v20613_v1 = vld [vmem:[%s21099_s25 + $0xe8] sm:$0xff] }
 0x2a7   : > { %v8552_v12 = vpop.f32.mrf.mxu0  ;;  %v3293_v0 = vadd.f32 %v2972_v49, %v1455_v16  ;;  %v20685_v49 = vld [vmem:[%s21099_s25 + $0xe0] sm:$0xff]  ;;  %v5953_v7 = vrot.slane %v20613_v1, 1  ;;  %v1461_v1 = vld [vmem:[%s21170_s4 + $0x118] sm:$0xff] }
 0x2a8   : > { %v6671_v10 = vadd.f32 %v21910_v4, %v4982_v5  ;;  %v7824_v57 = vshrl.u32 %v20685_v49, 16  ;;  %v7827_v14 = vshll.u32 %v20685_v49, 16 }
 0x2aa   : > { %v8872_v61 = vadd.f32 %v8550_v56, %v6671_v10  ;;  %v2285_v56 = vrot.slane %v2283_v28, 1  ;;  %v22014_v10 = vld [vmem:[%s21099_s25 + $0xd0] sm:$0xff] }
 0x2ab   : > { %v2291_v2 = vshll.u32 %v22014_v10, 16 }
 0x2ac   : > { %9017 = vst [vmem:[%s21170_s4 + $0xe0] sm:$0xff] %v8872_v61  ;;  %v21978_v31 = vpop.f32.mrf.mxu3  ;;  %v2286_v63 = vsel %vm2082_vm2, %v2281_v34, %v2285_v56 }
 0x2ad   : > { %v4662_v18 = vpop.f32.mrf.mxu2 }
 0x2ae   : > { %v4983_v4 = vadd.f32 %v4662_v18, %v3293_v0  ;;  %v2975_v25 = vpop.f32.mrf.mxu1  ;;  %v22023_v0 = vld [vmem:[%s21099_s25 + $0xd0] sm:$0xff] }
 0x2af   : > { %v8555_v29 = vpop.f32.mrf.mxu0  ;;  %v3294_v39 = vadd.f32 %v2975_v25, %v1456_v36  ;;  %v7829_v25 = vrot.slane %v7827_v14, 2 }
 0x2b0   : > { %v6672_v8 = vadd.f32 %v21920_v21, %v4983_v4  ;;  %v5952_v21 = vsel %vm4210_vm1, %v5949_v59, %v5951_v32  ;;  %v7821_v59 = vor.u32 %v7820_v52, %v7817_v30  ;;  %v7826_v4 = vrot.slane %v7824_v57, 1 }
 0x2b1   : > { %17738 = vmatmul.msk.bf16.gmra.mxu1 %vm688_vm0, %v2278_v26  ;;  %18474 = vmatmul.msk.bf16.gmra.mxu3 %vm688_vm0, %v5952_v21 }
 0x2b2   : > { %18105 = vmatmul.msk.bf16.gmra.mxu2 %vm688_vm0, %v4259_v9  ;;  %v8873_v17 = vadd.f32 %v8552_v12, %v6672_v8  ;;  %18839 = vmatmul.msk.bf16.gmra.mxu0 %vm688_vm0, %v7813_v13  ;;  %v7822_v51 = vsel %vm7589_vm3, %v7812_v22, %v7821_v59  ;;  %v2289_v8 = vor.u32 %v2287_v19, %v2285_v56  ;;  %v4262_v13 = vrot.slane %v22023_v0, 1  ;;  %v1462_v0 = vld [vmem:[%s21170_s4 + $0x120] sm:$0xff] }
 0x2b3   : > { %v2295_v56 = vshrl.u32 %v22014_v10, 16 }
 0x2b4   : > { %9018 = vst [vmem:[%s21170_s4 + $0xe8] sm:$0xff] %v8873_v17  ;;  %v21997_v53 = vpop.f32.mrf.mxu3  ;;  %v4263_v21 = vsel %vm4210_vm1, %v4260_v40, %v4262_v13 }
 0x2b5   : > { %v4665_v24 = vpop.f32.mrf.mxu2 }
 0x2b6   : > { %v4984_v43 = vadd.f32 %v4665_v24, %v3294_v39  ;;  %v2977_v23 = vpop.f32.mrf.mxu1  ;;  %v20614_v39 = vld [vmem:[%s21099_s25 + $0xf0] sm:$0xff] }
 0x2b7   : > { %v8557_v50 = vpop.f32.mrf.mxu0  ;;  %v3295_v38 = vadd.f32 %v2977_v23, %v1457_v54  ;;  %v20686_v23 = vld [vmem:[%s21099_s25 + $0xe8] sm:$0xff]  ;;  %v5955_v44 = vrot.slane %v20614_v39, 1 }
 0x2b8   : > { %v6673_v48 = vadd.f32 %v21939_v42, %v4984_v43  ;;  %v7833_v30 = vshrl.u32 %v20686_v23, 16  ;;  %v7836_v52 = vshll.u32 %v20686_v23, 16  ;;  %v1463_v39 = vld [vmem:[%s21170_s4 + $0x128] sm:$0xff] }
 0x2ba   : > { %v8874_v35 = vadd.f32 %v8555_v29, %v6673_v48  ;;  %v2293_v29 = vrot.slane %v2291_v2, 1  ;;  %v22043_v48 = vld [vmem:[%s21099_s25 + $0xd8] sm:$0xff] }
 0x2bb   : > { %v2299_v40 = vshll.u32 %v22043_v48, 16 }
 0x2bc   : > { %9019 = vst [vmem:[%s21170_s4 + $0xf0] sm:$0xff] %v8874_v35  ;;  %v22007_v5 = vpop.f32.mrf.mxu3  ;;  %v2294_v37 = vsel %vm2082_vm2, %v2289_v8, %v2293_v29 }
 0x2bd   : > { %v4667_v45 = vpop.f32.mrf.mxu2 }
 0x2be   : > { %v4985_v42 = vadd.f32 %v4667_v45, %v3295_v38  ;;  %v2980_v62 = vpop.f32.mrf.mxu1  ;;  %v22052_v38 = vld [vmem:[%s21099_s25 + $0xd8] sm:$0xff] }
 0x2bf   : > { %v8560_v3 = vpop.f32.mrf.mxu0  ;;  %v3296_v12 = vadd.f32 %v2980_v62, %v1458_v6  ;;  %v7838_v62 = vrot.slane %v7836_v52, 2 }
 0x2c0   : > { %v6674_v46 = vadd.f32 %v21949_v58, %v4985_v42  ;;  %v5954_v58 = vsel %vm4210_vm1, %v5951_v32, %v5953_v7  ;;  %v7830_v32 = vor.u32 %v7829_v25, %v7826_v4  ;;  %v7835_v42 = vrot.slane %v7833_v30, 1 }
 0x2c1   : > { %17739 = vmatmul.msk.bf16.gmra.mxu1 %vm688_vm0, %v2286_v63  ;;  %18475 = vmatmul.msk.bf16.gmra.mxu3 %vm688_vm0, %v5954_v58 }
 0x2c2   : > { %18106 = vmatmul.msk.bf16.gmra.mxu2 %vm688_vm0, %v4261_v47  ;;  %v8875_v55 = vadd.f32 %v8557_v50, %v6674_v46  ;;  %18840 = vmatmul.msk.bf16.gmra.mxu0 %vm688_vm0, %v7822_v51  ;;  %v7831_v24 = vsel %vm7589_vm3, %v7821_v59, %v7830_v32  ;;  %v2297_v46 = vor.u32 %v2295_v56, %v2293_v29  ;;  %v4264_v51 = vrot.slane %v22052_v38, 1  ;;  %v1464_v38 = vld [vmem:[%s21170_s4 + $0x130] sm:$0xff] }
 0x2c3   : > { %v2303_v29 = vshrl.u32 %v22043_v48, 16 }
 0x2c4   : > { %9020 = vst [vmem:[%s21170_s4 + $0xf8] sm:$0xff] %v8875_v55  ;;  %v22026_v26 = vpop.f32.mrf.mxu3  ;;  %v4265_v58 = vsel %vm4210_vm1, %v4262_v13, %v4264_v51 }
 0x2c5   : > { %v4670_v61 = vpop.f32.mrf.mxu2 }
 0x2c6   : > { %v4986_v16 = vadd.f32 %v4670_v61, %v3296_v12  ;;  %v2982_v60 = vpop.f32.mrf.mxu1  ;;  %v20615_v12 = vld [vmem:[%s21099_s25 + $0xf8] sm:$0xff] }
 0x2c7   : > { %v8562_v18 = vpop.f32.mrf.mxu0  ;;  %v3297_v11 = vadd.f32 %v2982_v60, %v1459_v27  ;;  %v20687_v60 = vld [vmem:[%s21099_s25 + $0xf0] sm:$0xff]  ;;  %v5957_v19 = vrot.slane %v20615_v12, 1  ;;  %v1465_v12 = vld [vmem:[%s21170_s4 + $0x138] sm:$0xff] }
 0x2c8   : > { %v6675_v22 = vadd.f32 %v21968_v15, %v4986_v16  ;;  %v7842_v4 = vshrl.u32 %v20687_v60, 16  ;;  %v7845_v25 = vshll.u32 %v20687_v60, 16 }
 0x2ca   : > { %v8876_v9 = vadd.f32 %v8560_v3, %v6675_v22  ;;  %v2301_v3 = vrot.slane %v2299_v40, 1  ;;  %v22072_v22 = vld [vmem:[%s21099_s25 + $0xe0] sm:$0xff] }
 0x2cb   : > { %v2307_v13 = vshll.u32 %v22072_v22, 16 }
 0x2cc   : > { %9021 = vst [vmem:[%s21170_s4 + $0x100] sm:$0xff] %v8876_v9  ;;  %v22036_v43 = vpop.f32.mrf.mxu3  ;;  %v2302_v10 = vsel %vm2082_vm2, %v2297_v46, %v2301_v3 }
 0x2cd   : > { %v4672_v17 = vpop.f32.mrf.mxu2 }
 0x2ce   : > { %v4987_v15 = vadd.f32 %v4672_v17, %v3297_v11  ;;  %v2985_v36 = vpop.f32.mrf.mxu1  ;;  %v22081_v11 = vld [vmem:[%s21099_s25 + $0xe0] sm:$0xff] }
 0x2cf   : > { %v8565_v41 = vpop.f32.mrf.mxu0  ;;  %v3298_v50 = vadd.f32 %v2985_v36, %v1460_v33  ;;  %v7847_v36 = vrot.slane %v7845_v25, 2 }
 0x2d0   : > { %v6676_v20 = vadd.f32 %v21978_v31, %v4987_v15  ;;  %v5956_v31 = vsel %vm4210_vm1, %v5953_v7, %v5955_v44  ;;  %v7839_v7 = vor.u32 %v7838_v62, %v7835_v42  ;;  %v7844_v15 = vrot.slane %v7842_v4, 1 }
 0x2d1   : > { %17740 = vmatmul.msk.bf16.gmra.mxu1 %vm688_vm0, %v2294_v37  ;;  %18476 = vmatmul.msk.bf16.gmra.mxu3 %vm688_vm0, %v5956_v31 }
 0x2d2   : > { %18107 = vmatmul.msk.bf16.gmra.mxu2 %vm688_vm0, %v4263_v21  ;;  %v8877_v28 = vadd.f32 %v8562_v18, %v6676_v20  ;;  %18841 = vmatmul.msk.bf16.gmra.mxu0 %vm688_vm0, %v7831_v24  ;;  %v7840_v61 = vsel %vm7589_vm3, %v7830_v32, %v7839_v7  ;;  %v2305_v20 = vor.u32 %v2303_v29, %v2301_v3  ;;  %v4266_v24 = vrot.slane %v22081_v11, 1  ;;  %v1466_v11 = vld [vmem:[%s21170_s4 + $0x140] sm:$0xff] }
 0x2d3   : > { %v2311_v3 = vshrl.u32 %v22072_v22, 16 }
 0x2d4   : > { %9022 = vst [vmem:[%s21170_s4 + $0x108] sm:$0xff] %v8877_v28  ;;  %v22055_v63 = vpop.f32.mrf.mxu3  ;;  %v4267_v31 = vsel %vm4210_vm1, %v4264_v51, %v4266_v24 }
 0x2d5   : > { %v4675_v35 = vpop.f32.mrf.mxu2 }
 0x2d6   : > { %v4988_v54 = vadd.f32 %v4675_v35, %v3298_v50  ;;  %v2987_v34 = vpop.f32.mrf.mxu1  ;;  %v20616_v50 = vld [vmem:[%s21099_s25 + $0x100] sm:$0xff] }
 0x2d7   : > { %v8567_v45 = vpop.f32.mrf.mxu0  ;;  %v3299_v49 = vadd.f32 %v2987_v34, %v1461_v1  ;;  %v20688_v34 = vld [vmem:[%s21099_s25 + $0xf8] sm:$0xff]  ;;  %v5959_v56 = vrot.slane %v20616_v50, 1  ;;  %v1467_v50 = vld [vmem:[%s21170_s4 + $0x148] sm:$0xff] }
 0x2d8   : > { %v6677_v59 = vadd.f32 %v21997_v53, %v4988_v54  ;;  %v7851_v42 = vshrl.u32 %v20688_v34, 16  ;;  %v7854_v62 = vshll.u32 %v20688_v34, 16 }
 0x2da   : > { %v8878_v47 = vadd.f32 %v8565_v41, %v6677_v59  ;;  %v2309_v41 = vrot.slane %v2307_v13, 1  ;;  %v22101_v59 = vld [vmem:[%s21099_s25 + $0xe8] sm:$0xff] }
 0x2db   : > { %v2315_v51 = vshll.u32 %v22101_v59, 16 }
 0x2dc   : > { %9023 = vst [vmem:[%s21170_s4 + $0x110] sm:$0xff] %v8878_v47  ;;  %v22065_v16 = vpop.f32.mrf.mxu3  ;;  %v2310_v48 = vsel %vm2082_vm2, %v2305_v20, %v2309_v41 }
 0x2dd   : > { %v4677_v55 = vpop.f32.mrf.mxu2 }
 0x2de   : > { %v4989_v53 = vadd.f32 %v4677_v55, %v3299_v49  ;;  %v2990_v6 = vpop.f32.mrf.mxu1  ;;  %v22110_v49 = vld [vmem:[%s21099_s25 + $0xe8] sm:$0xff] }
 0x2df   : > { %v8570_v14 = vpop.f32.mrf.mxu0  ;;  %v3300_v18 = vadd.f32 %v2990_v6, %v1462_v0  ;;  %v7856_v6 = vrot.slane %v7854_v62, 2 }
 0x2e0   : > { %v6678_v57 = vadd.f32 %v22007_v5, %v4989_v53  ;;  %v5958_v5 = vsel %vm4210_vm1, %v5955_v44, %v5957_v19  ;;  %v7848_v44 = vor.u32 %v7847_v36, %v7844_v15  ;;  %v7853_v53 = vrot.slane %v7851_v42, 1 }
 0x2e1   : > { %17741 = vmatmul.msk.bf16.gmra.mxu1 %vm688_vm0, %v2302_v10  ;;  %18477 = vmatmul.msk.bf16.gmra.mxu3 %vm688_vm0, %v5958_v5 }
 0x2e2   : > { %18108 = vmatmul.msk.bf16.gmra.mxu2 %vm688_vm0, %v4265_v58  ;;  %v8879_v2 = vadd.f32 %v8567_v45, %v6678_v57  ;;  %18842 = vmatmul.msk.bf16.gmra.mxu0 %vm688_vm0, %v7840_v61  ;;  %v7849_v35 = vsel %vm7589_vm3, %v7839_v7, %v7848_v44  ;;  %v2313_v57 = vor.u32 %v2311_v3, %v2309_v41  ;;  %v4268_v61 = vrot.slane %v22110_v49, 1  ;;  %v1468_v49 = vld [vmem:[%s21170_s4 + $0x150] sm:$0xff] }
 0x2e3   : > { %v2319_v41 = vshrl.u32 %v22101_v59, 16 }
 0x2e4   : > { %9024 = vst [vmem:[%s21170_s4 + $0x118] sm:$0xff] %v8879_v2  ;;  %v22084_v37 = vpop.f32.mrf.mxu3  ;;  %v4269_v5 = vsel %vm4210_vm1, %v4266_v24, %v4268_v61 }
 0x2e5   : > { %v4680_v9 = vpop.f32.mrf.mxu2 }
 0x2e6   : > { %v4990_v27 = vadd.f32 %v4680_v9, %v3300_v18  ;;  %v2992_v8 = vpop.f32.mrf.mxu1  ;;  %v20617_v18 = vld [vmem:[%s21099_s25 + $0x108] sm:$0xff] }
 0x2e7   : > { %v8572_v17 = vpop.f32.mrf.mxu0  ;;  %v3301_v23 = vadd.f32 %v2992_v8, %v1463_v39  ;;  %v20689_v8 = vld [vmem:[%s21099_s25 + $0x100] sm:$0xff]  ;;  %v5961_v29 = vrot.slane %v20617_v18, 1  ;;  %v1469_v18 = vld [vmem:[%s21170_s4 + $0x158] sm:$0xff] }
 0x2e8   : > { %v6679_v32 = vadd.f32 %v22026_v26, %v4990_v27  ;;  %v7860_v15 = vshrl.u32 %v20689_v8, 16  ;;  %v7863_v36 = vshll.u32 %v20689_v8, 16 }
 0x2ea   : > { %v8880_v21 = vadd.f32 %v8570_v14, %v6679_v32  ;;  %v2317_v14 = vrot.slane %v2315_v51, 1  ;;  %v22130_v32 = vld [vmem:[%s21099_s25 + $0xf0] sm:$0xff] }
 0x2eb   : > { %v2323_v24 = vshll.u32 %v22130_v32, 16 }
 0x2ec   : > { %9025 = vst [vmem:[%s21170_s4 + $0x120] sm:$0xff] %v8880_v21  ;;  %v22094_v54 = vpop.f32.mrf.mxu3  ;;  %v2318_v22 = vsel %vm2082_vm2, %v2313_v57, %v2317_v14 }
 0x2ed   : > { %v4682_v28 = vpop.f32.mrf.mxu2 }
 0x2ee   : > { %v4991_v26 = vadd.f32 %v4682_v28, %v3301_v23  ;;  %v2995_v33 = vpop.f32.mrf.mxu1  ;;  %v22139_v23 = vld [vmem:[%s21099_s25 + $0xf0] sm:$0xff] }
 0x2ef   : > { %v8575_v52 = vpop.f32.mrf.mxu0  ;;  %v3302_v45 = vadd.f32 %v2995_v33, %v1464_v38  ;;  %v7865_v33 = vrot.slane %v7863_v36, 2 }
 0x2f0   : > { %v6680_v30 = vadd.f32 %v22036_v43, %v4991_v26  ;;  %v5960_v43 = vsel %vm4210_vm1, %v5957_v19, %v5959_v56  ;;  %v7857_v19 = vor.u32 %v7856_v6, %v7853_v53  ;;  %v7862_v26 = vrot.slane %v7860_v15, 1 }
 0x2f1   : > { %17742 = vmatmul.msk.bf16.gmra.mxu1 %vm688_vm0, %v2310_v48  ;;  %18478 = vmatmul.msk.bf16.gmra.mxu3 %vm688_vm0, %v5960_v43 }
 0x2f2   : > { %18109 = vmatmul.msk.bf16.gmra.mxu2 %vm688_vm0, %v4267_v31  ;;  %v8881_v40 = vadd.f32 %v8572_v17, %v6680_v30  ;;  %18843 = vmatmul.msk.bf16.gmra.mxu0 %vm688_vm0, %v7849_v35  ;;  %v7858_v9 = vsel %vm7589_vm3, %v7848_v44, %v7857_v19  ;;  %v2321_v30 = vor.u32 %v2319_v41, %v2317_v14  ;;  %v4270_v35 = vrot.slane %v22139_v23, 1  ;;  %v1470_v23 = vld [vmem:[%s21170_s4 + $0x160] sm:$0xff] }
 0x2f3   : > { %v2327_v14 = vshrl.u32 %v22130_v32, 16 }
 0x2f4   : > { %9026 = vst [vmem:[%s21170_s4 + $0x128] sm:$0xff] %v8881_v40  ;;  %v22113_v10 = vpop.f32.mrf.mxu3  ;;  %v4271_v43 = vsel %vm4210_vm1, %v4268_v61, %v4270_v35 }
 0x2f5   : > { %v4685_v47 = vpop.f32.mrf.mxu2 }
 0x2f6   : > { %v4992_v1 = vadd.f32 %v4685_v47, %v3302_v45  ;;  %v2997_v46 = vpop.f32.mrf.mxu1  ;;  %v20618_v45 = vld [vmem:[%s21099_s25 + $0x110] sm:$0xff] }
 0x2f7   : > { %v8577_v55 = vpop.f32.mrf.mxu0  ;;  %v3303_v60 = vadd.f32 %v2997_v46, %v1465_v12  ;;  %v20690_v46 = vld [vmem:[%s21099_s25 + $0x108] sm:$0xff]  ;;  %v5963_v3 = vrot.slane %v20618_v45, 1 }
 0x2f8   : > { %v6681_v7 = vadd.f32 %v22055_v63, %v4992_v1  ;;  %v7869_v53 = vshrl.u32 %v20690_v46, 16  ;;  %v7872_v6 = vshll.u32 %v20690_v46, 16  ;;  %v1471_v45 = vld [vmem:[%s21170_s4 + $0x168] sm:$0xff] }
 0x2fa   : > { %v8882_v58 = vadd.f32 %v8575_v52, %v6681_v7  ;;  %v2325_v52 = vrot.slane %v2323_v24, 1  ;;  %v22159_v7 = vld [vmem:[%s21099_s25 + $0xf8] sm:$0xff] }
 0x2fb   : > { %v2331_v61 = vshll.u32 %v22159_v7, 16 }
 0x2fc   : > { %9027 = vst [vmem:[%s21170_s4 + $0x130] sm:$0xff] %v8882_v58  ;;  %v22123_v27 = vpop.f32.mrf.mxu3  ;;  %v2326_v59 = vsel %vm2082_vm2, %v2321_v30, %v2325_v52 }
 0x2fd   : > { %v4687_v2 = vpop.f32.mrf.mxu2 }
 0x2fe   : > { %v4993_v63 = vadd.f32 %v4687_v2, %v3303_v60  ;;  %v3000_v0 = vpop.f32.mrf.mxu1  ;;  %v22168_v60 = vld [vmem:[%s21099_s25 + $0xf8] sm:$0xff] }
 0x2ff   : > { %v8580_v25 = vpop.f32.mrf.mxu0  ;;  %v3304_v17 = vadd.f32 %v3000_v0, %v1466_v11  ;;  %v7874_v0 = vrot.slane %v7872_v6, 2 }
 0x300   : > { %v6682_v4 = vadd.f32 %v22065_v16, %v4993_v63  ;;  %v5962_v16 = vsel %vm4210_vm1, %v5959_v56, %v5961_v29  ;;  %v7866_v56 = vor.u32 %v7865_v33, %v7862_v26  ;;  %v7871_v63 = vrot.slane %v7869_v53, 1 }
 0x301   : > { %17743 = vmatmul.msk.bf16.gmra.mxu1 %vm688_vm0, %v2318_v22  ;;  %18479 = vmatmul.msk.bf16.gmra.mxu3 %vm688_vm0, %v5962_v16 }
 0x302   : > { %18110 = vmatmul.msk.bf16.gmra.mxu2 %vm688_vm0, %v4269_v5  ;;  %v8883_v13 = vadd.f32 %v8577_v55, %v6682_v4  ;;  %18844 = vmatmul.msk.bf16.gmra.mxu0 %vm688_vm0, %v7858_v9  ;;  %v7867_v47 = vsel %vm7589_vm3, %v7857_v19, %v7866_v56  ;;  %v2329_v4 = vor.u32 %v2327_v14, %v2325_v52  ;;  %v4272_v9 = vrot.slane %v22168_v60, 1  ;;  %v1472_v60 = vld [vmem:[%s21170_s4 + $0x170] sm:$0xff] }
 0x303   : > { %v2335_v52 = vshrl.u32 %v22159_v7, 16 }
 0x304   : > { %9028 = vst [vmem:[%s21170_s4 + $0x138] sm:$0xff] %v8883_v13  ;;  %v22142_v48 = vpop.f32.mrf.mxu3  ;;  %v4273_v16 = vsel %vm4210_vm1, %v4270_v35, %v4272_v9 }
 0x305   : > { %v4690_v21 = vpop.f32.mrf.mxu2 }
 0x306   : > { %v4994_v39 = vadd.f32 %v4690_v21, %v3304_v17  ;;  %v3002_v20 = vpop.f32.mrf.mxu1  ;;  %v20619_v17 = vld [vmem:[%s21099_s25 + $0x118] sm:$0xff] }
 0x307   : > { %v8582_v28 = vpop.f32.mrf.mxu0  ;;  %v3305_v34 = vadd.f32 %v3002_v20, %v1467_v50  ;;  %v20691_v20 = vld [vmem:[%s21099_s25 + $0x110] sm:$0xff]  ;;  %v5965_v41 = vrot.slane %v20619_v17, 1  ;;  %v1473_v17 = vld [vmem:[%s21170_s4 + $0x178] sm:$0xff] }
 0x308   : > { %v6683_v44 = vadd.f32 %v22084_v37, %v4994_v39  ;;  %v7878_v26 = vshrl.u32 %v20691_v20, 16  ;;  %v7881_v33 = vshll.u32 %v20691_v20, 16 }
 0x30a   : > { %v8884_v31 = vadd.f32 %v8580_v25, %v6683_v44  ;;  %v2333_v25 = vrot.slane %v2331_v61, 1  ;;  %v22188_v44 = vld [vmem:[%s21099_s25 + $0x100] sm:$0xff] }
 0x30b   : > { %v2339_v35 = vshll.u32 %v22188_v44, 16 }
 0x30c   : > { %9029 = vst [vmem:[%s21170_s4 + $0x140] sm:$0xff] %v8884_v31  ;;  %v22152_v1 = vpop.f32.mrf.mxu3  ;;  %v2334_v32 = vsel %vm2082_vm2, %v2329_v4, %v2333_v25 }
 0x30d   : > { %v4692_v40 = vpop.f32.mrf.mxu2 }
 0x30e   : > { %v4995_v37 = vadd.f32 %v4692_v40, %v3305_v34  ;;  %v3005_v38 = vpop.f32.mrf.mxu1  ;;  %v22197_v34 = vld [vmem:[%s21099_s25 + $0x100] sm:$0xff] }
 0x30f   : > { %v8585_v62 = vpop.f32.mrf.mxu0  ;;  %v3306_v55 = vadd.f32 %v3005_v38, %v1468_v49  ;;  %v7883_v38 = vrot.slane %v7881_v33, 2 }
 0x310   : > { %v6684_v42 = vadd.f32 %v22094_v54, %v4995_v37  ;;  %v5964_v54 = vsel %vm4210_vm1, %v5961_v29, %v5963_v3  ;;  %v7875_v29 = vor.u32 %v7874_v0, %v7871_v63  ;;  %v7880_v37 = vrot.slane %v7878_v26, 1 }
 0x311   : > { %17744 = vmatmul.msk.bf16.gmra.mxu1 %vm688_vm0, %v2326_v59  ;;  %18480 = vmatmul.msk.bf16.gmra.mxu3 %vm688_vm0, %v5964_v54 }
 0x312   : > { %18111 = vmatmul.msk.bf16.gmra.mxu2 %vm688_vm0, %v4271_v43  ;;  %v8885_v51 = vadd.f32 %v8582_v28, %v6684_v42  ;;  %18845 = vmatmul.msk.bf16.gmra.mxu0 %vm688_vm0, %v7867_v47  ;;  %v7876_v21 = vsel %vm7589_vm3, %v7866_v56, %v7875_v29  ;;  %v2337_v42 = vor.u32 %v2335_v52, %v2333_v25  ;;  %v4274_v47 = vrot.slane %v22197_v34, 1  ;;  %v1474_v34 = vld [vmem:[%s21170_s4 + $0x180] sm:$0xff] }
 0x313   : > { %v2343_v25 = vshrl.u32 %v22188_v44, 16 }
 0x314   : > { %9030 = vst [vmem:[%s21170_s4 + $0x148] sm:$0xff] %v8885_v51  ;;  %v22171_v22 = vpop.f32.mrf.mxu3  ;;  %v4275_v54 = vsel %vm4210_vm1, %v4272_v9, %v4274_v47 }
 0x315   : > { %v4695_v58 = vpop.f32.mrf.mxu2 }
 0x316   : > { %v4996_v12 = vadd.f32 %v4695_v58, %v3306_v55  ;;  %v3007_v57 = vpop.f32.mrf.mxu1  ;;  %v20620_v55 = vld [vmem:[%s21099_s25 + $0x120] sm:$0xff] }
 0x317   : > { %v8587_v2 = vpop.f32.mrf.mxu0  ;;  %v3307_v8 = vadd.f32 %v3007_v57, %v1469_v18  ;;  %v20692_v57 = vld [vmem:[%s21099_s25 + $0x118] sm:$0xff]  ;;  %v5967_v14 = vrot.slane %v20620_v55, 1  ;;  %v1475_v55 = vld [vmem:[%s21170_s4 + $0x188] sm:$0xff] }
 0x318   : > { %v6685_v19 = vadd.f32 %v22113_v10, %v4996_v12  ;;  %v7887_v63 = vshrl.u32 %v20692_v57, 16  ;;  %v7890_v0 = vshll.u32 %v20692_v57, 16 }
 0x31a   : > { %v8886_v5 = vadd.f32 %v8585_v62, %v6685_v19  ;;  %v2341_v62 = vrot.slane %v2339_v35, 1  ;;  %v22217_v19 = vld [vmem:[%s21099_s25 + $0x108] sm:$0xff] }
 0x31b   : > { %v2347_v9 = vshll.u32 %v22217_v19, 16 }
 0x31c   : > { %9031 = vst [vmem:[%s21170_s4 + $0x150] sm:$0xff] %v8886_v5  ;;  %v22181_v39 = vpop.f32.mrf.mxu3  ;;  %v2342_v7 = vsel %vm2082_vm2, %v2337_v42, %v2341_v62 }
 0x31d   : > { %v4697_v13 = vpop.f32.mrf.mxu2 }
 0x31e   : > { %v4997_v10 = vadd.f32 %v4697_v13, %v3307_v8  ;;  %v3010_v11 = vpop.f32.mrf.mxu1  ;;  %v22226_v8 = vld [vmem:[%s21099_s25 + $0x108] sm:$0xff] }
 0x31f   : > { %v8590_v36 = vpop.f32.mrf.mxu0  ;;  %v3308_v28 = vadd.f32 %v3010_v11, %v1470_v23  ;;  %v7892_v11 = vrot.slane %v7890_v0, 2 }
 0x320   : > { %v6686_v15 = vadd.f32 %v22123_v27, %v4997_v10  ;;  %v5966_v27 = vsel %vm4210_vm1, %v5963_v3, %v5965_v41  ;;  %v7884_v3 = vor.u32 %v7883_v38, %v7880_v37  ;;  %v7889_v10 = vrot.slane %v7887_v63, 1 }
 0x321   : > { %17745 = vmatmul.msk.bf16.gmra.mxu1 %vm688_vm0, %v2334_v32  ;;  %18481 = vmatmul.msk.bf16.gmra.mxu3 %vm688_vm0, %v5966_v27 }
 0x322   : > { %18112 = vmatmul.msk.bf16.gmra.mxu2 %vm688_vm0, %v4273_v16  ;;  %v8887_v24 = vadd.f32 %v8587_v2, %v6686_v15  ;;  %18846 = vmatmul.msk.bf16.gmra.mxu0 %vm688_vm0, %v7876_v21  ;;  %v7885_v58 = vsel %vm7589_vm3, %v7875_v29, %v7884_v3  ;;  %v2345_v15 = vor.u32 %v2343_v25, %v2341_v62  ;;  %v4276_v21 = vrot.slane %v22226_v8, 1  ;;  %v1476_v8 = vld [vmem:[%s21170_s4 + $0x190] sm:$0xff] }
 0x323   : > { %v2351_v62 = vshrl.u32 %v22217_v19, 16 }
 0x324   : > { %9032 = vst [vmem:[%s21170_s4 + $0x158] sm:$0xff] %v8887_v24  ;;  %v22200_v59 = vpop.f32.mrf.mxu3  ;;  %v4277_v27 = vsel %vm4210_vm1, %v4274_v47, %v4276_v21 }
 0x325   : > { %v4700_v31 = vpop.f32.mrf.mxu2 }
 0x326   : > { %v4998_v50 = vadd.f32 %v4700_v31, %v3308_v28  ;;  %v3012_v30 = vpop.f32.mrf.mxu1  ;;  %v20621_v28 = vld [vmem:[%s21099_s25 + $0x128] sm:$0xff] }
 0x327   : > { %v8592_v40 = vpop.f32.mrf.mxu0  ;;  %v3309_v46 = vadd.f32 %v3012_v30, %v1471_v45  ;;  %v20693_v30 = vld [vmem:[%s21099_s25 + $0x120] sm:$0xff]  ;;  %v5969_v52 = vrot.slane %v20621_v28, 1  ;;  %v1477_v28 = vld [vmem:[%s21170_s4 + $0x198] sm:$0xff] }
 0x328   : > { %v6687_v56 = vadd.f32 %v22142_v48, %v4998_v50  ;;  %v7896_v37 = vshrl.u32 %v20693_v30, 16  ;;  %v7899_v38 = vshll.u32 %v20693_v30, 16 }
 0x32a   : > { %v8888_v43 = vadd.f32 %v8590_v36, %v6687_v56  ;;  %v2349_v36 = vrot.slane %v2347_v9, 1  ;;  %v22246_v56 = vld [vmem:[%s21099_s25 + $0x110] sm:$0xff] }
 0x32b   : > { %v2355_v47 = vshll.u32 %v22246_v56, 16 }
 0x32c   : > { %9033 = vst [vmem:[%s21170_s4 + $0x160] sm:$0xff] %v8888_v43  ;;  %v22210_v12 = vpop.f32.mrf.mxu3  ;;  %v2350_v44 = vsel %vm2082_vm2, %v2345_v15, %v2349_v36 }
 0x32d   : > { %v4702_v51 = vpop.f32.mrf.mxu2 }
 0x32e   : > { %v4999_v48 = vadd.f32 %v4702_v51, %v3309_v46  ;;  %v3015_v49 = vpop.f32.mrf.mxu1  ;;  %v22255_v46 = vld [vmem:[%s21099_s25 + $0x110] sm:$0xff] }
 0x32f   : > { %v8595_v6 = vpop.f32.mrf.mxu0  ;;  %v3310_v2 = vadd.f32 %v3015_v49, %v1472_v60  ;;  %v7901_v49 = vrot.slane %v7899_v38, 2 }
 0x330   : > { %v6688_v53 = vadd.f32 %v22152_v1, %v4999_v48  ;;  %v5968_v1 = vsel %vm4210_vm1, %v5965_v41, %v5967_v14  ;;  %v7893_v41 = vor.u32 %v7892_v11, %v7889_v10  ;;  %v7898_v48 = vrot.slane %v7896_v37, 1 }
 0x331   : > { %17746 = vmatmul.msk.bf16.gmra.mxu1 %vm688_vm0, %v2342_v7  ;;  %18482 = vmatmul.msk.bf16.gmra.mxu3 %vm688_vm0, %v5968_v1 }
 0x332   : > { %18113 = vmatmul.msk.bf16.gmra.mxu2 %vm688_vm0, %v4275_v54  ;;  %v8889_v61 = vadd.f32 %v8592_v40, %v6688_v53  ;;  %18847 = vmatmul.msk.bf16.gmra.mxu0 %vm688_vm0, %v7885_v58  ;;  %v7894_v31 = vsel %vm7589_vm3, %v7884_v3, %v7893_v41  ;;  %v2353_v53 = vor.u32 %v2351_v62, %v2349_v36  ;;  %v4278_v58 = vrot.slane %v22255_v46, 1  ;;  %v1478_v46 = vld [vmem:[%s21170_s4 + $0x1a0] sm:$0xff] }
 0x333   : > { %v2359_v36 = vshrl.u32 %v22246_v56, 16 }
 0x334   : > { %9034 = vst [vmem:[%s21170_s4 + $0x168] sm:$0xff] %v8889_v61  ;;  %v22229_v32 = vpop.f32.mrf.mxu3  ;;  %v4279_v1 = vsel %vm4210_vm1, %v4276_v21, %v4278_v58 }
 0x335   : > { %v4705_v5 = vpop.f32.mrf.mxu2 }
 0x336   : > { %v5000_v18 = vadd.f32 %v4705_v5, %v3310_v2  ;;  %v3017_v4 = vpop.f32.mrf.mxu1  ;;  %v20622_v2 = vld [vmem:[%s21099_s25 + $0x130] sm:$0xff] }
 0x337   : > { %v8597_v13 = vpop.f32.mrf.mxu0  ;;  %v3311_v20 = vadd.f32 %v3017_v4, %v1473_v17  ;;  %v20694_v4 = vld [vmem:[%s21099_s25 + $0x128] sm:$0xff]  ;;  %v5971_v25 = vrot.slane %v20622_v2, 1 }
 0x338   : > { %v6689_v29 = vadd.f32 %v22171_v22, %v5000_v18  ;;  %v7905_v10 = vshrl.u32 %v20694_v4, 16  ;;  %v7908_v11 = vshll.u32 %v20694_v4, 16  ;;  %v1479_v2 = vld [vmem:[%s21170_s4 + $0x1a8] sm:$0xff] }
 0x33a   : > { %v8890_v16 = vadd.f32 %v8595_v6, %v6689_v29  ;;  %v2357_v6 = vrot.slane %v2355_v47, 1  ;;  %v22275_v29 = vld [vmem:[%s21099_s25 + $0x118] sm:$0xff] }
 0x33b   : > { %v2363_v21 = vshll.u32 %v22275_v29, 16 }
 0x33c   : > { %9035 = vst [vmem:[%s21170_s4 + $0x170] sm:$0xff] %v8890_v16  ;;  %v22239_v50 = vpop.f32.mrf.mxu3  ;;  %v2358_v19 = vsel %vm2082_vm2, %v2353_v53, %v2357_v6 }
 0x33d   : > { %v4707_v24 = vpop.f32.mrf.mxu2 }
 0x33e   : > { %v5001_v22 = vadd.f32 %v4707_v24, %v3311_v20  ;;  %v3020_v23 = vpop.f32.mrf.mxu1  ;;  %v22284_v20 = vld [vmem:[%s21099_s25 + $0x118] sm:$0xff] }
 0x33f   : > { %v8600_v33 = vpop.f32.mrf.mxu0  ;;  %v3312_v40 = vadd.f32 %v3020_v23, %v1474_v34  ;;  %v7910_v23 = vrot.slane %v7908_v11, 2 }
 0x340   : > { %v6690_v26 = vadd.f32 %v22181_v39, %v5001_v22  ;;  %v5970_v39 = vsel %vm4210_vm1, %v5967_v14, %v5969_v52  ;;  %v7902_v14 = vor.u32 %v7901_v49, %v7898_v48  ;;  %v7907_v22 = vrot.slane %v7905_v10, 1 }
 0x341   : > { %17747 = vmatmul.msk.bf16.gmra.mxu1 %vm688_vm0, %v2350_v44  ;;  %18483 = vmatmul.msk.bf16.gmra.mxu3 %vm688_vm0, %v5970_v39 }
 0x342   : > { %18114 = vmatmul.msk.bf16.gmra.mxu2 %vm688_vm0, %v4277_v27  ;;  %v8891_v35 = vadd.f32 %v8597_v13, %v6690_v26  ;;  %18848 = vmatmul.msk.bf16.gmra.mxu0 %vm688_vm0, %v7894_v31  ;;  %v7903_v5 = vsel %vm7589_vm3, %v7893_v41, %v7902_v14  ;;  %v2361_v26 = vor.u32 %v2359_v36, %v2357_v6  ;;  %v4280_v31 = vrot.slane %v22284_v20, 1  ;;  %v1480_v20 = vld [vmem:[%s21170_s4 + $0x1b0] sm:$0xff] }
 0x343   : > { %v2367_v6 = vshrl.u32 %v22275_v29, 16 }
 0x344   : > { %9036 = vst [vmem:[%s21170_s4 + $0x178] sm:$0xff] %v8891_v35  ;;  %v22258_v7 = vpop.f32.mrf.mxu3  ;;  %v4281_v39 = vsel %vm4210_vm1, %v4278_v58, %v4280_v31 }
 0x345   : > { %v4710_v43 = vpop.f32.mrf.mxu2 }
 0x346   : > { %v5002_v45 = vadd.f32 %v4710_v43, %v3312_v40  ;;  %v3022_v42 = vpop.f32.mrf.mxu1  ;;  %v20623_v40 = vld [vmem:[%s21099_s25 + $0x138] sm:$0xff] }
 0x347   : > { %v8602_v51 = vpop.f32.mrf.mxu0  ;;  %v3313_v57 = vadd.f32 %v3022_v42, %v1475_v55  ;;  %v20695_v42 = vld [vmem:[%s21099_s25 + $0x130] sm:$0xff]  ;;  %v5973_v62 = vrot.slane %v20623_v40, 1  ;;  %v1481_v40 = vld [vmem:[%s21170_s4 + $0x1b8] sm:$0xff] }
 0x348   : > { %v6691_v3 = vadd.f32 %v22200_v59, %v5002_v45  ;;  %v7914_v48 = vshrl.u32 %v20695_v42, 16  ;;  %v7917_v49 = vshll.u32 %v20695_v42, 16 }
 0x34a   : > { %v8892_v54 = vadd.f32 %v8600_v33, %v6691_v3  ;;  %v2365_v33 = vrot.slane %v2363_v21, 1  ;;  %v22304_v3 = vld [vmem:[%s21099_s25 + $0x120] sm:$0xff] }
 0x34b   : > { %v2371_v58 = vshll.u32 %v22304_v3, 16 }
 0x34c   : > { %9037 = vst [vmem:[%s21170_s4 + $0x180] sm:$0xff] %v8892_v54  ;;  %v22268_v18 = vpop.f32.mrf.mxu3  ;;  %v2366_v56 = vsel %vm2082_vm2, %v2361_v26, %v2365_v33 }
 0x34d   : > { %v4712_v61 = vpop.f32.mrf.mxu2 }
 0x34e   : > { %v5003_v59 = vadd.f32 %v4712_v61, %v3313_v57  ;;  %v3025_v60 = vpop.f32.mrf.mxu1  ;;  %v22313_v57 = vld [vmem:[%s21099_s25 + $0x120] sm:$0xff] }
 0x34f   : > { %v8605_v0 = vpop.f32.mrf.mxu0  ;;  %v3314_v13 = vadd.f32 %v3025_v60, %v1476_v8  ;;  %v7919_v60 = vrot.slane %v7917_v49, 2 }
 0x350   : > { %v6692_v63 = vadd.f32 %v22210_v12, %v5003_v59  ;;  %v5972_v12 = vsel %vm4210_vm1, %v5969_v52, %v5971_v25  ;;  %v7911_v52 = vor.u32 %v7910_v23, %v7907_v22  ;;  %v7916_v59 = vrot.slane %v7914_v48, 1 }
 0x351   : > { %17748 = vmatmul.msk.bf16.gmra.mxu1 %vm688_vm0, %v2358_v19  ;;  %18484 = vmatmul.msk.bf16.gmra.mxu3 %vm688_vm0, %v5972_v12 }
 0x352   : > { %18115 = vmatmul.msk.bf16.gmra.mxu2 %vm688_vm0, %v4279_v1  ;;  %v8893_v9 = vadd.f32 %v8602_v51, %v6692_v63  ;;  %18849 = vmatmul.msk.bf16.gmra.mxu0 %vm688_vm0, %v7903_v5  ;;  %v7912_v43 = vsel %vm7589_vm3, %v7902_v14, %v7911_v52  ;;  %v2369_v63 = vor.u32 %v2367_v6, %v2365_v33  ;;  %v4282_v5 = vrot.slane %v22313_v57, 1  ;;  %v1482_v57 = vld [vmem:[%s21170_s4 + $0x1c0] sm:$0xff] }
 0x353   : > { %v2375_v33 = vshrl.u32 %v22304_v3, 16 }
 0x354   : > { %9038 = vst [vmem:[%s21170_s4 + $0x188] sm:$0xff] %v8893_v9  ;;  %v22287_v44 = vpop.f32.mrf.mxu3  ;;  %v4283_v12 = vsel %vm4210_vm1, %v4280_v31, %v4282_v5 }
 0x355   : > { %v4715_v16 = vpop.f32.mrf.mxu2 }
 0x356   : > { %v5004_v17 = vadd.f32 %v4715_v16, %v3314_v13  ;;  %v3027_v15 = vpop.f32.mrf.mxu1  ;;  %v20624_v13 = vld [vmem:[%s21099_s25 + $0x140] sm:$0xff] }
 0x357   : > { %v8607_v24 = vpop.f32.mrf.mxu0  ;;  %v3315_v30 = vadd.f32 %v3027_v15, %v1477_v28  ;;  %v20696_v15 = vld [vmem:[%s21099_s25 + $0x138] sm:$0xff]  ;;  %v5975_v36 = vrot.slane %v20624_v13, 1  ;;  %v1483_v13 = vld [vmem:[%s21170_s4 + $0x1c8] sm:$0xff] }
 0x358   : > { %v6693_v41 = vadd.f32 %v22229_v32, %v5004_v17  ;;  %v7923_v22 = vshrl.u32 %v20696_v15, 16  ;;  %v7926_v23 = vshll.u32 %v20696_v15, 16 }
 0x35a   : > { %v8894_v27 = vadd.f32 %v8605_v0, %v6693_v41  ;;  %v2373_v0 = vrot.slane %v2371_v58, 1  ;;  %v22333_v41 = vld [vmem:[%s21099_s25 + $0x128] sm:$0xff] }
 0x35b   : > { %v2379_v31 = vshll.u32 %v22333_v41, 16 }
 0x35c   : > { %9039 = vst [vmem:[%s21170_s4 + $0x190] sm:$0xff] %v8894_v27  ;;  %v22297_v45 = vpop.f32.mrf.mxu3  ;;  %v2374_v29 = vsel %vm2082_vm2, %v2369_v63, %v2373_v0 }
 0x35d   : > { %v4717_v35 = vpop.f32.mrf.mxu2 }
 0x35e   : > { %v5005_v32 = vadd.f32 %v4717_v35, %v3315_v30  ;;  %v3030_v34 = vpop.f32.mrf.mxu1  ;;  %v22342_v30 = vld [vmem:[%s21099_s25 + $0x128] sm:$0xff] }
 0x35f   : > { %v8610_v38 = vpop.f32.mrf.mxu0  ;;  %v3316_v51 = vadd.f32 %v3030_v34, %v1478_v46  ;;  %v7928_v34 = vrot.slane %v7926_v23, 2 }
 0x360   : > { %v6694_v37 = vadd.f32 %v22239_v50, %v5005_v32  ;;  %v5974_v50 = vsel %vm4210_vm1, %v5971_v25, %v5973_v62  ;;  %v7920_v25 = vor.u32 %v7919_v60, %v7916_v59  ;;  %v7925_v32 = vrot.slane %v7923_v22, 1 }
 0x361   : > { %17749 = vmatmul.msk.bf16.gmra.mxu1 %vm688_vm0, %v2366_v56  ;;  %18485 = vmatmul.msk.bf16.gmra.mxu3 %vm688_vm0, %v5974_v50 }
 0x362   : > { %18116 = vmatmul.msk.bf16.gmra.mxu2 %vm688_vm0, %v4281_v39  ;;  %v8895_v47 = vadd.f32 %v8607_v24, %v6694_v37  ;;  %18850 = vmatmul.msk.bf16.gmra.mxu0 %vm688_vm0, %v7912_v43  ;;  %v7921_v16 = vsel %vm7589_vm3, %v7911_v52, %v7920_v25  ;;  %v2377_v37 = vor.u32 %v2375_v33, %v2373_v0  ;;  %v4284_v43 = vrot.slane %v22342_v30, 1  ;;  %v1484_v30 = vld [vmem:[%s21170_s4 + $0x1d0] sm:$0xff] }
 0x363   : > { %v2383_v0 = vshrl.u32 %v22333_v41, 16 }
 0x364   : > { %9040 = vst [vmem:[%s21170_s4 + $0x198] sm:$0xff] %v8895_v47  ;;  %v22316_v19 = vpop.f32.mrf.mxu3  ;;  %v4285_v50 = vsel %vm4210_vm1, %v4282_v5, %v4284_v43 }
 0x365   : > { %v4720_v54 = vpop.f32.mrf.mxu2 }
 0x366   : > { %v5006_v55 = vadd.f32 %v4720_v54, %v3316_v51  ;;  %v3032_v53 = vpop.f32.mrf.mxu1  ;;  %v20625_v51 = vld [vmem:[%s21099_s25 + $0x148] sm:$0xff] }
 0x367   : > { %v8612_v61 = vpop.f32.mrf.mxu0  ;;  %v3317_v4 = vadd.f32 %v3032_v53, %v1479_v2  ;;  %v20697_v53 = vld [vmem:[%s21099_s25 + $0x140] sm:$0xff]  ;;  %v5977_v6 = vrot.slane %v20625_v51, 1  ;;  %v1485_v51 = vld [vmem:[%s21170_s4 + $0x1d8] sm:$0xff] }
 0x368   : > { %v6695_v14 = vadd.f32 %v22258_v7, %v5006_v55  ;;  %v7932_v59 = vshrl.u32 %v20697_v53, 16  ;;  %v7935_v60 = vshll.u32 %v20697_v53, 16 }
 0x36a   : > { %v8896_v1 = vadd.f32 %v8610_v38, %v6695_v14  ;;  %v2381_v38 = vrot.slane %v2379_v31, 1  ;;  %v22362_v14 = vld [vmem:[%s21099_s25 + $0x130] sm:$0xff] }
 0x36b   : > { %v2387_v5 = vshll.u32 %v22362_v14, 16 }
 0x36c   : > { %9041 = vst [vmem:[%s21170_s4 + $0x1a0] sm:$0xff] %v8896_v1  ;;  %v22326_v17 = vpop.f32.mrf.mxu3  ;;  %v2382_v3 = vsel %vm2082_vm2, %v2377_v37, %v2381_v38 }
 0x36d   : > { %v4722_v9 = vpop.f32.mrf.mxu2 }
 0x36e   : > { %v5007_v7 = vadd.f32 %v4722_v9, %v3317_v4  ;;  %v3035_v8 = vpop.f32.mrf.mxu1  ;;  %v22371_v4 = vld [vmem:[%s21099_s25 + $0x130] sm:$0xff] }
 0x36f   : > { %v8615_v11 = vpop.f32.mrf.mxu0  ;;  %v3318_v24 = vadd.f32 %v3035_v8, %v1480_v20  ;;  %v7937_v8 = vrot.slane %v7935_v60, 2 }
 0x370   : > { %v6696_v10 = vadd.f32 %v22268_v18, %v5007_v7  ;;  %v5976_v18 = vsel %vm4210_vm1, %v5973_v62, %v5975_v36  ;;  %v7929_v62 = vor.u32 %v7928_v34, %v7925_v32  ;;  %v7934_v7 = vrot.slane %v7932_v59, 1 }
 0x371   : > { %17750 = vmatmul.msk.bf16.gmra.mxu1 %vm688_vm0, %v2374_v29  ;;  %18486 = vmatmul.msk.bf16.gmra.mxu3 %vm688_vm0, %v5976_v18 }
 0x372   : > { %18117 = vmatmul.msk.bf16.gmra.mxu2 %vm688_vm0, %v4283_v12  ;;  %v8897_v21 = vadd.f32 %v8612_v61, %v6696_v10  ;;  %18851 = vmatmul.msk.bf16.gmra.mxu0 %vm688_vm0, %v7921_v16  ;;  %v7930_v54 = vsel %vm7589_vm3, %v7920_v25, %v7929_v62  ;;  %v2385_v10 = vor.u32 %v2383_v0, %v2381_v38  ;;  %v4286_v16 = vrot.slane %v22371_v4, 1  ;;  %v1486_v4 = vld [vmem:[%s21170_s4 + $0x1e0] sm:$0xff] }
 0x373   : > { %v2391_v38 = vshrl.u32 %v22362_v14, 16 }
 0x374   : > { %9042 = vst [vmem:[%s21170_s4 + $0x1a8] sm:$0xff] %v8897_v21  ;;  %v22345_v56 = vpop.f32.mrf.mxu3  ;;  %v4287_v18 = vsel %vm4210_vm1, %v4284_v43, %v4286_v16 }
 0x375   : > { %v4725_v27 = vpop.f32.mrf.mxu2 }
 0x376   : > { %v5008_v28 = vadd.f32 %v4725_v27, %v3318_v24  ;;  %v3037_v26 = vpop.f32.mrf.mxu1  ;;  %v20626_v24 = vld [vmem:[%s21099_s25 + $0x150] sm:$0xff] }
 0x377   : > { %v8617_v35 = vpop.f32.mrf.mxu0  ;;  %v3319_v42 = vadd.f32 %v3037_v26, %v1481_v40  ;;  %v20698_v26 = vld [vmem:[%s21099_s25 + $0x148] sm:$0xff]  ;;  %v5979_v33 = vrot.slane %v20626_v24, 1 }
 0x378   : > { %v6697_v52 = vadd.f32 %v22287_v44, %v5008_v28  ;;  %v7941_v32 = vshrl.u32 %v20698_v26, 16  ;;  %v7944_v34 = vshll.u32 %v20698_v26, 16  ;;  %v1487_v24 = vld [vmem:[%s21170_s4 + $0x1e8] sm:$0xff] }
 0x37a   : > { %v8898_v39 = vadd.f32 %v8615_v11, %v6697_v52  ;;  %v2389_v11 = vrot.slane %v2387_v5, 1  ;;  %v22391_v52 = vld [vmem:[%s21099_s25 + $0x138] sm:$0xff] }
 0x37b   : > { %v2395_v43 = vshll.u32 %v22391_v52, 16 }
 0x37c   : > { %9043 = vst [vmem:[%s21170_s4 + $0x1b0] sm:$0xff] %v8898_v39  ;;  %v22355_v55 = vpop.f32.mrf.mxu3  ;;  %v2390_v41 = vsel %vm2082_vm2, %v2385_v10, %v2389_v11 }
 0x37d   : > { %v4727_v47 = vpop.f32.mrf.mxu2 }
 0x37e   : > { %v5009_v44 = vadd.f32 %v4727_v47, %v3319_v42  ;;  %v3040_v46 = vpop.f32.mrf.mxu1  ;;  %v22400_v42 = vld [vmem:[%s21099_s25 + $0x138] sm:$0xff] }
 0x37f   : > { %v8620_v49 = vpop.f32.mrf.mxu0  ;;  %v3320_v61 = vadd.f32 %v3040_v46, %v1482_v57  ;;  %v7946_v46 = vrot.slane %v7944_v34, 2 }
 0x380   : > { %v6698_v48 = vadd.f32 %v22297_v45, %v5009_v44  ;;  %v5978_v45 = vsel %vm4210_vm1, %v5975_v36, %v5977_v6  ;;  %v7938_v36 = vor.u32 %v7937_v8, %v7934_v7  ;;  %v7943_v44 = vrot.slane %v7941_v32, 1 }
 0x381   : > { %17751 = vmatmul.msk.bf16.gmra.mxu1 %vm688_vm0, %v2382_v3  ;;  %18487 = vmatmul.msk.bf16.gmra.mxu3 %vm688_vm0, %v5978_v45 }
 0x382   : > { %18118 = vmatmul.msk.bf16.gmra.mxu2 %vm688_vm0, %v4285_v50  ;;  %v8899_v58 = vadd.f32 %v8617_v35, %v6698_v48  ;;  %18852 = vmatmul.msk.bf16.gmra.mxu0 %vm688_vm0, %v7930_v54  ;;  %v7939_v27 = vsel %vm7589_vm3, %v7929_v62, %v7938_v36  ;;  %v2393_v48 = vor.u32 %v2391_v38, %v2389_v11  ;;  %v4288_v54 = vrot.slane %v22400_v42, 1  ;;  %v1488_v42 = vld [vmem:[%s21170_s4 + $0x1f0] sm:$0xff] }
 0x383   : > { %v2399_v11 = vshrl.u32 %v22391_v52, 16 }
 0x384   : > { %9044 = vst [vmem:[%s21170_s4 + $0x1b8] sm:$0xff] %v8899_v58  ;;  %v22374_v29 = vpop.f32.mrf.mxu3  ;;  %v4289_v45 = vsel %vm4210_vm1, %v4286_v16, %v4288_v54 }
 0x385   : > { %v4730_v1 = vpop.f32.mrf.mxu2 }
 0x386   : > { %v5010_v2 = vadd.f32 %v4730_v1, %v3320_v61  ;;  %v3042_v63 = vpop.f32.mrf.mxu1  ;;  %v20627_v61 = vld [vmem:[%s21099_s25 + $0x158] sm:$0xff] }
 0x387   : > { %v8622_v9 = vpop.f32.mrf.mxu0  ;;  %v3321_v15 = vadd.f32 %v3042_v63, %v1483_v13  ;;  %v20699_v63 = vld [vmem:[%s21099_s25 + $0x150] sm:$0xff]  ;;  %v5981_v0 = vrot.slane %v20627_v61, 1  ;;  %v1489_v61 = vld [vmem:[%s21170_s4 + $0x1f8] sm:$0xff] }
 0x388   : > { %v6699_v25 = vadd.f32 %v22316_v19, %v5010_v2  ;;  %v7950_v7 = vshrl.u32 %v20699_v63, 16  ;;  %v7953_v8 = vshll.u32 %v20699_v63, 16 }
 0x38a   : > { %v8900_v12 = vadd.f32 %v8620_v49, %v6699_v25  ;;  %v2397_v49 = vrot.slane %v2395_v43, 1  ;;  %v22420_v25 = vld [vmem:[%s21099_s25 + $0x140] sm:$0xff] }
 0x38b   : > { %v2403_v16 = vshll.u32 %v22420_v25, 16 }
 0x38c   : > { %9045 = vst [vmem:[%s21170_s4 + $0x1c0] sm:$0xff] %v8900_v12  ;;  %v22384_v28 = vpop.f32.mrf.mxu3  ;;  %v2398_v14 = vsel %vm2082_vm2, %v2393_v48, %v2397_v49 }
 0x38d   : > { %v4732_v21 = vpop.f32.mrf.mxu2 }
 0x38e   : > { %v5011_v19 = vadd.f32 %v4732_v21, %v3321_v15  ;;  %v3045_v20 = vpop.f32.mrf.mxu1  ;;  %v22429_v15 = vld [vmem:[%s21099_s25 + $0x140] sm:$0xff] }
 0x38f   : > { %v8625_v23 = vpop.f32.mrf.mxu0  ;;  %v3322_v35 = vadd.f32 %v3045_v20, %v1484_v30  ;;  %v7955_v20 = vrot.slane %v7953_v8, 2 }
 0x390   : > { %v6700_v22 = vadd.f32 %v22326_v17, %v5011_v19  ;;  %v5980_v17 = vsel %vm4210_vm1, %v5977_v6, %v5979_v33  ;;  %v7947_v6 = vor.u32 %v7946_v46, %v7943_v44  ;;  %v7952_v19 = vrot.slane %v7950_v7, 1 }
 0x391   : > { %17752 = vmatmul.msk.bf16.gmra.mxu1 %vm688_vm0, %v2390_v41  ;;  %18488 = vmatmul.msk.bf16.gmra.mxu3 %vm688_vm0, %v5980_v17 }
 0x392   : > { %18119 = vmatmul.msk.bf16.gmra.mxu2 %vm688_vm0, %v4287_v18  ;;  %v8901_v31 = vadd.f32 %v8622_v9, %v6700_v22  ;;  %18853 = vmatmul.msk.bf16.gmra.mxu0 %vm688_vm0, %v7939_v27  ;;  %v7948_v1 = vsel %vm7589_vm3, %v7938_v36, %v7947_v6  ;;  %v2401_v22 = vor.u32 %v2399_v11, %v2397_v49  ;;  %v4290_v27 = vrot.slane %v22429_v15, 1  ;;  %v1490_v15 = vld [vmem:[%s21170_s4 + $0x200] sm:$0xff] }
 0x393   : > { %v2407_v49 = vshrl.u32 %v22420_v25, 16 }
 0x394   : > { %9046 = vst [vmem:[%s21170_s4 + $0x1c8] sm:$0xff] %v8901_v31  ;;  %v22403_v3 = vpop.f32.mrf.mxu3  ;;  %v4291_v17 = vsel %vm4210_vm1, %v4288_v54, %v4290_v27 }
 0x395   : > { %v4735_v39 = vpop.f32.mrf.mxu2 }
 0x396   : > { %v5012_v40 = vadd.f32 %v4735_v39, %v3322_v35  ;;  %v3047_v37 = vpop.f32.mrf.mxu1  ;;  %v20628_v35 = vld [vmem:[%s21099_s25 + $0x160] sm:$0xff] }
 0x397   : > { %v8627_v47 = vpop.f32.mrf.mxu0  ;;  %v3323_v53 = vadd.f32 %v3047_v37, %v1485_v51  ;;  %v20700_v37 = vld [vmem:[%s21099_s25 + $0x158] sm:$0xff]  ;;  %v5983_v38 = vrot.slane %v20628_v35, 1  ;;  %v1491_v35 = vld [vmem:[%s21170_s4 + $0x208] sm:$0xff] }
 0x398   : > { %v6701_v62 = vadd.f32 %v22345_v56, %v5012_v40  ;;  %v7959_v44 = vshrl.u32 %v20700_v37, 16  ;;  %v7962_v46 = vshll.u32 %v20700_v37, 16 }
 0x39a   : > { %v8902_v50 = vadd.f32 %v8625_v23, %v6701_v62  ;;  %v2405_v23 = vrot.slane %v2403_v16, 1  ;;  %v22449_v62 = vld [vmem:[%s21099_s25 + $0x148] sm:$0xff] }
 0x39b   : > { %v2411_v54 = vshll.u32 %v22449_v62, 16 }
 0x39c   : > { %9047 = vst [vmem:[%s21170_s4 + $0x1d0] sm:$0xff] %v8902_v50  ;;  %v22413_v2 = vpop.f32.mrf.mxu3  ;;  %v2406_v52 = vsel %vm2082_vm2, %v2401_v22, %v2405_v23 }
 0x39d   : > { %v4737_v58 = vpop.f32.mrf.mxu2 }
 0x39e   : > { %v5013_v56 = vadd.f32 %v4737_v58, %v3323_v53  ;;  %v3050_v57 = vpop.f32.mrf.mxu1  ;;  %v22458_v53 = vld [vmem:[%s21099_s25 + $0x148] sm:$0xff] }
 0x39f   : > { %v8630_v60 = vpop.f32.mrf.mxu0  ;;  %v3324_v9 = vadd.f32 %v3050_v57, %v1486_v4  ;;  %v7964_v57 = vrot.slane %v7962_v46, 2 }
 0x3a0   : > { %v6702_v59 = vadd.f32 %v22355_v55, %v5013_v56  ;;  %v5982_v55 = vsel %vm4210_vm1, %v5979_v33, %v5981_v0  ;;  %v7956_v33 = vor.u32 %v7955_v20, %v7952_v19  ;;  %v7961_v56 = vrot.slane %v7959_v44, 1 }
 0x3a1   : > { %17753 = vmatmul.msk.bf16.gmra.mxu1 %vm688_vm0, %v2398_v14  ;;  %18489 = vmatmul.msk.bf16.gmra.mxu3 %vm688_vm0, %v5982_v55 }
 0x3a2   : > { %18120 = vmatmul.msk.bf16.gmra.mxu2 %vm688_vm0, %v4289_v45  ;;  %v8903_v5 = vadd.f32 %v8627_v47, %v6702_v59  ;;  %18854 = vmatmul.msk.bf16.gmra.mxu0 %vm688_vm0, %v7948_v1  ;;  %v7957_v39 = vsel %vm7589_vm3, %v7947_v6, %v7956_v33  ;;  %v2409_v59 = vor.u32 %v2407_v49, %v2405_v23  ;;  %v4292_v1 = vrot.slane %v22458_v53, 1  ;;  %v1492_v53 = vld [vmem:[%s21170_s4 + $0x210] sm:$0xff] }
 0x3a3   : > { %v2415_v23 = vshrl.u32 %v22449_v62, 16 }
 0x3a4   : > { %9048 = vst [vmem:[%s21170_s4 + $0x1d8] sm:$0xff] %v8903_v5  ;;  %v22432_v41 = vpop.f32.mrf.mxu3  ;;  %v4293_v55 = vsel %vm4210_vm1, %v4290_v27, %v4292_v1 }
 0x3a5   : > { %v4740_v12 = vpop.f32.mrf.mxu2 }
 0x3a6   : > { %v5014_v13 = vadd.f32 %v4740_v12, %v3324_v9  ;;  %v3052_v10 = vpop.f32.mrf.mxu1  ;;  %v20629_v9 = vld [vmem:[%s21099_s25 + $0x168] sm:$0xff] }
 0x3a7   : > { %v8632_v21 = vpop.f32.mrf.mxu0  ;;  %v3325_v26 = vadd.f32 %v3052_v10, %v1487_v24  ;;  %v20701_v10 = vld [vmem:[%s21099_s25 + $0x160] sm:$0xff]  ;;  %v5985_v11 = vrot.slane %v20629_v9, 1  ;;  %v1493_v9 = vld [vmem:[%s21170_s4 + $0x218] sm:$0xff] }
 0x3a8   : > { %v6703_v36 = vadd.f32 %v22374_v29, %v5014_v13  ;;  %v7968_v19 = vshrl.u32 %v20701_v10, 16  ;;  %v7971_v20 = vshll.u32 %v20701_v10, 16 }
 0x3aa   : > { %v8904_v18 = vadd.f32 %v8630_v60, %v6703_v36  ;;  %v2413_v60 = vrot.slane %v2411_v54, 1  ;;  %v22478_v36 = vld [vmem:[%s21099_s25 + $0x150] sm:$0xff] }
 0x3ab   : > { %v2419_v27 = vshll.u32 %v22478_v36, 16 }
 0x3ac   : > { %9049 = vst [vmem:[%s21170_s4 + $0x1e0] sm:$0xff] %v8904_v18  ;;  %v22442_v40 = vpop.f32.mrf.mxu3  ;;  %v2414_v25 = vsel %vm2082_vm2, %v2409_v59, %v2413_v60 }
 0x3ad   : > { %v4742_v31 = vpop.f32.mrf.mxu2 }
 0x3ae   : > { %v5015_v29 = vadd.f32 %v4742_v31, %v3325_v26  ;;  %v3055_v30 = vpop.f32.mrf.mxu1  ;;  %v22487_v26 = vld [vmem:[%s21099_s25 + $0x150] sm:$0xff] }
 0x3af   : > { %v8635_v34 = vpop.f32.mrf.mxu0  ;;  %v3326_v47 = vadd.f32 %v3055_v30, %v1488_v42  ;;  %v7973_v30 = vrot.slane %v7971_v20, 2 }
 0x3b0   : > { %v6704_v32 = vadd.f32 %v22384_v28, %v5015_v29  ;;  %v5984_v28 = vsel %vm4210_vm1, %v5981_v0, %v5983_v38  ;;  %v7965_v0 = vor.u32 %v7964_v57, %v7961_v56  ;;  %v7970_v29 = vrot.slane %v7968_v19, 1 }
 0x3b1   : > { %17754 = vmatmul.msk.bf16.gmra.mxu1 %vm688_vm0, %v2406_v52  ;;  %18490 = vmatmul.msk.bf16.gmra.mxu3 %vm688_vm0, %v5984_v28 }
 0x3b2   : > { %18121 = vmatmul.msk.bf16.gmra.mxu2 %vm688_vm0, %v4291_v17  ;;  %v8905_v43 = vadd.f32 %v8632_v21, %v6704_v32  ;;  %18855 = vmatmul.msk.bf16.gmra.mxu0 %vm688_vm0, %v7957_v39  ;;  %v7966_v12 = vsel %vm7589_vm3, %v7956_v33, %v7965_v0  ;;  %v2417_v32 = vor.u32 %v2415_v23, %v2413_v60  ;;  %v4294_v39 = vrot.slane %v22487_v26, 1  ;;  %v1494_v26 = vld [vmem:[%s21170_s4 + $0x220] sm:$0xff] }
 0x3b3   : > { %v2423_v60 = vshrl.u32 %v22478_v36, 16 }
 0x3b4   : > { %9050 = vst [vmem:[%s21170_s4 + $0x1e8] sm:$0xff] %v8905_v43  ;;  %v22461_v14 = vpop.f32.mrf.mxu3  ;;  %v4295_v28 = vsel %vm4210_vm1, %v4292_v1, %v4294_v39 }
 0x3b5   : > { %v4745_v50 = vpop.f32.mrf.mxu2 }
 0x3b6   : > { %v5016_v51 = vadd.f32 %v4745_v50, %v3326_v47  ;;  %v3057_v48 = vpop.f32.mrf.mxu1  ;;  %v20630_v47 = vld [vmem:[%s21099_s25 + $0x170] sm:$0xff] }
 0x3b7   : > { %v8637_v58 = vpop.f32.mrf.mxu0  ;;  %v3327_v63 = vadd.f32 %v3057_v48, %v1489_v61  ;;  %v20702_v48 = vld [vmem:[%s21099_s25 + $0x168] sm:$0xff]  ;;  %v5987_v49 = vrot.slane %v20630_v47, 1 }
 0x3b8   : > { %v6705_v6 = vadd.f32 %v22403_v3, %v5016_v51  ;;  %v7977_v56 = vshrl.u32 %v20702_v48, 16  ;;  %v7980_v57 = vshll.u32 %v20702_v48, 16  ;;  %v1495_v47 = vld [vmem:[%s21170_s4 + $0x228] sm:$0xff] }
 0x3ba   : > { %v8906_v45 = vadd.f32 %v8635_v34, %v6705_v6  ;;  %v2421_v34 = vrot.slane %v2419_v27, 1  ;;  %v22507_v6 = vld [vmem:[%s21099_s25 + $0x158] sm:$0xff] }
 0x3bb   : > { %v2427_v1 = vshll.u32 %v22507_v6, 16 }
 0x3bc   : > { %9051 = vst [vmem:[%s21170_s4 + $0x1f0] sm:$0xff] %v8906_v45  ;;  %v22471_v13 = vpop.f32.mrf.mxu3  ;;  %v2422_v62 = vsel %vm2082_vm2, %v2417_v32, %v2421_v34 }
 0x3bd   : > { %v4747_v5 = vpop.f32.mrf.mxu2 }
 0x3be   : > { %v5017_v3 = vadd.f32 %v4747_v5, %v3327_v63  ;;  %v3060_v4 = vpop.f32.mrf.mxu1  ;;  %v22516_v63 = vld [vmem:[%s21099_s25 + $0x158] sm:$0xff] }
 0x3bf   : > { %v8640_v8 = vpop.f32.mrf.mxu0  ;;  %v3328_v21 = vadd.f32 %v3060_v4, %v1490_v15  ;;  %v7982_v4 = vrot.slane %v7980_v57, 2 }
 0x3c0   : > { %v6706_v7 = vadd.f32 %v22413_v2, %v5017_v3  ;;  %v5986_v2 = vsel %vm4210_vm1, %v5983_v38, %v5985_v11  ;;  %v7974_v38 = vor.u32 %v7973_v30, %v7970_v29  ;;  %v7979_v3 = vrot.slane %v7977_v56, 1 }
 0x3c1   : > { %17755 = vmatmul.msk.bf16.gmra.mxu1 %vm688_vm0, %v2414_v25  ;;  %18491 = vmatmul.msk.bf16.gmra.mxu3 %vm688_vm0, %v5986_v2 }
 0x3c2   : > { %18122 = vmatmul.msk.bf16.gmra.mxu2 %vm688_vm0, %v4293_v55  ;;  %v8907_v16 = vadd.f32 %v8637_v58, %v6706_v7  ;;  %18856 = vmatmul.msk.bf16.gmra.mxu0 %vm688_vm0, %v7966_v12  ;;  %v7975_v50 = vsel %vm7589_vm3, %v7965_v0, %v7974_v38  ;;  %v2425_v7 = vor.u32 %v2423_v60, %v2421_v34  ;;  %v4296_v12 = vrot.slane %v22516_v63, 1  ;;  %v1496_v63 = vld [vmem:[%s21170_s4 + $0x230] sm:$0xff] }
 0x3c3   : > { %v2431_v34 = vshrl.u32 %v22507_v6, 16 }
 0x3c4   : > { %9052 = vst [vmem:[%s21170_s4 + $0x1f8] sm:$0xff] %v8907_v16  ;;  %v22490_v52 = vpop.f32.mrf.mxu3  ;;  %v4297_v2 = vsel %vm4210_vm1, %v4294_v39, %v4296_v12 }
 0x3c5   : > { %v4750_v18 = vpop.f32.mrf.mxu2 }
 0x3c6   : > { %v5018_v24 = vadd.f32 %v4750_v18, %v3328_v21  ;;  %v3062_v22 = vpop.f32.mrf.mxu1  ;;  %v20631_v21 = vld [vmem:[%s21099_s25 + $0x178] sm:$0xff] }
 0x3c7   : > { %v8642_v31 = vpop.f32.mrf.mxu0  ;;  %v3329_v37 = vadd.f32 %v3062_v22, %v1491_v35  ;;  %v20703_v22 = vld [vmem:[%s21099_s25 + $0x170] sm:$0xff]  ;;  %v5989_v23 = vrot.slane %v20631_v21, 1  ;;  %v1497_v21 = vld [vmem:[%s21170_s4 + $0x238] sm:$0xff] }
 0x3c8   : > { %v6707_v33 = vadd.f32 %v22432_v41, %v5018_v24  ;;  %v7986_v29 = vshrl.u32 %v20703_v22, 16  ;;  %v7989_v30 = vshll.u32 %v20703_v22, 16 }
 0x3ca   : > { %v8908_v17 = vadd.f32 %v8640_v8, %v6707_v33  ;;  %v2429_v8 = vrot.slane %v2427_v1, 1  ;;  %v22536_v33 = vld [vmem:[%s21099_s25 + $0x160] sm:$0xff] }
 0x3cb   : > { %v2435_v39 = vshll.u32 %v22536_v33, 16 }
 0x3cc   : > { %9053 = vst [vmem:[%s21170_s4 + $0x200] sm:$0xff] %v8908_v17  ;;  %v22500_v51 = vpop.f32.mrf.mxu3  ;;  %v2430_v36 = vsel %vm2082_vm2, %v2425_v7, %v2429_v8 }
 0x3cd   : > { %v4752_v43 = vpop.f32.mrf.mxu2 }
 0x3ce   : > { %v5019_v41 = vadd.f32 %v4752_v43, %v3329_v37  ;;  %v3065_v42 = vpop.f32.mrf.mxu1  ;;  %v22545_v37 = vld [vmem:[%s21099_s25 + $0x160] sm:$0xff] }
 0x3cf   : > { %v8645_v46 = vpop.f32.mrf.mxu0  ;;  %v3330_v58 = vadd.f32 %v3065_v42, %v1492_v53  ;;  %v7991_v42 = vrot.slane %v7989_v30, 2 }
 0x3d0   : > { %v6708_v44 = vadd.f32 %v22442_v40, %v5019_v41  ;;  %v5988_v40 = vsel %vm4210_vm1, %v5985_v11, %v5987_v49  ;;  %v7983_v11 = vor.u32 %v7982_v4, %v7979_v3  ;;  %v7988_v41 = vrot.slane %v7986_v29, 1 }
 0x3d1   : > { %17756 = vmatmul.msk.bf16.gmra.mxu1 %vm688_vm0, %v2422_v62  ;;  %18492 = vmatmul.msk.bf16.gmra.mxu3 %vm688_vm0, %v5988_v40 }
 0x3d2   : > { %18123 = vmatmul.msk.bf16.gmra.mxu2 %vm688_vm0, %v4295_v28  ;;  %v8909_v54 = vadd.f32 %v8642_v31, %v6708_v44  ;;  %18857 = vmatmul.msk.bf16.gmra.mxu0 %vm688_vm0, %v7975_v50  ;;  %v7984_v18 = vsel %vm7589_vm3, %v7974_v38, %v7983_v11  ;;  %v2433_v44 = vor.u32 %v2431_v34, %v2429_v8  ;;  %v4298_v50 = vrot.slane %v22545_v37, 1  ;;  %v1498_v37 = vld [vmem:[%s21170_s4 + $0x240] sm:$0xff] }
 0x3d3   : > { %v2439_v8 = vshrl.u32 %v22536_v33, 16 }
 0x3d4   : > { %9054 = vst [vmem:[%s21170_s4 + $0x208] sm:$0xff] %v8909_v54  ;;  %v22519_v25 = vpop.f32.mrf.mxu3  ;;  %v4299_v40 = vsel %vm4210_vm1, %v4296_v12, %v4298_v50 }
 0x3d5   : > { %v4755_v45 = vpop.f32.mrf.mxu2 }
 0x3d6   : > { %v5020_v61 = vadd.f32 %v4755_v45, %v3330_v58  ;;  %v3067_v59 = vpop.f32.mrf.mxu1  ;;  %v20632_v58 = vld [vmem:[%s21099_s25 + $0x180] sm:$0xff] }
 0x3d7   : > { %v8647_v5 = vpop.f32.mrf.mxu0  ;;  %v3331_v10 = vadd.f32 %v3067_v59, %v1493_v9  ;;  %v20704_v59 = vld [vmem:[%s21099_s25 + $0x178] sm:$0xff]  ;;  %v5991_v60 = vrot.slane %v20632_v58, 1  ;;  %v1499_v58 = vld [vmem:[%s21170_s4 + $0x248] sm:$0xff] }
 0x3d8   : > { %v6709_v0 = vadd.f32 %v22461_v14, %v5020_v61  ;;  %v7995_v3 = vshrl.u32 %v20704_v59, 16  ;;  %v7998_v4 = vshll.u32 %v20704_v59, 16 }
 0x3da   : > { %v8910_v55 = vadd.f32 %v8645_v46, %v6709_v0  ;;  %v2437_v46 = vrot.slane %v2435_v39, 1  ;;  %v22565_v0 = vld [vmem:[%s21099_s25 + $0x168] sm:$0xff] }
 0x3db   : > { %v2443_v12 = vshll.u32 %v22565_v0, 16 }
 0x3dc   : > { %9055 = vst [vmem:[%s21170_s4 + $0x210] sm:$0xff] %v8910_v55  ;;  %v22529_v24 = vpop.f32.mrf.mxu3  ;;  %v2438_v6 = vsel %vm2082_vm2, %v2433_v44, %v2437_v46 }
 0x3dd   : > { %v4757_v16 = vpop.f32.mrf.mxu2 }
 0x3de   : > { %v5021_v14 = vadd.f32 %v4757_v16, %v3331_v10  ;;  %v3070_v15 = vpop.f32.mrf.mxu1  ;;  %v22574_v10 = vld [vmem:[%s21099_s25 + $0x168] sm:$0xff] }
 0x3df   : > { %v8650_v20 = vpop.f32.mrf.mxu0  ;;  %v3332_v31 = vadd.f32 %v3070_v15, %v1494_v26  ;;  %v8000_v15 = vrot.slane %v7998_v4, 2 }
 0x3e0   : > { %v6710_v19 = vadd.f32 %v22471_v13, %v5021_v14  ;;  %v5990_v13 = vsel %vm4210_vm1, %v5987_v49, %v5989_v23  ;;  %v7992_v49 = vor.u32 %v7991_v42, %v7988_v41  ;;  %v7997_v14 = vrot.slane %v7995_v3, 1 }
 0x3e1   : > { %17757 = vmatmul.msk.bf16.gmra.mxu1 %vm688_vm0, %v2430_v36  ;;  %18493 = vmatmul.msk.bf16.gmra.mxu3 %vm688_vm0, %v5990_v13 }
 0x3e2   : > { %18124 = vmatmul.msk.bf16.gmra.mxu2 %vm688_vm0, %v4297_v2  ;;  %v8911_v27 = vadd.f32 %v8647_v5, %v6710_v19  ;;  %18858 = vmatmul.msk.bf16.gmra.mxu0 %vm688_vm0, %v7984_v18  ;;  %v7993_v45 = vsel %vm7589_vm3, %v7983_v11, %v7992_v49  ;;  %v2441_v19 = vor.u32 %v2439_v8, %v2437_v46  ;;  %v4300_v18 = vrot.slane %v22574_v10, 1  ;;  %v1500_v10 = vld [vmem:[%s21170_s4 + $0x250] sm:$0xff] }
 0x3e3   : > { %v2447_v46 = vshrl.u32 %v22565_v0, 16 }
 0x3e4   : > { %9056 = vst [vmem:[%s21170_s4 + $0x218] sm:$0xff] %v8911_v27  ;;  %v22548_v62 = vpop.f32.mrf.mxu3  ;;  %v4301_v13 = vsel %vm4210_vm1, %v4298_v50, %v4300_v18 }
 0x3e5   : > { %v4760_v17 = vpop.f32.mrf.mxu2 }
 0x3e6   : > { %v5022_v35 = vadd.f32 %v4760_v17, %v3332_v31  ;;  %v3072_v32 = vpop.f32.mrf.mxu1  ;;  %v20633_v31 = vld [vmem:[%s21099_s25 + $0x188] sm:$0xff] }
 0x3e7   : > { %v8652_v43 = vpop.f32.mrf.mxu0  ;;  %v3333_v48 = vadd.f32 %v3072_v32, %v1495_v47  ;;  %v20705_v32 = vld [vmem:[%s21099_s25 + $0x180] sm:$0xff]  ;;  %v5993_v34 = vrot.slane %v20633_v31, 1  ;;  %v1501_v31 = vld [vmem:[%s21170_s4 + $0x258] sm:$0xff] }
 0x3e8   : > { %v6711_v38 = vadd.f32 %v22490_v52, %v5022_v35  ;;  %v8004_v41 = vshrl.u32 %v20705_v32, 16  ;;  %v8007_v42 = vshll.u32 %v20705_v32, 16 }
 0x3ea   : > { %v8912_v28 = vadd.f32 %v8650_v20, %v6711_v38  ;;  %v2445_v20 = vrot.slane %v2443_v12, 1  ;;  %v22594_v38 = vld [vmem:[%s21099_s25 + $0x170] sm:$0xff] }
 0x3eb   : > { %v2451_v50 = vshll.u32 %v22594_v38, 16 }
 0x3ec   : > { %9057 = vst [vmem:[%s21170_s4 + $0x220] sm:$0xff] %v8912_v28  ;;  %v22558_v61 = vpop.f32.mrf.mxu3  ;;  %v2446_v33 = vsel %vm2082_vm2, %v2441_v19, %v2445_v20 }
 0x3ed   : > { %v4762_v54 = vpop.f32.mrf.mxu2 }
 0x3ee   : > { %v5023_v52 = vadd.f32 %v4762_v54, %v3333_v48  ;;  %v3075_v53 = vpop.f32.mrf.mxu1  ;;  %v22603_v48 = vld [vmem:[%s21099_s25 + $0x170] sm:$0xff] }
 0x3ef   : > { %v8655_v57 = vpop.f32.mrf.mxu0  ;;  %v3334_v5 = vadd.f32 %v3075_v53, %v1496_v63  ;;  %v8009_v53 = vrot.slane %v8007_v42, 2 }
 0x3f0   : > { %v6712_v56 = vadd.f32 %v22500_v51, %v5023_v52  ;;  %v5992_v51 = vsel %vm4210_vm1, %v5989_v23, %v5991_v60  ;;  %v8001_v23 = vor.u32 %v8000_v15, %v7997_v14  ;;  %v8006_v52 = vrot.slane %v8004_v41, 1 }
 0x3f1   : > { %17758 = vmatmul.msk.bf16.gmra.mxu1 %vm688_vm0, %v2438_v6  ;;  %18494 = vmatmul.msk.bf16.gmra.mxu3 %vm688_vm0, %v5992_v51 }
 0x3f2   : > { %18125 = vmatmul.msk.bf16.gmra.mxu2 %vm688_vm0, %v4299_v40  ;;  %v8913_v1 = vadd.f32 %v8652_v43, %v6712_v56  ;;  %18859 = vmatmul.msk.bf16.gmra.mxu0 %vm688_vm0, %v7993_v45  ;;  %v8002_v17 = vsel %vm7589_vm3, %v7992_v49, %v8001_v23  ;;  %v2449_v56 = vor.u32 %v2447_v46, %v2445_v20  ;;  %v4302_v45 = vrot.slane %v22603_v48, 1  ;;  %v1502_v48 = vld [vmem:[%s21170_s4 + $0x260] sm:$0xff] }
 0x3f3   : > { %v2455_v20 = vshrl.u32 %v22594_v38, 16 }
 0x3f4   : > { %9058 = vst [vmem:[%s21170_s4 + $0x228] sm:$0xff] %v8913_v1  ;;  %v22577_v36 = vpop.f32.mrf.mxu3  ;;  %v4303_v51 = vsel %vm4210_vm1, %v4300_v18, %v4302_v45 }
 0x3f5   : > { %v4765_v55 = vpop.f32.mrf.mxu2 }
 0x3f6   : > { %v5024_v9 = vadd.f32 %v4765_v55, %v3334_v5  ;;  %v3077_v7 = vpop.f32.mrf.mxu1  ;;  %v20634_v5 = vld [vmem:[%s21099_s25 + $0x190] sm:$0xff] }
 0x3f7   : > { %v8657_v16 = vpop.f32.mrf.mxu0  ;;  %v3335_v22 = vadd.f32 %v3077_v7, %v1497_v21  ;;  %v20706_v7 = vld [vmem:[%s21099_s25 + $0x188] sm:$0xff]  ;;  %v5995_v8 = vrot.slane %v20634_v5, 1 }
 0x3f8   : > { %v6713_v11 = vadd.f32 %v22519_v25, %v5024_v9  ;;  %v8013_v14 = vshrl.u32 %v20706_v7, 16  ;;  %v8016_v15 = vshll.u32 %v20706_v7, 16  ;;  %v1503_v5 = vld [vmem:[%s21170_s4 + $0x268] sm:$0xff] }
 0x3fa   : > { %v8914_v2 = vadd.f32 %v8655_v57, %v6713_v11  ;;  %v2453_v57 = vrot.slane %v2451_v50, 1  ;;  %v22623_v11 = vld [vmem:[%s21099_s25 + $0x178] sm:$0xff] }
 0x3fb   : > { %v2459_v18 = vshll.u32 %v22623_v11, 16 }
 0x3fc   : > { %9059 = vst [vmem:[%s21170_s4 + $0x230] sm:$0xff] %v8914_v2  ;;  %v22587_v35 = vpop.f32.mrf.mxu3  ;;  %v2454_v0 = vsel %vm2082_vm2, %v2449_v56, %v2453_v57 }
 0x3fd   : > { %v4767_v27 = vpop.f32.mrf.mxu2 }
 0x3fe   : > { %v5025_v25 = vadd.f32 %v4767_v27, %v3335_v22  ;;  %v3080_v26 = vpop.f32.mrf.mxu1  ;;  %v22632_v22 = vld [vmem:[%s21099_s25 + $0x178] sm:$0xff] }
 0x3ff   : > { %v8660_v30 = vpop.f32.mrf.mxu0  ;;  %v3336_v43 = vadd.f32 %v3080_v26, %v1498_v37  ;;  %v8018_v26 = vrot.slane %v8016_v15, 2 }
 0x400   : > { %v6714_v29 = vadd.f32 %v22529_v24, %v5025_v25  ;;  %v5994_v24 = vsel %vm4210_vm1, %v5991_v60, %v5993_v34  ;;  %v8010_v60 = vor.u32 %v8009_v53, %v8006_v52  ;;  %v8015_v25 = vrot.slane %v8013_v14, 1 }
 0x401   : > { %17759 = vmatmul.msk.bf16.gmra.mxu1 %vm688_vm0, %v2446_v33  ;;  %18495 = vmatmul.msk.bf16.gmra.mxu3 %vm688_vm0, %v5994_v24 }
 0x402   : > { %18126 = vmatmul.msk.bf16.gmra.mxu2 %vm688_vm0, %v4301_v13  ;;  %v8915_v39 = vadd.f32 %v8657_v16, %v6714_v29  ;;  %18860 = vmatmul.msk.bf16.gmra.mxu0 %vm688_vm0, %v8002_v17  ;;  %v8011_v55 = vsel %vm7589_vm3, %v8001_v23, %v8010_v60  ;;  %v2457_v29 = vor.u32 %v2455_v20, %v2453_v57  ;;  %v4304_v17 = vrot.slane %v22632_v22, 1  ;;  %v1504_v22 = vld [vmem:[%s21170_s4 + $0x270] sm:$0xff] }
 0x403   : > { %v2463_v57 = vshrl.u32 %v22623_v11, 16 }
 0x404   : > { %9060 = vst [vmem:[%s21170_s4 + $0x238] sm:$0xff] %v8915_v39  ;;  %v22606_v6 = vpop.f32.mrf.mxu3  ;;  %v4305_v24 = vsel %vm4210_vm1, %v4302_v45, %v4304_v17 }
 0x405   : > { %v4770_v28 = vpop.f32.mrf.mxu2 }
 0x406   : > { %v5026_v47 = vadd.f32 %v4770_v28, %v3336_v43  ;;  %v3082_v44 = vpop.f32.mrf.mxu1  ;;  %v20635_v43 = vld [vmem:[%s21099_s25 + $0x198] sm:$0xff] }
 0x407   : > { %v8662_v54 = vpop.f32.mrf.mxu0  ;;  %v3337_v59 = vadd.f32 %v3082_v44, %v1499_v58  ;;  %v20707_v44 = vld [vmem:[%s21099_s25 + $0x190] sm:$0xff]  ;;  %v5997_v46 = vrot.slane %v20635_v43, 1  ;;  %v1505_v43 = vld [vmem:[%s21170_s4 + $0x278] sm:$0xff] }
 0x408   : > { %v6715_v49 = vadd.f32 %v22548_v62, %v5026_v47  ;;  %v8022_v52 = vshrl.u32 %v20707_v44, 16  ;;  %v8025_v53 = vshll.u32 %v20707_v44, 16 }
 0x40a   : > { %v8916_v40 = vadd.f32 %v8660_v30, %v6715_v49  ;;  %v2461_v30 = vrot.slane %v2459_v18, 1  ;;  %v22652_v49 = vld [vmem:[%s21099_s25 + $0x180] sm:$0xff] }
 0x40b   : > { %v2467_v45 = vshll.u32 %v22652_v49, 16 }
 0x40c   : > { %9061 = vst [vmem:[%s21170_s4 + $0x240] sm:$0xff] %v8916_v40  ;;  %v22616_v9 = vpop.f32.mrf.mxu3  ;;  %v2462_v38 = vsel %vm2082_vm2, %v2457_v29, %v2461_v30 }
 0x40d   : > { %v4772_v1 = vpop.f32.mrf.mxu2 }
 0x40e   : > { %v5027_v62 = vadd.f32 %v4772_v1, %v3337_v59  ;;  %v3085_v63 = vpop.f32.mrf.mxu1  ;;  %v22661_v59 = vld [vmem:[%s21099_s25 + $0x180] sm:$0xff] }
 0x40f   : > { %v8665_v4 = vpop.f32.mrf.mxu0  ;;  %v3338_v16 = vadd.f32 %v3085_v63, %v1500_v10  ;;  %v8027_v63 = vrot.slane %v8025_v53, 2 }
 0x410   : > { %v6716_v3 = vadd.f32 %v22558_v61, %v5027_v62  ;;  %v5996_v61 = vsel %vm4210_vm1, %v5993_v34, %v5995_v8  ;;  %v8019_v34 = vor.u32 %v8018_v26, %v8015_v25  ;;  %v8024_v62 = vrot.slane %v8022_v52, 1 }
 0x411   : > { %17760 = vmatmul.msk.bf16.gmra.mxu1 %vm688_vm0, %v2454_v0  ;;  %18496 = vmatmul.msk.bf16.gmra.mxu3 %vm688_vm0, %v5996_v61 }
 0x412   : > { %18127 = vmatmul.msk.bf16.gmra.mxu2 %vm688_vm0, %v4303_v51  ;;  %v8917_v12 = vadd.f32 %v8662_v54, %v6716_v3  ;;  %18861 = vmatmul.msk.bf16.gmra.mxu0 %vm688_vm0, %v8011_v55  ;;  %v8020_v28 = vsel %vm7589_vm3, %v8010_v60, %v8019_v34  ;;  %v2465_v3 = vor.u32 %v2463_v57, %v2461_v30  ;;  %v4306_v55 = vrot.slane %v22661_v59, 1  ;;  %v1506_v59 = vld [vmem:[%s21170_s4 + $0x280] sm:$0xff] }
 0x413   : > { %v2471_v30 = vshrl.u32 %v22652_v49, 16 }
 0x414   : > { %9062 = vst [vmem:[%s21170_s4 + $0x248] sm:$0xff] %v8917_v12  ;;  %v22635_v33 = vpop.f32.mrf.mxu3  ;;  %v4307_v61 = vsel %vm4210_vm1, %v4304_v17, %v4306_v55 }
 0x415   : > { %v4775_v2 = vpop.f32.mrf.mxu2 }
 0x416   : > { %v5028_v21 = vadd.f32 %v4775_v2, %v3338_v16  ;;  %v3087_v19 = vpop.f32.mrf.mxu1  ;;  %v20636_v16 = vld [vmem:[%s21099_s25 + $0x1a0] sm:$0xff] }
 0x417   : > { %v8667_v27 = vpop.f32.mrf.mxu0  ;;  %v3339_v32 = vadd.f32 %v3087_v19, %v1501_v31  ;;  %v20708_v19 = vld [vmem:[%s21099_s25 + $0x198] sm:$0xff]  ;;  %v5999_v20 = vrot.slane %v20636_v16, 1  ;;  %v1507_v16 = vld [vmem:[%s21170_s4 + $0x288] sm:$0xff] }
 0x418   : > { %v6717_v23 = vadd.f32 %v22577_v36, %v5028_v21  ;;  %v8031_v25 = vshrl.u32 %v20708_v19, 16  ;;  %v8034_v26 = vshll.u32 %v20708_v19, 16 }
 0x41a   : > { %v8918_v13 = vadd.f32 %v8665_v4, %v6717_v23  ;;  %v2469_v4 = vrot.slane %v2467_v45, 1  ;;  %v22681_v23 = vld [vmem:[%s21099_s25 + $0x188] sm:$0xff] }
 0x41b   : > { %v2475_v17 = vshll.u32 %v22681_v23, 16 }
 0x41c   : > { %9063 = vst [vmem:[%s21170_s4 + $0x250] sm:$0xff] %v8918_v13  ;;  %v22645_v47 = vpop.f32.mrf.mxu3  ;;  %v2470_v11 = vsel %vm2082_vm2, %v2465_v3, %v2469_v4 }
 0x41d   : > { %v4777_v39 = vpop.f32.mrf.mxu2 }
 0x41e   : > { %v5029_v36 = vadd.f32 %v4777_v39, %v3339_v32  ;;  %v3090_v37 = vpop.f32.mrf.mxu1  ;;  %v22690_v32 = vld [vmem:[%s21099_s25 + $0x188] sm:$0xff] }
 0x41f   : > { %v8670_v42 = vpop.f32.mrf.mxu0  ;;  %v3340_v54 = vadd.f32 %v3090_v37, %v1502_v48  ;;  %v8036_v37 = vrot.slane %v8034_v26, 2 }
 0x420   : > { %v6718_v41 = vadd.f32 %v22587_v35, %v5029_v36  ;;  %v5998_v35 = vsel %vm4210_vm1, %v5995_v8, %v5997_v46  ;;  %v8028_v8 = vor.u32 %v8027_v63, %v8024_v62  ;;  %v8033_v36 = vrot.slane %v8031_v25, 1 }
 0x421   : > { %17761 = vmatmul.msk.bf16.gmra.mxu1 %vm688_vm0, %v2462_v38  ;;  %18497 = vmatmul.msk.bf16.gmra.mxu3 %vm688_vm0, %v5998_v35 }
 0x422   : > { %18128 = vmatmul.msk.bf16.gmra.mxu2 %vm688_vm0, %v4305_v24  ;;  %v8919_v50 = vadd.f32 %v8667_v27, %v6718_v41  ;;  %18862 = vmatmul.msk.bf16.gmra.mxu0 %vm688_vm0, %v8020_v28  ;;  %v8029_v2 = vsel %vm7589_vm3, %v8019_v34, %v8028_v8  ;;  %v2473_v41 = vor.u32 %v2471_v30, %v2469_v4  ;;  %v4308_v28 = vrot.slane %v22690_v32, 1  ;;  %v1508_v32 = vld [vmem:[%s21170_s4 + $0x290] sm:$0xff] }
 0x423   : > { %v2479_v4 = vshrl.u32 %v22681_v23, 16 }
 0x424   : > { %9064 = vst [vmem:[%s21170_s4 + $0x258] sm:$0xff] %v8919_v50  ;;  %v22664_v0 = vpop.f32.mrf.mxu3  ;;  %v4309_v35 = vsel %vm4210_vm1, %v4306_v55, %v4308_v28 }
 0x425   : > { %v4780_v40 = vpop.f32.mrf.mxu2 }
 0x426   : > { %v5030_v58 = vadd.f32 %v4780_v40, %v3340_v54  ;;  %v3092_v56 = vpop.f32.mrf.mxu1  ;;  %v20637_v54 = vld [vmem:[%s21099_s25 + $0x1a8] sm:$0xff] }
 0x427   : > { %v8672_v1 = vpop.f32.mrf.mxu0  ;;  %v3341_v7 = vadd.f32 %v3092_v56, %v1503_v5  ;;  %v20709_v56 = vld [vmem:[%s21099_s25 + $0x1a0] sm:$0xff]  ;;  %v6001_v57 = vrot.slane %v20637_v54, 1  ;;  %v1509_v54 = vld [vmem:[%s21170_s4 + $0x298] sm:$0xff] }
 0x428   : > { %v6719_v60 = vadd.f32 %v22606_v6, %v5030_v58  ;;  %v8040_v62 = vshrl.u32 %v20709_v56, 16  ;;  %v8043_v63 = vshll.u32 %v20709_v56, 16 }
 0x42a   : > { %v8920_v51 = vadd.f32 %v8670_v42, %v6719_v60  ;;  %v2477_v42 = vrot.slane %v2475_v17, 1  ;;  %v22710_v60 = vld [vmem:[%s21099_s25 + $0x190] sm:$0xff] }
 0x42b   : > { %v2483_v55 = vshll.u32 %v22710_v60, 16 }
 0x42c   : > { %9065 = vst [vmem:[%s21170_s4 + $0x260] sm:$0xff] %v8920_v51  ;;  %v22674_v21 = vpop.f32.mrf.mxu3  ;;  %v2478_v49 = vsel %vm2082_vm2, %v2473_v41, %v2477_v42 }
 0x42d   : > { %v4782_v12 = vpop.f32.mrf.mxu2 }
 0x42e   : > { %v5031_v6 = vadd.f32 %v4782_v12, %v3341_v7  ;;  %v3095_v10 = vpop.f32.mrf.mxu1  ;;  %v22719_v7 = vld [vmem:[%s21099_s25 + $0x190] sm:$0xff] }
 0x42f   : > { %v8675_v15 = vpop.f32.mrf.mxu0  ;;  %v3342_v27 = vadd.f32 %v3095_v10, %v1504_v22  ;;  %v8045_v10 = vrot.slane %v8043_v63, 2 }
 0x430   : > { %v6720_v14 = vadd.f32 %v22616_v9, %v5031_v6  ;;  %v6000_v9 = vsel %vm4210_vm1, %v5997_v46, %v5999_v20  ;;  %v8037_v46 = vor.u32 %v8036_v37, %v8033_v36  ;;  %v8042_v6 = vrot.slane %v8040_v62, 1 }
 0x431   : > { %17762 = vmatmul.msk.bf16.gmra.mxu1 %vm688_vm0, %v2470_v11  ;;  %18498 = vmatmul.msk.bf16.gmra.mxu3 %vm688_vm0, %v6000_v9 }
 0x432   : > { %18129 = vmatmul.msk.bf16.gmra.mxu2 %vm688_vm0, %v4307_v61  ;;  %v8921_v18 = vadd.f32 %v8672_v1, %v6720_v14  ;;  %18863 = vmatmul.msk.bf16.gmra.mxu0 %vm688_vm0, %v8029_v2  ;;  %v8038_v40 = vsel %vm7589_vm3, %v8028_v8, %v8037_v46  ;;  %v2481_v14 = vor.u32 %v2479_v4, %v2477_v42  ;;  %v4310_v2 = vrot.slane %v22719_v7, 1  ;;  %v1510_v7 = vld [vmem:[%s21170_s4 + $0x2a0] sm:$0xff] }
 0x433   : > { %v2487_v42 = vshrl.u32 %v22710_v60, 16 }
 0x434   : > { %9066 = vst [vmem:[%s21170_s4 + $0x268] sm:$0xff] %v8921_v18  ;;  %v22693_v38 = vpop.f32.mrf.mxu3  ;;  %v4311_v9 = vsel %vm4210_vm1, %v4308_v28, %v4310_v2 }
 0x435   : > { %v4785_v13 = vpop.f32.mrf.mxu2 }
 0x436   : > { %v5032_v31 = vadd.f32 %v4785_v13, %v3342_v27  ;;  %v3097_v29 = vpop.f32.mrf.mxu1  ;;  %v20638_v27 = vld [vmem:[%s21099_s25 + $0x1b0] sm:$0xff] }
 0x437   : > { %v8677_v39 = vpop.f32.mrf.mxu0  ;;  %v3343_v44 = vadd.f32 %v3097_v29, %v1505_v43  ;;  %v20710_v29 = vld [vmem:[%s21099_s25 + $0x1a8] sm:$0xff]  ;;  %v6003_v30 = vrot.slane %v20638_v27, 1 }
 0x438   : > { %v6721_v34 = vadd.f32 %v22635_v33, %v5032_v31  ;;  %v8049_v36 = vshrl.u32 %v20710_v29, 16  ;;  %v8052_v37 = vshll.u32 %v20710_v29, 16  ;;  %v1511_v27 = vld [vmem:[%s21170_s4 + $0x2a8] sm:$0xff] }
 0x43a   : > { %v8922_v24 = vadd.f32 %v8675_v15, %v6721_v34  ;;  %v2485_v15 = vrot.slane %v2483_v55, 1  ;;  %v22739_v34 = vld [vmem:[%s21099_s25 + $0x198] sm:$0xff] }
 0x43b   : > { %v2491_v28 = vshll.u32 %v22739_v34, 16 }
 0x43c   : > { %9067 = vst [vmem:[%s21170_s4 + $0x270] sm:$0xff] %v8922_v24  ;;  %v22703_v58 = vpop.f32.mrf.mxu3  ;;  %v2486_v23 = vsel %vm2082_vm2, %v2481_v14, %v2485_v15 }
 0x43d   : > { %v4787_v50 = vpop.f32.mrf.mxu2 }
 0x43e   : > { %v5033_v33 = vadd.f32 %v4787_v50, %v3343_v44  ;;  %v3100_v48 = vpop.f32.mrf.mxu1  ;;  %v22748_v44 = vld [vmem:[%s21099_s25 + $0x198] sm:$0xff] }
 0x43f   : > { %v8680_v53 = vpop.f32.mrf.mxu0  ;;  %v3344_v1 = vadd.f32 %v3100_v48, %v1506_v59  ;;  %v8054_v48 = vrot.slane %v8052_v37, 2 }
 0x440   : > { %v6722_v52 = vadd.f32 %v22645_v47, %v5033_v33  ;;  %v6002_v47 = vsel %vm4210_vm1, %v5999_v20, %v6001_v57  ;;  %v8046_v20 = vor.u32 %v8045_v10, %v8042_v6  ;;  %v8051_v33 = vrot.slane %v8049_v36, 1 }
 0x441   : > { %17763 = vmatmul.msk.bf16.gmra.mxu1 %vm688_vm0, %v2478_v49  ;;  %18499 = vmatmul.msk.bf16.gmra.mxu3 %vm688_vm0, %v6002_v47 }
 0x442   : > { %18130 = vmatmul.msk.bf16.gmra.mxu2 %vm688_vm0, %v4309_v35  ;;  %v8923_v45 = vadd.f32 %v8677_v39, %v6722_v52  ;;  %18864 = vmatmul.msk.bf16.gmra.mxu0 %vm688_vm0, %v8038_v40  ;;  %v8047_v13 = vsel %vm7589_vm3, %v8037_v46, %v8046_v20  ;;  %v2489_v52 = vor.u32 %v2487_v42, %v2485_v15  ;;  %v4312_v40 = vrot.slane %v22748_v44, 1  ;;  %v1512_v44 = vld [vmem:[%s21170_s4 + $0x2b0] sm:$0xff] }
 0x443   : > { %v2495_v15 = vshrl.u32 %v22739_v34, 16 }
 0x444   : > { %9068 = vst [vmem:[%s21170_s4 + $0x278] sm:$0xff] %v8923_v45  ;;  %v22722_v11 = vpop.f32.mrf.mxu3  ;;  %v4313_v47 = vsel %vm4210_vm1, %v4310_v2, %v4312_v40 }
 0x445   : > { %v4790_v51 = vpop.f32.mrf.mxu2 }
 0x446   : > { %v5034_v5 = vadd.f32 %v4790_v51, %v3344_v1  ;;  %v3102_v3 = vpop.f32.mrf.mxu1  ;;  %v20639_v1 = vld [vmem:[%s21099_s25 + $0x1b8] sm:$0xff] }
 0x447   : > { %v8682_v12 = vpop.f32.mrf.mxu0  ;;  %v3345_v19 = vadd.f32 %v3102_v3, %v1507_v16  ;;  %v20711_v3 = vld [vmem:[%s21099_s25 + $0x1b0] sm:$0xff]  ;;  %v6005_v4 = vrot.slane %v20639_v1, 1  ;;  %v1513_v1 = vld [vmem:[%s21170_s4 + $0x2b8] sm:$0xff] }
 0x448   : > { %v6723_v8 = vadd.f32 %v22664_v0, %v5034_v5  ;;  %v8058_v6 = vshrl.u32 %v20711_v3, 16  ;;  %v8061_v10 = vshll.u32 %v20711_v3, 16 }
 0x44a   : > { %v8924_v61 = vadd.f32 %v8680_v53, %v6723_v8  ;;  %v2493_v53 = vrot.slane %v2491_v28, 1  ;;  %v22768_v8 = vld [vmem:[%s21099_s25 + $0x1a0] sm:$0xff] }
 0x44b   : > { %v2499_v2 = vshll.u32 %v22768_v8, 16 }
 0x44c   : > { %9069 = vst [vmem:[%s21170_s4 + $0x280] sm:$0xff] %v8924_v61  ;;  %v22732_v31 = vpop.f32.mrf.mxu3  ;;  %v2494_v60 = vsel %vm2082_vm2, %v2489_v52, %v2493_v53 }
 0x44d   : > { %v4792_v18 = vpop.f32.mrf.mxu2 }
 0x44e   : > { %v5035_v0 = vadd.f32 %v4792_v18, %v3345_v19  ;;  %v3105_v22 = vpop.f32.mrf.mxu1  ;;  %v22777_v19 = vld [vmem:[%s21099_s25 + $0x1a0] sm:$0xff] }
 0x44f   : > { %v8685_v26 = vpop.f32.mrf.mxu0  ;;  %v3346_v39 = vadd.f32 %v3105_v22, %v1508_v32  ;;  %v8063_v22 = vrot.slane %v8061_v10, 2 }
 0x450   : > { %v6724_v25 = vadd.f32 %v22674_v21, %v5035_v0  ;;  %v6004_v21 = vsel %vm4210_vm1, %v6001_v57, %v6003_v30  ;;  %v8055_v57 = vor.u32 %v8054_v48, %v8051_v33  ;;  %v8060_v0 = vrot.slane %v8058_v6, 1 }
 0x451   : > { %17764 = vmatmul.msk.bf16.gmra.mxu1 %vm688_vm0, %v2486_v23  ;;  %18500 = vmatmul.msk.bf16.gmra.mxu3 %vm688_vm0, %v6004_v21 }
 0x452   : > { %18131 = vmatmul.msk.bf16.gmra.mxu2 %vm688_vm0, %v4311_v9  ;;  %v8925_v17 = vadd.f32 %v8682_v12, %v6724_v25  ;;  %18865 = vmatmul.msk.bf16.gmra.mxu0 %vm688_vm0, %v8047_v13  ;;  %v8056_v51 = vsel %vm7589_vm3, %v8046_v20, %v8055_v57  ;;  %v2497_v25 = vor.u32 %v2495_v15, %v2493_v53  ;;  %v4314_v13 = vrot.slane %v22777_v19, 1  ;;  %v1514_v19 = vld [vmem:[%s21170_s4 + $0x2c0] sm:$0xff] }
 0x453   : > { %v2503_v53 = vshrl.u32 %v22768_v8, 16 }
 0x454   : > { %9070 = vst [vmem:[%s21170_s4 + $0x288] sm:$0xff] %v8925_v17  ;;  %v22751_v49 = vpop.f32.mrf.mxu3  ;;  %v4315_v21 = vsel %vm4210_vm1, %v4312_v40, %v4314_v13 }
 0x455   : > { %v4795_v24 = vpop.f32.mrf.mxu2 }
 0x456   : > { %v5036_v43 = vadd.f32 %v4795_v24, %v3346_v39  ;;  %v3107_v41 = vpop.f32.mrf.mxu1  ;;  %v20640_v39 = vld [vmem:[%s21099_s25 + $0x1c0] sm:$0xff] }
 0x457   : > { %v8687_v50 = vpop.f32.mrf.mxu0  ;;  %v3347_v56 = vadd.f32 %v3107_v41, %v1509_v54  ;;  %v20712_v41 = vld [vmem:[%s21099_s25 + $0x1b8] sm:$0xff]  ;;  %v6007_v42 = vrot.slane %v20640_v39, 1  ;;  %v1515_v39 = vld [vmem:[%s21170_s4 + $0x2c8] sm:$0xff] }
 0x458   : > { %v6725_v46 = vadd.f32 %v22693_v38, %v5036_v43  ;;  %v8067_v33 = vshrl.u32 %v20712_v41, 16  ;;  %v8070_v48 = vshll.u32 %v20712_v41, 16 }
 0x45a   : > { %v8926_v35 = vadd.f32 %v8685_v26, %v6725_v46  ;;  %v2501_v26 = vrot.slane %v2499_v2, 1  ;;  %v22797_v46 = vld [vmem:[%s21099_s25 + $0x1a8] sm:$0xff] }
 0x45b   : > { %v2507_v40 = vshll.u32 %v22797_v46, 16 }
 0x45c   : > { %9071 = vst [vmem:[%s21170_s4 + $0x290] sm:$0xff] %v8926_v35  ;;  %v22761_v5 = vpop.f32.mrf.mxu3  ;;  %v2502_v34 = vsel %vm2082_vm2, %v2497_v25, %v2501_v26 }
 0x45d   : > { %v4797_v45 = vpop.f32.mrf.mxu2 }
 0x45e   : > { %v5037_v38 = vadd.f32 %v4797_v45, %v3347_v56  ;;  %v3110_v59 = vpop.f32.mrf.mxu1  ;;  %v22806_v56 = vld [vmem:[%s21099_s25 + $0x1a8] sm:$0xff] }
 0x45f   : > { %v8690_v63 = vpop.f32.mrf.mxu0  ;;  %v3348_v12 = vadd.f32 %v3110_v59, %v1510_v7  ;;  %v8072_v59 = vrot.slane %v8070_v48, 2 }
 0x460   : > { %v6726_v62 = vadd.f32 %v22703_v58, %v5037_v38  ;;  %v6006_v58 = vsel %vm4210_vm1, %v6003_v30, %v6005_v4  ;;  %v8064_v30 = vor.u32 %v8063_v22, %v8060_v0  ;;  %v8069_v38 = vrot.slane %v8067_v33, 1 }
 0x461   : > { %17765 = vmatmul.msk.bf16.gmra.mxu1 %vm688_vm0, %v2494_v60  ;;  %18501 = vmatmul.msk.bf16.gmra.mxu3 %vm688_vm0, %v6006_v58 }
 0x462   : > { %18132 = vmatmul.msk.bf16.gmra.mxu2 %vm688_vm0, %v4313_v47  ;;  %v8927_v55 = vadd.f32 %v8687_v50, %v6726_v62  ;;  %18866 = vmatmul.msk.bf16.gmra.mxu0 %vm688_vm0, %v8056_v51  ;;  %v8065_v24 = vsel %vm7589_vm3, %v8055_v57, %v8064_v30  ;;  %v2505_v62 = vor.u32 %v2503_v53, %v2501_v26  ;;  %v4316_v51 = vrot.slane %v22806_v56, 1  ;;  %v1516_v56 = vld [vmem:[%s21170_s4 + $0x2d0] sm:$0xff] }
 0x463   : > { %v2511_v26 = vshrl.u32 %v22797_v46, 16 }
 0x464   : > { %9072 = vst [vmem:[%s21170_s4 + $0x298] sm:$0xff] %v8927_v55  ;;  %v22780_v23 = vpop.f32.mrf.mxu3  ;;  %v4317_v58 = vsel %vm4210_vm1, %v4314_v13, %v4316_v51 }
 0x465   : > { %v4800_v61 = vpop.f32.mrf.mxu2 }
 0x466   : > { %v5038_v16 = vadd.f32 %v4800_v61, %v3348_v12  ;;  %v3112_v14 = vpop.f32.mrf.mxu1  ;;  %v20641_v12 = vld [vmem:[%s21099_s25 + $0x1c8] sm:$0xff] }
 0x467   : > { %v8692_v18 = vpop.f32.mrf.mxu0  ;;  %v3349_v29 = vadd.f32 %v3112_v14, %v1511_v27  ;;  %v20713_v14 = vld [vmem:[%s21099_s25 + $0x1c0] sm:$0xff]  ;;  %v6009_v15 = vrot.slane %v20641_v12, 1  ;;  %v1517_v12 = vld [vmem:[%s21170_s4 + $0x2d8] sm:$0xff] }
 0x468   : > { %v6727_v20 = vadd.f32 %v22722_v11, %v5038_v16  ;;  %v8076_v0 = vshrl.u32 %v20713_v14, 16  ;;  %v8079_v22 = vshll.u32 %v20713_v14, 16 }
 0x46a   : > { %v8928_v9 = vadd.f32 %v8690_v63, %v6727_v20  ;;  %v2509_v63 = vrot.slane %v2507_v40, 1  ;;  %v22826_v20 = vld [vmem:[%s21099_s25 + $0x1b0] sm:$0xff] }
 0x46b   : > { %v2515_v13 = vshll.u32 %v22826_v20, 16 }
 0x46c   : > { %9073 = vst [vmem:[%s21170_s4 + $0x2a0] sm:$0xff] %v8928_v9  ;;  %v22790_v43 = vpop.f32.mrf.mxu3  ;;  %v2510_v8 = vsel %vm2082_vm2, %v2505_v62, %v2509_v63 }
 0x46d   : > { %v4802_v17 = vpop.f32.mrf.mxu2 }
 0x46e   : > { %v5039_v11 = vadd.f32 %v4802_v17, %v3349_v29  ;;  %v3115_v32 = vpop.f32.mrf.mxu1  ;;  %v22835_v29 = vld [vmem:[%s21099_s25 + $0x1b0] sm:$0xff] }
 0x46f   : > { %v8695_v37 = vpop.f32.mrf.mxu0  ;;  %v3350_v50 = vadd.f32 %v3115_v32, %v1512_v44  ;;  %v8081_v32 = vrot.slane %v8079_v22, 2 }
 0x470   : > { %v6728_v36 = vadd.f32 %v22732_v31, %v5039_v11  ;;  %v6008_v31 = vsel %vm4210_vm1, %v6005_v4, %v6007_v42  ;;  %v8073_v4 = vor.u32 %v8072_v59, %v8069_v38  ;;  %v8078_v11 = vrot.slane %v8076_v0, 1 }
 0x471   : > { %17766 = vmatmul.msk.bf16.gmra.mxu1 %vm688_vm0, %v2502_v34  ;;  %18502 = vmatmul.msk.bf16.gmra.mxu3 %vm688_vm0, %v6008_v31 }
 0x472   : > { %18133 = vmatmul.msk.bf16.gmra.mxu2 %vm688_vm0, %v4315_v21  ;;  %v8929_v28 = vadd.f32 %v8692_v18, %v6728_v36  ;;  %18867 = vmatmul.msk.bf16.gmra.mxu0 %vm688_vm0, %v8065_v24  ;;  %v8074_v61 = vsel %vm7589_vm3, %v8064_v30, %v8073_v4  ;;  %v2513_v36 = vor.u32 %v2511_v26, %v2509_v63  ;;  %v4318_v24 = vrot.slane %v22835_v29, 1  ;;  %v1518_v29 = vld [vmem:[%s21170_s4 + $0x2e0] sm:$0xff] }
 0x473   : > { %v2519_v63 = vshrl.u32 %v22826_v20, 16 }
 0x474   : > { %9074 = vst [vmem:[%s21170_s4 + $0x2a8] sm:$0xff] %v8929_v28  ;;  %v22809_v60 = vpop.f32.mrf.mxu3  ;;  %v4319_v31 = vsel %vm4210_vm1, %v4316_v51, %v4318_v24 }
 0x475   : > { %v4805_v35 = vpop.f32.mrf.mxu2 }
 0x476   : > { %v5040_v54 = vadd.f32 %v4805_v35, %v3350_v50  ;;  %v3117_v52 = vpop.f32.mrf.mxu1  ;;  %v20642_v50 = vld [vmem:[%s21099_s25 + $0x1d0] sm:$0xff] }
 0x477   : > { %v8697_v45 = vpop.f32.mrf.mxu0  ;;  %v3351_v3 = vadd.f32 %v3117_v52, %v1513_v1  ;;  %v20714_v52 = vld [vmem:[%s21099_s25 + $0x1c8] sm:$0xff]  ;;  %v6011_v53 = vrot.slane %v20642_v50, 1 }
 0x478   : > { %v6729_v57 = vadd.f32 %v22751_v49, %v5040_v54  ;;  %v8085_v38 = vshrl.u32 %v20714_v52, 16  ;;  %v8088_v59 = vshll.u32 %v20714_v52, 16  ;;  %v1519_v50 = vld [vmem:[%s21170_s4 + $0x2e8] sm:$0xff] }
 0x47a   : > { %v8930_v47 = vadd.f32 %v8695_v37, %v6729_v57  ;;  %v2517_v37 = vrot.slane %v2515_v13, 1  ;;  %v22855_v57 = vld [vmem:[%s21099_s25 + $0x1b8] sm:$0xff] }
 0x47b   : > { %v2523_v51 = vshll.u32 %v22855_v57, 16 }
 0x47c   : > { %9075 = vst [vmem:[%s21170_s4 + $0x2b0] sm:$0xff] %v8930_v47  ;;  %v22819_v16 = vpop.f32.mrf.mxu3  ;;  %v2518_v46 = vsel %vm2082_vm2, %v2513_v36, %v2517_v37 }
 0x47d   : > { %v4807_v55 = vpop.f32.mrf.mxu2 }
 0x47e   : > { %v5041_v49 = vadd.f32 %v4807_v55, %v3351_v3  ;;  %v3120_v7 = vpop.f32.mrf.mxu1  ;;  %v22864_v3 = vld [vmem:[%s21099_s25 + $0x1b8] sm:$0xff] }
 0x47f   : > { %v8700_v10 = vpop.f32.mrf.mxu0  ;;  %v3352_v18 = vadd.f32 %v3120_v7, %v1514_v19  ;;  %v8090_v7 = vrot.slane %v8088_v59, 2 }
 0x480   : > { %v6730_v6 = vadd.f32 %v22761_v5, %v5041_v49  ;;  %v6010_v5 = vsel %vm4210_vm1, %v6007_v42, %v6009_v15  ;;  %v8082_v42 = vor.u32 %v8081_v32, %v8078_v11  ;;  %v8087_v49 = vrot.slane %v8085_v38, 1 }
 0x481   : > { %17767 = vmatmul.msk.bf16.gmra.mxu1 %vm688_vm0, %v2510_v8  ;;  %18503 = vmatmul.msk.bf16.gmra.mxu3 %vm688_vm0, %v6010_v5 }
 0x482   : > { %18134 = vmatmul.msk.bf16.gmra.mxu2 %vm688_vm0, %v4317_v58  ;;  %v8931_v2 = vadd.f32 %v8697_v45, %v6730_v6  ;;  %18868 = vmatmul.msk.bf16.gmra.mxu0 %vm688_vm0, %v8074_v61  ;;  %v8083_v35 = vsel %vm7589_vm3, %v8073_v4, %v8082_v42  ;;  %v2521_v6 = vor.u32 %v2519_v63, %v2517_v37  ;;  %v4320_v61 = vrot.slane %v22864_v3, 1  ;;  %v1520_v3 = vld [vmem:[%s21170_s4 + $0x2f0] sm:$0xff] }
 0x483   : > { %v2527_v37 = vshrl.u32 %v22855_v57, 16 }
 0x484   : > { %9076 = vst [vmem:[%s21170_s4 + $0x2b8] sm:$0xff] %v8931_v2  ;;  %v22838_v34 = vpop.f32.mrf.mxu3  ;;  %v4321_v5 = vsel %vm4210_vm1, %v4318_v24, %v4320_v61 }
 0x485   : > { %v4810_v9 = vpop.f32.mrf.mxu2 }
 0x486   : > { %v5042_v27 = vadd.f32 %v4810_v9, %v3352_v18  ;;  %v3122_v25 = vpop.f32.mrf.mxu1  ;;  %v20643_v18 = vld [vmem:[%s21099_s25 + $0x1d8] sm:$0xff] }
 0x487   : > { %v8702_v17 = vpop.f32.mrf.mxu0  ;;  %v3353_v41 = vadd.f32 %v3122_v25, %v1515_v39  ;;  %v20715_v25 = vld [vmem:[%s21099_s25 + $0x1d0] sm:$0xff]  ;;  %v6013_v26 = vrot.slane %v20643_v18, 1  ;;  %v1521_v18 = vld [vmem:[%s21170_s4 + $0x2f8] sm:$0xff] }
 0x488   : > { %v6731_v30 = vadd.f32 %v22780_v23, %v5042_v27  ;;  %v8094_v11 = vshrl.u32 %v20715_v25, 16  ;;  %v8097_v32 = vshll.u32 %v20715_v25, 16 }
 0x48a   : > { %v8932_v21 = vadd.f32 %v8700_v10, %v6731_v30  ;;  %v2525_v10 = vrot.slane %v2523_v51, 1  ;;  %v22884_v30 = vld [vmem:[%s21099_s25 + $0x1c0] sm:$0xff] }
 0x48b   : > { %v2531_v24 = vshll.u32 %v22884_v30, 16 }
 0x48c   : > { %9077 = vst [vmem:[%s21170_s4 + $0x2c0] sm:$0xff] %v8932_v21  ;;  %v22848_v54 = vpop.f32.mrf.mxu3  ;;  %v2526_v20 = vsel %vm2082_vm2, %v2521_v6, %v2525_v10 }
 0x48d   : > { %v4812_v28 = vpop.f32.mrf.mxu2 }
 0x48e   : > { %v5043_v23 = vadd.f32 %v4812_v28, %v3353_v41  ;;  %v3125_v44 = vpop.f32.mrf.mxu1  ;;  %v22893_v41 = vld [vmem:[%s21099_s25 + $0x1c0] sm:$0xff] }
 0x48f   : > { %v8705_v48 = vpop.f32.mrf.mxu0  ;;  %v3354_v45 = vadd.f32 %v3125_v44, %v1516_v56  ;;  %v8099_v44 = vrot.slane %v8097_v32, 2 }
 0x490   : > { %v6732_v33 = vadd.f32 %v22790_v43, %v5043_v23  ;;  %v6012_v43 = vsel %vm4210_vm1, %v6009_v15, %v6011_v53  ;;  %v8091_v15 = vor.u32 %v8090_v7, %v8087_v49  ;;  %v8096_v23 = vrot.slane %v8094_v11, 1 }
 0x491   : > { %17768 = vmatmul.msk.bf16.gmra.mxu1 %vm688_vm0, %v2518_v46  ;;  %18504 = vmatmul.msk.bf16.gmra.mxu3 %vm688_vm0, %v6012_v43 }
 0x492   : > { %18135 = vmatmul.msk.bf16.gmra.mxu2 %vm688_vm0, %v4319_v31  ;;  %v8933_v40 = vadd.f32 %v8702_v17, %v6732_v33  ;;  %18869 = vmatmul.msk.bf16.gmra.mxu0 %vm688_vm0, %v8083_v35  ;;  %v8092_v9 = vsel %vm7589_vm3, %v8082_v42, %v8091_v15  ;;  %v2529_v33 = vor.u32 %v2527_v37, %v2525_v10  ;;  %v4322_v35 = vrot.slane %v22893_v41, 1  ;;  %v1522_v41 = vld [vmem:[%s21170_s4 + $0x300] sm:$0xff] }
 0x493   : > { %v2535_v10 = vshrl.u32 %v22884_v30, 16 }
 0x494   : > { %9078 = vst [vmem:[%s21170_s4 + $0x2c8] sm:$0xff] %v8933_v40  ;;  %v22867_v8 = vpop.f32.mrf.mxu3  ;;  %v4323_v43 = vsel %vm4210_vm1, %v4320_v61, %v4322_v35 }
 0x495   : > { %v4815_v47 = vpop.f32.mrf.mxu2 }
 0x496   : > { %v5044_v1 = vadd.f32 %v4815_v47, %v3354_v45  ;;  %v3127_v62 = vpop.f32.mrf.mxu1  ;;  %v20644_v45 = vld [vmem:[%s21099_s25 + $0x1e0] sm:$0xff] }
 0x497   : > { %v8707_v55 = vpop.f32.mrf.mxu0  ;;  %v3355_v14 = vadd.f32 %v3127_v62, %v1517_v12  ;;  %v20716_v62 = vld [vmem:[%s21099_s25 + $0x1d8] sm:$0xff]  ;;  %v6015_v63 = vrot.slane %v20644_v45, 1  ;;  %v1523_v45 = vld [vmem:[%s21170_s4 + $0x308] sm:$0xff] }
 0x498   : > { %v6733_v4 = vadd.f32 %v22809_v60, %v5044_v1  ;;  %v8103_v49 = vshrl.u32 %v20716_v62, 16  ;;  %v8106_v7 = vshll.u32 %v20716_v62, 16 }
 0x49a   : > { %v8934_v58 = vadd.f32 %v8705_v48, %v6733_v4  ;;  %v2533_v48 = vrot.slane %v2531_v24, 1  ;;  %v22913_v4 = vld [vmem:[%s21099_s25 + $0x1c8] sm:$0xff] }
 0x49b   : > { %v2539_v61 = vshll.u32 %v22913_v4, 16 }
 0x49c   : > { %9079 = vst [vmem:[%s21170_s4 + $0x2d0] sm:$0xff] %v8934_v58  ;;  %v22877_v27 = vpop.f32.mrf.mxu3  ;;  %v2534_v57 = vsel %vm2082_vm2, %v2529_v33, %v2533_v48 }
 0x49d   : > { %v4817_v2 = vpop.f32.mrf.mxu2 }
 0x49e   : > { %v5045_v60 = vadd.f32 %v4817_v2, %v3355_v14  ;;  %v3130_v19 = vpop.f32.mrf.mxu1  ;;  %v22922_v14 = vld [vmem:[%s21099_s25 + $0x1c8] sm:$0xff] }
 0x49f   : > { %v8710_v22 = vpop.f32.mrf.mxu0  ;;  %v3356_v17 = vadd.f32 %v3130_v19, %v1518_v29  ;;  %v8108_v19 = vrot.slane %v8106_v7, 2 }
 0x4a0   : > { %v6734_v0 = vadd.f32 %v22819_v16, %v5045_v60  ;;  %v6014_v16 = vsel %vm4210_vm1, %v6011_v53, %v6013_v26  ;;  %v8100_v53 = vor.u32 %v8099_v44, %v8096_v23  ;;  %v8105_v60 = vrot.slane %v8103_v49, 1 }
 0x4a1   : > { %17769 = vmatmul.msk.bf16.gmra.mxu1 %vm688_vm0, %v2526_v20  ;;  %18505 = vmatmul.msk.bf16.gmra.mxu3 %vm688_vm0, %v6014_v16 }
 0x4a2   : > { %18136 = vmatmul.msk.bf16.gmra.mxu2 %vm688_vm0, %v4321_v5  ;;  %v8935_v13 = vadd.f32 %v8707_v55, %v6734_v0  ;;  %18870 = vmatmul.msk.bf16.gmra.mxu0 %vm688_vm0, %v8092_v9  ;;  %v8101_v47 = vsel %vm7589_vm3, %v8091_v15, %v8100_v53  ;;  %v2537_v0 = vor.u32 %v2535_v10, %v2533_v48  ;;  %v4324_v9 = vrot.slane %v22922_v14, 1  ;;  %v1524_v14 = vld [vmem:[%s21170_s4 + $0x310] sm:$0xff] }
 0x4a3   : > { %v2543_v48 = vshrl.u32 %v22913_v4, 16 }
 0x4a4   : > { %9080 = vst [vmem:[%s21170_s4 + $0x2d8] sm:$0xff] %v8935_v13  ;;  %v22896_v46 = vpop.f32.mrf.mxu3  ;;  %v4325_v16 = vsel %vm4210_vm1, %v4322_v35, %v4324_v9 }
 0x4a5   : > { %v4820_v21 = vpop.f32.mrf.mxu2 }
 0x4a6   : > { %v5046_v39 = vadd.f32 %v4820_v21, %v3356_v17  ;;  %v3132_v36 = vpop.f32.mrf.mxu1  ;;  %v20645_v17 = vld [vmem:[%s21099_s25 + $0x1e8] sm:$0xff] }
 0x4a7   : > { %v8712_v28 = vpop.f32.mrf.mxu0  ;;  %v3357_v52 = vadd.f32 %v3132_v36, %v1519_v50  ;;  %v20717_v36 = vld [vmem:[%s21099_s25 + $0x1e0] sm:$0xff]  ;;  %v6017_v37 = vrot.slane %v20645_v17, 1  ;;  %v1525_v17 = vld [vmem:[%s21170_s4 + $0x318] sm:$0xff] }
 0x4a8   : > { %v6735_v42 = vadd.f32 %v22838_v34, %v5046_v39  ;;  %v8112_v23 = vshrl.u32 %v20717_v36, 16  ;;  %v8115_v44 = vshll.u32 %v20717_v36, 16 }
 0x4aa   : > { %v8936_v31 = vadd.f32 %v8710_v22, %v6735_v42  ;;  %v2541_v22 = vrot.slane %v2539_v61, 1  ;;  %v22942_v42 = vld [vmem:[%s21099_s25 + $0x1d0] sm:$0xff] }
 0x4ab   : > { %v2547_v35 = vshll.u32 %v22942_v42, 16 }
 0x4ac   : > { %9081 = vst [vmem:[%s21170_s4 + $0x2e0] sm:$0xff] %v8936_v31  ;;  %v22906_v1 = vpop.f32.mrf.mxu3  ;;  %v2542_v30 = vsel %vm2082_vm2, %v2537_v0, %v2541_v22 }
 0x4ad   : > { %v4822_v40 = vpop.f32.mrf.mxu2 }
 0x4ae   : > { %v5047_v34 = vadd.f32 %v4822_v40, %v3357_v52  ;;  %v3135_v56 = vpop.f32.mrf.mxu1  ;;  %v22951_v52 = vld [vmem:[%s21099_s25 + $0x1d0] sm:$0xff] }
 0x4af   : > { %v8715_v59 = vpop.f32.mrf.mxu0  ;;  %v3358_v55 = vadd.f32 %v3135_v56, %v1520_v3  ;;  %v8117_v56 = vrot.slane %v8115_v44, 2 }
 0x4b0   : > { %v6736_v38 = vadd.f32 %v22848_v54, %v5047_v34  ;;  %v6016_v54 = vsel %vm4210_vm1, %v6013_v26, %v6015_v63  ;;  %v8109_v26 = vor.u32 %v8108_v19, %v8105_v60  ;;  %v8114_v34 = vrot.slane %v8112_v23, 1 }
 0x4b1   : > { %17770 = vmatmul.msk.bf16.gmra.mxu1 %vm688_vm0, %v2534_v57  ;;  %18506 = vmatmul.msk.bf16.gmra.mxu3 %vm688_vm0, %v6016_v54 }
 0x4b2   : > { %18137 = vmatmul.msk.bf16.gmra.mxu2 %vm688_vm0, %v4323_v43  ;;  %v8937_v51 = vadd.f32 %v8712_v28, %v6736_v38  ;;  %18871 = vmatmul.msk.bf16.gmra.mxu0 %vm688_vm0, %v8101_v47  ;;  %v8110_v21 = vsel %vm7589_vm3, %v8100_v53, %v8109_v26  ;;  %v2545_v38 = vor.u32 %v2543_v48, %v2541_v22  ;;  %v4326_v47 = vrot.slane %v22951_v52, 1  ;;  %v1526_v52 = vld [vmem:[%s21170_s4 + $0x320] sm:$0xff] }
 0x4b3   : > { %v2551_v22 = vshrl.u32 %v22942_v42, 16 }
 0x4b4   : > { %9082 = vst [vmem:[%s21170_s4 + $0x2e8] sm:$0xff] %v8937_v51  ;;  %v22925_v20 = vpop.f32.mrf.mxu3  ;;  %v4327_v54 = vsel %vm4210_vm1, %v4324_v9, %v4326_v47 }
 0x4b5   : > { %v4825_v58 = vpop.f32.mrf.mxu2 }
 0x4b6   : > { %v5048_v12 = vadd.f32 %v4825_v58, %v3358_v55  ;;  %v3137_v6 = vpop.f32.mrf.mxu1  ;;  %v20646_v55 = vld [vmem:[%s21099_s25 + $0x1f0] sm:$0xff] }
 0x4b7   : > { %v8717_v2 = vpop.f32.mrf.mxu0  ;;  %v3359_v25 = vadd.f32 %v3137_v6, %v1521_v18  ;;  %v20718_v6 = vld [vmem:[%s21099_s25 + $0x1e8] sm:$0xff]  ;;  %v6019_v10 = vrot.slane %v20646_v55, 1 }
 0x4b8   : > { %v6737_v15 = vadd.f32 %v22867_v8, %v5048_v12  ;;  %v8121_v60 = vshrl.u32 %v20718_v6, 16  ;;  %v8124_v19 = vshll.u32 %v20718_v6, 16  ;;  %v1527_v55 = vld [vmem:[%s21170_s4 + $0x328] sm:$0xff] }
 0x4ba   : > { %v8938_v5 = vadd.f32 %v8715_v59, %v6737_v15  ;;  %v2549_v59 = vrot.slane %v2547_v35, 1  ;;  %v22971_v15 = vld [vmem:[%s21099_s25 + $0x1d8] sm:$0xff] }
 0x4bb   : > { %v2555_v9 = vshll.u32 %v22971_v15, 16 }
 0x4bc   : > { %9083 = vst [vmem:[%s21170_s4 + $0x2f0] sm:$0xff] %v8938_v5  ;;  %v22935_v39 = vpop.f32.mrf.mxu3  ;;  %v2550_v4 = vsel %vm2082_vm2, %v2545_v38, %v2549_v59 }
 0x4bd   : > { %v4827_v13 = vpop.f32.mrf.mxu2 }
 0x4be   : > { %v5049_v8 = vadd.f32 %v4827_v13, %v3359_v25  ;;  %v3140_v29 = vpop.f32.mrf.mxu1  ;;  %v22980_v25 = vld [vmem:[%s21099_s25 + $0x1d8] sm:$0xff] }
 0x4bf   : > { %v8720_v32 = vpop.f32.mrf.mxu0  ;;  %v3360_v28 = vadd.f32 %v3140_v29, %v1522_v41  ;;  %v8126_v29 = vrot.slane %v8124_v19, 2 }
 0x4c0   : > { %v6738_v11 = vadd.f32 %v22877_v27, %v5049_v8  ;;  %v6018_v27 = vsel %vm4210_vm1, %v6015_v63, %v6017_v37  ;;  %v8118_v63 = vor.u32 %v8117_v56, %v8114_v34  ;;  %v8123_v8 = vrot.slane %v8121_v60, 1 }
 0x4c1   : > { %17771 = vmatmul.msk.bf16.gmra.mxu1 %vm688_vm0, %v2542_v30  ;;  %18507 = vmatmul.msk.bf16.gmra.mxu3 %vm688_vm0, %v6018_v27 }
 0x4c2   : > { %18138 = vmatmul.msk.bf16.gmra.mxu2 %vm688_vm0, %v4325_v16  ;;  %v8939_v24 = vadd.f32 %v8717_v2, %v6738_v11  ;;  %18872 = vmatmul.msk.bf16.gmra.mxu0 %vm688_vm0, %v8110_v21  ;;  %v8119_v58 = vsel %vm7589_vm3, %v8109_v26, %v8118_v63  ;;  %v2553_v11 = vor.u32 %v2551_v22, %v2549_v59  ;;  %v4328_v21 = vrot.slane %v22980_v25, 1  ;;  %v1528_v25 = vld [vmem:[%s21170_s4 + $0x330] sm:$0xff] }
 0x4c3   : > { %v2559_v59 = vshrl.u32 %v22971_v15, 16 }
 0x4c4   : > { %9084 = vst [vmem:[%s21170_s4 + $0x2f8] sm:$0xff] %v8939_v24  ;;  %v22954_v57 = vpop.f32.mrf.mxu3  ;;  %v4329_v27 = vsel %vm4210_vm1, %v4326_v47, %v4328_v21 }
 0x4c5   : > { %v4830_v31 = vpop.f32.mrf.mxu2 }
 0x4c6   : > { %v5050_v50 = vadd.f32 %v4830_v31, %v3360_v28  ;;  %v3142_v33 = vpop.f32.mrf.mxu1  ;;  %v20647_v28 = vld [vmem:[%s21099_s25 + $0x1f8] sm:$0xff] }
 0x4c7   : > { %v8722_v40 = vpop.f32.mrf.mxu0  ;;  %v3361_v62 = vadd.f32 %v3142_v33, %v1523_v45  ;;  %v20719_v33 = vld [vmem:[%s21099_s25 + $0x1f0] sm:$0xff]  ;;  %v6021_v48 = vrot.slane %v20647_v28, 1  ;;  %v1529_v28 = vld [vmem:[%s21170_s4 + $0x338] sm:$0xff] }
 0x4c8   : > { %v6739_v53 = vadd.f32 %v22896_v46, %v5050_v50  ;;  %v8130_v34 = vshrl.u32 %v20719_v33, 16  ;;  %v8133_v56 = vshll.u32 %v20719_v33, 16 }
 0x4ca   : > { %v8940_v43 = vadd.f32 %v8720_v32, %v6739_v53  ;;  %v2557_v32 = vrot.slane %v2555_v9, 1  ;;  %v23000_v53 = vld [vmem:[%s21099_s25 + $0x1e0] sm:$0xff] }
 0x4cb   : > { %v2563_v47 = vshll.u32 %v23000_v53, 16 }
 0x4cc   : > { %9085 = vst [vmem:[%s21170_s4 + $0x300] sm:$0xff] %v8940_v43  ;;  %v22964_v12 = vpop.f32.mrf.mxu3  ;;  %v2558_v42 = vsel %vm2082_vm2, %v2553_v11, %v2557_v32 }
 0x4cd   : > { %v4832_v51 = vpop.f32.mrf.mxu2 }
 0x4ce   : > { %v5051_v46 = vadd.f32 %v4832_v51, %v3361_v62  ;;  %v3145_v3 = vpop.f32.mrf.mxu1  ;;  %v23009_v62 = vld [vmem:[%s21099_s25 + $0x1e0] sm:$0xff] }
 0x4cf   : > { %v8725_v7 = vpop.f32.mrf.mxu0  ;;  %v3362_v2 = vadd.f32 %v3145_v3, %v1524_v14  ;;  %v8135_v3 = vrot.slane %v8133_v56, 2 }
 0x4d0   : > { %v6740_v49 = vadd.f32 %v22906_v1, %v5051_v46  ;;  %v6020_v1 = vsel %vm4210_vm1, %v6017_v37, %v6019_v10  ;;  %v8127_v37 = vor.u32 %v8126_v29, %v8123_v8  ;;  %v8132_v46 = vrot.slane %v8130_v34, 1 }
 0x4d1   : > { %17772 = vmatmul.msk.bf16.gmra.mxu1 %vm688_vm0, %v2550_v4  ;;  %18508 = vmatmul.msk.bf16.gmra.mxu3 %vm688_vm0, %v6020_v1 }
 0x4d2   : > { %18139 = vmatmul.msk.bf16.gmra.mxu2 %vm688_vm0, %v4327_v54  ;;  %v8941_v61 = vadd.f32 %v8722_v40, %v6740_v49  ;;  %18873 = vmatmul.msk.bf16.gmra.mxu0 %vm688_vm0, %v8119_v58  ;;  %v8128_v31 = vsel %vm7589_vm3, %v8118_v63, %v8127_v37  ;;  %v2561_v49 = vor.u32 %v2559_v59, %v2557_v32  ;;  %v4330_v58 = vrot.slane %v23009_v62, 1  ;;  %v1530_v62 = vld [vmem:[%s21170_s4 + $0x340] sm:$0xff] }
 0x4d3   : > { %v2567_v32 = vshrl.u32 %v23000_v53, 16 }
 0x4d4   : > { %9086 = vst [vmem:[%s21170_s4 + $0x308] sm:$0xff] %v8941_v61  ;;  %v22983_v30 = vpop.f32.mrf.mxu3  ;;  %v4331_v1 = vsel %vm4210_vm1, %v4328_v21, %v4330_v58 }
 0x4d5   : > { %v4835_v5 = vpop.f32.mrf.mxu2 }
 0x4d6   : > { %v5052_v18 = vadd.f32 %v4835_v5, %v3362_v2  ;;  %v3147_v0 = vpop.f32.mrf.mxu1  ;;  %v20648_v2 = vld [vmem:[%s21099_s25 + $0x200] sm:$0xff] }
 0x4d7   : > { %v8727_v13 = vpop.f32.mrf.mxu0  ;;  %v3363_v36 = vadd.f32 %v3147_v0, %v1525_v17  ;;  %v20720_v0 = vld [vmem:[%s21099_s25 + $0x1f8] sm:$0xff]  ;;  %v6023_v22 = vrot.slane %v20648_v2, 1  ;;  %v1531_v2 = vld [vmem:[%s21170_s4 + $0x348] sm:$0xff] }
 0x4d8   : > { %v6741_v26 = vadd.f32 %v22925_v20, %v5052_v18  ;;  %v8139_v8 = vshrl.u32 %v20720_v0, 16  ;;  %v8142_v29 = vshll.u32 %v20720_v0, 16 }
 0x4da   : > { %v8942_v16 = vadd.f32 %v8725_v7, %v6741_v26  ;;  %v2565_v7 = vrot.slane %v2563_v47, 1  ;;  %v23029_v26 = vld [vmem:[%s21099_s25 + $0x1e8] sm:$0xff] }
 0x4db   : > { %v2571_v21 = vshll.u32 %v23029_v26, 16 }
 0x4dc   : > { %9087 = vst [vmem:[%s21170_s4 + $0x310] sm:$0xff] %v8942_v16  ;;  %v22993_v50 = vpop.f32.mrf.mxu3  ;;  %v2566_v15 = vsel %vm2082_vm2, %v2561_v49, %v2565_v7 }
 0x4dd   : > { %v4837_v24 = vpop.f32.mrf.mxu2 }
 0x4de   : > { %v5053_v20 = vadd.f32 %v4837_v24, %v3363_v36  ;;  %v3150_v41 = vpop.f32.mrf.mxu1  ;;  %v23038_v36 = vld [vmem:[%s21099_s25 + $0x1e8] sm:$0xff] }
 0x4df   : > { %v8730_v44 = vpop.f32.mrf.mxu0  ;;  %v3364_v40 = vadd.f32 %v3150_v41, %v1526_v52  ;;  %v8144_v41 = vrot.slane %v8142_v29, 2 }
 0x4e0   : > { %v6742_v23 = vadd.f32 %v22935_v39, %v5053_v20  ;;  %v6022_v39 = vsel %vm4210_vm1, %v6019_v10, %v6021_v48  ;;  %v8136_v10 = vor.u32 %v8135_v3, %v8132_v46  ;;  %v8141_v20 = vrot.slane %v8139_v8, 1 }
 0x4e1   : > { %17773 = vmatmul.msk.bf16.gmra.mxu1 %vm688_vm0, %v2558_v42  ;;  %18509 = vmatmul.msk.bf16.gmra.mxu3 %vm688_vm0, %v6022_v39 }
 0x4e2   : > { %18140 = vmatmul.msk.bf16.gmra.mxu2 %vm688_vm0, %v4329_v27  ;;  %v8943_v35 = vadd.f32 %v8727_v13, %v6742_v23  ;;  %18874 = vmatmul.msk.bf16.gmra.mxu0 %vm688_vm0, %v8128_v31  ;;  %v8137_v5 = vsel %vm7589_vm3, %v8127_v37, %v8136_v10  ;;  %v2569_v23 = vor.u32 %v2567_v32, %v2565_v7  ;;  %v4332_v31 = vrot.slane %v23038_v36, 1  ;;  %v1532_v36 = vld [vmem:[%s21170_s4 + $0x350] sm:$0xff] }
 0x4e3   : > { %v2575_v7 = vshrl.u32 %v23029_v26, 16 }
 0x4e4   : > { %9088 = vst [vmem:[%s21170_s4 + $0x318] sm:$0xff] %v8943_v35  ;;  %v23012_v4 = vpop.f32.mrf.mxu3  ;;  %v4333_v39 = vsel %vm4210_vm1, %v4330_v58, %v4332_v31 }
 0x4e5   : > { %v4840_v43 = vpop.f32.mrf.mxu2 }
 0x4e6   : > { %v5054_v45 = vadd.f32 %v4840_v43, %v3364_v40  ;;  %v3152_v38 = vpop.f32.mrf.mxu1  ;;  %v20649_v40 = vld [vmem:[%s21099_s25 + $0x208] sm:$0xff] }
 0x4e7   : > { %v8732_v51 = vpop.f32.mrf.mxu0  ;;  %v3365_v6 = vadd.f32 %v3152_v38, %v1527_v55  ;;  %v20721_v38 = vld [vmem:[%s21099_s25 + $0x200] sm:$0xff]  ;;  %v6025_v59 = vrot.slane %v20649_v40, 1  ;;  %v1533_v40 = vld [vmem:[%s21170_s4 + $0x358] sm:$0xff] }
 0x4e8   : > { %v6743_v63 = vadd.f32 %v22954_v57, %v5054_v45  ;;  %v8148_v46 = vshrl.u32 %v20721_v38, 16  ;;  %v8151_v3 = vshll.u32 %v20721_v38, 16 }
 0x4ea   : > { %v8944_v54 = vadd.f32 %v8730_v44, %v6743_v63  ;;  %v2573_v44 = vrot.slane %v2571_v21, 1  ;;  %v23058_v63 = vld [vmem:[%s21099_s25 + $0x1f0] sm:$0xff] }
 0x4eb   : > { %v2579_v58 = vshll.u32 %v23058_v63, 16 }
 0x4ec   : > { %9089 = vst [vmem:[%s21170_s4 + $0x320] sm:$0xff] %v8944_v54  ;;  %v23022_v18 = vpop.f32.mrf.mxu3  ;;  %v2574_v53 = vsel %vm2082_vm2, %v2569_v23, %v2573_v44 }
 0x4ed   : > { %v4842_v61 = vpop.f32.mrf.mxu2 }
 0x4ee   : > { %v5055_v57 = vadd.f32 %v4842_v61, %v3365_v6  ;;  %v3155_v14 = vpop.f32.mrf.mxu1  ;;  %v23067_v6 = vld [vmem:[%s21099_s25 + $0x1f0] sm:$0xff] }
 0x4ef   : > { %v8735_v19 = vpop.f32.mrf.mxu0  ;;  %v3366_v13 = vadd.f32 %v3155_v14, %v1528_v25  ;;  %v8153_v14 = vrot.slane %v8151_v3, 2 }
 0x4f0   : > { %v6744_v60 = vadd.f32 %v22964_v12, %v5055_v57  ;;  %v6024_v12 = vsel %vm4210_vm1, %v6021_v48, %v6023_v22  ;;  %v8145_v48 = vor.u32 %v8144_v41, %v8141_v20  ;;  %v8150_v57 = vrot.slane %v8148_v46, 1 }
 0x4f1   : > { %17774 = vmatmul.msk.bf16.gmra.mxu1 %vm688_vm0, %v2566_v15  ;;  %18510 = vmatmul.msk.bf16.gmra.mxu3 %vm688_vm0, %v6024_v12 }
 0x4f2   : > { %18141 = vmatmul.msk.bf16.gmra.mxu2 %vm688_vm0, %v4331_v1  ;;  %v8945_v9 = vadd.f32 %v8732_v51, %v6744_v60  ;;  %18875 = vmatmul.msk.bf16.gmra.mxu0 %vm688_vm0, %v8137_v5  ;;  %v8146_v43 = vsel %vm7589_vm3, %v8136_v10, %v8145_v48  ;;  %v2577_v60 = vor.u32 %v2575_v7, %v2573_v44  ;;  %v4334_v5 = vrot.slane %v23067_v6, 1  ;;  %v1534_v6 = vld [vmem:[%s21170_s4 + $0x360] sm:$0xff] }
 0x4f3   : > { %v2583_v44 = vshrl.u32 %v23058_v63, 16 }
 0x4f4   : > { %9090 = vst [vmem:[%s21170_s4 + $0x328] sm:$0xff] %v8945_v9  ;;  %v23041_v42 = vpop.f32.mrf.mxu3  ;;  %v4335_v12 = vsel %vm4210_vm1, %v4332_v31, %v4334_v5 }
 0x4f5   : > { %v4845_v16 = vpop.f32.mrf.mxu2 }
 0x4f6   : > { %v5056_v17 = vadd.f32 %v4845_v16, %v3366_v13  ;;  %v3157_v11 = vpop.f32.mrf.mxu1  ;;  %v20650_v13 = vld [vmem:[%s21099_s25 + $0x210] sm:$0xff] }
 0x4f7   : > { %v8737_v24 = vpop.f32.mrf.mxu0  ;;  %v3367_v33 = vadd.f32 %v3157_v11, %v1529_v28  ;;  %v20722_v11 = vld [vmem:[%s21099_s25 + $0x208] sm:$0xff]  ;;  %v6027_v32 = vrot.slane %v20650_v13, 1 }
 0x4f8   : > { %v6745_v37 = vadd.f32 %v22983_v30, %v5056_v17  ;;  %v8157_v20 = vshrl.u32 %v20722_v11, 16  ;;  %v8160_v41 = vshll.u32 %v20722_v11, 16  ;;  %v1535_v13 = vld [vmem:[%s21170_s4 + $0x368] sm:$0xff] }
 0x4fa   : > { %v8946_v27 = vadd.f32 %v8735_v19, %v6745_v37  ;;  %v2581_v19 = vrot.slane %v2579_v58, 1  ;;  %v23087_v37 = vld [vmem:[%s21099_s25 + $0x1f8] sm:$0xff] }
 0x4fb   : > { %v2587_v31 = vshll.u32 %v23087_v37, 16 }
 0x4fc   : > { %9091 = vst [vmem:[%s21170_s4 + $0x330] sm:$0xff] %v8946_v27  ;;  %v23051_v45 = vpop.f32.mrf.mxu3  ;;  %v2582_v26 = vsel %vm2082_vm2, %v2577_v60, %v2581_v19 }
 0x4fd   : > { %v4847_v35 = vpop.f32.mrf.mxu2 }
 0x4fe   : > { %v5057_v30 = vadd.f32 %v4847_v35, %v3367_v33  ;;  %v3160_v52 = vpop.f32.mrf.mxu1  ;;  %v23096_v33 = vld [vmem:[%s21099_s25 + $0x1f8] sm:$0xff] }
 0x4ff   : > { %v8740_v56 = vpop.f32.mrf.mxu0  ;;  %v3368_v51 = vadd.f32 %v3160_v52, %v1530_v62  ;;  %v8162_v52 = vrot.slane %v8160_v41, 2 }
 0x500   : > { %v6746_v34 = vadd.f32 %v22993_v50, %v5057_v30  ;;  %v6026_v50 = vsel %vm4210_vm1, %v6023_v22, %v6025_v59  ;;  %v8154_v22 = vor.u32 %v8153_v14, %v8150_v57  ;;  %v8159_v30 = vrot.slane %v8157_v20, 1 }
 0x501   : > { %17775 = vmatmul.msk.bf16.gmra.mxu1 %vm688_vm0, %v2574_v53  ;;  %18511 = vmatmul.msk.bf16.gmra.mxu3 %vm688_vm0, %v6026_v50 }
 0x502   : > { %18142 = vmatmul.msk.bf16.gmra.mxu2 %vm688_vm0, %v4333_v39  ;;  %v8947_v47 = vadd.f32 %v8737_v24, %v6746_v34  ;;  %18876 = vmatmul.msk.bf16.gmra.mxu0 %vm688_vm0, %v8146_v43  ;;  %v8155_v16 = vsel %vm7589_vm3, %v8145_v48, %v8154_v22  ;;  %v2585_v34 = vor.u32 %v2583_v44, %v2581_v19  ;;  %v4336_v43 = vrot.slane %v23096_v33, 1  ;;  %v1536_v33 = vld [vmem:[%s21170_s4 + $0x370] sm:$0xff] }
 0x503   : > { %v2591_v19 = vshrl.u32 %v23087_v37, 16 }
 0x504   : > { %9092 = vst [vmem:[%s21170_s4 + $0x338] sm:$0xff] %v8947_v47  ;;  %v23070_v15 = vpop.f32.mrf.mxu3  ;;  %v4337_v50 = vsel %vm4210_vm1, %v4334_v5, %v4336_v43 }
 0x505   : > { %v4850_v54 = vpop.f32.mrf.mxu2 }
 0x506   : > { %v5058_v55 = vadd.f32 %v4850_v54, %v3368_v51  ;;  %v3162_v49 = vpop.f32.mrf.mxu1  ;;  %v20651_v51 = vld [vmem:[%s21099_s25 + $0x218] sm:$0xff] }
 0x507   : > { %v8742_v61 = vpop.f32.mrf.mxu0  ;;  %v3369_v0 = vadd.f32 %v3162_v49, %v1531_v2  ;;  %v20723_v49 = vld [vmem:[%s21099_s25 + $0x210] sm:$0xff]  ;;  %v6029_v7 = vrot.slane %v20651_v51, 1  ;;  %v1537_v51 = vld [vmem:[%s21170_s4 + $0x378] sm:$0xff] }
 0x508   : > { %v6747_v10 = vadd.f32 %v23012_v4, %v5058_v55  ;;  %v8166_v57 = vshrl.u32 %v20723_v49, 16  ;;  %v8169_v14 = vshll.u32 %v20723_v49, 16 }
 0x50a   : > { %v8948_v1 = vadd.f32 %v8740_v56, %v6747_v10  ;;  %v2589_v56 = vrot.slane %v2587_v31, 1  ;;  %v23116_v10 = vld [vmem:[%s21099_s25 + $0x200] sm:$0xff] }
 0x50b   : > { %v2595_v5 = vshll.u32 %v23116_v10, 16 }
 0x50c   : > { %9093 = vst [vmem:[%s21170_s4 + $0x340] sm:$0xff] %v8948_v1  ;;  %v23080_v17 = vpop.f32.mrf.mxu3  ;;  %v2590_v63 = vsel %vm2082_vm2, %v2585_v34, %v2589_v56 }
 0x50d   : > { %v4852_v9 = vpop.f32.mrf.mxu2 }
 0x50e   : > { %v5059_v4 = vadd.f32 %v4852_v9, %v3369_v0  ;;  %v3165_v25 = vpop.f32.mrf.mxu1  ;;  %v23125_v0 = vld [vmem:[%s21099_s25 + $0x200] sm:$0xff] }
 0x50f   : > { %v8745_v29 = vpop.f32.mrf.mxu0  ;;  %v3370_v24 = vadd.f32 %v3165_v25, %v1532_v36  ;;  %v8171_v25 = vrot.slane %v8169_v14, 2 }
 0x510   : > { %v6748_v8 = vadd.f32 %v23022_v18, %v5059_v4  ;;  %v6028_v18 = vsel %vm4210_vm1, %v6025_v59, %v6027_v32  ;;  %v8163_v59 = vor.u32 %v8162_v52, %v8159_v30  ;;  %v8168_v4 = vrot.slane %v8166_v57, 1 }
 0x511   : > { %17776 = vmatmul.msk.bf16.gmra.mxu1 %vm688_vm0, %v2582_v26  ;;  %18512 = vmatmul.msk.bf16.gmra.mxu3 %vm688_vm0, %v6028_v18 }
 0x512   : > { %18143 = vmatmul.msk.bf16.gmra.mxu2 %vm688_vm0, %v4335_v12  ;;  %v8949_v21 = vadd.f32 %v8742_v61, %v6748_v8  ;;  %18877 = vmatmul.msk.bf16.gmra.mxu0 %vm688_vm0, %v8155_v16  ;;  %v8164_v54 = vsel %vm7589_vm3, %v8154_v22, %v8163_v59  ;;  %v2593_v8 = vor.u32 %v2591_v19, %v2589_v56  ;;  %v4338_v16 = vrot.slane %v23125_v0, 1  ;;  %v1538_v0 = vld [vmem:[%s21170_s4 + $0x380] sm:$0xff] }
 0x513   : > { %v2599_v56 = vshrl.u32 %v23116_v10, 16 }
 0x514   : > { %9094 = vst [vmem:[%s21170_s4 + $0x348] sm:$0xff] %v8949_v21  ;;  %v23099_v53 = vpop.f32.mrf.mxu3  ;;  %v4339_v18 = vsel %vm4210_vm1, %v4336_v43, %v4338_v16 }
 0x515   : > { %v4855_v27 = vpop.f32.mrf.mxu2 }
 0x516   : > { %v5060_v28 = vadd.f32 %v4855_v27, %v3370_v24  ;;  %v3167_v23 = vpop.f32.mrf.mxu1  ;;  %v20652_v24 = vld [vmem:[%s21099_s25 + $0x220] sm:$0xff] }
 0x517   : > { %v8747_v35 = vpop.f32.mrf.mxu0  ;;  %v3371_v38 = vadd.f32 %v3167_v23, %v1533_v40  ;;  %v20724_v23 = vld [vmem:[%s21099_s25 + $0x218] sm:$0xff]  ;;  %v6031_v44 = vrot.slane %v20652_v24, 1  ;;  %v1539_v24 = vld [vmem:[%s21170_s4 + $0x388] sm:$0xff] }
 0x518   : > { %v6749_v48 = vadd.f32 %v23041_v42, %v5060_v28  ;;  %v8175_v30 = vshrl.u32 %v20724_v23, 16  ;;  %v8178_v52 = vshll.u32 %v20724_v23, 16 }
 0x51a   : > { %v8950_v39 = vadd.f32 %v8745_v29, %v6749_v48  ;;  %v2597_v29 = vrot.slane %v2595_v5, 1  ;;  %v23145_v48 = vld [vmem:[%s21099_s25 + $0x208] sm:$0xff] }
 0x51b   : > { %v2603_v43 = vshll.u32 %v23145_v48, 16 }
 0x51c   : > { %9095 = vst [vmem:[%s21170_s4 + $0x350] sm:$0xff] %v8950_v39  ;;  %v23109_v55 = vpop.f32.mrf.mxu3  ;;  %v2598_v37 = vsel %vm2082_vm2, %v2593_v8, %v2597_v29 }
 0x51d   : > { %v4857_v47 = vpop.f32.mrf.mxu2 }
 0x51e   : > { %v5061_v42 = vadd.f32 %v4857_v47, %v3371_v38  ;;  %v3170_v62 = vpop.f32.mrf.mxu1  ;;  %v23154_v38 = vld [vmem:[%s21099_s25 + $0x208] sm:$0xff] }
 0x51f   : > { %v8750_v3 = vpop.f32.mrf.mxu0  ;;  %v3372_v61 = vadd.f32 %v3170_v62, %v1534_v6  ;;  %v8180_v62 = vrot.slane %v8178_v52, 2 }
 0x520   : > { %v6750_v46 = vadd.f32 %v23051_v45, %v5061_v42  ;;  %v6030_v45 = vsel %vm4210_vm1, %v6027_v32, %v6029_v7  ;;  %v8172_v32 = vor.u32 %v8171_v25, %v8168_v4  ;;  %v8177_v42 = vrot.slane %v8175_v30, 1 }
 0x521   : > { %17777 = vmatmul.msk.bf16.gmra.mxu1 %vm688_vm0, %v2590_v63  ;;  %18513 = vmatmul.msk.bf16.gmra.mxu3 %vm688_vm0, %v6030_v45 }
 0x522   : > { %18144 = vmatmul.msk.bf16.gmra.mxu2 %vm688_vm0, %v4337_v50  ;;  %v8951_v58 = vadd.f32 %v8747_v35, %v6750_v46  ;;  %18878 = vmatmul.msk.bf16.gmra.mxu0 %vm688_vm0, %v8164_v54  ;;  %v8173_v27 = vsel %vm7589_vm3, %v8163_v59, %v8172_v32  ;;  %v2601_v46 = vor.u32 %v2599_v56, %v2597_v29  ;;  %v4340_v54 = vrot.slane %v23154_v38, 1  ;;  %v1540_v38 = vld [vmem:[%s21170_s4 + $0x390] sm:$0xff] }
 0x523   : > { %v2607_v29 = vshrl.u32 %v23145_v48, 16 }
 0x524   : > { %9096 = vst [vmem:[%s21170_s4 + $0x358] sm:$0xff] %v8951_v58  ;;  %v23128_v26 = vpop.f32.mrf.mxu3  ;;  %v4341_v45 = vsel %vm4210_vm1, %v4338_v16, %v4340_v54 }
 0x525   : > { %v4860_v1 = vpop.f32.mrf.mxu2 }
 0x526   : > { %v5062_v2 = vadd.f32 %v4860_v1, %v3372_v61  ;;  %v3172_v60 = vpop.f32.mrf.mxu1  ;;  %v20653_v61 = vld [vmem:[%s21099_s25 + $0x228] sm:$0xff] }
 0x527   : > { %v8752_v9 = vpop.f32.mrf.mxu0  ;;  %v3373_v11 = vadd.f32 %v3172_v60, %v1535_v13  ;;  %v20725_v60 = vld [vmem:[%s21099_s25 + $0x220] sm:$0xff]  ;;  %v6033_v19 = vrot.slane %v20653_v61, 1  ;;  %v1541_v61 = vld [vmem:[%s21170_s4 + $0x398] sm:$0xff] }
 0x528   : > { %v6751_v22 = vadd.f32 %v23070_v15, %v5062_v2  ;;  %v8184_v4 = vshrl.u32 %v20725_v60, 16  ;;  %v8187_v25 = vshll.u32 %v20725_v60, 16 }
 0x52a   : > { %v8952_v12 = vadd.f32 %v8750_v3, %v6751_v22  ;;  %v2605_v3 = vrot.slane %v2603_v43, 1  ;;  %v23174_v22 = vld [vmem:[%s21099_s25 + $0x210] sm:$0xff] }
 0x52b   : > { %v2611_v16 = vshll.u32 %v23174_v22, 16 }
 0x52c   : > { %9097 = vst [vmem:[%s21170_s4 + $0x360] sm:$0xff] %v8952_v12  ;;  %v23138_v28 = vpop.f32.mrf.mxu3  ;;  %v2606_v10 = vsel %vm2082_vm2, %v2601_v46, %v2605_v3 }
 0x52d   : > { %v4862_v21 = vpop.f32.mrf.mxu2 }
 0x52e   : > { %v5063_v15 = vadd.f32 %v4862_v21, %v3373_v11  ;;  %v3175_v36 = vpop.f32.mrf.mxu1  ;;  %v23183_v11 = vld [vmem:[%s21099_s25 + $0x210] sm:$0xff] }
 0x52f   : > { %v8755_v41 = vpop.f32.mrf.mxu0  ;;  %v3374_v35 = vadd.f32 %v3175_v36, %v1536_v33  ;;  %v8189_v36 = vrot.slane %v8187_v25, 2 }
 0x530   : > { %v6752_v20 = vadd.f32 %v23080_v17, %v5063_v15  ;;  %v6032_v17 = vsel %vm4210_vm1, %v6029_v7, %v6031_v44  ;;  %v8181_v7 = vor.u32 %v8180_v62, %v8177_v42  ;;  %v8186_v15 = vrot.slane %v8184_v4, 1 }
 0x531   : > { %17778 = vmatmul.msk.bf16.gmra.mxu1 %vm688_vm0, %v2598_v37  ;;  %18514 = vmatmul.msk.bf16.gmra.mxu3 %vm688_vm0, %v6032_v17 }
 0x532   : > { %18145 = vmatmul.msk.bf16.gmra.mxu2 %vm688_vm0, %v4339_v18  ;;  %v8953_v31 = vadd.f32 %v8752_v9, %v6752_v20  ;;  %18879 = vmatmul.msk.bf16.gmra.mxu0 %vm688_vm0, %v8173_v27  ;;  %v8182_v1 = vsel %vm7589_vm3, %v8172_v32, %v8181_v7  ;;  %v2609_v20 = vor.u32 %v2607_v29, %v2605_v3  ;;  %v4342_v27 = vrot.slane %v23183_v11, 1  ;;  %v1542_v11 = vld [vmem:[%s21170_s4 + $0x3a0] sm:$0xff] }
 0x533   : > { %v2615_v3 = vshrl.u32 %v23174_v22, 16 }
 0x534   : > { %9098 = vst [vmem:[%s21170_s4 + $0x368] sm:$0xff] %v8953_v31  ;;  %v23157_v63 = vpop.f32.mrf.mxu3  ;;  %v4343_v17 = vsel %vm4210_vm1, %v4340_v54, %v4342_v27 }
 0x535   : > { %v4865_v39 = vpop.f32.mrf.mxu2 }
 0x536   : > { %v5064_v40 = vadd.f32 %v4865_v39, %v3374_v35  ;;  %v3177_v34 = vpop.f32.mrf.mxu1  ;;  %v20654_v35 = vld [vmem:[%s21099_s25 + $0x230] sm:$0xff] }
 0x537   : > { %v8757_v47 = vpop.f32.mrf.mxu0  ;;  %v3375_v49 = vadd.f32 %v3177_v34, %v1537_v51  ;;  %v20726_v34 = vld [vmem:[%s21099_s25 + $0x228] sm:$0xff]  ;;  %v6035_v56 = vrot.slane %v20654_v35, 1 }
 0x538   : > { %v6753_v59 = vadd.f32 %v23099_v53, %v5064_v40  ;;  %v8193_v42 = vshrl.u32 %v20726_v34, 16  ;;  %v8196_v62 = vshll.u32 %v20726_v34, 16  ;;  %v1543_v35 = vld [vmem:[%s21170_s4 + $0x3a8] sm:$0xff] }
 0x53a   : > { %v8954_v50 = vadd.f32 %v8755_v41, %v6753_v59  ;;  %v2613_v41 = vrot.slane %v2611_v16, 1  ;;  %v23203_v59 = vld [vmem:[%s21099_s25 + $0x218] sm:$0xff] }
 0x53b   : > { %v2619_v54 = vshll.u32 %v23203_v59, 16 }
 0x53c   : > { %9099 = vst [vmem:[%s21170_s4 + $0x370] sm:$0xff] %v8954_v50  ;;  %v23167_v2 = vpop.f32.mrf.mxu3  ;;  %v2614_v48 = vsel %vm2082_vm2, %v2609_v20, %v2613_v41 }
 0x53d   : > { %v4867_v58 = vpop.f32.mrf.mxu2 }
 0x53e   : > { %v5065_v53 = vadd.f32 %v4867_v58, %v3375_v49  ;;  %v3180_v6 = vpop.f32.mrf.mxu1  ;;  %v23212_v49 = vld [vmem:[%s21099_s25 + $0x218] sm:$0xff] }
 0x53f   : > { %v8760_v14 = vpop.f32.mrf.mxu0  ;;  %v3376_v9 = vadd.f32 %v3180_v6, %v1538_v0  ;;  %v8198_v6 = vrot.slane %v8196_v62, 2 }
 0x540   : > { %v6754_v57 = vadd.f32 %v23109_v55, %v5065_v53  ;;  %v6034_v55 = vsel %vm4210_vm1, %v6031_v44, %v6033_v19  ;;  %v8190_v44 = vor.u32 %v8189_v36, %v8186_v15  ;;  %v8195_v53 = vrot.slane %v8193_v42, 1 }
 0x541   : > { %17779 = vmatmul.msk.bf16.gmra.mxu1 %vm688_vm0, %v2606_v10  ;;  %18515 = vmatmul.msk.bf16.gmra.mxu3 %vm688_vm0, %v6034_v55 }
 0x542   : > { %18146 = vmatmul.msk.bf16.gmra.mxu2 %vm688_vm0, %v4341_v45  ;;  %v8955_v5 = vadd.f32 %v8757_v47, %v6754_v57  ;;  %18880 = vmatmul.msk.bf16.gmra.mxu0 %vm688_vm0, %v8182_v1  ;;  %v8191_v39 = vsel %vm7589_vm3, %v8181_v7, %v8190_v44  ;;  %v2617_v57 = vor.u32 %v2615_v3, %v2613_v41  ;;  %v4344_v1 = vrot.slane %v23212_v49, 1  ;;  %v1544_v49 = vld [vmem:[%s21170_s4 + $0x3b0] sm:$0xff] }
 0x543   : > { %v2623_v41 = vshrl.u32 %v23203_v59, 16 }
 0x544   : > { %9100 = vst [vmem:[%s21170_s4 + $0x378] sm:$0xff] %v8955_v5  ;;  %v23186_v37 = vpop.f32.mrf.mxu3  ;;  %v4345_v55 = vsel %vm4210_vm1, %v4342_v27, %v4344_v1 }
 0x545   : > { %v4870_v12 = vpop.f32.mrf.mxu2 }
 0x546   : > { %v5066_v13 = vadd.f32 %v4870_v12, %v3376_v9  ;;  %v3182_v8 = vpop.f32.mrf.mxu1  ;;  %v20655_v9 = vld [vmem:[%s21099_s25 + $0x238] sm:$0xff] }
 0x547   : > { %v8762_v21 = vpop.f32.mrf.mxu0  ;;  %v3377_v23 = vadd.f32 %v3182_v8, %v1539_v24  ;;  %v20727_v8 = vld [vmem:[%s21099_s25 + $0x230] sm:$0xff]  ;;  %v6037_v29 = vrot.slane %v20655_v9, 1  ;;  %v1545_v9 = vld [vmem:[%s21170_s4 + $0x3b8] sm:$0xff] }
 0x548   : > { %v6755_v32 = vadd.f32 %v23128_v26, %v5066_v13  ;;  %v8202_v15 = vshrl.u32 %v20727_v8, 16  ;;  %v8205_v36 = vshll.u32 %v20727_v8, 16 }
 0x54a   : > { %v8956_v18 = vadd.f32 %v8760_v14, %v6755_v32  ;;  %v2621_v14 = vrot.slane %v2619_v54, 1  ;;  %v23232_v32 = vld [vmem:[%s21099_s25 + $0x220] sm:$0xff] }
 0x54b   : > { %v2627_v27 = vshll.u32 %v23232_v32, 16 }
 0x54c   : > { %9101 = vst [vmem:[%s21170_s4 + $0x380] sm:$0xff] %v8956_v18  ;;  %v23196_v40 = vpop.f32.mrf.mxu3  ;;  %v2622_v22 = vsel %vm2082_vm2, %v2617_v57, %v2621_v14 }
 0x54d   : > { %v4872_v31 = vpop.f32.mrf.mxu2 }
 0x54e   : > { %v5067_v26 = vadd.f32 %v4872_v31, %v3377_v23  ;;  %v3185_v33 = vpop.f32.mrf.mxu1  ;;  %v23241_v23 = vld [vmem:[%s21099_s25 + $0x220] sm:$0xff] }
 0x54f   : > { %v8765_v52 = vpop.f32.mrf.mxu0  ;;  %v3378_v47 = vadd.f32 %v3185_v33, %v1540_v38  ;;  %v8207_v33 = vrot.slane %v8205_v36, 2 }
 0x550   : > { %v6756_v30 = vadd.f32 %v23138_v28, %v5067_v26  ;;  %v6036_v28 = vsel %vm4210_vm1, %v6033_v19, %v6035_v56  ;;  %v8199_v19 = vor.u32 %v8198_v6, %v8195_v53  ;;  %v8204_v26 = vrot.slane %v8202_v15, 1 }
 0x551   : > { %17780 = vmatmul.msk.bf16.gmra.mxu1 %vm688_vm0, %v2614_v48  ;;  %18516 = vmatmul.msk.bf16.gmra.mxu3 %vm688_vm0, %v6036_v28 }
 0x552   : > { %18147 = vmatmul.msk.bf16.gmra.mxu2 %vm688_vm0, %v4343_v17  ;;  %v8957_v43 = vadd.f32 %v8762_v21, %v6756_v30  ;;  %18881 = vmatmul.msk.bf16.gmra.mxu0 %vm688_vm0, %v8191_v39  ;;  %v8200_v12 = vsel %vm7589_vm3, %v8190_v44, %v8199_v19  ;;  %v2625_v30 = vor.u32 %v2623_v41, %v2621_v14  ;;  %v4346_v39 = vrot.slane %v23241_v23, 1  ;;  %v1546_v23 = vld [vmem:[%s21170_s4 + $0x3c0] sm:$0xff] }
 0x553   : > { %v2631_v14 = vshrl.u32 %v23232_v32, 16 }
 0x554   : > { %9102 = vst [vmem:[%s21170_s4 + $0x388] sm:$0xff] %v8957_v43  ;;  %v23215_v10 = vpop.f32.mrf.mxu3  ;;  %v4347_v28 = vsel %vm4210_vm1, %v4344_v1, %v4346_v39 }
 0x555   : > { %v4875_v50 = vpop.f32.mrf.mxu2 }
 0x556   : > { %v5068_v51 = vadd.f32 %v4875_v50, %v3378_v47  ;;  %v3187_v46 = vpop.f32.mrf.mxu1  ;;  %v20656_v47 = vld [vmem:[%s21099_s25 + $0x240] sm:$0xff] }
 0x557   : > { %v8767_v58 = vpop.f32.mrf.mxu0  ;;  %v3379_v60 = vadd.f32 %v3187_v46, %v1541_v61  ;;  %v20728_v46 = vld [vmem:[%s21099_s25 + $0x238] sm:$0xff]  ;;  %v6039_v3 = vrot.slane %v20656_v47, 1  ;;  %v1547_v47 = vld [vmem:[%s21170_s4 + $0x3c8] sm:$0xff] }
 0x558   : > { %v6757_v7 = vadd.f32 %v23157_v63, %v5068_v51  ;;  %v8211_v53 = vshrl.u32 %v20728_v46, 16  ;;  %v8214_v6 = vshll.u32 %v20728_v46, 16 }
 0x55a   : > { %v8958_v45 = vadd.f32 %v8765_v52, %v6757_v7  ;;  %v2629_v52 = vrot.slane %v2627_v27, 1  ;;  %v23261_v7 = vld [vmem:[%s21099_s25 + $0x228] sm:$0xff] }
 0x55b   : > { %v2635_v1 = vshll.u32 %v23261_v7, 16 }
 0x55c   : > { %9103 = vst [vmem:[%s21170_s4 + $0x390] sm:$0xff] %v8958_v45  ;;  %v23225_v13 = vpop.f32.mrf.mxu3  ;;  %v2630_v59 = vsel %vm2082_vm2, %v2625_v30, %v2629_v52 }
 0x55d   : > { %v4877_v5 = vpop.f32.mrf.mxu2 }
 0x55e   : > { %v5069_v63 = vadd.f32 %v4877_v5, %v3379_v60  ;;  %v3190_v0 = vpop.f32.mrf.mxu1  ;;  %v23270_v60 = vld [vmem:[%s21099_s25 + $0x228] sm:$0xff] }
 0x55f   : > { %v8770_v25 = vpop.f32.mrf.mxu0  ;;  %v3380_v21 = vadd.f32 %v3190_v0, %v1542_v11  ;;  %v8216_v0 = vrot.slane %v8214_v6, 2 }
 0x560   : > { %v6758_v4 = vadd.f32 %v23167_v2, %v5069_v63  ;;  %v6038_v2 = vsel %vm4210_vm1, %v6035_v56, %v6037_v29  ;;  %v8208_v56 = vor.u32 %v8207_v33, %v8204_v26  ;;  %v8213_v63 = vrot.slane %v8211_v53, 1 }
 0x561   : > { %17781 = vmatmul.msk.bf16.gmra.mxu1 %vm688_vm0, %v2622_v22  ;;  %18517 = vmatmul.msk.bf16.gmra.mxu3 %vm688_vm0, %v6038_v2 }
 0x562   : > { %18148 = vmatmul.msk.bf16.gmra.mxu2 %vm688_vm0, %v4345_v55  ;;  %v8959_v16 = vadd.f32 %v8767_v58, %v6758_v4  ;;  %18882 = vmatmul.msk.bf16.gmra.mxu0 %vm688_vm0, %v8200_v12  ;;  %v8209_v50 = vsel %vm7589_vm3, %v8199_v19, %v8208_v56  ;;  %v2633_v4 = vor.u32 %v2631_v14, %v2629_v52  ;;  %v4348_v12 = vrot.slane %v23270_v60, 1 }
 0x563   : > { %v2639_v52 = vshrl.u32 %v23261_v7, 16 }
 0x564   : > { %9104 = vst [vmem:[%s21170_s4 + $0x398] sm:$0xff] %v8959_v16  ;;  %v23244_v48 = vpop.f32.mrf.mxu3  ;;  %v4349_v2 = vsel %vm4210_vm1, %v4346_v39, %v4348_v12 }
 0x565   : > { %v4880_v18 = vpop.f32.mrf.mxu2 }
 0x566   : > { %v5070_v24 = vadd.f32 %v4880_v18, %v3380_v21  ;;  %v3192_v20 = vpop.f32.mrf.mxu1  ;;  %v20657_v21 = vld [vmem:[%s21099_s25 + $0x248] sm:$0xff] }
 0x567   : > { %v8772_v31 = vpop.f32.mrf.mxu0  ;;  %v3381_v34 = vadd.f32 %v3192_v20, %v1543_v35  ;;  %v20729_v20 = vld [vmem:[%s21099_s25 + $0x240] sm:$0xff]  ;;  %v6041_v41 = vrot.slane %v20657_v21, 1 }
 0x568   : > { %v6759_v44 = vadd.f32 %v23186_v37, %v5070_v24  ;;  %v8220_v26 = vshrl.u32 %v20729_v20, 16  ;;  %v8223_v33 = vshll.u32 %v20729_v20, 16 }
 0x56a   : > { %v8960_v17 = vadd.f32 %v8770_v25, %v6759_v44  ;;  %v2637_v25 = vrot.slane %v2635_v1, 1  ;;  %v23290_v44 = vld [vmem:[%s21099_s25 + $0x230] sm:$0xff]  ;;  %v20730_v1 = vld [vmem:[%s21099_s25 + $0x248] sm:$0xff] }
 0x56b   : > { %v2643_v39 = vshll.u32 %v23290_v44, 16 }
 0x56c   : > { %9105 = vst [vmem:[%s21170_s4 + $0x3a0] sm:$0xff] %v8960_v17  ;;  %v23254_v51 = vpop.f32.mrf.mxu3  ;;  %v2638_v32 = vsel %vm2082_vm2, %v2633_v4, %v2637_v25 }
 0x56d   : > { %v4882_v43 = vpop.f32.mrf.mxu2 }
 0x56e   : > { %v5071_v37 = vadd.f32 %v4882_v43, %v3381_v34  ;;  %v3195_v38 = vpop.f32.mrf.mxu1  ;;  %v23299_v34 = vld [vmem:[%s21099_s25 + $0x230] sm:$0xff] }
 0x56f   : > { %v8775_v62 = vpop.f32.mrf.mxu0  ;;  %v3382_v58 = vadd.f32 %v3195_v38, %v1544_v49  ;;  %v8225_v38 = vrot.slane %v8223_v33, 2 }
 0x570   : > { %v6760_v42 = vadd.f32 %v23196_v40, %v5071_v37  ;;  %v6040_v40 = vsel %vm4210_vm1, %v6037_v29, %v6039_v3  ;;  %v8217_v29 = vor.u32 %v8216_v0, %v8213_v63  ;;  %v8222_v37 = vrot.slane %v8220_v26, 1  ;;  %v23322_v63 = vld [vmem:[%s21099_s25 + $0x238] sm:$0xff] }
 0x571   : > { %17782 = vmatmul.msk.bf16.gmra.mxu1 %vm688_vm0, %v2630_v59  ;;  %18518 = vmatmul.msk.bf16.gmra.mxu3 %vm688_vm0, %v6040_v40 }
 0x572   : > { %18149 = vmatmul.msk.bf16.gmra.mxu2 %vm688_vm0, %v4347_v28  ;;  %v8961_v54 = vadd.f32 %v8772_v31, %v6760_v42  ;;  %18883 = vmatmul.msk.bf16.gmra.mxu0 %vm688_vm0, %v8209_v50  ;;  %v8218_v18 = vsel %vm7589_vm3, %v8208_v56, %v8217_v29  ;;  %v2641_v42 = vor.u32 %v2639_v52, %v2637_v25  ;;  %v4350_v50 = vrot.slane %v23299_v34, 1 }
 0x574   : > { %9106 = vst [vmem:[%s21170_s4 + $0x3a8] sm:$0xff] %v8961_v54  ;;  %v23273_v22 = vpop.f32.mrf.mxu3  ;;  %v5533_v54 = vld [vmem:[%s21099_s25 + $0x250] sm:$0x7]  ;;  %v4351_v53 = vsel %vm4210_vm1, %v4348_v12, %v4350_v50 }
 0x575   : > { %v4885_v45 = vpop.f32.mrf.mxu2  ;;  %v5826_v7 = vunpack.c.l.b16 %v5533_v54 }
 0x576   : > { %v5072_v61 = vadd.f32 %v4885_v45, %v3382_v58  ;;  %v3197_v57 = vpop.f32.mrf.mxu1 }
 0x577   : > { %v8777_v5 = vpop.f32.mrf.mxu0  ;;  %v3383_v8 = vadd.f32 %v3197_v57, %v1545_v9  ;;  %v23310_v6 = vpack.c.b16 %v5826_v7, %v5826_v7  ;;  %v8232_v9 = vshll.u32 %v20730_v1, 16 }
 0x578   : > { %v6761_v19 = vadd.f32 %v23215_v10, %v5072_v61 }
 0x579   : > { %v6043_v60 = vrot.slane %v23310_v6, 1 }
 0x57a   : > { %v8962_v55 = vadd.f32 %v8775_v62, %v6761_v19  ;;  %v2645_v62 = vrot.slane %v2643_v39, 1  ;;  %v3843_v39 = vld [vmem:[%s21099_s25 + $0x240] sm:$0x7] }
 0x57c   : > { %9107 = vst [vmem:[%s21170_s4 + $0x3b0] sm:$0xff] %v8962_v55  ;;  %v23283_v24 = vpop.f32.mrf.mxu3  ;;  %v2646_v58 = vsel %vm2082_vm2, %v2641_v42, %v2645_v62  ;;  %v8229_v55 = vshrl.u32 %v20730_v1, 16  ;;  %v4136_v42 = vunpack.c.l.b16 %v3843_v39  ;;  %v20878_v1 = vld [vmem:[%s21099_s25 + $0x20] sm:$0xf0] }
 0x57d   : > { %v4887_v16 = vpop.f32.mrf.mxu2 }
 0x57e   : > { %v5073_v10 = vadd.f32 %v4887_v16, %v3383_v8  ;;  %v3200_v11 = vpop.f32.mrf.mxu1  ;;  %v2647_v8 = vshrl.u32 %v23290_v44, 16  ;;  %v23331_v16 = vld [vmem:[%s21099_s25 + $0x238] sm:$0xff]  ;;  %v1715_v44 = vld [vmem:[%s21099_s25 + $0x240] sm:$0x7] }
 0x57f   : > { %v8780_v36 = vpop.f32.mrf.mxu0  ;;  %v3384_v31 = vadd.f32 %v3200_v11, %v1546_v23 }
 0x580   : > { %v6762_v15 = vadd.f32 %v23225_v13, %v5073_v10  ;;  %v6042_v13 = vsel %vm4210_vm1, %v6039_v3, %v6041_v41  ;;  %v8226_v3 = vor.u32 %v8225_v38, %v8222_v37  ;;  %v2649_v20 = vor.u32 %v2647_v8, %v2645_v62 }
 0x581   : > { %17783 = vmatmul.msk.bf16.gmra.mxu1 %vm688_vm0, %v2638_v32  ;;  %18519 = vmatmul.msk.bf16.gmra.mxu3 %vm688_vm0, %v6042_v13  ;;  %v8231_v32 = vrot.slane %v8229_v55, 1 }
 0x582   : > { %18150 = vmatmul.msk.bf16.gmra.mxu2 %vm688_vm0, %v4349_v2  ;;  %v8963_v27 = vadd.f32 %v8777_v5, %v6762_v15  ;;  %18884 = vmatmul.msk.bf16.gmra.mxu0 %vm688_vm0, %v8218_v18  ;;  %v8227_v57 = vsel %vm7589_vm3, %v8217_v29, %v8226_v3  ;;  %v1548_v5 = vld [vmem:[%s21170_s4 + $0x3d0] sm:$0xff]  ;;  %v2651_v29 = vshll.u32 %v23322_v63, 16  ;;  %v8234_v2 = vrot.slane %v8232_v9, 2  ;;  %v1549_v18 = vld [vmem:[%s21170_s4 + $0x3d8] sm:$0xff] }
 0x583   : > { %v7222_v15 = vld [vmem:[%s21099_s25 + $0x250] sm:$0xf] }
 0x584   : > { %9108 = vst [vmem:[%s21170_s4 + $0x3b8] sm:$0xff] %v8963_v27  ;;  %v23302_v59 = vpop.f32.mrf.mxu3  ;;  %v4352_v27 = vrot.slane %v23331_v16, 1  ;;  %v8235_v13 = vor.u32 %v8234_v2, %v8231_v32 }
 0x585   : > { %v4890_v17 = vpop.f32.mrf.mxu2 }
 0x586   : > { %v5074_v35 = vadd.f32 %v4890_v17, %v3384_v31  ;;  %v3202_v30 = vpop.f32.mrf.mxu1  ;;  %v7515_v31 = vunpack.c.l.b16 %v7222_v15 }
 0x587   : > { %v8782_v43 = vpop.f32.mrf.mxu0  ;;  %v3385_v46 = vadd.f32 %v3202_v30, %v1547_v47  ;;  %v2008_v30 = vunpack.c.l.b16 %v1715_v44 }
 0x588   : > { %v6763_v56 = vadd.f32 %v23244_v48, %v5074_v35  ;;  %v4353_v35 = vsel %vm4210_vm1, %v4350_v50, %v4352_v27  ;;  %v7588_v37 = vpack.c.b16 %v7515_v31, %v7515_v31  ;;  %v1552_v31 = vld [vmem:[%s21170_s4 + $0x3f0] sm:$0xff] }
 0x589   : > { %v23351_v47 = vpack.c.b16 %v2008_v30, %v2008_v30 }
 0x58a   : > { %v8964_v28 = vadd.f32 %v8780_v36, %v6763_v56  ;;  %v8236_v56 = vsel %vm7589_vm3, %v8226_v3, %v8235_v13  ;;  %v8241_v50 = vshll.u32 %v7588_v37, 16 }
 0x58b   : > { %v2659_v7 = vshll.u32 %v23351_v47, 16  ;;  %v2663_v39 = vshrl.u32 %v23351_v47, 16 }
 0x58c   : > { %9109 = vst [vmem:[%s21170_s4 + $0x3c0] sm:$0xff] %v8964_v28  ;;  %v23314_v14 = vpop.f32.mrf.mxu3  ;;  %v1550_v28 = vld [vmem:[%s21170_s4 + $0x3e0] sm:$0xff]  ;;  %v8243_v6 = vrot.slane %v8241_v50, 2 }
 0x58d   : > { %v4892_v49 = vpop.f32.mrf.mxu2 }
 0x58e   : > { %v5075_v48 = vadd.f32 %v4892_v49, %v3385_v46  ;;  %v3205_v40 = vpop.f32.mrf.mxu1  ;;  %v2655_v49 = vshrl.u32 %v23322_v63, 16 }
 0x58f   : > { %v8785_v61 = vpop.f32.mrf.mxu0  ;;  %v3386_v0 = vadd.f32 %v3205_v40, %v1548_v5  ;;  %v2661_v5 = vrot.slane %v2659_v7, 1 }
 0x590   : > { %v6764_v45 = vadd.f32 %v23254_v51, %v5075_v48  ;;  %v6044_v51 = vsel %vm4210_vm1, %v6041_v41, %v6043_v60  ;;  %v2653_v41 = vrot.slane %v2651_v29, 1  ;;  %v23358_v48 = vpack.c.b16 %v4136_v42, %v4136_v42 }
 0x591   : > { %17784 = vmatmul.msk.bf16.gmra.mxu1 %vm688_vm0, %v2646_v58  ;;  %18520 = vmatmul.msk.bf16.gmra.mxu3 %vm688_vm0, %v6044_v51  ;;  %v20879_v51 = vld [vmem:[%s21099_s25 + $0x28] sm:$0xff]  ;;  %v2665_v50 = vor.u32 %v2663_v39, %v2661_v5 }
 0x592   : > { %18151 = vmatmul.msk.bf16.gmra.mxu2 %vm688_vm0, %v4351_v53  ;;  %v8965_v19 = vadd.f32 %v8782_v43, %v6764_v45  ;;  %18885 = vmatmul.msk.bf16.gmra.mxu0 %vm688_vm0, %v8227_v57  ;;  %v2654_v17 = vsel %vm2082_vm2, %v2649_v20, %v2653_v41  ;;  %v19627_v57 = vld [vmem:[%s21099_s25 + $0x20] sm:$0xc]  ;;  %v4354_v63 = vrot.slane %v23358_v48, 1  ;;  %v13182_v8 = vshrl.u32 %v20879_v51, 16 }
 0x593   : > { %v13185_v32 = vshll.u32 %v20879_v51, 16  ;;  %v23408_v51 = vld [vmem:[%s21099_s25 + $0x18] sm:$0xff] }
 0x594   : > { %9110 = vst [vmem:[%s21170_s4 + $0x3c8] sm:$0xff] %v8965_v19  ;;  %v23334_v21 = vpop.f32.mrf.mxu3  ;;  %v2657_v19 = vor.u32 %v2655_v49, %v2653_v41  ;;  %v13184_v41 = vrot.slane %v13182_v8, 2 }
 0x595   : > { %v4895_v4 = vpop.f32.mrf.mxu2  ;;  %v13187_v44 = vrot.slane %v13185_v32, 3 }
 0x596   : > { %v5076_v25 = vadd.f32 %v4895_v4, %v3386_v0  ;;  %v3207_v12 = vpop.f32.mrf.mxu1  ;;  %v19628_v0 = vor.u32 %v20878_v1, %v19627_v57  ;;  %v2662_v16 = vsel %vm2082_vm2, %v2657_v19, %v2661_v5  ;;  %v20952_v19 = vld [vmem:[%s21099_s25 + $0x20] sm:$0xf0] }
 0x597   : > { %v8787_v11 = vpop.f32.mrf.mxu0  ;;  %v3387_v23 = vadd.f32 %v3207_v12, %v1549_v18 }
 0x598   : > { %v6765_v10 = vadd.f32 %v23273_v22, %v5076_v25  ;;  %v13177_v12 = vshll.u32 %v19628_v0, 16 }
 0x59a   : > { %v8966_v36 = vadd.f32 %v8785_v61, %v6765_v10  ;;  %v4355_v10 = vsel %vm4210_vm1, %v4352_v27, %v4354_v63  ;;  %v13179_v20 = vrot.slane %v13177_v12, 3 }
 0x59c   : > { %9111 = vst [vmem:[%s21170_s4 + $0x3d0] sm:$0xff] %v8966_v36  ;;  %v23346_v43 = vpop.f32.mrf.mxu3 }
 0x59d   : > { %v4897_v22 = vpop.f32.mrf.mxu2 }
 0x59e   : > { %v5077_v26 = vadd.f32 %v4897_v22, %v3387_v23  ;;  %v3210_v33 = vpop.f32.mrf.mxu1 }
 0x59f   : > { %v8790_v34 = vpop.f32.mrf.mxu0  ;;  %v3388_v62 = vadd.f32 %v3210_v33, %v1550_v28 }
 0x5a0   : > { %v6766_v52 = vadd.f32 %v23283_v24, %v5077_v26  ;;  %v8238_v24 = vshrl.u32 %v7588_v37, 16  ;;  %v20880_v37 = vld [vmem:[%s21099_s25 + $0x30] sm:$0xff] }
 0x5a1   : > { %17785 = vmatmul.msk.bf16.gmra.mxu1 %vm688_vm0, %v2654_v17  ;;  %18521 = vmatmul.msk.bf16.gmra.mxu3 %vm688_vm0, %v6043_v60  ;;  %v1551_v60 = vld [vmem:[%s21170_s4 + $0x3e8] sm:$0xff]  ;;  %v13191_v42 = vshrl.u32 %v20880_v37, 16 }
 0x5a2   : > { %18152 = vmatmul.msk.bf16.gmra.mxu2 %vm688_vm0, %v4353_v35  ;;  %v8967_v38 = vadd.f32 %v8787_v11, %v6766_v52  ;;  %18886 = vmatmul.msk.bf16.gmra.mxu0 %vm688_vm0, %v8236_v56  ;;  %v8240_v53 = vrot.slane %v8238_v24, 1  ;;  %v1553_v56 = vld [vmem:[%s21170_s4 + $0x3f8] sm:$0xff] }
 0x5a4   : > { %9112 = vst [vmem:[%s21170_s4 + $0x3d8] sm:$0xff] %v8967_v38  ;;  %v23361_v45 = vpop.f32.mrf.mxu3  ;;  %v8244_v9 = vor.u32 %v8243_v6, %v8240_v53  ;;  %v20732_v53 = vld [vmem:[%s21099_s25 + $0x10] sm:$0xf0]  ;;  %v19260_v6 = vld [vmem:[%s21099_s25 + $0x20] sm:$0xc] }
 0x5a5   : > { %v4900_v46 = vpop.f32.mrf.mxu2 }
 0x5a6   : > { %v5078_v3 = vadd.f32 %v4900_v46, %v3388_v62  ;;  %v3212_v54 = vpop.f32.mrf.mxu1  ;;  %v8245_v36 = vsel %vm7589_vm3, %v8235_v13, %v8244_v9  ;;  %v13188_v13 = vor.u32 %v13187_v44, %v13184_v41  ;;  %v13194_v62 = vshll.u32 %v20880_v37, 16 }
 0x5a7   : > { %v8792_v58 = vpop.f32.mrf.mxu0  ;;  %v3389_v55 = vadd.f32 %v3212_v54, %v1551_v60  ;;  %v13193_v46 = vrot.slane %v13191_v42, 2  ;;  %v19998_v60 = vld [vmem:[%s21099_s25 + $0x20] sm:$0x8] }
 0x5a8   : > { %v6767_v40 = vadd.f32 %v23302_v59, %v5078_v3  ;;  %v13174_v59 = vshrl.u32 %v19628_v0, 16  ;;  %v13196_v3 = vrot.slane %v13194_v62, 3  ;;  %v19999_v12 = vor.u32 %v20952_v19, %v19998_v60  ;;  %v20734_v62 = vld [vmem:[%s21099_s25 + $0x20] sm:$0xff] }
 0x5aa   : > { %v8968_v61 = vadd.f32 %v8790_v34, %v6767_v40  ;;  %v13176_v11 = vrot.slane %v13174_v59, 2  ;;  %v23392_v7 = vor.u32 %v13196_v3, %v13193_v46  ;;  %v1554_v40 = vld [vmem:[%s21170_s4 + $0x400] sm:$0xff]  ;;  %v23444_v46 = vld [vmem:[%s21099_s25 + $0x30] sm:$0xff] }
 0x5ac   : > { %9113 = vst [vmem:[%s21170_s4 + $0x3e0] sm:$0xff] %v8968_v61  ;;  %v23373_v18 = vpop.f32.mrf.mxu3  ;;  %v20805_v61 = vld [vmem:[%s21099_s25 + $0x20] sm:$0xf0]  ;;  %v13198_v57 = vsel %vm13172_vm4, %v13188_v13, %v23392_v7 }
 0x5ad   : > { %v4902_v4 = vpop.f32.mrf.mxu2 }
 0x5ae   : > { %v5079_v25 = vadd.f32 %v4902_v4, %v3389_v55  ;;  %v3215_v29 = vpop.f32.mrf.mxu1  ;;  %v23411_v55 = vld [vmem:[%s21099_s25 + $0x28] sm:$0xff] }
 0x5af   : > { %v8795_v15 = vpop.f32.mrf.mxu0  ;;  %v3390_v27 = vadd.f32 %v3215_v29, %v1552_v31 }
 0x5b0   : > { %v6768_v2 = vadd.f32 %v23314_v14, %v5079_v25  ;;  %v13180_v14 = vor.u32 %v13179_v20, %v13176_v11  ;;  %v23416_v25 = vld [vmem:[%s21099_s25 + $0x28] sm:$0xff]  ;;  %v9792_v11 = vrot.slane %v23408_v51, 2  ;;  %v15377_v20 = vrot.slane %v19999_v12, 3 }
 0x5b1   : > { %17786 = vmatmul.msk.bf16.gmra.mxu1 %vm688_vm0, %v2662_v16  ;;  %v1555_v16 = vld [vmem:[%s21170_s4 + $0x408] sm:$0xff] }
 0x5b2   : > { %18153 = vmatmul.msk.bf16.gmra.mxu2 %vm688_vm0, %v4355_v10  ;;  %v8969_v23 = vadd.f32 %v8792_v58, %v6768_v2  ;;  %18887 = vmatmul.msk.bf16.gmra.mxu0 %vm688_vm0, %v8245_v36  ;;  %v13189_v33 = vsel %vm13172_vm4, %v13180_v14, %v13188_v13  ;;  %v18893_v58 = vld [vmem:[%s21099_s25 + $0x10] sm:$0xc]  ;;  %v11481_v2 = vrot.slane %v23411_v55, 2 }
 0x5b3   : > { %19921 = vmatmul.msk.bf16.vlgmr.msra.gmra.mxu3 %vm688_vm0, %v13189_v33  ;;  %v18894_v0 = vor.u32 %v20732_v53, %v18893_v58  ;;  %v15380_v53 = vrot.slane %v23444_v46, 3  ;;  %v20736_v46 = vld [vmem:[%s21099_s25 + $0x30] sm:$0xff] }
 0x5b4   : > { %9114 = vst [vmem:[%s21170_s4 + $0x3e8] sm:$0xff] %v8969_v23  ;;  %v23383_v52 = vpop.f32.mrf.mxu3 }
 0x5b5   : > { %v4905_v22 = vpop.f32.mrf.mxu2  ;;  %v9791_v10 = vrot.slane %v18894_v0, 2 }
 0x5b6   : > { %v5080_v26 = vadd.f32 %v4905_v22, %v3390_v27  ;;  %v3217_v17 = vpop.f32.mrf.mxu1 }
 0x5b7   : > { %v8797_v30 = vpop.f32.mrf.mxu0  ;;  %v3391_v38 = vadd.f32 %v3217_v17, %v1553_v56  ;;  %v9793_v27 = vsel %vm9790_vm5, %v9791_v10, %v9792_v11  ;;  %v1556_v56 = vld [vmem:[%s21170_s4 + $0x410] sm:$0xff]  ;;  %v20735_v10 = vld [vmem:[%s21099_s25 + $0x28] sm:$0xff] }
 0x5b8   : > { %v6769_v35 = vadd.f32 %v23334_v21, %v5080_v26 }
 0x5ba   : > { %v8970_v34 = vadd.f32 %v8795_v15, %v6769_v35  ;;  %v20881_v15 = vld [vmem:[%s21099_s25 + $0x38] sm:$0xff] }
 0x5bb   : > { %v13200_v23 = vshrl.u32 %v20881_v15, 16  ;;  %v13203_v44 = vshll.u32 %v20881_v15, 16  ;;  %v23469_v15 = vld [vmem:[%s21099_s25 + $0x38] sm:$0xff] }
 0x5bc   : > { %9115 = vst [vmem:[%s21170_s4 + $0x3f0] sm:$0xff] %v8970_v34  ;;  %v23390_v49 = vpop.f32.mrf.mxu3 }
 0x5bd   : > { %v4907_v28 = vpop.f32.mrf.mxu2  ;;  %v13202_v22 = vrot.slane %v13200_v23, 2  ;;  %v13205_v26 = vrot.slane %v13203_v44, 3  ;;  %v20883_v44 = vld [vmem:[%s21099_s25 + $0x48] sm:$0xff] }
 0x5be   : > { %v5081_v24 = vadd.f32 %v4907_v28, %v3391_v38  ;;  %v3220_v21 = vpop.f32.mrf.mxu1 }
 0x5bf   : > { %v8800_v54 = vpop.f32.mrf.mxu0  ;;  %v13206_v39 = vor.u32 %v13205_v26, %v13202_v22  ;;  %v13221_v22 = vshll.u32 %v20883_v44, 16 }
 0x5c0   : > { %v6770_v47 = vadd.f32 %v23346_v43, %v5081_v24  ;;  %v3392_v43 = vadd.f32 %v3220_v21, %v1554_v40  ;;  %v20807_v24 = vld [vmem:[%s21099_s25 + $0x30] sm:$0xff] }
 0x5c1   : > { %17787 = vmatmul.msk.bf16.gmra.mxu1 %vm688_vm0, %v2665_v50  ;;  %v11483_v40 = vrot.slane %v20807_v24, 2 }
 0x5c2   : > { %18154 = vmatmul.msk.bf16.gmra.mxu2 %vm688_vm0, %v4354_v63  ;;  %v8971_v48 = vadd.f32 %v8797_v30, %v6770_v47  ;;  %18888 = vmatmul.msk.bf16.gmra.mxu0 %vm688_vm0, %v8244_v9  ;;  %v19261_v9 = vor.u32 %v20805_v61, %v19260_v6 }
 0x5c3   : > { %19922 = vmatmul.msk.bf16.gmra.mxu3 %vm688_vm0, %v13198_v57  ;;  %v11484_v60 = vsel %vm9790_vm5, %v11481_v2, %v11483_v40 }
 0x5c4   : > { %9116 = vst [vmem:[%s21170_s4 + $0x3f8] sm:$0xff] %v8971_v48  ;;  %v23418_v8 = vpop.f32.mrf.mxu3  ;;  %v11480_v32 = vrot.slane %v19261_v9, 2  ;;  %v9794_v48 = vrot.slane %v20734_v62, 2 }
 0x5c5   : > { %v4910_v1 = vpop.f32.mrf.mxu2 }
 0x5c6   : > { %v5082_v5 = vadd.f32 %v4910_v1, %v3392_v43  ;;  %v3222_v63 = vpop.f32.mrf.mxu1  ;;  %v11482_v13 = vsel %vm9790_vm5, %v11480_v32, %v11481_v2  ;;  %v9795_v1 = vsel %vm9790_vm5, %v9792_v11, %v9794_v48  ;;  %v20808_v11 = vld [vmem:[%s21099_s25 + $0x38] sm:$0xff] }
 0x5c7   : > { %v8802_v59 = vpop.f32.mrf.mxu0  ;;  %v3393_v36 = vadd.f32 %v3222_v63, %v1555_v16  ;;  %v11485_v23 = vrot.slane %v20808_v11, 2 }
 0x5c8   : > { %v6771_v4 = vadd.f32 %v23361_v45, %v5082_v5  ;;  %v15378_v45 = vrot.slane %v23416_v25, 3 }
 0x5ca   : > { %v8972_v29 = vadd.f32 %v8800_v54, %v6771_v4  ;;  %v15379_v35 = vsel %vm15376_vm6, %v15377_v20, %v15378_v45  ;;  %v1557_v54 = vld [vmem:[%s21170_s4 + $0x418] sm:$0xff]  ;;  %v15381_v0 = vsel %vm15376_vm6, %v15378_v45, %v15380_v53  ;;  %v1559_v45 = vld [vmem:[%s21170_s4 + $0x428] sm:$0xff] }
 0x5cc   : > { %9117 = vst [vmem:[%s21170_s4 + $0x400] sm:$0xff] %v8972_v29  ;;  %v23430_v30 = vpop.f32.mrf.mxu3 }
 0x5cd   : > { %v4912_v41 = vpop.f32.mrf.mxu2 }
 0x5ce   : > { %v5083_v31 = vadd.f32 %v4912_v41, %v3393_v36  ;;  %v3225_v14 = vpop.f32.mrf.mxu1  ;;  %v9796_v41 = vrot.slane %v20735_v10, 2 }
 0x5cf   : > { %v8805_v17 = vpop.f32.mrf.mxu0  ;;  %v3394_v37 = vadd.f32 %v3225_v14, %v1556_v56  ;;  %v15382_v14 = vrot.slane %v23469_v15, 3  ;;  %v20737_v15 = vld [vmem:[%s21099_s25 + $0x38] sm:$0xff] }
 0x5d0   : > { %v6772_v33 = vadd.f32 %v23373_v18, %v5083_v31  ;;  %v13207_v18 = vsel %vm13172_vm4, %v23392_v7, %v13206_v39  ;;  %v20882_v7 = vld [vmem:[%s21099_s25 + $0x40] sm:$0xff] }
 0x5d1   : > { %19183 = vmatmul.msk.bf16.vlgmr.msra.gmra.mxu1 %vm688_vm0, %v9793_v27  ;;  %v13209_v6 = vshrl.u32 %v20882_v7, 16  ;;  %v13212_v61 = vshll.u32 %v20882_v7, 16 }
 0x5d2   : > { %19550 = vmatmul.msk.bf16.vlgmr.msra.gmra.mxu2 %vm688_vm0, %v11482_v13  ;;  %v8973_v34 = vadd.f32 %v8802_v59, %v6772_v33  ;;  %20292 = vmatmul.msk.bf16.vlgmr.msra.gmra.mxu0 %vm688_vm0, %v15379_v35  ;;  %v1558_v59 = vld [vmem:[%s21170_s4 + $0x420] sm:$0xff]  ;;  %v13218_v13 = vshrl.u32 %v20883_v44, 16  ;;  %v9797_v33 = vsel %vm9790_vm5, %v9794_v48, %v9796_v41 }
 0x5d3   : > { %19923 = vmatmul.msk.bf16.gmra.mxu3 %vm688_vm0, %v13207_v18  ;;  %v13211_v19 = vrot.slane %v13209_v6, 2  ;;  %v13214_v5 = vrot.slane %v13212_v61, 3  ;;  %v20884_v61 = vld [vmem:[%s21099_s25 + $0x50] sm:$0xff] }
 0x5d4   : > { %9118 = vst [vmem:[%s21170_s4 + $0x408] sm:$0xff] %v8973_v34  ;;  %v23446_v3 = vpop.f32.mrf.mxu3  ;;  %v13220_v35 = vrot.slane %v13218_v13, 2 }
 0x5d5   : > { %v4915_v38 = vpop.f32.mrf.mxu2  ;;  %v13215_v9 = vor.u32 %v13214_v5, %v13211_v19  ;;  %v13230_v19 = vshll.u32 %v20884_v61, 16 }
 0x5d6   : > { %v5084_v28 = vadd.f32 %v4915_v38, %v3394_v37  ;;  %v3227_v42 = vpop.f32.mrf.mxu1  ;;  %v15383_v37 = vsel %vm15376_vm6, %v15380_v53, %v15382_v14  ;;  %v1561_v53 = vld [vmem:[%s21170_s4 + $0x438] sm:$0xff] }
 0x5d7   : > { %v8807_v21 = vpop.f32.mrf.mxu0  ;;  %v3395_v58 = vadd.f32 %v3227_v42, %v1557_v54  ;;  %v1560_v42 = vld [vmem:[%s21170_s4 + $0x430] sm:$0xff] }
 0x5d8   : > { %v6773_v50 = vadd.f32 %v23383_v52, %v5084_v28 }
 0x5da   : > { %v8974_v47 = vadd.f32 %v8805_v17, %v6773_v50  ;;  %v11486_v17 = vsel %vm9790_vm5, %v11483_v40, %v11485_v23  ;;  %v23494_v40 = vld [vmem:[%s21099_s25 + $0x40] sm:$0xff] }
 0x5dc   : > { %9119 = vst [vmem:[%s21170_s4 + $0x410] sm:$0xff] %v8974_v47  ;;  %v23456_v55 = vpop.f32.mrf.mxu3  ;;  %v20809_v47 = vld [vmem:[%s21099_s25 + $0x40] sm:$0xff] }
 0x5dd   : > { %v4917_v43 = vpop.f32.mrf.mxu2  ;;  %v11487_v6 = vrot.slane %v20809_v47, 2 }
 0x5de   : > { %v5085_v57 = vadd.f32 %v4917_v43, %v3395_v58  ;;  %v3230_v52 = vpop.f32.mrf.mxu1  ;;  %v9798_v43 = vrot.slane %v20736_v46, 2 }
 0x5df   : > { %v8810_v51 = vpop.f32.mrf.mxu0  ;;  %v3396_v25 = vadd.f32 %v3230_v52, %v1558_v59  ;;  %v15384_v52 = vrot.slane %v23494_v40, 3  ;;  %v20738_v40 = vld [vmem:[%s21099_s25 + $0x40] sm:$0xff] }
 0x5e0   : > { %v6774_v63 = vadd.f32 %v23390_v49, %v5085_v57  ;;  %v13216_v49 = vsel %vm13172_vm4, %v13206_v39, %v13215_v9  ;;  %v13223_v39 = vrot.slane %v13221_v22, 3  ;;  %v20885_v22 = vld [vmem:[%s21099_s25 + $0x58] sm:$0xff] }
 0x5e1   : > { %19184 = vmatmul.msk.bf16.gmra.mxu1 %vm688_vm0, %v9795_v1 }
 0x5e2   : > { %19551 = vmatmul.msk.bf16.gmra.mxu2 %vm688_vm0, %v11484_v60  ;;  %v8975_v4 = vadd.f32 %v8807_v21, %v6774_v63  ;;  %20293 = vmatmul.msk.bf16.gmra.mxu0 %vm688_vm0, %v15381_v0  ;;  %v13224_v38 = vor.u32 %v13223_v39, %v13220_v35  ;;  %v13227_v60 = vshrl.u32 %v20884_v61, 16  ;;  %v9799_v63 = vsel %vm9790_vm5, %v9796_v41, %v9798_v43 }
 0x5e3   : > { %19924 = vmatmul.msk.bf16.gmra.mxu3 %vm688_vm0, %v13216_v49  ;;  %v13239_v35 = vshll.u32 %v20885_v22, 16 }
 0x5e4   : > { %9120 = vst [vmem:[%s21170_s4 + $0x418] sm:$0xff] %v8975_v4  ;;  %v23471_v36 = vpop.f32.mrf.mxu3  ;;  %v13229_v0 = vrot.slane %v13227_v60, 2 }
 0x5e5   : > { %v4920_v12 = vpop.f32.mrf.mxu2 }
 0x5e6   : > { %v5086_v29 = vadd.f32 %v4920_v12, %v3396_v25  ;;  %v3232_v16 = vpop.f32.mrf.mxu1  ;;  %v15385_v25 = vsel %vm15376_vm6, %v15382_v14, %v15384_v52  ;;  %v1563_v14 = vld [vmem:[%s21170_s4 + $0x448] sm:$0xff] }
 0x5e7   : > { %v8812_v2 = vpop.f32.mrf.mxu0  ;;  %v3397_v31 = vadd.f32 %v3232_v16, %v1559_v45  ;;  %v1562_v16 = vld [vmem:[%s21170_s4 + $0x440] sm:$0xff] }
 0x5e8   : > { %v6775_v32 = vadd.f32 %v23418_v8, %v5086_v29 }
 0x5ea   : > { %v8976_v20 = vadd.f32 %v8810_v51, %v6775_v32  ;;  %v11488_v51 = vsel %vm9790_vm5, %v11485_v23, %v11487_v6  ;;  %v23519_v23 = vld [vmem:[%s21099_s25 + $0x48] sm:$0xff] }
 0x5ec   : > { %9121 = vst [vmem:[%s21170_s4 + $0x420] sm:$0xff] %v8976_v20  ;;  %v23481_v18 = vpop.f32.mrf.mxu3  ;;  %v20810_v20 = vld [vmem:[%s21099_s25 + $0x48] sm:$0xff] }
 0x5ed   : > { %v4922_v27 = vpop.f32.mrf.mxu2  ;;  %v11489_v13 = vrot.slane %v20810_v20, 2 }
 0x5ee   : > { %v5087_v26 = vadd.f32 %v4922_v27, %v3397_v31  ;;  %v3235_v8 = vpop.f32.mrf.mxu1  ;;  %v9800_v27 = vrot.slane %v20737_v15, 2 }
 0x5ef   : > { %v8815_v56 = vpop.f32.mrf.mxu0  ;;  %v3398_v62 = vadd.f32 %v3235_v8, %v1560_v42  ;;  %v15386_v8 = vrot.slane %v23519_v23, 3  ;;  %v23565_v23 = vld [vmem:[%s21099_s25 + $0x48] sm:$0xff] }
 0x5f0   : > { %v6776_v34 = vadd.f32 %v23430_v30, %v5087_v26  ;;  %v13225_v30 = vsel %vm13172_vm4, %v13215_v9, %v13224_v38  ;;  %v13232_v9 = vrot.slane %v13230_v19, 3  ;;  %v20886_v19 = vld [vmem:[%s21099_s25 + $0x60] sm:$0xff] }
 0x5f1   : > { %19185 = vmatmul.msk.bf16.gmra.mxu1 %vm688_vm0, %v9797_v33 }
 0x5f2   : > { %19552 = vmatmul.msk.bf16.gmra.mxu2 %vm688_vm0, %v11486_v17  ;;  %v8977_v28 = vadd.f32 %v8812_v2, %v6776_v34  ;;  %20294 = vmatmul.msk.bf16.gmra.mxu0 %vm688_vm0, %v15383_v37  ;;  %v13233_v12 = vor.u32 %v13232_v9, %v13229_v0  ;;  %v13236_v17 = vshrl.u32 %v20885_v22, 16  ;;  %v9801_v34 = vsel %vm9790_vm5, %v9798_v43, %v9800_v27 }
 0x5f3   : > { %19925 = vmatmul.msk.bf16.gmra.mxu3 %vm688_vm0, %v13225_v30  ;;  %v13248_v0 = vshll.u32 %v20886_v19, 16 }
 0x5f4   : > { %9122 = vst [vmem:[%s21170_s4 + $0x428] sm:$0xff] %v8977_v28  ;;  %v23496_v7 = vpop.f32.mrf.mxu3  ;;  %v13238_v37 = vrot.slane %v13236_v17, 2 }
 0x5f5   : > { %v4925_v24 = vpop.f32.mrf.mxu2 }
 0x5f6   : > { %v5088_v50 = vadd.f32 %v4925_v24, %v3398_v62  ;;  %v3237_v21 = vpop.f32.mrf.mxu1  ;;  %v15387_v62 = vsel %vm15376_vm6, %v15384_v52, %v15386_v8  ;;  %v1565_v52 = vld [vmem:[%s21170_s4 + $0x458] sm:$0xff] }
 0x5f7   : > { %v8817_v48 = vpop.f32.mrf.mxu0  ;;  %v3399_v57 = vadd.f32 %v3237_v21, %v1561_v53  ;;  %v1564_v21 = vld [vmem:[%s21170_s4 + $0x450] sm:$0xff] }
 0x5f8   : > { %v6777_v54 = vadd.f32 %v23446_v3, %v5088_v50 }
 0x5fa   : > { %v8978_v58 = vadd.f32 %v8815_v56, %v6777_v54  ;;  %v11490_v56 = vsel %vm9790_vm5, %v11487_v6, %v11489_v13  ;;  %v23544_v6 = vld [vmem:[%s21099_s25 + $0x50] sm:$0xff] }
 0x5fc   : > { %9123 = vst [vmem:[%s21170_s4 + $0x430] sm:$0xff] %v8978_v58  ;;  %v23506_v49 = vpop.f32.mrf.mxu3  ;;  %v20811_v58 = vld [vmem:[%s21099_s25 + $0x50] sm:$0xff] }
 0x5fd   : > { %v4927_v1 = vpop.f32.mrf.mxu2  ;;  %v11491_v60 = vrot.slane %v20811_v58, 2 }
 0x5fe   : > { %v5089_v5 = vadd.f32 %v4927_v1, %v3399_v57  ;;  %v3240_v3 = vpop.f32.mrf.mxu1  ;;  %v9802_v1 = vrot.slane %v20738_v40, 2 }
 0x5ff   : > { %v8820_v59 = vpop.f32.mrf.mxu0  ;;  %v3400_v10 = vadd.f32 %v3240_v3, %v1562_v16  ;;  %v15388_v3 = vrot.slane %v23544_v6, 3  ;;  %v20740_v6 = vld [vmem:[%s21099_s25 + $0x50] sm:$0xff] }
 0x600   : > { %v6778_v4 = vadd.f32 %v23456_v55, %v5089_v5  ;;  %v13234_v55 = vsel %vm13172_vm4, %v13224_v38, %v13233_v12  ;;  %v13241_v38 = vrot.slane %v13239_v35, 3  ;;  %v20887_v35 = vld [vmem:[%s21099_s25 + $0x68] sm:$0xff] }
 0x601   : > { %19186 = vmatmul.msk.bf16.gmra.mxu1 %vm688_vm0, %v9799_v63 }
 0x602   : > { %19553 = vmatmul.msk.bf16.gmra.mxu2 %vm688_vm0, %v11488_v51  ;;  %v8979_v29 = vadd.f32 %v8817_v48, %v6778_v4  ;;  %20295 = vmatmul.msk.bf16.gmra.mxu0 %vm688_vm0, %v15385_v25  ;;  %v13242_v24 = vor.u32 %v13241_v38, %v13238_v37  ;;  %v13245_v51 = vshrl.u32 %v20886_v19, 16  ;;  %v9803_v4 = vsel %vm9790_vm5, %v9800_v27, %v9802_v1 }
 0x603   : > { %19926 = vmatmul.msk.bf16.gmra.mxu3 %vm688_vm0, %v13234_v55  ;;  %v13257_v37 = vshll.u32 %v20887_v35, 16 }
 0x604   : > { %9124 = vst [vmem:[%s21170_s4 + $0x438] sm:$0xff] %v8979_v29  ;;  %v23521_v44 = vpop.f32.mrf.mxu3  ;;  %v13247_v25 = vrot.slane %v13245_v51, 2 }
 0x605   : > { %v4930_v11 = vpop.f32.mrf.mxu2 }
 0x606   : > { %v5090_v32 = vadd.f32 %v4930_v11, %v3400_v10  ;;  %v3242_v2 = vpop.f32.mrf.mxu1  ;;  %v15389_v10 = vsel %vm15376_vm6, %v15386_v8, %v15388_v3  ;;  %v1567_v8 = vld [vmem:[%s21170_s4 + $0x468] sm:$0xff] }
 0x607   : > { %v8822_v41 = vpop.f32.mrf.mxu0  ;;  %v3401_v26 = vadd.f32 %v3242_v2, %v1563_v14  ;;  %v1566_v2 = vld [vmem:[%s21170_s4 + $0x460] sm:$0xff] }
 0x608   : > { %v6779_v45 = vadd.f32 %v23471_v36, %v5090_v32 }
 0x60a   : > { %v8980_v31 = vadd.f32 %v8820_v59, %v6779_v45  ;;  %v11492_v59 = vsel %vm9790_vm5, %v11489_v13, %v11491_v60  ;;  %v20959_v13 = vld [vmem:[%s21099_s25 + $0x58] sm:$0xff] }
 0x60c   : > { %9125 = vst [vmem:[%s21170_s4 + $0x440] sm:$0xff] %v8980_v31  ;;  %v23531_v30 = vpop.f32.mrf.mxu3  ;;  %v23568_v31 = vld [vmem:[%s21099_s25 + $0x58] sm:$0xff] }
 0x60d   : > { %v4932_v33 = vpop.f32.mrf.mxu2  ;;  %v11493_v17 = vrot.slane %v23568_v31, 2 }
 0x60e   : > { %v5091_v39 = vadd.f32 %v4932_v33, %v3401_v26  ;;  %v3245_v36 = vpop.f32.mrf.mxu1  ;;  %v9804_v33 = vrot.slane %v23565_v23, 2 }
 0x60f   : > { %v8825_v42 = vpop.f32.mrf.mxu0  ;;  %v3402_v46 = vadd.f32 %v3245_v36, %v1564_v21  ;;  %v15390_v36 = vrot.slane %v20959_v13, 3  ;;  %v20814_v13 = vld [vmem:[%s21099_s25 + $0x68] sm:$0xff] }
 0x610   : > { %v6780_v28 = vadd.f32 %v23481_v18, %v5091_v39  ;;  %v13243_v18 = vsel %vm13172_vm4, %v13233_v12, %v13242_v24  ;;  %v13250_v12 = vrot.slane %v13248_v0, 3 }
 0x611   : > { %19187 = vmatmul.msk.bf16.gmra.mxu1 %vm688_vm0, %v9801_v34 }
 0x612   : > { %19554 = vmatmul.msk.bf16.gmra.mxu2 %vm688_vm0, %v11490_v56  ;;  %v8981_v50 = vadd.f32 %v8822_v41, %v6780_v28  ;;  %20296 = vmatmul.msk.bf16.gmra.mxu0 %vm688_vm0, %v15387_v62  ;;  %v13251_v11 = vor.u32 %v13250_v12, %v13247_v25  ;;  %v13254_v56 = vshrl.u32 %v20887_v35, 16  ;;  %v9805_v28 = vsel %vm9790_vm5, %v9802_v1, %v9804_v33 }
 0x613   : > { %19927 = vmatmul.msk.bf16.gmra.mxu3 %vm688_vm0, %v13243_v18 }
 0x614   : > { %9126 = vst [vmem:[%s21170_s4 + $0x448] sm:$0xff] %v8981_v50  ;;  %v23546_v61 = vpop.f32.mrf.mxu3  ;;  %v13256_v62 = vrot.slane %v13254_v56, 2  ;;  %v20889_v56 = vld [vmem:[%s21099_s25 + $0x78] sm:$0xff] }
 0x615   : > { %v4935_v47 = vpop.f32.mrf.mxu2 }
 0x616   : > { %v5092_v54 = vadd.f32 %v4935_v47, %v3402_v46  ;;  %v3247_v48 = vpop.f32.mrf.mxu1  ;;  %v15391_v46 = vsel %vm15376_vm6, %v15388_v3, %v15390_v36  ;;  %v1569_v3 = vld [vmem:[%s21170_s4 + $0x478] sm:$0xff] }
 0x617   : > { %v8827_v43 = vpop.f32.mrf.mxu0  ;;  %v3403_v5 = vadd.f32 %v3247_v48, %v1565_v52  ;;  %v1568_v48 = vld [vmem:[%s21170_s4 + $0x470] sm:$0xff]  ;;  %v20960_v52 = vld [vmem:[%s21099_s25 + $0x60] sm:$0xff] }
 0x618   : > { %v6781_v53 = vadd.f32 %v23496_v7, %v5092_v54  ;;  %v15392_v0 = vrot.slane %v20960_v52, 3  ;;  %v23644_v52 = vld [vmem:[%s21099_s25 + $0x70] sm:$0xff] }
 0x61a   : > { %v8982_v57 = vadd.f32 %v8825_v42, %v6781_v53  ;;  %v11494_v42 = vsel %vm9790_vm5, %v11491_v60, %v11493_v17 }
 0x61c   : > { %9127 = vst [vmem:[%s21170_s4 + $0x450] sm:$0xff] %v8982_v57  ;;  %v23556_v55 = vpop.f32.mrf.mxu3  ;;  %v20813_v57 = vld [vmem:[%s21099_s25 + $0x60] sm:$0xff] }
 0x61d   : > { %v4937_v63 = vpop.f32.mrf.mxu2  ;;  %v11495_v51 = vrot.slane %v20813_v57, 2  ;;  %v23641_v57 = vld [vmem:[%s21099_s25 + $0x60] sm:$0xff] }
 0x61e   : > { %v5093_v9 = vadd.f32 %v4937_v63, %v3403_v5  ;;  %v3250_v7 = vpop.f32.mrf.mxu1  ;;  %v9806_v63 = vrot.slane %v20740_v6, 2 }
 0x61f   : > { %v8830_v16 = vpop.f32.mrf.mxu0  ;;  %v3404_v15 = vadd.f32 %v3250_v7, %v1566_v2  ;;  %v20888_v7 = vld [vmem:[%s21099_s25 + $0x70] sm:$0xff] }
 0x620   : > { %v6782_v29 = vadd.f32 %v23506_v49, %v5093_v9  ;;  %v13252_v49 = vsel %vm13172_vm4, %v13242_v24, %v13251_v11  ;;  %v13259_v24 = vrot.slane %v13257_v37, 3  ;;  %v13263_v25 = vshrl.u32 %v20888_v7, 16 }
 0x621   : > { %19188 = vmatmul.msk.bf16.gmra.mxu1 %vm688_vm0, %v9803_v4  ;;  %v13266_v12 = vshll.u32 %v20888_v7, 16 }
 0x622   : > { %19555 = vmatmul.msk.bf16.gmra.mxu2 %vm688_vm0, %v11492_v59  ;;  %v8983_v32 = vadd.f32 %v8827_v43, %v6782_v29  ;;  %20297 = vmatmul.msk.bf16.gmra.mxu0 %vm688_vm0, %v15389_v10  ;;  %v13260_v47 = vor.u32 %v13259_v24, %v13256_v62  ;;  %v1570_v29 = vld [vmem:[%s21170_s4 + $0x480] sm:$0xf]  ;;  %v11496_v10 = vsel %vm9790_vm5, %v11493_v17, %v11495_v51 }
 0x623   : > { %19928 = vmatmul.msk.bf16.gmra.mxu3 %vm688_vm0, %v13252_v49  ;;  %v13265_v49 = vrot.slane %v13263_v25, 2 }
 0x624   : > { %9128 = vst [vmem:[%s21170_s4 + $0x458] sm:$0xff] %v8983_v32  ;;  %v23573_v22 = vpop.f32.mrf.mxu3 }
 0x625   : > { %v4940_v20 = vpop.f32.mrf.mxu2 }
 0x626   : > { %v5094_v45 = vadd.f32 %v4940_v20, %v3404_v15  ;;  %v3252_v41 = vpop.f32.mrf.mxu1  ;;  %v13268_v20 = vrot.slane %v13266_v12, 3 }
 0x627   : > { %v8832_v27 = vpop.f32.mrf.mxu0  ;;  %v3405_v39 = vadd.f32 %v3252_v41, %v1567_v8  ;;  %v23619_v8 = vld [vmem:[%s21099_s25 + $0x68] sm:$0xff] }
 0x628   : > { %v6783_v14 = vadd.f32 %v23521_v44, %v5094_v45  ;;  %v13269_v23 = vor.u32 %v13268_v20, %v13265_v49 }
 0x62a   : > { %v8984_v26 = vadd.f32 %v8830_v16, %v6783_v14 }
 0x62c   : > { %9129 = vst [vmem:[%s21170_s4 + $0x460] sm:$0xff] %v8984_v26  ;;  %v6641_v18 = vpop.f32.mrf.mxu3 }
 0x62d   : > { %v4942_v34 = vpop.f32.mrf.mxu2 }
 0x62e   : > { %v5095_v38 = vadd.f32 %v4942_v34, %v3405_v39  ;;  %v3255_v44 = vpop.f32.mrf.mxu1  ;;  %v15394_v34 = vrot.slane %v23619_v8, 3 }
 0x62f   : > { %v8835_v21 = vpop.f32.mrf.mxu0  ;;  %v3406_v40 = vadd.f32 %v3255_v44, %v1568_v48  ;;  %v13275_v44 = vshll.u32 %v20889_v56, 16 }
 0x630   : > { %v6784_v50 = vadd.f32 %v23531_v30, %v5095_v38  ;;  %v13261_v30 = vsel %vm13172_vm4, %v13251_v11, %v13260_v47  ;;  %v15393_v11 = vsel %vm15376_vm6, %v15390_v36, %v15392_v0  ;;  %v11497_v36 = vrot.slane %v20814_v13, 2 }
 0x631   : > { %19189 = vmatmul.msk.bf16.gmra.mxu1 %vm688_vm0, %v9805_v28  ;;  %v13272_v38 = vshrl.u32 %v20889_v56, 16  ;;  %v23684_v56 = vld [vmem:[%s21099_s25 + $0x78] sm:$0xff] }
 0x632   : > { %19556 = vmatmul.msk.bf16.gmra.mxu2 %vm688_vm0, %v11494_v42  ;;  %v8985_v54 = vadd.f32 %v8832_v27, %v6784_v50  ;;  %20298 = vmatmul.msk.bf16.gmra.mxu0 %vm688_vm0, %v15391_v46  ;;  %v20741_v27 = vld [vmem:[%s21099_s25 + $0x58] sm:$0xff]  ;;  %v11498_v62 = vsel %vm9790_vm5, %v11495_v51, %v11497_v36  ;;  %v15395_v50 = vsel %vm15376_vm6, %v15392_v0, %v15394_v34  ;;  %v13277_v46 = vrot.slane %v13275_v44, 3  ;;  %v9135_v51 = vld [vmem:[%s21170_s4 + $0x8] sm:$0xff] }
 0x633   : > { %19929 = vmatmul.msk.bf16.gmra.mxu3 %vm688_vm0, %v13261_v30  ;;  %v9808_v39 = vrot.slane %v20741_v27, 2  ;;  %v9810_v0 = vrot.slane %v23641_v57, 2  ;;  %v9136_v27 = vld [vmem:[%s21170_s4 + $0x10] sm:$0xff]  ;;  %v23690_v44 = vld [vmem:[%s21099_s25 + $0x78] sm:$0xff] }
 0x634   : > { %9130 = vst [vmem:[%s21170_s4 + $0x468] sm:$0xff] %v8985_v54  ;;  %v9134_v54 = vld [vmem:[%s21170_s4] sm:$0xff] }
 0x635   : > { %v4945_v58 = vpop.f32.mrf.mxu2  ;;  %v9809_v42 = vsel %vm9790_vm5, %v9806_v63, %v9808_v39 }
 0x636   : > { %v5096_v53 = vadd.f32 %v4945_v58, %v3406_v40  ;;  %v3257_v43 = vpop.f32.mrf.mxu1  ;;  %v23595_v5 = vpop.f32.mrf.mxu3 }
 0x637   : > { %v8837_v60 = vpop.f32.mrf.mxu0  ;;  %v3407_v9 = vadd.f32 %v3257_v43, %v1569_v3 }
 0x638   : > { %v6785_v1 = vadd.f32 %v23546_v61, %v5096_v53  ;;  %v9807_v61 = vsel %vm9790_vm5, %v9804_v33, %v9806_v63 }
 0x63a   : > { %v8986_v19 = vadd.f32 %v8835_v21, %v6785_v1  ;;  %v13274_v21 = vrot.slane %v13272_v38, 2 }
 0x63c   : > { %9131 = vst [vmem:[%s21170_s4 + $0x470] sm:$0xff] %v8986_v19  ;;  %v13278_v48 = vor.u32 %v13277_v46, %v13274_v21  ;;  %v23654_v19 = vld [vmem:[%s21099_s25 + $0x70] sm:$0xff] }
 0x63d   : > { %v4947_v4 = vpop.f32.mrf.mxu2 }
 0x63e   : > { %v5097_v59 = vadd.f32 %v4947_v4, %v3407_v9  ;;  %v3260_v16 = vpop.f32.mrf.mxu1  ;;  %v23610_v41 = vpop.f32.mrf.mxu3  ;;  %v13279_v53 = vsel %vm13172_vm4, %v13269_v23, %v13278_v48  ;;  %v11499_v9 = vrot.slane %v23644_v52, 2  ;;  %v15396_v4 = vrot.slane %v23654_v19, 3 }
 0x63f   : > { %v3408_v32 = vadd.f32 %v3260_v16, %v1570_v29  ;;  %v23605_v15 = vpop.f32.mrf.mxu0 }
 0x640   : > { %v6786_v2 = vadd.f32 %v23556_v55, %v5097_v59  ;;  %v13270_v55 = vsel %vm13172_vm4, %v13260_v47, %v13269_v23  ;;  %v20890_v59 = vld [vmem:[%s21099_s25 + $0x80] sm:$0xff]  ;;  %v15397_v23 = vsel %vm15376_vm6, %v15394_v34, %v15396_v4  ;;  %v23681_v34 = vld [vmem:[%s21099_s25 + $0x68] sm:$0xff] }
 0x641   : > { %3553 = vst [vmem:[%s21170_s4 + $0x480] sm:$0xf] %v3408_v32  ;;  %19190 = vmatmul.msk.bf16.gmra.mxu1 %vm688_vm0, %v9807_v61  ;;  %v9811_v32 = vsel %vm9790_vm5, %v9808_v39, %v9810_v0  ;;  %v13284_v49 = vshll.u32 %v20890_v59, 16 }
 0x642   : > { %19557 = vmatmul.msk.bf16.gmra.mxu2 %vm688_vm0, %v11496_v10  ;;  %v8987_v45 = vadd.f32 %v8837_v60, %v6786_v2  ;;  %20299 = vmatmul.msk.bf16.gmra.mxu0 %vm688_vm0, %v15393_v11  ;;  %v13281_v10 = vshrl.u32 %v20890_v59, 16  ;;  %v11500_v2 = vsel %vm9790_vm5, %v11497_v36, %v11499_v9 }
 0x643   : > { %19930 = vmatmul.msk.bf16.gmra.mxu3 %vm688_vm0, %v13270_v55 }
 0x644   : > { %9132 = vst [vmem:[%s21170_s4 + $0x478] sm:$0xff] %v8987_v45  ;;  %v13283_v55 = vrot.slane %v13281_v10, 2 }
 0x645   : > { %v4950_v31 = vpop.f32.mrf.mxu2 }
 0x646   : > { %v3262_v14 = vpop.f32.mrf.mxu1  ;;  %v23622_v35 = vpop.f32.mrf.mxu3 }
 0x647   : > { %v8842_v26 = vpop.f32.mrf.mxu0 }
 0x648   : > { %v3698_v33 = vld [vmem:[%s21170_s4 + $0x480] sm:$0xf] }
 0x649   : > { %v5098_v17 = vadd.f32 %v4950_v31, %v3698_v33 }
 0x64b   : > { %5243 = vst [vmem:[%s21170_s4 + $0x480] sm:$0xf] %v5098_v17 }
 0x64d   : > { %v4952_v37 = vpop.f32.mrf.mxu2 }
 0x64e   : > { %v10170_v28 = vpop.f32.mrf.mxu1  ;;  %v23632_v18 = vpop.f32.mrf.mxu3 }
 0x64f   : > { %v15756_v24 = vpop.f32.mrf.mxu0  ;;  %v10534_v30 = vadd.f32 %v10170_v28, %v9134_v54  ;;  %v20891_v54 = vld [vmem:[%s21099_s25 + $0x88] sm:$0xff] }
 0x651   : > { %19191 = vmatmul.msk.bf16.gmra.mxu1 %vm688_vm0, %v9809_v42 }
 0x652   : > { %19558 = vmatmul.msk.bf16.gmra.mxu2 %vm688_vm0, %v11498_v62  ;;  %v5388_v47 = vld [vmem:[%s21170_s4 + $0x480] sm:$0xf]  ;;  %20300 = vmatmul.msk.bf16.gmra.mxu0 %vm688_vm0, %v15395_v50  ;;  %v9137_v62 = vld [vmem:[%s21170_s4 + $0x18] sm:$0xff]  ;;  %v11501_v50 = vrot.slane %v23684_v56, 2 }
 0x653   : > { %v6787_v40 = vadd.f32 %v23573_v22, %v5388_v47  ;;  %19931 = vmatmul.msk.bf16.gmra.mxu3 %vm688_vm0, %v13279_v53  ;;  %v23651_v22 = vld [vmem:[%s25808_s2] ss:$0 sm:$0xff]  ;;  %v15398_v47 = vrot.slane %v23690_v44, 3 }
 0x655   : > { %v11859_v58 = vpop.f32.mrf.mxu2  ;;  %6932 = vst [vmem:[%s21170_s4 + $0x480] sm:$0xf] %v6787_v40 }
 0x656   : > { %v12223_v43 = vadd.f32 %v11859_v58, %v10534_v30  ;;  %v10172_v6 = vpop.f32.mrf.mxu1  ;;  %v23656_v63 = vpop.f32.mrf.mxu3  ;;  %v13290_v30 = vshrl.u32 %v20891_v54, 16  ;;  %v13293_v58 = vshll.u32 %v20891_v54, 16 }
 0x657   : > { %v15758_v60 = vpop.f32.mrf.mxu0  ;;  %v10535_v7 = vadd.f32 %v10172_v6, %v9135_v51  ;;  %v11502_v6 = vsel %vm9790_vm5, %v11499_v9, %v11501_v50 }
 0x658   : > { %v14427_v1 = vadd.f32 %v23595_v5, %v12223_v43  ;;  %v13295_v19 = vrot.slane %v13293_v58, 3  ;;  %v23756_v58 = vld [vmem:[%s21099_s25 + $0x88] sm:$0xff] }
 0x65a   : > { %v16120_v3 = vadd.f32 %v15756_v24, %v14427_v1  ;;  %v9812_v24 = vrot.slane %v23681_v34, 2  ;;  %v15399_v1 = vsel %vm15376_vm6, %v15396_v4, %v15398_v47 }
 0x65c   : > { %v16559_v5 = vadd.f32 %v23651_v22, %v16120_v3  ;;  %v7077_v25 = vld [vmem:[%s21170_s4 + $0x480] sm:$0xf]  ;;  %v9813_v43 = vsel %vm9790_vm5, %v9810_v0, %v9812_v24 }
 0x65d   : > { %v11861_v12 = vpop.f32.mrf.mxu2  ;;  %v8988_v29 = vadd.f32 %v23605_v15, %v7077_v25  ;;  %v13286_v15 = vrot.slane %v13284_v49, 3  ;;  %v9138_v0 = vld [vmem:[%s21170_s4 + $0x20] sm:$0xff]  ;;  %v9139_v49 = vld [vmem:[%s21170_s4 + $0x28] sm:$0xff] }
 0x65e   : > { %v12224_v16 = vadd.f32 %v11861_v12, %v10535_v7  ;;  %v16704_v61 = vmax.f32 %v16559_v5, 0.0  ;;  %v10175_v11 = vpop.f32.mrf.mxu1  ;;  %v23674_v14 = vpop.f32.mrf.mxu3 }
 0x65f   : > { %9133 = vst [vmem:[%s21170_s4 + $0x480] sm:$0xf] %v8988_v29  ;;  %v15761_v45 = vpop.f32.mrf.mxu0  ;;  %v10536_v13 = vadd.f32 %v10175_v11, %v9136_v27  ;;  %v23714_v29 = vld [vmem:[%s21099_s25 + $0x70] sm:$0xff]  ;;  %v23723_v11 = vld [vmem:[%s21099_s25 + $0x80] sm:$0xff] }
 0x660   : > { %v14428_v20 = vadd.f32 %v23610_v41, %v12224_v16  ;;  %16849 = vst [vmem:[%s21170_s4] sm:$0xff] %v16704_v61  ;;  %v13287_v41 = vor.u32 %v13286_v15, %v13283_v55  ;;  %v23717_v16 = vld [vmem:[%s21099_s25 + $0x80] sm:$0xff]  ;;  %v15400_v15 = vrot.slane %v23723_v11, 3 }
 0x661   : > { %19192 = vmatmul.msk.bf16.gmra.mxu1 %vm688_vm0, %v9811_v32 }
 0x662   : > { %19559 = vmatmul.msk.bf16.gmra.mxu2 %vm688_vm0, %v11500_v2  ;;  %v16121_v31 = vadd.f32 %v15758_v60, %v14428_v20  ;;  %20301 = vmatmul.msk.bf16.gmra.mxu0 %vm688_vm0, %v15397_v23  ;;  %v13288_v33 = vsel %vm13172_vm4, %v13278_v48, %v13287_v41  ;;  %v13292_v60 = vrot.slane %v13290_v30, 2  ;;  %v9814_v20 = vrot.slane %v23714_v29, 2 }
 0x663   : > { %19932 = vmatmul.msk.bf16.gmra.mxu3 %vm688_vm0, %v13288_v33  ;;  %v15401_v34 = vsel %vm15376_vm6, %v15398_v47, %v15400_v15 }
 0x664   : > { %v16560_v26 = vadd.f32 %v23651_v22, %v16121_v31  ;;  %v20892_v31 = vld [vmem:[%s21099_s25 + $0x90] sm:$0xff]  ;;  %v9815_v33 = vsel %vm9790_vm5, %v9812_v24, %v9814_v20 }
 0x665   : > { %v11864_v8 = vpop.f32.mrf.mxu2 }
 0x666   : > { %v12225_v17 = vadd.f32 %v11864_v8, %v10536_v13  ;;  %v16705_v39 = vmax.f32 %v16560_v26, 0.0  ;;  %v10177_v36 = vpop.f32.mrf.mxu1  ;;  %v23692_v42 = vpop.f32.mrf.mxu3  ;;  %v13299_v13 = vshrl.u32 %v20892_v31, 16  ;;  %v13302_v26 = vshll.u32 %v20892_v31, 16 }
 0x667   : > { %v15763_v38 = vpop.f32.mrf.mxu0  ;;  %v10537_v21 = vadd.f32 %v10177_v36, %v9137_v62 }
 0x668   : > { %v14429_v37 = vadd.f32 %v23622_v35, %v12225_v17  ;;  %16850 = vst [vmem:[%s21170_s4 + $0x8] sm:$0xff] %v16705_v39  ;;  %v13301_v56 = vrot.slane %v13299_v13, 2 }
 0x66a   : > { %v16122_v28 = vadd.f32 %v15761_v45, %v14429_v37  ;;  %v11503_v45 = vrot.slane %v23717_v16, 2  ;;  %v13304_v37 = vrot.slane %v13302_v26, 3  ;;  %v23789_v26 = vld [vmem:[%s21099_s25 + $0x90] sm:$0xff] }
 0x66c   : > { %v16561_v46 = vadd.f32 %v23651_v22, %v16122_v28  ;;  %v11504_v17 = vsel %vm9790_vm5, %v11501_v50, %v11503_v45  ;;  %v9140_v28 = vld [vmem:[%s21170_s4 + $0x30] sm:$0xff] }
 0x66d   : > { %v11866_v35 = vpop.f32.mrf.mxu2 }
 0x66e   : > { %v12226_v48 = vadd.f32 %v11866_v35, %v10537_v21  ;;  %v16706_v40 = vmax.f32 %v16561_v46, 0.0  ;;  %v10180_v53 = vpop.f32.mrf.mxu1  ;;  %v23707_v51 = vpop.f32.mrf.mxu3  ;;  %v23747_v35 = vld [vmem:[%s21099_s25 + $0x78] sm:$0xff] }
 0x66f   : > { %v15766_v52 = vpop.f32.mrf.mxu0  ;;  %v10538_v9 = vadd.f32 %v10180_v53, %v9138_v0 }
 0x670   : > { %v14430_v57 = vadd.f32 %v23632_v18, %v12226_v48  ;;  %16851 = vst [vmem:[%s21170_s4 + $0x10] sm:$0xff] %v16706_v40  ;;  %v13296_v18 = vor.u32 %v13295_v19, %v13292_v60  ;;  %v23750_v48 = vld [vmem:[%s21099_s25 + $0x88] sm:$0xff]  ;;  %v15402_v19 = vrot.slane %v23756_v58, 3 }
 0x671   : > { %19193 = vmatmul.msk.bf16.gmra.mxu1 %vm688_vm0, %v9813_v43 }
 0x672   : > { %19560 = vmatmul.msk.bf16.gmra.mxu2 %vm688_vm0, %v11502_v6  ;;  %v16123_v3 = vadd.f32 %v15763_v38, %v14430_v57  ;;  %20302 = vmatmul.msk.bf16.gmra.mxu0 %vm688_vm0, %v15399_v1  ;;  %v13297_v4 = vsel %vm13172_vm4, %v13287_v41, %v13296_v18  ;;  %v9141_v6 = vld [vmem:[%s21170_s4 + $0x38] sm:$0xff]  ;;  %v9816_v57 = vrot.slane %v23747_v35, 2  ;;  %v15403_v29 = vsel %vm15376_vm6, %v15400_v15, %v15402_v19 }
 0x673   : > { %19933 = vmatmul.msk.bf16.gmra.mxu3 %vm688_vm0, %v13297_v4 }
 0x674   : > { %v16562_v7 = vadd.f32 %v23651_v22, %v16123_v3  ;;  %v20893_v3 = vld [vmem:[%s21099_s25 + $0x98] sm:$0xff]  ;;  %v9817_v4 = vsel %vm9790_vm5, %v9814_v20, %v9816_v57 }
 0x675   : > { %v11869_v5 = vpop.f32.mrf.mxu2 }
 0x676   : > { %v12227_v59 = vadd.f32 %v11869_v5, %v10538_v9  ;;  %v16707_v25 = vmax.f32 %v16562_v7, 0.0  ;;  %v10182_v12 = vpop.f32.mrf.mxu1  ;;  %v23725_v2 = vpop.f32.mrf.mxu3  ;;  %v13308_v9 = vshrl.u32 %v20893_v3, 16  ;;  %v13311_v7 = vshll.u32 %v20893_v3, 16 }
 0x677   : > { %v15768_v10 = vpop.f32.mrf.mxu0  ;;  %v10539_v23 = vadd.f32 %v10182_v12, %v9139_v49 }
 0x678   : > { %v14431_v61 = vadd.f32 %v23656_v63, %v12227_v59  ;;  %16852 = vst [vmem:[%s21170_s4 + $0x18] sm:$0xff] %v16707_v25  ;;  %v13310_v16 = vrot.slane %v13308_v9, 2 }
 0x67a   : > { %v16124_v32 = vadd.f32 %v15766_v52, %v14431_v61  ;;  %v11505_v52 = vrot.slane %v23750_v48, 2  ;;  %v13313_v61 = vrot.slane %v13311_v7, 3  ;;  %v23822_v7 = vld [vmem:[%s21099_s25 + $0x98] sm:$0xff] }
 0x67c   : > { %v16563_v55 = vadd.f32 %v23651_v22, %v16124_v32  ;;  %v11506_v59 = vsel %vm9790_vm5, %v11503_v45, %v11505_v52  ;;  %v9142_v32 = vld [vmem:[%s21170_s4 + $0x40] sm:$0xff] }
 0x67d   : > { %v11871_v63 = vpop.f32.mrf.mxu2 }
 0x67e   : > { %v12228_v27 = vadd.f32 %v11871_v63, %v10539_v23  ;;  %v16708_v41 = vmax.f32 %v16563_v55, 0.0  ;;  %v10185_v8 = vpop.f32.mrf.mxu1  ;;  %v23740_v44 = vpop.f32.mrf.mxu3  ;;  %v23780_v63 = vld [vmem:[%s21099_s25 + $0x80] sm:$0xff] }
 0x67f   : > { %v15771_v36 = vpop.f32.mrf.mxu0  ;;  %v10540_v62 = vadd.f32 %v10185_v8, %v9140_v28 }
 0x680   : > { %v14432_v39 = vadd.f32 %v23674_v14, %v12228_v27  ;;  %16853 = vst [vmem:[%s21170_s4 + $0x20] sm:$0xff] %v16708_v41  ;;  %v13305_v14 = vor.u32 %v13304_v37, %v13301_v56  ;;  %v23783_v27 = vld [vmem:[%s21099_s25 + $0x90] sm:$0xff]  ;;  %v15404_v37 = vrot.slane %v23789_v26, 3 }
 0x681   : > { %19194 = vmatmul.msk.bf16.gmra.mxu1 %vm688_vm0, %v9815_v33 }
 0x682   : > { %19561 = vmatmul.msk.bf16.gmra.mxu2 %vm688_vm0, %v11504_v17  ;;  %v16125_v38 = vadd.f32 %v15768_v10, %v14432_v39  ;;  %20303 = vmatmul.msk.bf16.gmra.mxu0 %vm688_vm0, %v15401_v34  ;;  %v13306_v21 = vsel %vm13172_vm4, %v13296_v18, %v13305_v14  ;;  %v9143_v17 = vld [vmem:[%s21170_s4 + $0x48] sm:$0xff]  ;;  %v9818_v39 = vrot.slane %v23780_v63, 2  ;;  %v15405_v35 = vsel %vm15376_vm6, %v15402_v19, %v15404_v37 }
 0x683   : > { %19934 = vmatmul.msk.bf16.gmra.mxu3 %vm688_vm0, %v13306_v21 }
 0x684   : > { %v16564_v24 = vadd.f32 %v23651_v22, %v16125_v38  ;;  %v20894_v38 = vld [vmem:[%s21099_s25 + $0xa0] sm:$0xff]  ;;  %v9819_v21 = vsel %vm9790_vm5, %v9816_v57, %v9818_v39 }
 0x685   : > { %v11874_v50 = vpop.f32.mrf.mxu2 }
 0x686   : > { %v12229_v46 = vadd.f32 %v11874_v50, %v10540_v62  ;;  %v16709_v47 = vmax.f32 %v16564_v24, 0.0  ;;  %v10187_v54 = vpop.f32.mrf.mxu1  ;;  %v23758_v43 = vpop.f32.mrf.mxu3  ;;  %v13317_v62 = vshrl.u32 %v20894_v38, 16  ;;  %v13320_v24 = vshll.u32 %v20894_v38, 16 }
 0x687   : > { %v15773_v30 = vpop.f32.mrf.mxu0  ;;  %v10541_v1 = vadd.f32 %v10187_v54, %v9141_v6 }
 0x688   : > { %v14433_v40 = vadd.f32 %v23692_v42, %v12229_v46  ;;  %16854 = vst [vmem:[%s21170_s4 + $0x28] sm:$0xff] %v16709_v47  ;;  %v13319_v48 = vrot.slane %v13317_v62, 2 }
 0x68a   : > { %v16126_v53 = vadd.f32 %v15771_v36, %v14433_v40  ;;  %v11507_v36 = vrot.slane %v23783_v27, 2  ;;  %v13322_v40 = vrot.slane %v13320_v24, 3  ;;  %v23855_v24 = vld [vmem:[%s21099_s25 + $0xa0] sm:$0xff] }
 0x68c   : > { %v16565_v60 = vadd.f32 %v23651_v22, %v16126_v53  ;;  %v11508_v46 = vsel %vm9790_vm5, %v11505_v52, %v11507_v36  ;;  %v9144_v53 = vld [vmem:[%s21170_s4 + $0x50] sm:$0xff] }
 0x68d   : > { %v11876_v42 = vpop.f32.mrf.mxu2 }
 0x68e   : > { %v12230_v0 = vadd.f32 %v11876_v42, %v10541_v1  ;;  %v16710_v18 = vmax.f32 %v16565_v60, 0.0  ;;  %v10190_v5 = vpop.f32.mrf.mxu1  ;;  %v23773_v11 = vpop.f32.mrf.mxu3  ;;  %v23813_v42 = vld [vmem:[%s21099_s25 + $0x88] sm:$0xff] }
 0x68f   : > { %v15776_v12 = vpop.f32.mrf.mxu0  ;;  %v10542_v49 = vadd.f32 %v10190_v5, %v9142_v32 }
 0x690   : > { %v14434_v25 = vadd.f32 %v23707_v51, %v12230_v0  ;;  %16855 = vst [vmem:[%s21170_s4 + $0x30] sm:$0xff] %v16710_v18  ;;  %v13314_v51 = vor.u32 %v13313_v61, %v13310_v16  ;;  %v23816_v0 = vld [vmem:[%s21099_s25 + $0x98] sm:$0xff]  ;;  %v15406_v61 = vrot.slane %v23822_v7, 3 }
 0x691   : > { %19195 = vmatmul.msk.bf16.gmra.mxu1 %vm688_vm0, %v9817_v4 }
 0x692   : > { %19562 = vmatmul.msk.bf16.gmra.mxu2 %vm688_vm0, %v11506_v59  ;;  %v16127_v10 = vadd.f32 %v15773_v30, %v14434_v25  ;;  %20304 = vmatmul.msk.bf16.gmra.mxu0 %vm688_vm0, %v15403_v29  ;;  %v13315_v23 = vsel %vm13172_vm4, %v13305_v14, %v13314_v51  ;;  %v9145_v59 = vld [vmem:[%s21170_s4 + $0x58] sm:$0xff]  ;;  %v9820_v25 = vrot.slane %v23813_v42, 2  ;;  %v15407_v63 = vsel %vm15376_vm6, %v15404_v37, %v15406_v61 }
 0x693   : > { %19935 = vmatmul.msk.bf16.gmra.mxu3 %vm688_vm0, %v13315_v23 }
 0x694   : > { %v16566_v20 = vadd.f32 %v23651_v22, %v16127_v10  ;;  %v20895_v10 = vld [vmem:[%s21099_s25 + $0xa8] sm:$0xff]  ;;  %v9821_v23 = vsel %vm9790_vm5, %v9818_v39, %v9820_v25 }
 0x695   : > { %v11879_v45 = vpop.f32.mrf.mxu2 }
 0x696   : > { %v12231_v55 = vadd.f32 %v11879_v45, %v10542_v49  ;;  %v16711_v15 = vmax.f32 %v16566_v20, 0.0  ;;  %v10192_v31 = vpop.f32.mrf.mxu1  ;;  %v23791_v33 = vpop.f32.mrf.mxu3  ;;  %v13326_v49 = vshrl.u32 %v20895_v10, 16  ;;  %v13329_v20 = vshll.u32 %v20895_v10, 16 }
 0x697   : > { %v15778_v13 = vpop.f32.mrf.mxu0  ;;  %v10543_v34 = vadd.f32 %v10192_v31, %v9143_v17 }
 0x698   : > { %v14435_v41 = vadd.f32 %v23725_v2, %v12231_v55  ;;  %16856 = vst [vmem:[%s21170_s4 + $0x38] sm:$0xff] %v16711_v15  ;;  %v13328_v27 = vrot.slane %v13326_v49, 2 }
 0x69a   : > { %v16128_v8 = vadd.f32 %v15776_v12, %v14435_v41  ;;  %v11509_v12 = vrot.slane %v23816_v0, 2  ;;  %v13331_v41 = vrot.slane %v13329_v20, 3  ;;  %v23888_v20 = vld [vmem:[%s21099_s25 + $0xa8] sm:$0xff] }
 0x69c   : > { %v16567_v56 = vadd.f32 %v23651_v22, %v16128_v8  ;;  %v11510_v55 = vsel %vm9790_vm5, %v11507_v36, %v11509_v12  ;;  %v9146_v8 = vld [vmem:[%s21170_s4 + $0x60] sm:$0xff] }
 0x69d   : > { %v11881_v2 = vpop.f32.mrf.mxu2 }
 0x69e   : > { %v12232_v28 = vadd.f32 %v11881_v2, %v10543_v34  ;;  %v16712_v14 = vmax.f32 %v16567_v56, 0.0  ;;  %v10195_v50 = vpop.f32.mrf.mxu1  ;;  %v23806_v58 = vpop.f32.mrf.mxu3  ;;  %v23846_v2 = vld [vmem:[%s21099_s25 + $0x90] sm:$0xff] }
 0x69f   : > { %v15781_v54 = vpop.f32.mrf.mxu0  ;;  %v10544_v6 = vadd.f32 %v10195_v50, %v9144_v53 }
 0x6a0   : > { %v14436_v47 = vadd.f32 %v23740_v44, %v12232_v28  ;;  %16857 = vst [vmem:[%s21170_s4 + $0x40] sm:$0xff] %v16712_v14  ;;  %v13323_v44 = vor.u32 %v13322_v40, %v13319_v48  ;;  %v23849_v28 = vld [vmem:[%s21099_s25 + $0xa0] sm:$0xff]  ;;  %v15408_v40 = vrot.slane %v23855_v24, 3 }
 0x6a1   : > { %19196 = vmatmul.msk.bf16.gmra.mxu1 %vm688_vm0, %v9819_v21 }
 0x6a2   : > { %19563 = vmatmul.msk.bf16.gmra.mxu2 %vm688_vm0, %v11508_v46  ;;  %v16129_v30 = vadd.f32 %v15778_v13, %v14436_v47  ;;  %20305 = vmatmul.msk.bf16.gmra.mxu0 %vm688_vm0, %v15405_v35  ;;  %v13324_v1 = vsel %vm13172_vm4, %v13314_v51, %v13323_v44  ;;  %v9147_v46 = vld [vmem:[%s21170_s4 + $0x68] sm:$0xff]  ;;  %v9822_v47 = vrot.slane %v23846_v2, 2  ;;  %v15409_v42 = vsel %vm15376_vm6, %v15406_v61, %v15408_v40 }
 0x6a3   : > { %19936 = vmatmul.msk.bf16.gmra.mxu3 %vm688_vm0, %v13324_v1 }
 0x6a4   : > { %v16568_v57 = vadd.f32 %v23651_v22, %v16129_v30  ;;  %v20896_v30 = vld [vmem:[%s21099_s25 + $0xb0] sm:$0xff]  ;;  %v9823_v1 = vsel %vm9790_vm5, %v9820_v25, %v9822_v47 }
 0x6a5   : > { %v11884_v52 = vpop.f32.mrf.mxu2 }
 0x6a6   : > { %v12233_v60 = vadd.f32 %v11884_v52, %v10544_v6  ;;  %v16713_v19 = vmax.f32 %v16568_v57, 0.0  ;;  %v10197_v3 = vpop.f32.mrf.mxu1  ;;  %v23824_v4 = vpop.f32.mrf.mxu3  ;;  %v13335_v6 = vshrl.u32 %v20896_v30, 16  ;;  %v13338_v57 = vshll.u32 %v20896_v30, 16 }
 0x6a7   : > { %v15783_v9 = vpop.f32.mrf.mxu0  ;;  %v10545_v29 = vadd.f32 %v10197_v3, %v9145_v59 }
 0x6a8   : > { %v14437_v18 = vadd.f32 %v23758_v43, %v12233_v60  ;;  %16858 = vst [vmem:[%s21170_s4 + $0x48] sm:$0xff] %v16713_v19  ;;  %v13337_v0 = vrot.slane %v13335_v6, 2 }
 0x6aa   : > { %v16130_v5 = vadd.f32 %v15781_v54, %v14437_v18  ;;  %v11511_v54 = vrot.slane %v23849_v28, 2  ;;  %v13340_v18 = vrot.slane %v13338_v57, 3  ;;  %v23921_v57 = vld [vmem:[%s21099_s25 + $0xb0] sm:$0xff] }
 0x6ac   : > { %v16569_v16 = vadd.f32 %v23651_v22, %v16130_v5  ;;  %v11512_v60 = vsel %vm9790_vm5, %v11509_v12, %v11511_v54  ;;  %v9148_v5 = vld [vmem:[%s21170_s4 + $0x70] sm:$0xff] }
 0x6ad   : > { %v11886_v43 = vpop.f32.mrf.mxu2 }
 0x6ae   : > { %v12234_v32 = vadd.f32 %v11886_v43, %v10545_v29  ;;  %v16714_v51 = vmax.f32 %v16569_v16, 0.0  ;;  %v10200_v45 = vpop.f32.mrf.mxu1  ;;  %v23839_v26 = vpop.f32.mrf.mxu3  ;;  %v23879_v43 = vld [vmem:[%s21099_s25 + $0x98] sm:$0xff] }
 0x6af   : > { %v15786_v31 = vpop.f32.mrf.mxu0  ;;  %v10546_v17 = vadd.f32 %v10200_v45, %v9146_v8 }
 0x6b0   : > { %v14438_v15 = vadd.f32 %v23773_v11, %v12234_v32  ;;  %16859 = vst [vmem:[%s21170_s4 + $0x50] sm:$0xff] %v16714_v51  ;;  %v13332_v11 = vor.u32 %v13331_v41, %v13328_v27  ;;  %v23882_v32 = vld [vmem:[%s21099_s25 + $0xa8] sm:$0xff]  ;;  %v15410_v41 = vrot.slane %v23888_v20, 3 }
 0x6b1   : > { %19197 = vmatmul.msk.bf16.gmra.mxu1 %vm688_vm0, %v9821_v23 }
 0x6b2   : > { %19564 = vmatmul.msk.bf16.gmra.mxu2 %vm688_vm0, %v11510_v55  ;;  %v16131_v13 = vadd.f32 %v15783_v9, %v14438_v15  ;;  %20306 = vmatmul.msk.bf16.gmra.mxu0 %vm688_vm0, %v15407_v63  ;;  %v13333_v34 = vsel %vm13172_vm4, %v13323_v44, %v13332_v11  ;;  %v9149_v55 = vld [vmem:[%s21170_s4 + $0x78] sm:$0xff]  ;;  %v9824_v15 = vrot.slane %v23879_v43, 2  ;;  %v15411_v2 = vsel %vm15376_vm6, %v15408_v40, %v15410_v41 }
 0x6b3   : > { %19937 = vmatmul.msk.bf16.gmra.mxu3 %vm688_vm0, %v13333_v34 }
 0x6b4   : > { %v16570_v39 = vadd.f32 %v23651_v22, %v16131_v13  ;;  %v20897_v13 = vld [vmem:[%s21099_s25 + $0xb8] sm:$0xff]  ;;  %v9825_v34 = vsel %vm9790_vm5, %v9822_v47, %v9824_v15 }
 0x6b5   : > { %v11889_v36 = vpop.f32.mrf.mxu2 }
 0x6b6   : > { %v12235_v56 = vadd.f32 %v11889_v36, %v10546_v17  ;;  %v16715_v37 = vmax.f32 %v16570_v39, 0.0  ;;  %v10202_v38 = vpop.f32.mrf.mxu1  ;;  %v23857_v21 = vpop.f32.mrf.mxu3  ;;  %v13344_v17 = vshrl.u32 %v20897_v13, 16  ;;  %v13347_v39 = vshll.u32 %v20897_v13, 16 }
 0x6b7   : > { %v15788_v62 = vpop.f32.mrf.mxu0  ;;  %v10547_v35 = vadd.f32 %v10202_v38, %v9147_v46 }
 0x6b8   : > { %v14439_v14 = vadd.f32 %v23791_v33, %v12235_v56  ;;  %16860 = vst [vmem:[%s21170_s4 + $0x58] sm:$0xff] %v16715_v37  ;;  %v13346_v28 = vrot.slane %v13344_v17, 2 }
 0x6ba   : > { %v16132_v50 = vadd.f32 %v15786_v31, %v14439_v14  ;;  %v11513_v31 = vrot.slane %v23882_v32, 2  ;;  %v13349_v14 = vrot.slane %v13347_v39, 3  ;;  %v23954_v39 = vld [vmem:[%s21099_s25 + $0xb8] sm:$0xff] }
 0x6bc   : > { %v16571_v48 = vadd.f32 %v23651_v22, %v16132_v50  ;;  %v11514_v56 = vsel %vm9790_vm5, %v11511_v54, %v11513_v31  ;;  %v9150_v50 = vld [vmem:[%s21170_s4 + $0x80] sm:$0xff] }
 0x6bd   : > { %v11891_v33 = vpop.f32.mrf.mxu2 }
 0x6be   : > { %v12236_v53 = vadd.f32 %v11891_v33, %v10547_v35  ;;  %v16716_v44 = vmax.f32 %v16571_v48, 0.0  ;;  %v10205_v52 = vpop.f32.mrf.mxu1  ;;  %v23872_v7 = vpop.f32.mrf.mxu3  ;;  %v23912_v33 = vld [vmem:[%s21099_s25 + $0xa0] sm:$0xff] }
 0x6bf   : > { %v15791_v3 = vpop.f32.mrf.mxu0  ;;  %v10548_v59 = vadd.f32 %v10205_v52, %v9148_v5 }
 0x6c0   : > { %v14440_v19 = vadd.f32 %v23806_v58, %v12236_v53  ;;  %16861 = vst [vmem:[%s21170_s4 + $0x60] sm:$0xff] %v16716_v44  ;;  %v13341_v58 = vor.u32 %v13340_v18, %v13337_v0  ;;  %v23915_v53 = vld [vmem:[%s21099_s25 + $0xb0] sm:$0xff]  ;;  %v15412_v18 = vrot.slane %v23921_v57, 3 }
 0x6c1   : > { %19198 = vmatmul.msk.bf16.gmra.mxu1 %vm688_vm0, %v9823_v1 }
 0x6c2   : > { %19565 = vmatmul.msk.bf16.gmra.mxu2 %vm688_vm0, %v11512_v60  ;;  %v16133_v9 = vadd.f32 %v15788_v62, %v14440_v19  ;;  %20307 = vmatmul.msk.bf16.gmra.mxu0 %vm688_vm0, %v15409_v42  ;;  %v13342_v29 = vsel %vm13172_vm4, %v13332_v11, %v13341_v58  ;;  %v9151_v60 = vld [vmem:[%s21170_s4 + $0x88] sm:$0xff]  ;;  %v9826_v19 = vrot.slane %v23912_v33, 2  ;;  %v15413_v43 = vsel %vm15376_vm6, %v15410_v41, %v15412_v18 }
 0x6c3   : > { %19938 = vmatmul.msk.bf16.gmra.mxu3 %vm688_vm0, %v13342_v29 }
 0x6c4   : > { %v16572_v25 = vadd.f32 %v23651_v22, %v16133_v9  ;;  %v20898_v9 = vld [vmem:[%s21099_s25 + $0xc0] sm:$0xff]  ;;  %v9827_v29 = vsel %vm9790_vm5, %v9824_v15, %v9826_v19 }
 0x6c5   : > { %v11894_v12 = vpop.f32.mrf.mxu2 }
 0x6c6   : > { %v12237_v16 = vadd.f32 %v11894_v12, %v10548_v59  ;;  %v16717_v61 = vmax.f32 %v16572_v25, 0.0  ;;  %v10207_v10 = vpop.f32.mrf.mxu1  ;;  %v23890_v23 = vpop.f32.mrf.mxu3  ;;  %v13353_v59 = vshrl.u32 %v20898_v9, 16  ;;  %v13356_v25 = vshll.u32 %v20898_v9, 16 }
 0x6c7   : > { %v15793_v49 = vpop.f32.mrf.mxu0  ;;  %v10549_v63 = vadd.f32 %v10207_v10, %v9149_v55 }
 0x6c8   : > { %v14441_v51 = vadd.f32 %v23824_v4, %v12237_v16  ;;  %16862 = vst [vmem:[%s21170_s4 + $0x68] sm:$0xff] %v16717_v61  ;;  %v13355_v32 = vrot.slane %v13353_v59, 2 }
 0x6ca   : > { %v16134_v45 = vadd.f32 %v15791_v3, %v14441_v51  ;;  %v11515_v3 = vrot.slane %v23915_v53, 2  ;;  %v13358_v51 = vrot.slane %v13356_v25, 3  ;;  %v23987_v25 = vld [vmem:[%s21099_s25 + $0xc0] sm:$0xff] }
 0x6cc   : > { %v16573_v27 = vadd.f32 %v23651_v22, %v16134_v45  ;;  %v11516_v16 = vsel %vm9790_vm5, %v11513_v31, %v11515_v3  ;;  %v9152_v45 = vld [vmem:[%s21170_s4 + $0x90] sm:$0xff] }
 0x6cd   : > { %v11896_v4 = vpop.f32.mrf.mxu2 }
 0x6ce   : > { %v12238_v8 = vadd.f32 %v11896_v4, %v10549_v63  ;;  %v16718_v11 = vmax.f32 %v16573_v27, 0.0  ;;  %v10210_v36 = vpop.f32.mrf.mxu1  ;;  %v23905_v24 = vpop.f32.mrf.mxu3  ;;  %v23945_v4 = vld [vmem:[%s21099_s25 + $0xa8] sm:$0xff] }
 0x6cf   : > { %v15796_v38 = vpop.f32.mrf.mxu0  ;;  %v10550_v46 = vadd.f32 %v10210_v36, %v9150_v50 }
 0x6d0   : > { %v14442_v37 = vadd.f32 %v23839_v26, %v12238_v8  ;;  %16863 = vst [vmem:[%s21170_s4 + $0x70] sm:$0xff] %v16718_v11  ;;  %v13350_v26 = vor.u32 %v13349_v14, %v13346_v28  ;;  %v23948_v8 = vld [vmem:[%s21099_s25 + $0xb8] sm:$0xff]  ;;  %v15414_v14 = vrot.slane %v23954_v39, 3 }
 0x6d1   : > { %19199 = vmatmul.msk.bf16.gmra.mxu1 %vm688_vm0, %v9825_v34 }
 0x6d2   : > { %19566 = vmatmul.msk.bf16.gmra.mxu2 %vm688_vm0, %v11514_v56  ;;  %v16135_v62 = vadd.f32 %v15793_v49, %v14442_v37  ;;  %20308 = vmatmul.msk.bf16.gmra.mxu0 %vm688_vm0, %v15411_v2  ;;  %v13351_v35 = vsel %vm13172_vm4, %v13341_v58, %v13350_v26  ;;  %v9153_v56 = vld [vmem:[%s21170_s4 + $0x98] sm:$0xff]  ;;  %v9828_v37 = vrot.slane %v23945_v4, 2  ;;  %v15415_v33 = vsel %vm15376_vm6, %v15412_v18, %v15414_v14 }
 0x6d3   : > { %19939 = vmatmul.msk.bf16.gmra.mxu3 %vm688_vm0, %v13351_v35 }
 0x6d4   : > { %v16574_v47 = vadd.f32 %v23651_v22, %v16135_v62  ;;  %v20899_v62 = vld [vmem:[%s21099_s25 + $0xc8] sm:$0xff]  ;;  %v9829_v35 = vsel %vm9790_vm5, %v9826_v19, %v9828_v37 }
 0x6d5   : > { %v11899_v54 = vpop.f32.mrf.mxu2 }
 0x6d6   : > { %v12239_v48 = vadd.f32 %v11899_v54, %v10550_v46  ;;  %v16719_v40 = vmax.f32 %v16574_v47, 0.0  ;;  %v10212_v30 = vpop.f32.mrf.mxu1  ;;  %v23923_v1 = vpop.f32.mrf.mxu3  ;;  %v13362_v46 = vshrl.u32 %v20899_v62, 16  ;;  %v13365_v47 = vshll.u32 %v20899_v62, 16 }
 0x6d7   : > { %v15798_v6 = vpop.f32.mrf.mxu0  ;;  %v10551_v42 = vadd.f32 %v10212_v30, %v9151_v60 }
 0x6d8   : > { %v14443_v44 = vadd.f32 %v23857_v21, %v12239_v48  ;;  %16864 = vst [vmem:[%s21170_s4 + $0x78] sm:$0xff] %v16719_v40  ;;  %v13364_v53 = vrot.slane %v13362_v46, 2 }
 0x6da   : > { %v16136_v52 = vadd.f32 %v15796_v38, %v14443_v44  ;;  %v11517_v38 = vrot.slane %v23948_v8, 2  ;;  %v13367_v44 = vrot.slane %v13365_v47, 3  ;;  %v24020_v47 = vld [vmem:[%s21099_s25 + $0xc8] sm:$0xff] }
 0x6dc   : > { %v16575_v0 = vadd.f32 %v23651_v22, %v16136_v52  ;;  %v11518_v48 = vsel %vm9790_vm5, %v11515_v3, %v11517_v38  ;;  %v9154_v52 = vld [vmem:[%s21170_s4 + $0xa0] sm:$0xff] }
 0x6dd   : > { %v11901_v21 = vpop.f32.mrf.mxu2 }
 0x6de   : > { %v12240_v5 = vadd.f32 %v11901_v21, %v10551_v42  ;;  %v16720_v58 = vmax.f32 %v16575_v0, 0.0  ;;  %v10215_v12 = vpop.f32.mrf.mxu1  ;;  %v23938_v20 = vpop.f32.mrf.mxu3  ;;  %v23978_v21 = vld [vmem:[%s21099_s25 + $0xb0] sm:$0xff] }
 0x6df   : > { %v15801_v10 = vpop.f32.mrf.mxu0  ;;  %v10552_v55 = vadd.f32 %v10215_v12, %v9152_v45 }
 0x6e0   : > { %v14444_v61 = vadd.f32 %v23872_v7, %v12240_v5  ;;  %16865 = vst [vmem:[%s21170_s4 + $0x80] sm:$0xff] %v16720_v58  ;;  %v13359_v7 = vor.u32 %v13358_v51, %v13355_v32  ;;  %v23981_v5 = vld [vmem:[%s21099_s25 + $0xc0] sm:$0xff]  ;;  %v15416_v51 = vrot.slane %v23987_v25, 3 }
 0x6e1   : > { %19200 = vmatmul.msk.bf16.gmra.mxu1 %vm688_vm0, %v9827_v29  ;;  %v9158_v25 = vld [vmem:[%s21170_s4 + $0xc0] sm:$0xff] }
 0x6e2   : > { %19567 = vmatmul.msk.bf16.gmra.mxu2 %vm688_vm0, %v11516_v16  ;;  %v16137_v49 = vadd.f32 %v15798_v6, %v14444_v61  ;;  %20309 = vmatmul.msk.bf16.gmra.mxu0 %vm688_vm0, %v15413_v43  ;;  %v13360_v63 = vsel %vm13172_vm4, %v13350_v26, %v13359_v7  ;;  %v9155_v16 = vld [vmem:[%s21170_s4 + $0xa8] sm:$0xff]  ;;  %v9830_v61 = vrot.slane %v23978_v21, 2  ;;  %v15417_v4 = vsel %vm15376_vm6, %v15414_v14, %v15416_v51 }
 0x6e3   : > { %19940 = vmatmul.msk.bf16.gmra.mxu3 %vm688_vm0, %v13360_v63 }
 0x6e4   : > { %v16576_v15 = vadd.f32 %v23651_v22, %v16137_v49  ;;  %v20900_v49 = vld [vmem:[%s21099_s25 + $0xd0] sm:$0xff]  ;;  %v9831_v63 = vsel %vm9790_vm5, %v9828_v37, %v9830_v61 }
 0x6e5   : > { %v11904_v31 = vpop.f32.mrf.mxu2 }
 0x6e6   : > { %v12241_v27 = vadd.f32 %v11904_v31, %v10552_v55  ;;  %v16721_v41 = vmax.f32 %v16576_v15, 0.0  ;;  %v10217_v13 = vpop.f32.mrf.mxu1  ;;  %v23956_v34 = vpop.f32.mrf.mxu3  ;;  %v13371_v55 = vshrl.u32 %v20900_v49, 16  ;;  %v13374_v15 = vshll.u32 %v20900_v49, 16 }
 0x6e7   : > { %v15803_v17 = vpop.f32.mrf.mxu0  ;;  %v10553_v2 = vadd.f32 %v10217_v13, %v9153_v56 }
 0x6e8   : > { %v14445_v11 = vadd.f32 %v23890_v23, %v12241_v27  ;;  %16866 = vst [vmem:[%s21170_s4 + $0x88] sm:$0xff] %v16721_v41  ;;  %v13373_v8 = vrot.slane %v13371_v55, 2 }
 0x6ea   : > { %v16138_v36 = vadd.f32 %v15801_v10, %v14445_v11  ;;  %v11519_v10 = vrot.slane %v23981_v5, 2  ;;  %v13376_v11 = vrot.slane %v13374_v15, 3  ;;  %v24058_v15 = vld [vmem:[%s21099_s25 + $0xd0] sm:$0xff] }
 0x6ec   : > { %v16577_v28 = vadd.f32 %v23651_v22, %v16138_v36  ;;  %v11520_v27 = vsel %vm9790_vm5, %v11517_v38, %v11519_v10  ;;  %v9156_v36 = vld [vmem:[%s21170_s4 + $0xb0] sm:$0xff] }
 0x6ed   : > { %v11906_v23 = vpop.f32.mrf.mxu2 }
 0x6ee   : > { %v12242_v50 = vadd.f32 %v11906_v23, %v10553_v2  ;;  %v16722_v26 = vmax.f32 %v16577_v28, 0.0  ;;  %v10220_v54 = vpop.f32.mrf.mxu1  ;;  %v23971_v57 = vpop.f32.mrf.mxu3  ;;  %v24011_v23 = vld [vmem:[%s21099_s25 + $0xb8] sm:$0xff] }
 0x6ef   : > { %v15806_v30 = vpop.f32.mrf.mxu0  ;;  %v10554_v60 = vadd.f32 %v10220_v54, %v9154_v52 }
 0x6f0   : > { %v14446_v40 = vadd.f32 %v23905_v24, %v12242_v50  ;;  %16867 = vst [vmem:[%s21170_s4 + $0x90] sm:$0xff] %v16722_v26  ;;  %v13368_v24 = vor.u32 %v13367_v44, %v13364_v53  ;;  %v24014_v50 = vld [vmem:[%s21099_s25 + $0xc8] sm:$0xff]  ;;  %v15418_v44 = vrot.slane %v24020_v47, 3 }
 0x6f1   : > { %19201 = vmatmul.msk.bf16.gmra.mxu1 %vm688_vm0, %v9829_v35 }
 0x6f2   : > { %19568 = vmatmul.msk.bf16.gmra.mxu2 %vm688_vm0, %v11518_v48  ;;  %v16139_v6 = vadd.f32 %v15803_v17, %v14446_v40  ;;  %20310 = vmatmul.msk.bf16.gmra.mxu0 %vm688_vm0, %v15415_v33  ;;  %v13369_v42 = vsel %vm13172_vm4, %v13359_v7, %v13368_v24  ;;  %v9157_v48 = vld [vmem:[%s21170_s4 + $0xb8] sm:$0xff]  ;;  %v9832_v40 = vrot.slane %v24011_v23, 2 }
 0x6f3   : > { %19941 = vmatmul.msk.bf16.gmra.mxu3 %vm688_vm0, %v13369_v42 }
 0x6f4   : > { %v16578_v19 = vadd.f32 %v23651_v22, %v16139_v6  ;;  %v20901_v6 = vld [vmem:[%s21099_s25 + $0xd8] sm:$0xff]  ;;  %v9833_v42 = vsel %vm9790_vm5, %v9830_v61, %v9832_v40 }
 0x6f5   : > { %v11909_v3 = vpop.f32.mrf.mxu2 }
 0x6f6   : > { %v12243_v0 = vadd.f32 %v11909_v3, %v10554_v60  ;;  %v16723_v18 = vmax.f32 %v16578_v19, 0.0  ;;  %v10222_v9 = vpop.f32.mrf.mxu1  ;;  %v23989_v29 = vpop.f32.mrf.mxu3  ;;  %v13380_v60 = vshrl.u32 %v20901_v6, 16  ;;  %v13383_v19 = vshll.u32 %v20901_v6, 16 }
 0x6f7   : > { %v15808_v59 = vpop.f32.mrf.mxu0  ;;  %v10555_v43 = vadd.f32 %v10222_v9, %v9155_v16  ;;  %v24044_v16 = vld [vmem:[%s25808_s2] ss:$0 sm:$0xff] }
 0x6f8   : > { %v14447_v58 = vadd.f32 %v23923_v1, %v12243_v0  ;;  %16868 = vst [vmem:[%s21170_s4 + $0x98] sm:$0xff] %v16723_v18  ;;  %v13382_v21 = vrot.slane %v13380_v60, 2  ;;  %v13385_v5 = vrot.slane %v13383_v19, 3  ;;  %v24091_v19 = vld [vmem:[%s21099_s25 + $0xd8] sm:$0xff] }
 0x6fa   : > { %v16140_v12 = vadd.f32 %v15806_v30, %v14447_v58  ;;  %v11521_v30 = vrot.slane %v24014_v50, 2 }
 0x6fc   : > { %v16579_v32 = vadd.f32 %v23651_v22, %v16140_v12  ;;  %v11522_v0 = vsel %vm9790_vm5, %v11519_v10, %v11521_v30 }
 0x6fd   : > { %v11911_v1 = vpop.f32.mrf.mxu2 }
 0x6fe   : > { %v12244_v45 = vadd.f32 %v11911_v1, %v10555_v43  ;;  %v16724_v7 = vmax.f32 %v16579_v32, 0.0  ;;  %v10225_v31 = vpop.f32.mrf.mxu1  ;;  %v24004_v39 = vpop.f32.mrf.mxu3  ;;  %v24049_v1 = vld [vmem:[%s21099_s25 + $0xc0] sm:$0xff] }
 0x6ff   : > { %v15811_v13 = vpop.f32.mrf.mxu0  ;;  %v10556_v56 = vadd.f32 %v10225_v31, %v9156_v36 }
 0x700   : > { %v14448_v41 = vadd.f32 %v23938_v20, %v12244_v45  ;;  %16869 = vst [vmem:[%s21170_s4 + $0xa0] sm:$0xff] %v16724_v7  ;;  %v13377_v20 = vor.u32 %v13376_v11, %v13373_v8  ;;  %v24052_v45 = vld [vmem:[%s21099_s25 + $0xd0] sm:$0xff]  ;;  %v15420_v11 = vrot.slane %v24058_v15, 3 }
 0x701   : > { %19202 = vmatmul.msk.bf16.gmra.mxu1 %vm688_vm0, %v9831_v63 }
 0x702   : > { %19569 = vmatmul.msk.bf16.gmra.mxu2 %vm688_vm0, %v11520_v27  ;;  %v16141_v17 = vadd.f32 %v15808_v59, %v14448_v41  ;;  %20311 = vmatmul.msk.bf16.gmra.mxu0 %vm688_vm0, %v15417_v4  ;;  %v13378_v2 = vsel %vm13172_vm4, %v13368_v24, %v13377_v20  ;;  %v9159_v27 = vld [vmem:[%s21170_s4 + $0xc8] sm:$0xff]  ;;  %v9834_v41 = vrot.slane %v24049_v1, 2  ;;  %v15421_v23 = vsel %vm15376_vm6, %v15418_v44, %v15420_v11 }
 0x703   : > { %19942 = vmatmul.msk.bf16.gmra.mxu3 %vm688_vm0, %v13378_v2 }
 0x704   : > { %v16580_v37 = vadd.f32 %v23651_v22, %v16141_v17  ;;  %v20902_v17 = vld [vmem:[%s21099_s25 + $0xe0] sm:$0xff]  ;;  %v9835_v2 = vsel %vm9790_vm5, %v9832_v40, %v9834_v41 }
 0x705   : > { %v11914_v38 = vpop.f32.mrf.mxu2 }
 0x706   : > { %v12245_v28 = vadd.f32 %v11914_v38, %v10556_v56  ;;  %v16725_v14 = vmax.f32 %v16580_v37, 0.0  ;;  %v10227_v62 = vpop.f32.mrf.mxu1  ;;  %v24022_v35 = vpop.f32.mrf.mxu3  ;;  %v13389_v56 = vshrl.u32 %v20902_v17, 16  ;;  %v13392_v37 = vshll.u32 %v20902_v17, 16 }
 0x707   : > { %v15813_v46 = vpop.f32.mrf.mxu0  ;;  %v10557_v33 = vadd.f32 %v10227_v62, %v9157_v48 }
 0x708   : > { %v14449_v26 = vadd.f32 %v23956_v34, %v12245_v28  ;;  %16870 = vst [vmem:[%s21170_s4 + $0xa8] sm:$0xff] %v16725_v14  ;;  %v13391_v50 = vrot.slane %v13389_v56, 2 }
 0x70a   : > { %v16142_v54 = vadd.f32 %v15811_v13, %v14449_v26  ;;  %v11523_v13 = vrot.slane %v24052_v45, 2  ;;  %v13394_v26 = vrot.slane %v13392_v37, 3  ;;  %v24124_v37 = vld [vmem:[%s21099_s25 + $0xe0] sm:$0xff] }
 0x70c   : > { %v16581_v53 = vadd.f32 %v23651_v22, %v16142_v54  ;;  %v15419_v22 = vsel %vm15376_vm6, %v15416_v51, %v15418_v44  ;;  %v11524_v28 = vsel %vm9790_vm5, %v11521_v30, %v11523_v13  ;;  %v9160_v54 = vld [vmem:[%s21170_s4 + $0xd0] sm:$0xff] }
 0x70d   : > { %v11916_v34 = vpop.f32.mrf.mxu2 }
 0x70e   : > { %v12246_v52 = vadd.f32 %v11916_v34, %v10557_v33  ;;  %v16726_v24 = vmax.f32 %v16581_v53, 0.0  ;;  %v10230_v3 = vpop.f32.mrf.mxu1  ;;  %v24037_v59 = vpop.f32.mrf.mxu3  ;;  %v24082_v34 = vld [vmem:[%s21099_s25 + $0xc8] sm:$0xff] }
 0x70f   : > { %v15816_v9 = vpop.f32.mrf.mxu0  ;;  %v10558_v12 = vadd.f32 %v10230_v3, %v9158_v25 }
 0x710   : > { %v14450_v18 = vadd.f32 %v23971_v57, %v12246_v52  ;;  %16871 = vst [vmem:[%s21170_s4 + $0xb0] sm:$0xff] %v16726_v24  ;;  %v13386_v57 = vor.u32 %v13385_v5, %v13382_v21  ;;  %v24085_v52 = vld [vmem:[%s21099_s25 + $0xd8] sm:$0xff]  ;;  %v15422_v5 = vrot.slane %v24091_v19, 3 }
 0x711   : > { %19203 = vmatmul.msk.bf16.gmra.mxu1 %vm688_vm0, %v9833_v42 }
 0x712   : > { %19570 = vmatmul.msk.bf16.gmra.mxu2 %vm688_vm0, %v11522_v0  ;;  %v16143_v58 = vadd.f32 %v15813_v46, %v14450_v18  ;;  %20312 = vmatmul.msk.bf16.gmra.mxu0 %vm688_vm0, %v15419_v22  ;;  %v13387_v43 = vsel %vm13172_vm4, %v13377_v20, %v13386_v57  ;;  %v9161_v0 = vld [vmem:[%s21170_s4 + $0xd8] sm:$0xff]  ;;  %v9836_v18 = vrot.slane %v24082_v34, 2  ;;  %v15423_v1 = vsel %vm15376_vm6, %v15420_v11, %v15422_v5 }
 0x713   : > { %19943 = vmatmul.msk.bf16.gmra.mxu3 %vm688_vm0, %v13387_v43 }
 0x714   : > { %v16582_v61 = vadd.f32 %v24044_v16, %v16143_v58  ;;  %v20903_v58 = vld [vmem:[%s21099_s25 + $0xe8] sm:$0xff]  ;;  %v9837_v43 = vsel %vm9790_vm5, %v9834_v41, %v9836_v18 }
 0x715   : > { %v11919_v10 = vpop.f32.mrf.mxu2 }
 0x716   : > { %v12247_v32 = vadd.f32 %v11919_v10, %v10558_v12  ;;  %v16727_v51 = vmax.f32 %v16582_v61, 0.0  ;;  %v10232_v49 = vpop.f32.mrf.mxu1  ;;  %v24060_v63 = vpop.f32.mrf.mxu3  ;;  %v13398_v12 = vshrl.u32 %v20903_v58, 16  ;;  %v13401_v61 = vshll.u32 %v20903_v58, 16 }
 0x717   : > { %v15818_v55 = vpop.f32.mrf.mxu0  ;;  %v10559_v4 = vadd.f32 %v10232_v49, %v9159_v27 }
 0x718   : > { %v14451_v7 = vadd.f32 %v23989_v29, %v12247_v32  ;;  %16872 = vst [vmem:[%s21170_s4 + $0xb8] sm:$0xff] %v16727_v51  ;;  %v13400_v45 = vrot.slane %v13398_v12, 2 }
 0x71a   : > { %v16144_v31 = vadd.f32 %v15816_v9, %v14451_v7  ;;  %v11525_v9 = vrot.slane %v24085_v52, 2  ;;  %v13403_v7 = vrot.slane %v13401_v61, 3  ;;  %v24157_v61 = vld [vmem:[%s21099_s25 + $0xe8] sm:$0xff] }
 0x71c   : > { %v16583_v8 = vadd.f32 %v24044_v16, %v16144_v31  ;;  %v11526_v32 = vsel %vm9790_vm5, %v11523_v13, %v11525_v9  ;;  %v9162_v31 = vld [vmem:[%s21170_s4 + $0xe0] sm:$0xff] }
 0x71d   : > { %v11921_v29 = vpop.f32.mrf.mxu2 }
 0x71e   : > { %v12248_v36 = vadd.f32 %v11921_v29, %v10559_v4  ;;  %v16728_v20 = vmax.f32 %v16583_v8, 0.0  ;;  %v10235_v38 = vpop.f32.mrf.mxu1  ;;  %v24075_v47 = vpop.f32.mrf.mxu3  ;;  %v24115_v29 = vld [vmem:[%s21099_s25 + $0xd0] sm:$0xff] }
 0x71f   : > { %v15821_v62 = vpop.f32.mrf.mxu0  ;;  %v10560_v48 = vadd.f32 %v10235_v38, %v9160_v54 }
 0x720   : > { %v14452_v14 = vadd.f32 %v24004_v39, %v12248_v36  ;;  %16873 = vst [vmem:[%s21170_s4 + $0xc0] sm:$0xff] %v16728_v20  ;;  %v13395_v39 = vor.u32 %v13394_v26, %v13391_v50  ;;  %v24118_v36 = vld [vmem:[%s21099_s25 + $0xe0] sm:$0xff]  ;;  %v15424_v26 = vrot.slane %v24124_v37, 3 }
 0x721   : > { %19204 = vmatmul.msk.bf16.gmra.mxu1 %vm688_vm0, %v9835_v2 }
 0x722   : > { %19571 = vmatmul.msk.bf16.gmra.mxu2 %vm688_vm0, %v11524_v28  ;;  %v16145_v46 = vadd.f32 %v15818_v55, %v14452_v14  ;;  %20313 = vmatmul.msk.bf16.gmra.mxu0 %vm688_vm0, %v15421_v23  ;;  %v13396_v33 = vsel %vm13172_vm4, %v13386_v57, %v13395_v39  ;;  %v9163_v28 = vld [vmem:[%s21170_s4 + $0xe8] sm:$0xff]  ;;  %v9838_v14 = vrot.slane %v24115_v29, 2  ;;  %v15425_v34 = vsel %vm15376_vm6, %v15422_v5, %v15424_v26 }
 0x723   : > { %19944 = vmatmul.msk.bf16.gmra.mxu3 %vm688_vm0, %v13396_v33 }
 0x724   : > { %v16584_v40 = vadd.f32 %v24044_v16, %v16145_v46  ;;  %v20904_v46 = vld [vmem:[%s21099_s25 + $0xf0] sm:$0xff]  ;;  %v9839_v33 = vsel %vm9790_vm5, %v9836_v18, %v9838_v14 }
 0x725   : > { %v11924_v30 = vpop.f32.mrf.mxu2 }
 0x726   : > { %v12249_v53 = vadd.f32 %v11924_v30, %v10560_v48  ;;  %v16729_v44 = vmax.f32 %v16584_v40, 0.0  ;;  %v10237_v6 = vpop.f32.mrf.mxu1  ;;  %v24093_v42 = vpop.f32.mrf.mxu3  ;;  %v13407_v48 = vshrl.u32 %v20904_v46, 16  ;;  %v13410_v40 = vshll.u32 %v20904_v46, 16 }
 0x727   : > { %v15823_v60 = vpop.f32.mrf.mxu0  ;;  %v10561_v22 = vadd.f32 %v10237_v6, %v9161_v0 }
 0x728   : > { %v14453_v24 = vadd.f32 %v24022_v35, %v12249_v53  ;;  %16874 = vst [vmem:[%s21170_s4 + $0xc8] sm:$0xff] %v16729_v44  ;;  %v13409_v52 = vrot.slane %v13407_v48, 2 }
 0x72a   : > { %v16146_v3 = vadd.f32 %v15821_v62, %v14453_v24  ;;  %v11527_v62 = vrot.slane %v24118_v36, 2  ;;  %v13412_v24 = vrot.slane %v13410_v40, 3  ;;  %v24190_v40 = vld [vmem:[%s21099_s25 + $0xf0] sm:$0xff] }
 0x72c   : > { %v16585_v21 = vadd.f32 %v24044_v16, %v16146_v3  ;;  %v11528_v53 = vsel %vm9790_vm5, %v11525_v9, %v11527_v62  ;;  %v9164_v3 = vld [vmem:[%s21170_s4 + $0xf0] sm:$0xff] }
 0x72d   : > { %v11926_v35 = vpop.f32.mrf.mxu2 }
 0x72e   : > { %v12250_v25 = vadd.f32 %v11926_v35, %v10561_v22  ;;  %v16730_v57 = vmax.f32 %v16585_v21, 0.0  ;;  %v10240_v10 = vpop.f32.mrf.mxu1  ;;  %v24108_v15 = vpop.f32.mrf.mxu3  ;;  %v24148_v35 = vld [vmem:[%s21099_s25 + $0xd8] sm:$0xff] }
 0x72f   : > { %v15826_v49 = vpop.f32.mrf.mxu0  ;;  %v10562_v27 = vadd.f32 %v10240_v10, %v9162_v31 }
 0x730   : > { %v14454_v51 = vadd.f32 %v24037_v59, %v12250_v25  ;;  %16875 = vst [vmem:[%s21170_s4 + $0xd0] sm:$0xff] %v16730_v57  ;;  %v13404_v59 = vor.u32 %v13403_v7, %v13400_v45  ;;  %v24151_v25 = vld [vmem:[%s21099_s25 + $0xe8] sm:$0xff]  ;;  %v15426_v7 = vrot.slane %v24157_v61, 3 }
 0x731   : > { %19205 = vmatmul.msk.bf16.gmra.mxu1 %vm688_vm0, %v9837_v43 }
 0x732   : > { %19572 = vmatmul.msk.bf16.gmra.mxu2 %vm688_vm0, %v11526_v32  ;;  %v16147_v55 = vadd.f32 %v15823_v60, %v14454_v51  ;;  %20314 = vmatmul.msk.bf16.gmra.mxu0 %vm688_vm0, %v15423_v1  ;;  %v13405_v4 = vsel %vm13172_vm4, %v13395_v39, %v13404_v59  ;;  %v9165_v32 = vld [vmem:[%s21170_s4 + $0xf8] sm:$0xff]  ;;  %v9840_v51 = vrot.slane %v24148_v35, 2  ;;  %v15427_v29 = vsel %vm15376_vm6, %v15424_v26, %v15426_v7 }
 0x733   : > { %19945 = vmatmul.msk.bf16.gmra.mxu3 %vm688_vm0, %v13405_v4 }
 0x734   : > { %v16586_v41 = vadd.f32 %v24044_v16, %v16147_v55  ;;  %v20905_v55 = vld [vmem:[%s21099_s25 + $0xf8] sm:$0xff]  ;;  %v9841_v4 = vsel %vm9790_vm5, %v9838_v14, %v9840_v51 }
 0x735   : > { %v11929_v13 = vpop.f32.mrf.mxu2 }
 0x736   : > { %v12251_v8 = vadd.f32 %v11929_v13, %v10562_v27  ;;  %v16731_v11 = vmax.f32 %v16586_v41, 0.0  ;;  %v10242_v17 = vpop.f32.mrf.mxu1  ;;  %v24126_v2 = vpop.f32.mrf.mxu3  ;;  %v13416_v27 = vshrl.u32 %v20905_v55, 16  ;;  %v13419_v41 = vshll.u32 %v20905_v55, 16 }
 0x737   : > { %v15828_v56 = vpop.f32.mrf.mxu0  ;;  %v10563_v23 = vadd.f32 %v10242_v17, %v9163_v28 }
 0x738   : > { %v14455_v20 = vadd.f32 %v24060_v63, %v12251_v8  ;;  %16876 = vst [vmem:[%s21170_s4 + $0xd8] sm:$0xff] %v16731_v11  ;;  %v13418_v36 = vrot.slane %v13416_v27, 2 }
 0x73a   : > { %v16148_v38 = vadd.f32 %v15826_v49, %v14455_v20  ;;  %v11529_v49 = vrot.slane %v24151_v25, 2  ;;  %v13421_v20 = vrot.slane %v13419_v41, 3  ;;  %v24223_v41 = vld [vmem:[%s21099_s25 + $0xf8] sm:$0xff] }
 0x73c   : > { %v16587_v50 = vadd.f32 %v24044_v16, %v16148_v38  ;;  %v11530_v8 = vsel %vm9790_vm5, %v11527_v62, %v11529_v49  ;;  %v9166_v38 = vld [vmem:[%s21170_s4 + $0x100] sm:$0xff] }
 0x73d   : > { %v11931_v63 = vpop.f32.mrf.mxu2 }
 0x73e   : > { %v12252_v54 = vadd.f32 %v11931_v63, %v10563_v23  ;;  %v16732_v39 = vmax.f32 %v16587_v50, 0.0  ;;  %v10245_v30 = vpop.f32.mrf.mxu1  ;;  %v24141_v19 = vpop.f32.mrf.mxu3  ;;  %v24181_v63 = vld [vmem:[%s21099_s25 + $0xe0] sm:$0xff] }
 0x73f   : > { %v15831_v6 = vpop.f32.mrf.mxu0  ;;  %v10564_v0 = vadd.f32 %v10245_v30, %v9164_v3 }
 0x740   : > { %v14456_v44 = vadd.f32 %v24075_v47, %v12252_v54  ;;  %16877 = vst [vmem:[%s21170_s4 + $0xe0] sm:$0xff] %v16732_v39  ;;  %v13413_v47 = vor.u32 %v13412_v24, %v13409_v52  ;;  %v24184_v54 = vld [vmem:[%s21099_s25 + $0xf0] sm:$0xff]  ;;  %v15428_v24 = vrot.slane %v24190_v40, 3 }
 0x741   : > { %19206 = vmatmul.msk.bf16.gmra.mxu1 %vm688_vm0, %v9839_v33 }
 0x742   : > { %19573 = vmatmul.msk.bf16.gmra.mxu2 %vm688_vm0, %v11528_v53  ;;  %v16149_v60 = vadd.f32 %v15828_v56, %v14456_v44  ;;  %20315 = vmatmul.msk.bf16.gmra.mxu0 %vm688_vm0, %v15425_v34  ;;  %v13414_v22 = vsel %vm13172_vm4, %v13404_v59, %v13413_v47  ;;  %v9167_v53 = vld [vmem:[%s21170_s4 + $0x108] sm:$0xff]  ;;  %v9842_v44 = vrot.slane %v24181_v63, 2  ;;  %v15429_v35 = vsel %vm15376_vm6, %v15426_v7, %v15428_v24 }
 0x743   : > { %19946 = vmatmul.msk.bf16.gmra.mxu3 %vm688_vm0, %v13414_v22 }
 0x744   : > { %v16588_v18 = vadd.f32 %v24044_v16, %v16149_v60  ;;  %v20906_v60 = vld [vmem:[%s21099_s25 + $0x100] sm:$0xff]  ;;  %v9843_v22 = vsel %vm9790_vm5, %v9840_v51, %v9842_v44 }
 0x745   : > { %v11934_v9 = vpop.f32.mrf.mxu2 }
 0x746   : > { %v12253_v21 = vadd.f32 %v11934_v9, %v10564_v0  ;;  %v16733_v5 = vmax.f32 %v16588_v18, 0.0  ;;  %v10247_v58 = vpop.f32.mrf.mxu1  ;;  %v24159_v43 = vpop.f32.mrf.mxu3  ;;  %v13425_v0 = vshrl.u32 %v20906_v60, 16  ;;  %v13428_v18 = vshll.u32 %v20906_v60, 16 }
 0x747   : > { %v15833_v12 = vpop.f32.mrf.mxu0  ;;  %v10565_v1 = vadd.f32 %v10247_v58, %v9165_v32 }
 0x748   : > { %v14457_v57 = vadd.f32 %v24093_v42, %v12253_v21  ;;  %16878 = vst [vmem:[%s21170_s4 + $0xe8] sm:$0xff] %v16733_v5  ;;  %v13427_v25 = vrot.slane %v13425_v0, 2 }
 0x74a   : > { %v16150_v10 = vadd.f32 %v15831_v6, %v14457_v57  ;;  %v11531_v6 = vrot.slane %v24184_v54, 2  ;;  %v13430_v57 = vrot.slane %v13428_v18, 3  ;;  %v24256_v18 = vld [vmem:[%s21099_s25 + $0x100] sm:$0xff] }
 0x74c   : > { %v16589_v45 = vadd.f32 %v24044_v16, %v16150_v10  ;;  %v11532_v21 = vsel %vm9790_vm5, %v11529_v49, %v11531_v6  ;;  %v9168_v10 = vld [vmem:[%s21170_s4 + $0x110] sm:$0xff] }
 0x74d   : > { %v11936_v42 = vpop.f32.mrf.mxu2 }
 0x74e   : > { %v12254_v31 = vadd.f32 %v11936_v42, %v10565_v1  ;;  %v16734_v59 = vmax.f32 %v16589_v45, 0.0  ;;  %v10250_v13 = vpop.f32.mrf.mxu1  ;;  %v24174_v37 = vpop.f32.mrf.mxu3  ;;  %v24214_v42 = vld [vmem:[%s21099_s25 + $0xe8] sm:$0xff] }
 0x74f   : > { %v15836_v17 = vpop.f32.mrf.mxu0  ;;  %v10566_v28 = vadd.f32 %v10250_v13, %v9166_v38 }
 0x750   : > { %v14458_v11 = vadd.f32 %v24108_v15, %v12254_v31  ;;  %16879 = vst [vmem:[%s21170_s4 + $0xf0] sm:$0xff] %v16734_v59  ;;  %v13422_v15 = vor.u32 %v13421_v20, %v13418_v36  ;;  %v24217_v31 = vld [vmem:[%s21099_s25 + $0xf8] sm:$0xff]  ;;  %v15430_v20 = vrot.slane %v24223_v41, 3 }
 0x751   : > { %19207 = vmatmul.msk.bf16.gmra.mxu1 %vm688_vm0, %v9841_v4 }
 0x752   : > { %19574 = vmatmul.msk.bf16.gmra.mxu2 %vm688_vm0, %v11530_v8  ;;  %v16151_v56 = vadd.f32 %v15833_v12, %v14458_v11  ;;  %20316 = vmatmul.msk.bf16.gmra.mxu0 %vm688_vm0, %v15427_v29  ;;  %v13423_v23 = vsel %vm13172_vm4, %v13413_v47, %v13422_v15  ;;  %v9169_v8 = vld [vmem:[%s21170_s4 + $0x118] sm:$0xff]  ;;  %v9844_v11 = vrot.slane %v24214_v42, 2  ;;  %v15431_v63 = vsel %vm15376_vm6, %v15428_v24, %v15430_v20 }
 0x753   : > { %19947 = vmatmul.msk.bf16.gmra.mxu3 %vm688_vm0, %v13423_v23 }
 0x754   : > { %v16590_v14 = vadd.f32 %v24044_v16, %v16151_v56  ;;  %v20907_v56 = vld [vmem:[%s21099_s25 + $0x108] sm:$0xff]  ;;  %v9845_v23 = vsel %vm9790_vm5, %v9842_v44, %v9844_v11 }
 0x755   : > { %v11939_v62 = vpop.f32.mrf.mxu2 }
 0x756   : > { %v12255_v50 = vadd.f32 %v11939_v62, %v10566_v28  ;;  %v16735_v26 = vmax.f32 %v16590_v14, 0.0  ;;  %v10252_v46 = vpop.f32.mrf.mxu1  ;;  %v24192_v33 = vpop.f32.mrf.mxu3  ;;  %v13434_v28 = vshrl.u32 %v20907_v56, 16  ;;  %v13437_v14 = vshll.u32 %v20907_v56, 16 }
 0x757   : > { %v15838_v48 = vpop.f32.mrf.mxu0  ;;  %v10567_v34 = vadd.f32 %v10252_v46, %v9167_v53 }
 0x758   : > { %v14459_v39 = vadd.f32 %v24126_v2, %v12255_v50  ;;  %16880 = vst [vmem:[%s21170_s4 + $0xf8] sm:$0xff] %v16735_v26  ;;  %v13436_v54 = vrot.slane %v13434_v28, 2 }
 0x75a   : > { %v16152_v30 = vadd.f32 %v15836_v17, %v14459_v39  ;;  %v11533_v17 = vrot.slane %v24217_v31, 2  ;;  %v13439_v39 = vrot.slane %v13437_v14, 3  ;;  %v24289_v14 = vld [vmem:[%s21099_s25 + $0x108] sm:$0xff] }
 0x75c   : > { %v16591_v52 = vadd.f32 %v24044_v16, %v16152_v30  ;;  %v11534_v50 = vsel %vm9790_vm5, %v11531_v6, %v11533_v17  ;;  %v9170_v30 = vld [vmem:[%s21170_s4 + $0x120] sm:$0xff] }
 0x75d   : > { %v11941_v2 = vpop.f32.mrf.mxu2 }
 0x75e   : > { %v12256_v3 = vadd.f32 %v11941_v2, %v10567_v34  ;;  %v16736_v47 = vmax.f32 %v16591_v52, 0.0  ;;  %v10255_v9 = vpop.f32.mrf.mxu1  ;;  %v24207_v61 = vpop.f32.mrf.mxu3  ;;  %v24247_v2 = vld [vmem:[%s21099_s25 + $0xf0] sm:$0xff] }
 0x75f   : > { %v15841_v58 = vpop.f32.mrf.mxu0  ;;  %v10568_v32 = vadd.f32 %v10255_v9, %v9168_v10 }
 0x760   : > { %v14460_v5 = vadd.f32 %v24141_v19, %v12256_v3  ;;  %16881 = vst [vmem:[%s21170_s4 + $0x100] sm:$0xff] %v16736_v47  ;;  %v13431_v19 = vor.u32 %v13430_v57, %v13427_v25  ;;  %v24250_v3 = vld [vmem:[%s21099_s25 + $0x100] sm:$0xff]  ;;  %v15432_v57 = vrot.slane %v24256_v18, 3 }
 0x761   : > { %19208 = vmatmul.msk.bf16.gmra.mxu1 %vm688_vm0, %v9843_v22 }
 0x762   : > { %19575 = vmatmul.msk.bf16.gmra.mxu2 %vm688_vm0, %v11532_v21  ;;  %v16153_v12 = vadd.f32 %v15838_v48, %v14460_v5  ;;  %20317 = vmatmul.msk.bf16.gmra.mxu0 %vm688_vm0, %v15429_v35  ;;  %v13432_v1 = vsel %vm13172_vm4, %v13422_v15, %v13431_v19  ;;  %v9171_v21 = vld [vmem:[%s21170_s4 + $0x128] sm:$0xff]  ;;  %v9846_v5 = vrot.slane %v24247_v2, 2  ;;  %v15433_v42 = vsel %vm15376_vm6, %v15430_v20, %v15432_v57 }
 0x763   : > { %19948 = vmatmul.msk.bf16.gmra.mxu3 %vm688_vm0, %v13432_v1 }
 0x764   : > { %v16592_v51 = vadd.f32 %v24044_v16, %v16153_v12  ;;  %v20908_v12 = vld [vmem:[%s21099_s25 + $0x110] sm:$0xff]  ;;  %v9847_v1 = vsel %vm9790_vm5, %v9844_v11, %v9846_v5 }
 0x765   : > { %v11944_v49 = vpop.f32.mrf.mxu2 }
 0x766   : > { %v12257_v45 = vadd.f32 %v11944_v49, %v10568_v32  ;;  %v16737_v7 = vmax.f32 %v16592_v51, 0.0  ;;  %v10257_v55 = vpop.f32.mrf.mxu1  ;;  %v24225_v4 = vpop.f32.mrf.mxu3  ;;  %v13443_v32 = vshrl.u32 %v20908_v12, 16  ;;  %v13446_v51 = vshll.u32 %v20908_v12, 16 }
 0x767   : > { %v15843_v27 = vpop.f32.mrf.mxu0  ;;  %v10569_v29 = vadd.f32 %v10257_v55, %v9169_v8 }
 0x768   : > { %v14461_v59 = vadd.f32 %v24159_v43, %v12257_v45  ;;  %16882 = vst [vmem:[%s21170_s4 + $0x108] sm:$0xff] %v16737_v7  ;;  %v13445_v31 = vrot.slane %v13443_v32, 2 }
 0x76a   : > { %v16154_v13 = vadd.f32 %v15841_v58, %v14461_v59  ;;  %v11535_v58 = vrot.slane %v24250_v3, 2  ;;  %v13448_v59 = vrot.slane %v13446_v51, 3  ;;  %v24322_v51 = vld [vmem:[%s21099_s25 + $0x110] sm:$0xff] }
 0x76c   : > { %v16593_v36 = vadd.f32 %v24044_v16, %v16154_v13  ;;  %v11536_v45 = vsel %vm9790_vm5, %v11533_v17, %v11535_v58  ;;  %v9172_v13 = vld [vmem:[%s21170_s4 + $0x130] sm:$0xff] }
 0x76d   : > { %v11946_v43 = vpop.f32.mrf.mxu2 }
 0x76e   : > { %v12258_v38 = vadd.f32 %v11946_v43, %v10569_v29  ;;  %v16738_v15 = vmax.f32 %v16593_v36, 0.0  ;;  %v10260_v62 = vpop.f32.mrf.mxu1  ;;  %v24240_v40 = vpop.f32.mrf.mxu3  ;;  %v24280_v43 = vld [vmem:[%s21099_s25 + $0xf8] sm:$0xff] }
 0x76f   : > { %v15846_v46 = vpop.f32.mrf.mxu0  ;;  %v10570_v53 = vadd.f32 %v10260_v62, %v9170_v30 }
 0x770   : > { %v14462_v26 = vadd.f32 %v24174_v37, %v12258_v38  ;;  %16883 = vst [vmem:[%s21170_s4 + $0x110] sm:$0xff] %v16738_v15  ;;  %v13440_v37 = vor.u32 %v13439_v39, %v13436_v54  ;;  %v24283_v38 = vld [vmem:[%s21099_s25 + $0x108] sm:$0xff]  ;;  %v15434_v39 = vrot.slane %v24289_v14, 3 }
 0x771   : > { %19209 = vmatmul.msk.bf16.gmra.mxu1 %vm688_vm0, %v9845_v23 }
 0x772   : > { %19576 = vmatmul.msk.bf16.gmra.mxu2 %vm688_vm0, %v11534_v50  ;;  %v16155_v48 = vadd.f32 %v15843_v27, %v14462_v26  ;;  %20318 = vmatmul.msk.bf16.gmra.mxu0 %vm688_vm0, %v15431_v63  ;;  %v13441_v34 = vsel %vm13172_vm4, %v13431_v19, %v13440_v37  ;;  %v9173_v50 = vld [vmem:[%s21170_s4 + $0x138] sm:$0xff]  ;;  %v9848_v26 = vrot.slane %v24280_v43, 2  ;;  %v15435_v2 = vsel %vm15376_vm6, %v15432_v57, %v15434_v39 }
 0x773   : > { %19949 = vmatmul.msk.bf16.gmra.mxu3 %vm688_vm0, %v13441_v34 }
 0x774   : > { %v16594_v44 = vadd.f32 %v24044_v16, %v16155_v48  ;;  %v20909_v48 = vld [vmem:[%s21099_s25 + $0x118] sm:$0xff]  ;;  %v9849_v34 = vsel %vm9790_vm5, %v9846_v5, %v9848_v26 }
 0x775   : > { %v11949_v6 = vpop.f32.mrf.mxu2 }
 0x776   : > { %v12259_v52 = vadd.f32 %v11949_v6, %v10570_v53  ;;  %v16739_v24 = vmax.f32 %v16594_v44, 0.0  ;;  %v10262_v60 = vpop.f32.mrf.mxu1  ;;  %v24258_v22 = vpop.f32.mrf.mxu3  ;;  %v13452_v53 = vshrl.u32 %v20909_v48, 16  ;;  %v13455_v44 = vshll.u32 %v20909_v48, 16 }
 0x777   : > { %v15848_v0 = vpop.f32.mrf.mxu0  ;;  %v10571_v35 = vadd.f32 %v10262_v60, %v9171_v21 }
 0x778   : > { %v14463_v47 = vadd.f32 %v24192_v33, %v12259_v52  ;;  %16884 = vst [vmem:[%s21170_s4 + $0x118] sm:$0xff] %v16739_v24  ;;  %v13454_v3 = vrot.slane %v13452_v53, 2 }
 0x77a   : > { %v16156_v9 = vadd.f32 %v15846_v46, %v14463_v47  ;;  %v11537_v46 = vrot.slane %v24283_v38, 2  ;;  %v13457_v47 = vrot.slane %v13455_v44, 3  ;;  %v24355_v44 = vld [vmem:[%s21099_s25 + $0x118] sm:$0xff] }
 0x77c   : > { %v16595_v25 = vadd.f32 %v24044_v16, %v16156_v9  ;;  %v11538_v52 = vsel %vm9790_vm5, %v11535_v58, %v11537_v46  ;;  %v9174_v9 = vld [vmem:[%s21170_s4 + $0x140] sm:$0xff] }
 0x77d   : > { %v11951_v33 = vpop.f32.mrf.mxu2 }
 0x77e   : > { %v12260_v10 = vadd.f32 %v11951_v33, %v10571_v35  ;;  %v16740_v19 = vmax.f32 %v16595_v25, 0.0  ;;  %v10265_v49 = vpop.f32.mrf.mxu1  ;;  %v24273_v41 = vpop.f32.mrf.mxu3  ;;  %v24313_v33 = vld [vmem:[%s21099_s25 + $0x100] sm:$0xff] }
 0x77f   : > { %v15851_v55 = vpop.f32.mrf.mxu0  ;;  %v10572_v8 = vadd.f32 %v10265_v49, %v9172_v13 }
 0x780   : > { %v14464_v7 = vadd.f32 %v24207_v61, %v12260_v10  ;;  %16885 = vst [vmem:[%s21170_s4 + $0x120] sm:$0xff] %v16740_v19  ;;  %v13449_v61 = vor.u32 %v13448_v59, %v13445_v31  ;;  %v24316_v10 = vld [vmem:[%s21099_s25 + $0x110] sm:$0xff]  ;;  %v15436_v59 = vrot.slane %v24322_v51, 3 }
 0x781   : > { %19210 = vmatmul.msk.bf16.gmra.mxu1 %vm688_vm0, %v9847_v1 }
 0x782   : > { %19577 = vmatmul.msk.bf16.gmra.mxu2 %vm688_vm0, %v11536_v45  ;;  %v16157_v27 = vadd.f32 %v15848_v0, %v14464_v7  ;;  %20319 = vmatmul.msk.bf16.gmra.mxu0 %vm688_vm0, %v15433_v42  ;;  %v13450_v29 = vsel %vm13172_vm4, %v13440_v37, %v13449_v61  ;;  %v9175_v45 = vld [vmem:[%s21170_s4 + $0x148] sm:$0xff]  ;;  %v9850_v7 = vrot.slane %v24313_v33, 2  ;;  %v15437_v43 = vsel %vm15376_vm6, %v15434_v39, %v15436_v59 }
 0x783   : > { %19950 = vmatmul.msk.bf16.gmra.mxu3 %vm688_vm0, %v13450_v29 }
 0x784   : > { %v16596_v11 = vadd.f32 %v24044_v16, %v16157_v27  ;;  %v20910_v27 = vld [vmem:[%s21099_s25 + $0x120] sm:$0xff]  ;;  %v9851_v29 = vsel %vm9790_vm5, %v9848_v26, %v9850_v7 }
 0x785   : > { %v11954_v17 = vpop.f32.mrf.mxu2 }
 0x786   : > { %v12261_v36 = vadd.f32 %v11954_v17, %v10572_v8  ;;  %v16741_v20 = vmax.f32 %v16596_v11, 0.0  ;;  %v10267_v56 = vpop.f32.mrf.mxu1  ;;  %v24291_v23 = vpop.f32.mrf.mxu3  ;;  %v13461_v8 = vshrl.u32 %v20910_v27, 16  ;;  %v13464_v11 = vshll.u32 %v20910_v27, 16 }
 0x787   : > { %v15853_v28 = vpop.f32.mrf.mxu0  ;;  %v10573_v63 = vadd.f32 %v10267_v56, %v9173_v50 }
 0x788   : > { %v14465_v15 = vadd.f32 %v24225_v4, %v12261_v36  ;;  %16886 = vst [vmem:[%s21170_s4 + $0x128] sm:$0xff] %v16741_v20  ;;  %v13463_v38 = vrot.slane %v13461_v8, 2 }
 0x78a   : > { %v16158_v62 = vadd.f32 %v15851_v55, %v14465_v15  ;;  %v11539_v55 = vrot.slane %v24316_v10, 2  ;;  %v13466_v15 = vrot.slane %v13464_v11, 3  ;;  %v24388_v11 = vld [vmem:[%s21099_s25 + $0x120] sm:$0xff] }
 0x78c   : > { %v16597_v54 = vadd.f32 %v24044_v16, %v16158_v62  ;;  %v11540_v36 = vsel %vm9790_vm5, %v11537_v46, %v11539_v55  ;;  %v9176_v62 = vld [vmem:[%s21170_s4 + $0x150] sm:$0xff] }
 0x78d   : > { %v11956_v4 = vpop.f32.mrf.mxu2 }
 0x78e   : > { %v12262_v30 = vadd.f32 %v11956_v4, %v10573_v63  ;;  %v16742_v37 = vmax.f32 %v16597_v54, 0.0  ;;  %v10270_v6 = vpop.f32.mrf.mxu1  ;;  %v24306_v18 = vpop.f32.mrf.mxu3  ;;  %v24346_v4 = vld [vmem:[%s21099_s25 + $0x108] sm:$0xff] }
 0x78f   : > { %v15856_v60 = vpop.f32.mrf.mxu0  ;;  %v10574_v21 = vadd.f32 %v10270_v6, %v9174_v9 }
 0x790   : > { %v14466_v24 = vadd.f32 %v24240_v40, %v12262_v30  ;;  %16887 = vst [vmem:[%s21170_s4 + $0x130] sm:$0xff] %v16742_v37  ;;  %v13458_v40 = vor.u32 %v13457_v47, %v13454_v3  ;;  %v24349_v30 = vld [vmem:[%s21099_s25 + $0x118] sm:$0xff]  ;;  %v15438_v47 = vrot.slane %v24355_v44, 3 }
 0x791   : > { %19211 = vmatmul.msk.bf16.gmra.mxu1 %vm688_vm0, %v9849_v34 }
 0x792   : > { %19578 = vmatmul.msk.bf16.gmra.mxu2 %vm688_vm0, %v11538_v52  ;;  %v16159_v0 = vadd.f32 %v15853_v28, %v14466_v24  ;;  %20320 = vmatmul.msk.bf16.gmra.mxu0 %vm688_vm0, %v15435_v2  ;;  %v13459_v35 = vsel %vm13172_vm4, %v13449_v61, %v13458_v40  ;;  %v9177_v52 = vld [vmem:[%s21170_s4 + $0x158] sm:$0xff]  ;;  %v9852_v24 = vrot.slane %v24346_v4, 2  ;;  %v15439_v33 = vsel %vm15376_vm6, %v15436_v59, %v15438_v47 }
 0x793   : > { %19951 = vmatmul.msk.bf16.gmra.mxu3 %vm688_vm0, %v13459_v35 }
 0x794   : > { %v16598_v5 = vadd.f32 %v24044_v16, %v16159_v0  ;;  %v20911_v0 = vld [vmem:[%s21099_s25 + $0x128] sm:$0xff]  ;;  %v9853_v35 = vsel %vm9790_vm5, %v9850_v7, %v9852_v24 }
 0x795   : > { %v11959_v58 = vpop.f32.mrf.mxu2 }
 0x796   : > { %v12263_v25 = vadd.f32 %v11959_v58, %v10574_v21  ;;  %v16743_v57 = vmax.f32 %v16598_v5, 0.0  ;;  %v10272_v12 = vpop.f32.mrf.mxu1  ;;  %v24324_v1 = vpop.f32.mrf.mxu3  ;;  %v13470_v21 = vshrl.u32 %v20911_v0, 16  ;;  %v13473_v5 = vshll.u32 %v20911_v0, 16 }
 0x797   : > { %v15858_v32 = vpop.f32.mrf.mxu0  ;;  %v10575_v42 = vadd.f32 %v10272_v12, %v9175_v45 }
 0x798   : > { %v14467_v19 = vadd.f32 %v24258_v22, %v12263_v25  ;;  %16888 = vst [vmem:[%s21170_s4 + $0x138] sm:$0xff] %v16743_v57  ;;  %v13472_v10 = vrot.slane %v13470_v21, 2 }
 0x79a   : > { %v16160_v49 = vadd.f32 %v15856_v60, %v14467_v19  ;;  %v11541_v60 = vrot.slane %v24349_v30, 2  ;;  %v13475_v19 = vrot.slane %v13473_v5, 3  ;;  %v24421_v5 = vld [vmem:[%s21099_s25 + $0x128] sm:$0xff] }
 0x79c   : > { %v16599_v31 = vadd.f32 %v24044_v16, %v16160_v49  ;;  %v11542_v25 = vsel %vm9790_vm5, %v11539_v55, %v11541_v60  ;;  %v9178_v49 = vld [vmem:[%s21170_s4 + $0x160] sm:$0xff] }
 0x79d   : > { %v11961_v22 = vpop.f32.mrf.mxu2 }
 0x79e   : > { %v12264_v13 = vadd.f32 %v11961_v22, %v10575_v42  ;;  %v16744_v61 = vmax.f32 %v16599_v31, 0.0  ;;  %v10275_v17 = vpop.f32.mrf.mxu1  ;;  %v24339_v14 = vpop.f32.mrf.mxu3  ;;  %v24379_v22 = vld [vmem:[%s21099_s25 + $0x110] sm:$0xff] }
 0x79f   : > { %v15861_v56 = vpop.f32.mrf.mxu0  ;;  %v10576_v50 = vadd.f32 %v10275_v17, %v9176_v62 }
 0x7a0   : > { %v14468_v20 = vadd.f32 %v24273_v41, %v12264_v13  ;;  %16889 = vst [vmem:[%s21170_s4 + $0x140] sm:$0xff] %v16744_v61  ;;  %v13467_v41 = vor.u32 %v13466_v15, %v13463_v38  ;;  %v24382_v13 = vld [vmem:[%s21099_s25 + $0x120] sm:$0xff]  ;;  %v15440_v15 = vrot.slane %v24388_v11, 3 }
 0x7a1   : > { %19212 = vmatmul.msk.bf16.gmra.mxu1 %vm688_vm0, %v9851_v29  ;;  %v9182_v11 = vld [vmem:[%s21170_s4 + $0x180] sm:$0xff] }
 0x7a2   : > { %19579 = vmatmul.msk.bf16.gmra.mxu2 %vm688_vm0, %v11540_v36  ;;  %v16161_v28 = vadd.f32 %v15858_v32, %v14468_v20  ;;  %20321 = vmatmul.msk.bf16.gmra.mxu0 %vm688_vm0, %v15437_v43  ;;  %v13468_v63 = vsel %vm13172_vm4, %v13458_v40, %v13467_v41  ;;  %v9179_v36 = vld [vmem:[%s21170_s4 + $0x168] sm:$0xff]  ;;  %v9854_v20 = vrot.slane %v24379_v22, 2  ;;  %v15441_v4 = vsel %vm15376_vm6, %v15438_v47, %v15440_v15 }
 0x7a3   : > { %19952 = vmatmul.msk.bf16.gmra.mxu3 %vm688_vm0, %v13468_v63 }
 0x7a4   : > { %v16600_v26 = vadd.f32 %v24044_v16, %v16161_v28  ;;  %v20912_v28 = vld [vmem:[%s21099_s25 + $0x130] sm:$0xff]  ;;  %v9855_v63 = vsel %vm9790_vm5, %v9852_v24, %v9854_v20 }
 0x7a5   : > { %v11964_v46 = vpop.f32.mrf.mxu2 }
 0x7a6   : > { %v12265_v54 = vadd.f32 %v11964_v46, %v10576_v50  ;;  %v16745_v39 = vmax.f32 %v16600_v26, 0.0  ;;  %v10277_v48 = vpop.f32.mrf.mxu1  ;;  %v24357_v34 = vpop.f32.mrf.mxu3  ;;  %v13479_v50 = vshrl.u32 %v20912_v28, 16  ;;  %v13482_v26 = vshll.u32 %v20912_v28, 16 }
 0x7a7   : > { %v15863_v53 = vpop.f32.mrf.mxu0  ;;  %v10577_v2 = vadd.f32 %v10277_v48, %v9177_v52 }
 0x7a8   : > { %v14469_v37 = vadd.f32 %v24291_v23, %v12265_v54  ;;  %16890 = vst [vmem:[%s21170_s4 + $0x148] sm:$0xff] %v16745_v39  ;;  %v13481_v30 = vrot.slane %v13479_v50, 2 }
 0x7aa   : > { %v16162_v6 = vadd.f32 %v15861_v56, %v14469_v37  ;;  %v11543_v56 = vrot.slane %v24382_v13, 2  ;;  %v13484_v37 = vrot.slane %v13482_v26, 3  ;;  %v24459_v26 = vld [vmem:[%s21099_s25 + $0x130] sm:$0xff] }
 0x7ac   : > { %v16601_v3 = vadd.f32 %v24044_v16, %v16162_v6  ;;  %v11544_v54 = vsel %vm9790_vm5, %v11541_v60, %v11543_v56  ;;  %v9180_v6 = vld [vmem:[%s21170_s4 + $0x170] sm:$0xff] }
 0x7ad   : > { %v11966_v23 = vpop.f32.mrf.mxu2 }
 0x7ae   : > { %v12266_v9 = vadd.f32 %v11966_v23, %v10577_v2  ;;  %v16746_v40 = vmax.f32 %v16601_v3, 0.0  ;;  %v10280_v58 = vpop.f32.mrf.mxu1  ;;  %v24372_v51 = vpop.f32.mrf.mxu3  ;;  %v24412_v23 = vld [vmem:[%s21099_s25 + $0x118] sm:$0xff] }
 0x7af   : > { %v15866_v12 = vpop.f32.mrf.mxu0  ;;  %v10578_v45 = vadd.f32 %v10280_v58, %v9178_v49 }
 0x7b0   : > { %v14470_v57 = vadd.f32 %v24306_v18, %v12266_v9  ;;  %16891 = vst [vmem:[%s21170_s4 + $0x150] sm:$0xff] %v16746_v40  ;;  %v13476_v18 = vor.u32 %v13475_v19, %v13472_v10  ;;  %v24415_v9 = vld [vmem:[%s21099_s25 + $0x128] sm:$0xff]  ;;  %v15442_v19 = vrot.slane %v24421_v5, 3 }
 0x7b1   : > { %19213 = vmatmul.msk.bf16.gmra.mxu1 %vm688_vm0, %v9853_v35 }
 0x7b2   : > { %19580 = vmatmul.msk.bf16.gmra.mxu2 %vm688_vm0, %v11542_v25  ;;  %v16163_v32 = vadd.f32 %v15863_v53, %v14470_v57  ;;  %20322 = vmatmul.msk.bf16.gmra.mxu0 %vm688_vm0, %v15439_v33  ;;  %v13477_v42 = vsel %vm13172_vm4, %v13467_v41, %v13476_v18  ;;  %v9181_v25 = vld [vmem:[%s21170_s4 + $0x178] sm:$0xff]  ;;  %v9856_v57 = vrot.slane %v24412_v23, 2 }
 0x7b3   : > { %19953 = vmatmul.msk.bf16.gmra.mxu3 %vm688_vm0, %v13477_v42 }
 0x7b4   : > { %v16602_v7 = vadd.f32 %v24044_v16, %v16163_v32  ;;  %v20913_v32 = vld [vmem:[%s21099_s25 + $0x138] sm:$0xff]  ;;  %v9857_v42 = vsel %vm9790_vm5, %v9854_v20, %v9856_v57 }
 0x7b5   : > { %v11969_v55 = vpop.f32.mrf.mxu2 }
 0x7b6   : > { %v12267_v31 = vadd.f32 %v11969_v55, %v10578_v45  ;;  %v16747_v59 = vmax.f32 %v16602_v7, 0.0  ;;  %v10282_v27 = vpop.f32.mrf.mxu1  ;;  %v24390_v29 = vpop.f32.mrf.mxu3  ;;  %v13488_v45 = vshrl.u32 %v20913_v32, 16  ;;  %v13491_v7 = vshll.u32 %v20913_v32, 16 }
 0x7b7   : > { %v15868_v8 = vpop.f32.mrf.mxu0  ;;  %v10579_v43 = vadd.f32 %v10282_v27, %v9179_v36  ;;  %v24445_v36 = vld [vmem:[%s25808_s2] ss:$0 sm:$0xff] }
 0x7b8   : > { %v14471_v61 = vadd.f32 %v24324_v1, %v12267_v31  ;;  %16892 = vst [vmem:[%s21170_s4 + $0x158] sm:$0xff] %v16747_v59  ;;  %v13490_v22 = vrot.slane %v13488_v45, 2  ;;  %v13493_v13 = vrot.slane %v13491_v7, 3  ;;  %v24492_v7 = vld [vmem:[%s21099_s25 + $0x138] sm:$0xff] }
 0x7ba   : > { %v16164_v17 = vadd.f32 %v15866_v12, %v14471_v61  ;;  %v11545_v12 = vrot.slane %v24415_v9, 2 }
 0x7bc   : > { %v16603_v38 = vadd.f32 %v24044_v16, %v16164_v17  ;;  %v11546_v31 = vsel %vm9790_vm5, %v11543_v56, %v11545_v12 }
 0x7bd   : > { %v11971_v1 = vpop.f32.mrf.mxu2 }
 0x7be   : > { %v12268_v62 = vadd.f32 %v11971_v1, %v10579_v43  ;;  %v16748_v41 = vmax.f32 %v16603_v38, 0.0  ;;  %v10285_v46 = vpop.f32.mrf.mxu1  ;;  %v24405_v44 = vpop.f32.mrf.mxu3  ;;  %v24450_v1 = vld [vmem:[%s21099_s25 + $0x120] sm:$0xff] }
 0x7bf   : > { %v15871_v48 = vpop.f32.mrf.mxu0  ;;  %v10580_v52 = vadd.f32 %v10285_v46, %v9180_v6 }
 0x7c0   : > { %v14472_v39 = vadd.f32 %v24339_v14, %v12268_v62  ;;  %16893 = vst [vmem:[%s21170_s4 + $0x160] sm:$0xff] %v16748_v41  ;;  %v13485_v14 = vor.u32 %v13484_v37, %v13481_v30  ;;  %v24453_v62 = vld [vmem:[%s21099_s25 + $0x130] sm:$0xff]  ;;  %v15444_v37 = vrot.slane %v24459_v26, 3 }
 0x7c1   : > { %19214 = vmatmul.msk.bf16.gmra.mxu1 %vm688_vm0, %v9855_v63 }
 0x7c2   : > { %19581 = vmatmul.msk.bf16.gmra.mxu2 %vm688_vm0, %v11544_v54  ;;  %v16165_v53 = vadd.f32 %v15868_v8, %v14472_v39  ;;  %20323 = vmatmul.msk.bf16.gmra.mxu0 %vm688_vm0, %v15441_v4  ;;  %v13486_v2 = vsel %vm13172_vm4, %v13476_v18, %v13485_v14  ;;  %v9183_v54 = vld [vmem:[%s21170_s4 + $0x188] sm:$0xff]  ;;  %v9858_v39 = vrot.slane %v24450_v1, 2  ;;  %v15445_v23 = vsel %vm15376_vm6, %v15442_v19, %v15444_v37 }
 0x7c3   : > { %19954 = vmatmul.msk.bf16.gmra.mxu3 %vm688_vm0, %v13486_v2 }
 0x7c4   : > { %v16604_v24 = vadd.f32 %v24044_v16, %v16165_v53  ;;  %v20914_v53 = vld [vmem:[%s21099_s25 + $0x140] sm:$0xff]  ;;  %v9859_v2 = vsel %vm9790_vm5, %v9856_v57, %v9858_v39 }
 0x7c5   : > { %v11974_v60 = vpop.f32.mrf.mxu2 }
 0x7c6   : > { %v12269_v3 = vadd.f32 %v11974_v60, %v10580_v52  ;;  %v16749_v47 = vmax.f32 %v16604_v24, 0.0  ;;  %v10287_v0 = vpop.f32.mrf.mxu1  ;;  %v24423_v35 = vpop.f32.mrf.mxu3  ;;  %v13497_v52 = vshrl.u32 %v20914_v53, 16  ;;  %v13500_v24 = vshll.u32 %v20914_v53, 16 }
 0x7c7   : > { %v15873_v21 = vpop.f32.mrf.mxu0  ;;  %v10581_v33 = vadd.f32 %v10287_v0, %v9181_v25 }
 0x7c8   : > { %v14473_v40 = vadd.f32 %v24357_v34, %v12269_v3  ;;  %16894 = vst [vmem:[%s21170_s4 + $0x168] sm:$0xff] %v16749_v47  ;;  %v13499_v9 = vrot.slane %v13497_v52, 2 }
 0x7ca   : > { %v16166_v58 = vadd.f32 %v15871_v48, %v14473_v40  ;;  %v11547_v48 = vrot.slane %v24453_v62, 2  ;;  %v13502_v40 = vrot.slane %v13500_v24, 3  ;;  %v24525_v24 = vld [vmem:[%s21099_s25 + $0x140] sm:$0xff] }
 0x7cc   : > { %v16605_v10 = vadd.f32 %v24044_v16, %v16166_v58  ;;  %v15443_v16 = vsel %vm15376_vm6, %v15440_v15, %v15442_v19  ;;  %v11548_v3 = vsel %vm9790_vm5, %v11545_v12, %v11547_v48  ;;  %v9184_v58 = vld [vmem:[%s21170_s4 + $0x190] sm:$0xff] }
 0x7cd   : > { %v11976_v34 = vpop.f32.mrf.mxu2 }
 0x7ce   : > { %v12270_v49 = vadd.f32 %v11976_v34, %v10581_v33  ;;  %v16750_v18 = vmax.f32 %v16605_v10, 0.0  ;;  %v10290_v55 = vpop.f32.mrf.mxu1  ;;  %v24438_v8 = vpop.f32.mrf.mxu3  ;;  %v24483_v34 = vld [vmem:[%s21099_s25 + $0x128] sm:$0xff] }
 0x7cf   : > { %v15876_v27 = vpop.f32.mrf.mxu0  ;;  %v10582_v17 = vadd.f32 %v10290_v55, %v9182_v11 }
 0x7d0   : > { %v14474_v59 = vadd.f32 %v24372_v51, %v12270_v49  ;;  %16895 = vst [vmem:[%s21170_s4 + $0x170] sm:$0xff] %v16750_v18  ;;  %v13494_v51 = vor.u32 %v13493_v13, %v13490_v22  ;;  %v24486_v49 = vld [vmem:[%s21099_s25 + $0x138] sm:$0xff]  ;;  %v15446_v13 = vrot.slane %v24492_v7, 3 }
 0x7d1   : > { %19215 = vmatmul.msk.bf16.gmra.mxu1 %vm688_vm0, %v9857_v42 }
 0x7d2   : > { %19582 = vmatmul.msk.bf16.gmra.mxu2 %vm688_vm0, %v11546_v31  ;;  %v16167_v61 = vadd.f32 %v15873_v21, %v14474_v59  ;;  %20324 = vmatmul.msk.bf16.gmra.mxu0 %vm688_vm0, %v15443_v16  ;;  %v13495_v43 = vsel %vm13172_vm4, %v13485_v14, %v13494_v51  ;;  %v9185_v31 = vld [vmem:[%s21170_s4 + $0x198] sm:$0xff]  ;;  %v9860_v59 = vrot.slane %v24483_v34, 2  ;;  %v15447_v1 = vsel %vm15376_vm6, %v15444_v37, %v15446_v13 }
 0x7d3   : > { %19955 = vmatmul.msk.bf16.gmra.mxu3 %vm688_vm0, %v13495_v43 }
 0x7d4   : > { %v16606_v20 = vadd.f32 %v24445_v36, %v16167_v61  ;;  %v20915_v61 = vld [vmem:[%s21099_s25 + $0x148] sm:$0xff]  ;;  %v9861_v43 = vsel %vm9790_vm5, %v9858_v39, %v9860_v59 }
 0x7d5   : > { %v11979_v56 = vpop.f32.mrf.mxu2 }
 0x7d6   : > { %v12271_v38 = vadd.f32 %v11979_v56, %v10582_v17  ;;  %v16751_v15 = vmax.f32 %v16606_v20, 0.0  ;;  %v10292_v28 = vpop.f32.mrf.mxu1  ;;  %v24461_v63 = vpop.f32.mrf.mxu3  ;;  %v13506_v17 = vshrl.u32 %v20915_v61, 16  ;;  %v13509_v20 = vshll.u32 %v20915_v61, 16 }
 0x7d7   : > { %v15878_v50 = vpop.f32.mrf.mxu0  ;;  %v10583_v4 = vadd.f32 %v10292_v28, %v9183_v54 }
 0x7d8   : > { %v14475_v41 = vadd.f32 %v24390_v29, %v12271_v38  ;;  %16896 = vst [vmem:[%s21170_s4 + $0x178] sm:$0xff] %v16751_v15  ;;  %v13508_v62 = vrot.slane %v13506_v17, 2 }
 0x7da   : > { %v16168_v46 = vadd.f32 %v15876_v27, %v14475_v41  ;;  %v11549_v27 = vrot.slane %v24486_v49, 2  ;;  %v13511_v41 = vrot.slane %v13509_v20, 3  ;;  %v24558_v20 = vld [vmem:[%s21099_s25 + $0x148] sm:$0xff] }
 0x7dc   : > { %v16607_v30 = vadd.f32 %v24445_v36, %v16168_v46  ;;  %v11550_v38 = vsel %vm9790_vm5, %v11547_v48, %v11549_v27  ;;  %v9186_v46 = vld [vmem:[%s21170_s4 + $0x1a0] sm:$0xff] }
 0x7dd   : > { %v11981_v29 = vpop.f32.mrf.mxu2 }
 0x7de   : > { %v12272_v6 = vadd.f32 %v11981_v29, %v10583_v4  ;;  %v16752_v14 = vmax.f32 %v16607_v30, 0.0  ;;  %v10295_v60 = vpop.f32.mrf.mxu1  ;;  %v24476_v5 = vpop.f32.mrf.mxu3  ;;  %v24516_v29 = vld [vmem:[%s21099_s25 + $0x130] sm:$0xff] }
 0x7df   : > { %v15881_v0 = vpop.f32.mrf.mxu0  ;;  %v10584_v25 = vadd.f32 %v10295_v60, %v9184_v58 }
 0x7e0   : > { %v14476_v47 = vadd.f32 %v24405_v44, %v12272_v6  ;;  %16897 = vst [vmem:[%s21170_s4 + $0x180] sm:$0xff] %v16752_v14  ;;  %v13503_v44 = vor.u32 %v13502_v40, %v13499_v9  ;;  %v24519_v6 = vld [vmem:[%s21099_s25 + $0x140] sm:$0xff]  ;;  %v15448_v40 = vrot.slane %v24525_v24, 3 }
 0x7e1   : > { %19216 = vmatmul.msk.bf16.gmra.mxu1 %vm688_vm0, %v9859_v2 }
 0x7e2   : > { %19583 = vmatmul.msk.bf16.gmra.mxu2 %vm688_vm0, %v11548_v3  ;;  %v16169_v21 = vadd.f32 %v15878_v50, %v14476_v47  ;;  %20325 = vmatmul.msk.bf16.gmra.mxu0 %vm688_vm0, %v15445_v23  ;;  %v13504_v33 = vsel %vm13172_vm4, %v13494_v51, %v13503_v44  ;;  %v9187_v3 = vld [vmem:[%s21170_s4 + $0x1a8] sm:$0xff]  ;;  %v9862_v47 = vrot.slane %v24516_v29, 2  ;;  %v15449_v34 = vsel %vm15376_vm6, %v15446_v13, %v15448_v40 }
 0x7e3   : > { %19956 = vmatmul.msk.bf16.gmra.mxu3 %vm688_vm0, %v13504_v33 }
 0x7e4   : > { %v16608_v57 = vadd.f32 %v24445_v36, %v16169_v21  ;;  %v20916_v21 = vld [vmem:[%s21099_s25 + $0x150] sm:$0xff]  ;;  %v9863_v33 = vsel %vm9790_vm5, %v9860_v59, %v9862_v47 }
 0x7e5   : > { %v11984_v12 = vpop.f32.mrf.mxu2 }
 0x7e6   : > { %v12273_v10 = vadd.f32 %v11984_v12, %v10584_v25  ;;  %v16753_v19 = vmax.f32 %v16608_v57, 0.0  ;;  %v10297_v32 = vpop.f32.mrf.mxu1  ;;  %v24494_v42 = vpop.f32.mrf.mxu3  ;;  %v13515_v25 = vshrl.u32 %v20916_v21, 16  ;;  %v13518_v57 = vshll.u32 %v20916_v21, 16 }
 0x7e7   : > { %v15883_v45 = vpop.f32.mrf.mxu0  ;;  %v10585_v16 = vadd.f32 %v10297_v32, %v9185_v31 }
 0x7e8   : > { %v14477_v18 = vadd.f32 %v24423_v35, %v12273_v10  ;;  %16898 = vst [vmem:[%s21170_s4 + $0x188] sm:$0xff] %v16753_v19  ;;  %v13517_v49 = vrot.slane %v13515_v25, 2 }
 0x7ea   : > { %v16170_v55 = vadd.f32 %v15881_v0, %v14477_v18  ;;  %v11551_v0 = vrot.slane %v24519_v6, 2  ;;  %v13520_v18 = vrot.slane %v13518_v57, 3  ;;  %v24591_v57 = vld [vmem:[%s21099_s25 + $0x150] sm:$0xff] }
 0x7ec   : > { %v16609_v22 = vadd.f32 %v24445_v36, %v16170_v55  ;;  %v11552_v10 = vsel %vm9790_vm5, %v11549_v27, %v11551_v0  ;;  %v9188_v55 = vld [vmem:[%s21170_s4 + $0x1b0] sm:$0xff] }
 0x7ed   : > { %v11986_v35 = vpop.f32.mrf.mxu2 }
 0x7ee   : > { %v12274_v11 = vadd.f32 %v11986_v35, %v10585_v16  ;;  %v16754_v51 = vmax.f32 %v16609_v22, 0.0  ;;  %v10300_v56 = vpop.f32.mrf.mxu1  ;;  %v24509_v26 = vpop.f32.mrf.mxu3  ;;  %v24549_v35 = vld [vmem:[%s21099_s25 + $0x138] sm:$0xff] }
 0x7ef   : > { %v15886_v28 = vpop.f32.mrf.mxu0  ;;  %v10586_v54 = vadd.f32 %v10300_v56, %v9186_v46 }
 0x7f0   : > { %v14478_v15 = vadd.f32 %v24438_v8, %v12274_v11  ;;  %16899 = vst [vmem:[%s21170_s4 + $0x190] sm:$0xff] %v16754_v51  ;;  %v13512_v8 = vor.u32 %v13511_v41, %v13508_v62  ;;  %v24552_v11 = vld [vmem:[%s21099_s25 + $0x148] sm:$0xff]  ;;  %v15450_v41 = vrot.slane %v24558_v20, 3 }
 0x7f1   : > { %19217 = vmatmul.msk.bf16.gmra.mxu1 %vm688_vm0, %v9861_v43 }
 0x7f2   : > { %19584 = vmatmul.msk.bf16.gmra.mxu2 %vm688_vm0, %v11550_v38  ;;  %v16171_v50 = vadd.f32 %v15883_v45, %v14478_v15  ;;  %20326 = vmatmul.msk.bf16.gmra.mxu0 %vm688_vm0, %v15447_v1  ;;  %v13513_v4 = vsel %vm13172_vm4, %v13503_v44, %v13512_v8  ;;  %v9189_v38 = vld [vmem:[%s21170_s4 + $0x1b8] sm:$0xff]  ;;  %v9864_v15 = vrot.slane %v24549_v35, 2  ;;  %v15451_v29 = vsel %vm15376_vm6, %v15448_v40, %v15450_v41 }
 0x7f3   : > { %19957 = vmatmul.msk.bf16.gmra.mxu3 %vm688_vm0, %v13513_v4 }
 0x7f4   : > { %v16610_v39 = vadd.f32 %v24445_v36, %v16171_v50  ;;  %v20917_v50 = vld [vmem:[%s21099_s25 + $0x158] sm:$0xff]  ;;  %v9865_v4 = vsel %vm9790_vm5, %v9862_v47, %v9864_v15 }
 0x7f5   : > { %v11989_v48 = vpop.f32.mrf.mxu2 }
 0x7f6   : > { %v12275_v30 = vadd.f32 %v11989_v48, %v10586_v54  ;;  %v16755_v37 = vmax.f32 %v16610_v39, 0.0  ;;  %v10302_v53 = vpop.f32.mrf.mxu1  ;;  %v24527_v2 = vpop.f32.mrf.mxu3  ;;  %v13524_v54 = vshrl.u32 %v20917_v50, 16  ;;  %v13527_v39 = vshll.u32 %v20917_v50, 16 }
 0x7f7   : > { %v15888_v52 = vpop.f32.mrf.mxu0  ;;  %v10587_v23 = vadd.f32 %v10302_v53, %v9187_v3 }
 0x7f8   : > { %v14479_v14 = vadd.f32 %v24461_v63, %v12275_v30  ;;  %16900 = vst [vmem:[%s21170_s4 + $0x198] sm:$0xff] %v16755_v37  ;;  %v13526_v6 = vrot.slane %v13524_v54, 2 }
 0x7fa   : > { %v16172_v60 = vadd.f32 %v15886_v28, %v14479_v14  ;;  %v11553_v28 = vrot.slane %v24552_v11, 2  ;;  %v13529_v14 = vrot.slane %v13527_v39, 3  ;;  %v24624_v39 = vld [vmem:[%s21099_s25 + $0x158] sm:$0xff] }
 0x7fc   : > { %v16611_v9 = vadd.f32 %v24445_v36, %v16172_v60  ;;  %v11554_v30 = vsel %vm9790_vm5, %v11551_v0, %v11553_v28  ;;  %v9190_v60 = vld [vmem:[%s21170_s4 + $0x1c0] sm:$0xff] }
 0x7fd   : > { %v11991_v63 = vpop.f32.mrf.mxu2 }
 0x7fe   : > { %v12276_v58 = vadd.f32 %v11991_v63, %v10587_v23  ;;  %v16756_v44 = vmax.f32 %v16611_v9, 0.0  ;;  %v10305_v12 = vpop.f32.mrf.mxu1  ;;  %v24542_v7 = vpop.f32.mrf.mxu3  ;;  %v24582_v63 = vld [vmem:[%s21099_s25 + $0x140] sm:$0xff] }
 0x7ff   : > { %v15891_v32 = vpop.f32.mrf.mxu0  ;;  %v10588_v31 = vadd.f32 %v10305_v12, %v9188_v55 }
 0x800   : > { %v14480_v19 = vadd.f32 %v24476_v5, %v12276_v58  ;;  %16901 = vst [vmem:[%s21170_s4 + $0x1a0] sm:$0xff] %v16756_v44  ;;  %v13521_v5 = vor.u32 %v13520_v18, %v13517_v49  ;;  %v24585_v58 = vld [vmem:[%s21099_s25 + $0x150] sm:$0xff]  ;;  %v15452_v18 = vrot.slane %v24591_v57, 3 }
 0x801   : > { %19218 = vmatmul.msk.bf16.gmra.mxu1 %vm688_vm0, %v9863_v33 }
 0x802   : > { %19585 = vmatmul.msk.bf16.gmra.mxu2 %vm688_vm0, %v11552_v10  ;;  %v16173_v45 = vadd.f32 %v15888_v52, %v14480_v19  ;;  %20327 = vmatmul.msk.bf16.gmra.mxu0 %vm688_vm0, %v15449_v34  ;;  %v13522_v16 = vsel %vm13172_vm4, %v13512_v8, %v13521_v5  ;;  %v9191_v10 = vld [vmem:[%s21170_s4 + $0x1c8] sm:$0xff]  ;;  %v9866_v19 = vrot.slane %v24582_v63, 2  ;;  %v15453_v35 = vsel %vm15376_vm6, %v15450_v41, %v15452_v18 }
 0x803   : > { %19958 = vmatmul.msk.bf16.gmra.mxu3 %vm688_vm0, %v13522_v16 }
 0x804   : > { %v16612_v59 = vadd.f32 %v24445_v36, %v16173_v45  ;;  %v20918_v45 = vld [vmem:[%s21099_s25 + $0x160] sm:$0xff]  ;;  %v9867_v16 = vsel %vm9790_vm5, %v9864_v15, %v9866_v19 }
 0x805   : > { %v11994_v27 = vpop.f32.mrf.mxu2 }
 0x806   : > { %v12277_v22 = vadd.f32 %v11994_v27, %v10588_v31  ;;  %v16757_v13 = vmax.f32 %v16612_v59, 0.0  ;;  %v10307_v61 = vpop.f32.mrf.mxu1  ;;  %v24560_v43 = vpop.f32.mrf.mxu3  ;;  %v13533_v31 = vshrl.u32 %v20918_v45, 16  ;;  %v13536_v59 = vshll.u32 %v20918_v45, 16 }
 0x807   : > { %v15893_v17 = vpop.f32.mrf.mxu0  ;;  %v10589_v1 = vadd.f32 %v10307_v61, %v9189_v38 }
 0x808   : > { %v14481_v51 = vadd.f32 %v24494_v42, %v12277_v22  ;;  %16902 = vst [vmem:[%s21170_s4 + $0x1a8] sm:$0xff] %v16757_v13  ;;  %v13535_v11 = vrot.slane %v13533_v31, 2 }
 0x80a   : > { %v16174_v56 = vadd.f32 %v15891_v32, %v14481_v51  ;;  %v11555_v32 = vrot.slane %v24585_v58, 2  ;;  %v13538_v51 = vrot.slane %v13536_v59, 3  ;;  %v24657_v59 = vld [vmem:[%s21099_s25 + $0x160] sm:$0xff] }
 0x80c   : > { %v16613_v62 = vadd.f32 %v24445_v36, %v16174_v56  ;;  %v11556_v22 = vsel %vm9790_vm5, %v11553_v28, %v11555_v32  ;;  %v9192_v56 = vld [vmem:[%s21170_s4 + $0x1d0] sm:$0xff] }
 0x80d   : > { %v11996_v42 = vpop.f32.mrf.mxu2 }
 0x80e   : > { %v12278_v46 = vadd.f32 %v11996_v42, %v10589_v1  ;;  %v16758_v8 = vmax.f32 %v16613_v62, 0.0  ;;  %v10310_v48 = vpop.f32.mrf.mxu1  ;;  %v24575_v24 = vpop.f32.mrf.mxu3  ;;  %v24615_v42 = vld [vmem:[%s21099_s25 + $0x148] sm:$0xff] }
 0x80f   : > { %v15896_v53 = vpop.f32.mrf.mxu0  ;;  %v10590_v3 = vadd.f32 %v10310_v48, %v9190_v60 }
 0x810   : > { %v14482_v37 = vadd.f32 %v24509_v26, %v12278_v46  ;;  %16903 = vst [vmem:[%s21170_s4 + $0x1b0] sm:$0xff] %v16758_v8  ;;  %v13530_v26 = vor.u32 %v13529_v14, %v13526_v6  ;;  %v24618_v46 = vld [vmem:[%s21099_s25 + $0x158] sm:$0xff]  ;;  %v15454_v14 = vrot.slane %v24624_v39, 3 }
 0x811   : > { %19219 = vmatmul.msk.bf16.gmra.mxu1 %vm688_vm0, %v9865_v4 }
 0x812   : > { %19586 = vmatmul.msk.bf16.gmra.mxu2 %vm688_vm0, %v11554_v30  ;;  %v16175_v52 = vadd.f32 %v15893_v17, %v14482_v37  ;;  %20328 = vmatmul.msk.bf16.gmra.mxu0 %vm688_vm0, %v15451_v29  ;;  %v13531_v23 = vsel %vm13172_vm4, %v13521_v5, %v13530_v26  ;;  %v9193_v30 = vld [vmem:[%s21170_s4 + $0x1d8] sm:$0xff]  ;;  %v9868_v37 = vrot.slane %v24615_v42, 2  ;;  %v15455_v63 = vsel %vm15376_vm6, %v15452_v18, %v15454_v14 }
 0x813   : > { %19959 = vmatmul.msk.bf16.gmra.mxu3 %vm688_vm0, %v13531_v23 }
 0x814   : > { %v16614_v47 = vadd.f32 %v24445_v36, %v16175_v52  ;;  %v20919_v52 = vld [vmem:[%s21099_s25 + $0x168] sm:$0xff]  ;;  %v9869_v23 = vsel %vm9790_vm5, %v9866_v19, %v9868_v37 }
 0x815   : > { %v11999_v0 = vpop.f32.mrf.mxu2 }
 0x816   : > { %v12279_v9 = vadd.f32 %v11999_v0, %v10590_v3  ;;  %v16759_v40 = vmax.f32 %v16614_v47, 0.0  ;;  %v10312_v21 = vpop.f32.mrf.mxu1  ;;  %v24593_v33 = vpop.f32.mrf.mxu3  ;;  %v13542_v3 = vshrl.u32 %v20919_v52, 16  ;;  %v13545_v47 = vshll.u32 %v20919_v52, 16 }
 0x817   : > { %v15898_v25 = vpop.f32.mrf.mxu0  ;;  %v10591_v34 = vadd.f32 %v10312_v21, %v9191_v10 }
 0x818   : > { %v14483_v44 = vadd.f32 %v24527_v2, %v12279_v9  ;;  %16904 = vst [vmem:[%s21170_s4 + $0x1b8] sm:$0xff] %v16759_v40  ;;  %v13544_v58 = vrot.slane %v13542_v3, 2 }
 0x81a   : > { %v16176_v12 = vadd.f32 %v15896_v53, %v14483_v44  ;;  %v11557_v53 = vrot.slane %v24618_v46, 2  ;;  %v13547_v44 = vrot.slane %v13545_v47, 3  ;;  %v24690_v47 = vld [vmem:[%s21099_s25 + $0x168] sm:$0xff] }
 0x81c   : > { %v16615_v49 = vadd.f32 %v24445_v36, %v16176_v12  ;;  %v11558_v9 = vsel %vm9790_vm5, %v11555_v32, %v11557_v53  ;;  %v9194_v12 = vld [vmem:[%s21170_s4 + $0x1e0] sm:$0xff] }
 0x81d   : > { %v12001_v2 = vpop.f32.mrf.mxu2 }
 0x81e   : > { %v12280_v55 = vadd.f32 %v12001_v2, %v10591_v34  ;;  %v16760_v5 = vmax.f32 %v16615_v49, 0.0  ;;  %v10315_v27 = vpop.f32.mrf.mxu1  ;;  %v24608_v20 = vpop.f32.mrf.mxu3  ;;  %v24648_v2 = vld [vmem:[%s21099_s25 + $0x150] sm:$0xff] }
 0x81f   : > { %v15901_v61 = vpop.f32.mrf.mxu0  ;;  %v10592_v38 = vadd.f32 %v10315_v27, %v9192_v56 }
 0x820   : > { %v14484_v13 = vadd.f32 %v24542_v7, %v12280_v55  ;;  %16905 = vst [vmem:[%s21170_s4 + $0x1c0] sm:$0xff] %v16760_v5  ;;  %v13539_v7 = vor.u32 %v13538_v51, %v13535_v11  ;;  %v24651_v55 = vld [vmem:[%s21099_s25 + $0x160] sm:$0xff]  ;;  %v15456_v51 = vrot.slane %v24657_v59, 3 }
 0x821   : > { %19220 = vmatmul.msk.bf16.gmra.mxu1 %vm688_vm0, %v9867_v16 }
 0x822   : > { %19587 = vmatmul.msk.bf16.gmra.mxu2 %vm688_vm0, %v11556_v22  ;;  %v16177_v17 = vadd.f32 %v15898_v25, %v14484_v13  ;;  %20329 = vmatmul.msk.bf16.gmra.mxu0 %vm688_vm0, %v15453_v35  ;;  %v13540_v1 = vsel %vm13172_vm4, %v13530_v26, %v13539_v7  ;;  %v9195_v22 = vld [vmem:[%s21170_s4 + $0x1e8] sm:$0xff]  ;;  %v9870_v13 = vrot.slane %v24648_v2, 2  ;;  %v15457_v42 = vsel %vm15376_vm6, %v15454_v14, %v15456_v51 }
 0x823   : > { %19960 = vmatmul.msk.bf16.gmra.mxu3 %vm688_vm0, %v13540_v1 }
 0x824   : > { %v16616_v15 = vadd.f32 %v24445_v36, %v16177_v17  ;;  %v20920_v17 = vld [vmem:[%s21099_s25 + $0x170] sm:$0xff]  ;;  %v9871_v1 = vsel %vm9790_vm5, %v9868_v37, %v9870_v13 }
 0x825   : > { %v12004_v28 = vpop.f32.mrf.mxu2 }
 0x826   : > { %v12281_v62 = vadd.f32 %v12004_v28, %v10592_v38  ;;  %v16761_v41 = vmax.f32 %v16616_v15, 0.0  ;;  %v10317_v50 = vpop.f32.mrf.mxu1  ;;  %v24626_v4 = vpop.f32.mrf.mxu3  ;;  %v13551_v38 = vshrl.u32 %v20920_v17, 16  ;;  %v13554_v15 = vshll.u32 %v20920_v17, 16 }
 0x827   : > { %v15903_v54 = vpop.f32.mrf.mxu0  ;;  %v10593_v29 = vadd.f32 %v10317_v50, %v9193_v30 }
 0x828   : > { %v14485_v8 = vadd.f32 %v24560_v43, %v12281_v62  ;;  %16906 = vst [vmem:[%s21170_s4 + $0x1c8] sm:$0xff] %v16761_v41  ;;  %v13553_v46 = vrot.slane %v13551_v38, 2 }
 0x82a   : > { %v16178_v48 = vadd.f32 %v15901_v61, %v14485_v8  ;;  %v11559_v61 = vrot.slane %v24651_v55, 2  ;;  %v13556_v8 = vrot.slane %v13554_v15, 3  ;;  %v24723_v15 = vld [vmem:[%s21099_s25 + $0x170] sm:$0xff] }
 0x82c   : > { %v16617_v6 = vadd.f32 %v24445_v36, %v16178_v48  ;;  %v11560_v62 = vsel %vm9790_vm5, %v11557_v53, %v11559_v61  ;;  %v9196_v48 = vld [vmem:[%s21170_s4 + $0x1f0] sm:$0xff] }
 0x82d   : > { %v12006_v43 = vpop.f32.mrf.mxu2 }
 0x82e   : > { %v12282_v60 = vadd.f32 %v12006_v43, %v10593_v29  ;;  %v16762_v26 = vmax.f32 %v16617_v6, 0.0  ;;  %v10320_v0 = vpop.f32.mrf.mxu1  ;;  %v24641_v57 = vpop.f32.mrf.mxu3  ;;  %v24681_v43 = vld [vmem:[%s21099_s25 + $0x158] sm:$0xff] }
 0x82f   : > { %v15906_v21 = vpop.f32.mrf.mxu0  ;;  %v10594_v10 = vadd.f32 %v10320_v0, %v9194_v12 }
 0x830   : > { %v14486_v40 = vadd.f32 %v24575_v24, %v12282_v60  ;;  %16907 = vst [vmem:[%s21170_s4 + $0x1d0] sm:$0xff] %v16762_v26  ;;  %v13548_v24 = vor.u32 %v13547_v44, %v13544_v58  ;;  %v24684_v60 = vld [vmem:[%s21099_s25 + $0x168] sm:$0xff]  ;;  %v15458_v44 = vrot.slane %v24690_v47, 3 }
 0x831   : > { %19221 = vmatmul.msk.bf16.gmra.mxu1 %vm688_vm0, %v9869_v23 }
 0x832   : > { %19588 = vmatmul.msk.bf16.gmra.mxu2 %vm688_vm0, %v11558_v9  ;;  %v16179_v25 = vadd.f32 %v15903_v54, %v14486_v40  ;;  %20330 = vmatmul.msk.bf16.gmra.mxu0 %vm688_vm0, %v15455_v63  ;;  %v13549_v34 = vsel %vm13172_vm4, %v13539_v7, %v13548_v24  ;;  %v9197_v9 = vld [vmem:[%s21170_s4 + $0x1f8] sm:$0xff]  ;;  %v9872_v40 = vrot.slane %v24681_v43, 2  ;;  %v15459_v2 = vsel %vm15376_vm6, %v15456_v51, %v15458_v44 }
 0x833   : > { %19961 = vmatmul.msk.bf16.gmra.mxu3 %vm688_vm0, %v13549_v34 }
 0x834   : > { %v16618_v19 = vadd.f32 %v24445_v36, %v16179_v25  ;;  %v20921_v25 = vld [vmem:[%s21099_s25 + $0x178] sm:$0xff]  ;;  %v9873_v34 = vsel %vm9790_vm5, %v9870_v13, %v9872_v40 }
 0x835   : > { %v12009_v32 = vpop.f32.mrf.mxu2 }
 0x836   : > { %v12283_v49 = vadd.f32 %v12009_v32, %v10594_v10  ;;  %v16763_v18 = vmax.f32 %v16618_v19, 0.0  ;;  %v10322_v45 = vpop.f32.mrf.mxu1  ;;  %v24659_v16 = vpop.f32.mrf.mxu3  ;;  %v13560_v10 = vshrl.u32 %v20921_v25, 16  ;;  %v13563_v19 = vshll.u32 %v20921_v25, 16 }
 0x837   : > { %v15908_v31 = vpop.f32.mrf.mxu0  ;;  %v10595_v35 = vadd.f32 %v10322_v45, %v9195_v22 }
 0x838   : > { %v14487_v5 = vadd.f32 %v24593_v33, %v12283_v49  ;;  %16908 = vst [vmem:[%s21170_s4 + $0x1d8] sm:$0xff] %v16763_v18  ;;  %v13562_v55 = vrot.slane %v13560_v10, 2 }
 0x83a   : > { %v16180_v27 = vadd.f32 %v15906_v21, %v14487_v5  ;;  %v11561_v21 = vrot.slane %v24684_v60, 2  ;;  %v13565_v5 = vrot.slane %v13563_v19, 3  ;;  %v24756_v19 = vld [vmem:[%s21099_s25 + $0x178] sm:$0xff] }
 0x83c   : > { %v16619_v11 = vadd.f32 %v24445_v36, %v16180_v27  ;;  %v11562_v49 = vsel %vm9790_vm5, %v11559_v61, %v11561_v21  ;;  %v9198_v27 = vld [vmem:[%s21170_s4 + $0x200] sm:$0xff] }
 0x83d   : > { %v12011_v33 = vpop.f32.mrf.mxu2 }
 0x83e   : > { %v12284_v56 = vadd.f32 %v12011_v33, %v10595_v35  ;;  %v16764_v7 = vmax.f32 %v16619_v11, 0.0  ;;  %v10325_v28 = vpop.f32.mrf.mxu1  ;;  %v24674_v39 = vpop.f32.mrf.mxu3  ;;  %v24714_v33 = vld [vmem:[%s21099_s25 + $0x160] sm:$0xff] }
 0x83f   : > { %v15911_v50 = vpop.f32.mrf.mxu0  ;;  %v10596_v30 = vadd.f32 %v10325_v28, %v9196_v48 }
 0x840   : > { %v14488_v41 = vadd.f32 %v24608_v20, %v12284_v56  ;;  %16909 = vst [vmem:[%s21170_s4 + $0x1e0] sm:$0xff] %v16764_v7  ;;  %v13557_v20 = vor.u32 %v13556_v8, %v13553_v46  ;;  %v24717_v56 = vld [vmem:[%s21099_s25 + $0x170] sm:$0xff]  ;;  %v15460_v8 = vrot.slane %v24723_v15, 3 }
 0x841   : > { %19222 = vmatmul.msk.bf16.gmra.mxu1 %vm688_vm0, %v9871_v1 }
 0x842   : > { %19589 = vmatmul.msk.bf16.gmra.mxu2 %vm688_vm0, %v11560_v62  ;;  %v16181_v54 = vadd.f32 %v15908_v31, %v14488_v41  ;;  %20331 = vmatmul.msk.bf16.gmra.mxu0 %vm688_vm0, %v15457_v42  ;;  %v13558_v29 = vsel %vm13172_vm4, %v13548_v24, %v13557_v20  ;;  %v9199_v62 = vld [vmem:[%s21170_s4 + $0x208] sm:$0xff]  ;;  %v9874_v41 = vrot.slane %v24714_v33, 2  ;;  %v15461_v43 = vsel %vm15376_vm6, %v15458_v44, %v15460_v8 }
 0x843   : > { %19962 = vmatmul.msk.bf16.gmra.mxu3 %vm688_vm0, %v13558_v29 }
 0x844   : > { %v16620_v37 = vadd.f32 %v24445_v36, %v16181_v54  ;;  %v20922_v54 = vld [vmem:[%s21099_s25 + $0x180] sm:$0xff]  ;;  %v9875_v29 = vsel %vm9790_vm5, %v9872_v40, %v9874_v41 }
 0x845   : > { %v12014_v53 = vpop.f32.mrf.mxu2 }
 0x846   : > { %v12285_v6 = vadd.f32 %v12014_v53, %v10596_v30  ;;  %v16765_v14 = vmax.f32 %v16620_v37, 0.0  ;;  %v10327_v52 = vpop.f32.mrf.mxu1  ;;  %v24692_v23 = vpop.f32.mrf.mxu3  ;;  %v13569_v30 = vshrl.u32 %v20922_v54, 16  ;;  %v13572_v37 = vshll.u32 %v20922_v54, 16 }
 0x847   : > { %v15913_v3 = vpop.f32.mrf.mxu0  ;;  %v10597_v63 = vadd.f32 %v10327_v52, %v9197_v9 }
 0x848   : > { %v14489_v26 = vadd.f32 %v24626_v4, %v12285_v6  ;;  %16910 = vst [vmem:[%s21170_s4 + $0x1e8] sm:$0xff] %v16765_v14  ;;  %v13571_v60 = vrot.slane %v13569_v30, 2 }
 0x84a   : > { %v16182_v0 = vadd.f32 %v15911_v50, %v14489_v26  ;;  %v11563_v50 = vrot.slane %v24717_v56, 2  ;;  %v13574_v26 = vrot.slane %v13572_v37, 3  ;;  %v24789_v37 = vld [vmem:[%s21099_s25 + $0x180] sm:$0xff] }
 0x84c   : > { %v16621_v58 = vadd.f32 %v24445_v36, %v16182_v0  ;;  %v11564_v6 = vsel %vm9790_vm5, %v11561_v21, %v11563_v50  ;;  %v9200_v0 = vld [vmem:[%s21170_s4 + $0x210] sm:$0xff] }
 0x84d   : > { %v12016_v4 = vpop.f32.mrf.mxu2 }
 0x84e   : > { %v12286_v12 = vadd.f32 %v12016_v4, %v10597_v63  ;;  %v16766_v24 = vmax.f32 %v16621_v58, 0.0  ;;  %v10330_v32 = vpop.f32.mrf.mxu1  ;;  %v24707_v59 = vpop.f32.mrf.mxu3  ;;  %v24747_v4 = vld [vmem:[%s21099_s25 + $0x168] sm:$0xff] }
 0x84f   : > { %v15916_v45 = vpop.f32.mrf.mxu0  ;;  %v10598_v22 = vadd.f32 %v10330_v32, %v9198_v27 }
 0x850   : > { %v14490_v18 = vadd.f32 %v24641_v57, %v12286_v12  ;;  %16911 = vst [vmem:[%s21170_s4 + $0x1f0] sm:$0xff] %v16766_v24  ;;  %v13566_v57 = vor.u32 %v13565_v5, %v13562_v55  ;;  %v24750_v12 = vld [vmem:[%s21099_s25 + $0x178] sm:$0xff]  ;;  %v15462_v5 = vrot.slane %v24756_v19, 3 }
 0x851   : > { %19223 = vmatmul.msk.bf16.gmra.mxu1 %vm688_vm0, %v9873_v34 }
 0x852   : > { %19590 = vmatmul.msk.bf16.gmra.mxu2 %vm688_vm0, %v11562_v49  ;;  %v16183_v31 = vadd.f32 %v15913_v3, %v14490_v18  ;;  %20332 = vmatmul.msk.bf16.gmra.mxu0 %vm688_vm0, %v15459_v2  ;;  %v13567_v35 = vsel %vm13172_vm4, %v13557_v20, %v13566_v57  ;;  %v9201_v49 = vld [vmem:[%s21170_s4 + $0x218] sm:$0xff]  ;;  %v9876_v18 = vrot.slane %v24747_v4, 2  ;;  %v15463_v33 = vsel %vm15376_vm6, %v15460_v8, %v15462_v5 }
 0x853   : > { %19963 = vmatmul.msk.bf16.gmra.mxu3 %vm688_vm0, %v13567_v35 }
 0x854   : > { %v16622_v13 = vadd.f32 %v24445_v36, %v16183_v31  ;;  %v20923_v31 = vld [vmem:[%s21099_s25 + $0x188] sm:$0xff]  ;;  %v9877_v35 = vsel %vm9790_vm5, %v9874_v41, %v9876_v18 }
 0x855   : > { %v12019_v61 = vpop.f32.mrf.mxu2 }
 0x856   : > { %v12287_v11 = vadd.f32 %v12019_v61, %v10598_v22  ;;  %v16767_v51 = vmax.f32 %v16622_v13, 0.0  ;;  %v10332_v17 = vpop.f32.mrf.mxu1  ;;  %v24725_v1 = vpop.f32.mrf.mxu3  ;;  %v13578_v22 = vshrl.u32 %v20923_v31, 16  ;;  %v13581_v13 = vshll.u32 %v20923_v31, 16 }
 0x857   : > { %v15918_v38 = vpop.f32.mrf.mxu0  ;;  %v10599_v42 = vadd.f32 %v10332_v17, %v9199_v62 }
 0x858   : > { %v14491_v7 = vadd.f32 %v24659_v16, %v12287_v11  ;;  %16912 = vst [vmem:[%s21170_s4 + $0x1f8] sm:$0xff] %v16767_v51  ;;  %v13580_v56 = vrot.slane %v13578_v22, 2 }
 0x85a   : > { %v16184_v28 = vadd.f32 %v15916_v45, %v14491_v7  ;;  %v11565_v45 = vrot.slane %v24750_v12, 2  ;;  %v13583_v7 = vrot.slane %v13581_v13, 3  ;;  %v24822_v13 = vld [vmem:[%s21099_s25 + $0x188] sm:$0xff] }
 0x85c   : > { %v16623_v46 = vadd.f32 %v24445_v36, %v16184_v28  ;;  %v11566_v11 = vsel %vm9790_vm5, %v11563_v50, %v11565_v45  ;;  %v9202_v28 = vld [vmem:[%s21170_s4 + $0x220] sm:$0xff] }
 0x85d   : > { %v12021_v16 = vpop.f32.mrf.mxu2 }
 0x85e   : > { %v12288_v48 = vadd.f32 %v12021_v16, %v10599_v42  ;;  %v16768_v20 = vmax.f32 %v16623_v46, 0.0  ;;  %v10335_v53 = vpop.f32.mrf.mxu1  ;;  %v24740_v47 = vpop.f32.mrf.mxu3  ;;  %v24780_v16 = vld [vmem:[%s21099_s25 + $0x170] sm:$0xff] }
 0x85f   : > { %v15921_v52 = vpop.f32.mrf.mxu0  ;;  %v10600_v9 = vadd.f32 %v10335_v53, %v9200_v0 }
 0x860   : > { %v14492_v14 = vadd.f32 %v24674_v39, %v12288_v48  ;;  %16913 = vst [vmem:[%s21170_s4 + $0x200] sm:$0xff] %v16768_v20  ;;  %v13575_v39 = vor.u32 %v13574_v26, %v13571_v60  ;;  %v24783_v48 = vld [vmem:[%s21099_s25 + $0x180] sm:$0xff]  ;;  %v15464_v26 = vrot.slane %v24789_v37, 3 }
 0x861   : > { %19224 = vmatmul.msk.bf16.gmra.mxu1 %vm688_vm0, %v9875_v29  ;;  %v9206_v37 = vld [vmem:[%s21170_s4 + $0x240] sm:$0xff] }
 0x862   : > { %19591 = vmatmul.msk.bf16.gmra.mxu2 %vm688_vm0, %v11564_v6  ;;  %v16185_v3 = vadd.f32 %v15918_v38, %v14492_v14  ;;  %20333 = vmatmul.msk.bf16.gmra.mxu0 %vm688_vm0, %v15461_v43  ;;  %v13576_v63 = vsel %vm13172_vm4, %v13566_v57, %v13575_v39  ;;  %v9203_v6 = vld [vmem:[%s21170_s4 + $0x228] sm:$0xff]  ;;  %v9878_v14 = vrot.slane %v24780_v16, 2  ;;  %v15465_v4 = vsel %vm15376_vm6, %v15462_v5, %v15464_v26 }
 0x863   : > { %19964 = vmatmul.msk.bf16.gmra.mxu3 %vm688_vm0, %v13576_v63 }
 0x864   : > { %v16624_v40 = vadd.f32 %v24445_v36, %v16185_v3  ;;  %v20924_v3 = vld [vmem:[%s21099_s25 + $0x190] sm:$0xff]  ;;  %v9879_v63 = vsel %vm9790_vm5, %v9876_v18, %v9878_v14 }
 0x865   : > { %v12024_v21 = vpop.f32.mrf.mxu2 }
 0x866   : > { %v12289_v58 = vadd.f32 %v12024_v21, %v10600_v9  ;;  %v16769_v44 = vmax.f32 %v16624_v40, 0.0  ;;  %v10337_v25 = vpop.f32.mrf.mxu1  ;;  %v24758_v34 = vpop.f32.mrf.mxu3  ;;  %v13587_v9 = vshrl.u32 %v20924_v3, 16  ;;  %v13590_v40 = vshll.u32 %v20924_v3, 16 }
 0x867   : > { %v15923_v10 = vpop.f32.mrf.mxu0  ;;  %v10601_v2 = vadd.f32 %v10337_v25, %v9201_v49 }
 0x868   : > { %v14493_v24 = vadd.f32 %v24692_v23, %v12289_v58  ;;  %16914 = vst [vmem:[%s21170_s4 + $0x208] sm:$0xff] %v16769_v44  ;;  %v13589_v12 = vrot.slane %v13587_v9, 2 }
 0x86a   : > { %v16186_v32 = vadd.f32 %v15921_v52, %v14493_v24  ;;  %v11567_v52 = vrot.slane %v24783_v48, 2  ;;  %v13592_v24 = vrot.slane %v13590_v40, 3  ;;  %v24860_v40 = vld [vmem:[%s21099_s25 + $0x190] sm:$0xff] }
 0x86c   : > { %v16625_v55 = vadd.f32 %v24445_v36, %v16186_v32  ;;  %v11568_v58 = vsel %vm9790_vm5, %v11565_v45, %v11567_v52  ;;  %v9204_v32 = vld [vmem:[%s21170_s4 + $0x230] sm:$0xff] }
 0x86d   : > { %v12026_v23 = vpop.f32.mrf.mxu2 }
 0x86e   : > { %v12290_v27 = vadd.f32 %v12026_v23, %v10601_v2  ;;  %v16770_v57 = vmax.f32 %v16625_v55, 0.0  ;;  %v10340_v61 = vpop.f32.mrf.mxu1  ;;  %v24773_v15 = vpop.f32.mrf.mxu3  ;;  %v24813_v23 = vld [vmem:[%s21099_s25 + $0x178] sm:$0xff] }
 0x86f   : > { %v15926_v17 = vpop.f32.mrf.mxu0  ;;  %v10602_v62 = vadd.f32 %v10340_v61, %v9202_v28 }
 0x870   : > { %v14494_v51 = vadd.f32 %v24707_v59, %v12290_v27  ;;  %16915 = vst [vmem:[%s21170_s4 + $0x210] sm:$0xff] %v16770_v57  ;;  %v13584_v59 = vor.u32 %v13583_v7, %v13580_v56  ;;  %v24816_v27 = vld [vmem:[%s21099_s25 + $0x188] sm:$0xff]  ;;  %v15466_v7 = vrot.slane %v24822_v13, 3 }
 0x871   : > { %19225 = vmatmul.msk.bf16.gmra.mxu1 %vm688_vm0, %v9877_v35 }
 0x872   : > { %19592 = vmatmul.msk.bf16.gmra.mxu2 %vm688_vm0, %v11566_v11  ;;  %v16187_v38 = vadd.f32 %v15923_v10, %v14494_v51  ;;  %20334 = vmatmul.msk.bf16.gmra.mxu0 %vm688_vm0, %v15463_v33  ;;  %v13585_v42 = vsel %vm13172_vm4, %v13575_v39, %v13584_v59  ;;  %v9205_v11 = vld [vmem:[%s21170_s4 + $0x238] sm:$0xff]  ;;  %v9880_v51 = vrot.slane %v24813_v23, 2 }
 0x873   : > { %19965 = vmatmul.msk.bf16.gmra.mxu3 %vm688_vm0, %v13585_v42 }
 0x874   : > { %v16626_v41 = vadd.f32 %v24445_v36, %v16187_v38  ;;  %v20925_v38 = vld [vmem:[%s21099_s25 + $0x198] sm:$0xff]  ;;  %v9881_v42 = vsel %vm9790_vm5, %v9878_v14, %v9880_v51 }
 0x875   : > { %v12029_v50 = vpop.f32.mrf.mxu2 }
 0x876   : > { %v12291_v46 = vadd.f32 %v12029_v50, %v10602_v62  ;;  %v16771_v8 = vmax.f32 %v16626_v41, 0.0  ;;  %v10342_v54 = vpop.f32.mrf.mxu1  ;;  %v24791_v29 = vpop.f32.mrf.mxu3  ;;  %v13596_v62 = vshrl.u32 %v20925_v38, 16  ;;  %v13599_v41 = vshll.u32 %v20925_v38, 16 }
 0x877   : > { %v15928_v30 = vpop.f32.mrf.mxu0  ;;  %v10603_v43 = vadd.f32 %v10342_v54, %v9203_v6  ;;  %v24846_v6 = vld [vmem:[%s25808_s2] ss:$0 sm:$0xff] }
 0x878   : > { %v14495_v20 = vadd.f32 %v24725_v1, %v12291_v46  ;;  %16916 = vst [vmem:[%s21170_s4 + $0x218] sm:$0xff] %v16771_v8  ;;  %v13598_v16 = vrot.slane %v13596_v62, 2  ;;  %v13601_v48 = vrot.slane %v13599_v41, 3  ;;  %v24893_v41 = vld [vmem:[%s21099_s25 + $0x198] sm:$0xff] }
 0x87a   : > { %v16188_v53 = vadd.f32 %v15926_v17, %v14495_v20  ;;  %v11569_v17 = vrot.slane %v24816_v27, 2 }
 0x87c   : > { %v16627_v60 = vadd.f32 %v24445_v36, %v16188_v53  ;;  %v11570_v46 = vsel %vm9790_vm5, %v11567_v52, %v11569_v17 }
 0x87d   : > { %v12031_v1 = vpop.f32.mrf.mxu2 }
 0x87e   : > { %v12292_v0 = vadd.f32 %v12031_v1, %v10603_v43  ;;  %v16772_v39 = vmax.f32 %v16627_v60, 0.0  ;;  %v10345_v21 = vpop.f32.mrf.mxu1  ;;  %v24806_v19 = vpop.f32.mrf.mxu3  ;;  %v24851_v1 = vld [vmem:[%s21099_s25 + $0x180] sm:$0xff] }
 0x87f   : > { %v15931_v25 = vpop.f32.mrf.mxu0  ;;  %v10604_v49 = vadd.f32 %v10345_v21, %v9204_v32 }
 0x880   : > { %v14496_v44 = vadd.f32 %v24740_v47, %v12292_v0  ;;  %16917 = vst [vmem:[%s21170_s4 + $0x220] sm:$0xff] %v16772_v39  ;;  %v13593_v47 = vor.u32 %v13592_v24, %v13589_v12  ;;  %v24854_v0 = vld [vmem:[%s21099_s25 + $0x190] sm:$0xff]  ;;  %v15468_v24 = vrot.slane %v24860_v40, 3 }
 0x881   : > { %19226 = vmatmul.msk.bf16.gmra.mxu1 %vm688_vm0, %v9879_v63 }
 0x882   : > { %19593 = vmatmul.msk.bf16.gmra.mxu2 %vm688_vm0, %v11568_v58  ;;  %v16189_v10 = vadd.f32 %v15928_v30, %v14496_v44  ;;  %20335 = vmatmul.msk.bf16.gmra.mxu0 %vm688_vm0, %v15465_v4  ;;  %v13594_v2 = vsel %vm13172_vm4, %v13584_v59, %v13593_v47  ;;  %v9207_v58 = vld [vmem:[%s21170_s4 + $0x248] sm:$0xff]  ;;  %v9882_v44 = vrot.slane %v24851_v1, 2  ;;  %v15469_v23 = vsel %vm15376_vm6, %v15466_v7, %v15468_v24 }
 0x883   : > { %19966 = vmatmul.msk.bf16.gmra.mxu3 %vm688_vm0, %v13594_v2 }
 0x884   : > { %v16628_v18 = vadd.f32 %v24445_v36, %v16189_v10  ;;  %v20926_v10 = vld [vmem:[%s21099_s25 + $0x1a0] sm:$0xff]  ;;  %v9883_v2 = vsel %vm9790_vm5, %v9880_v51, %v9882_v44 }
 0x885   : > { %v12034_v45 = vpop.f32.mrf.mxu2 }
 0x886   : > { %v12293_v55 = vadd.f32 %v12034_v45, %v10604_v49  ;;  %v16773_v5 = vmax.f32 %v16628_v18, 0.0  ;;  %v10347_v31 = vpop.f32.mrf.mxu1  ;;  %v24824_v35 = vpop.f32.mrf.mxu3  ;;  %v13605_v49 = vshrl.u32 %v20926_v10, 16  ;;  %v13608_v18 = vshll.u32 %v20926_v10, 16 }
 0x887   : > { %v15933_v22 = vpop.f32.mrf.mxu0  ;;  %v10605_v33 = vadd.f32 %v10347_v31, %v9205_v11 }
 0x888   : > { %v14497_v57 = vadd.f32 %v24758_v34, %v12293_v55  ;;  %16918 = vst [vmem:[%s21170_s4 + $0x228] sm:$0xff] %v16773_v5  ;;  %v13607_v27 = vrot.slane %v13605_v49, 2 }
 0x88a   : > { %v16190_v61 = vadd.f32 %v15931_v25, %v14497_v57  ;;  %v11571_v25 = vrot.slane %v24854_v0, 2  ;;  %v13610_v57 = vrot.slane %v13608_v18, 3  ;;  %v24926_v18 = vld [vmem:[%s21099_s25 + $0x1a0] sm:$0xff] }
 0x88c   : > { %v16629_v56 = vadd.f32 %v24445_v36, %v16190_v61  ;;  %v15467_v36 = vsel %vm15376_vm6, %v15464_v26, %v15466_v7  ;;  %v11572_v55 = vsel %vm9790_vm5, %v11569_v17, %v11571_v25  ;;  %v9208_v61 = vld [vmem:[%s21170_s4 + $0x250] sm:$0xff] }
 0x88d   : > { %v12036_v34 = vpop.f32.mrf.mxu2 }
 0x88e   : > { %v12294_v28 = vadd.f32 %v12036_v34, %v10605_v33  ;;  %v16774_v59 = vmax.f32 %v16629_v56, 0.0  ;;  %v10350_v50 = vpop.f32.mrf.mxu1  ;;  %v24839_v30 = vpop.f32.mrf.mxu3  ;;  %v24884_v34 = vld [vmem:[%s21099_s25 + $0x188] sm:$0xff] }
 0x88f   : > { %v15936_v54 = vpop.f32.mrf.mxu0  ;;  %v10606_v53 = vadd.f32 %v10350_v50, %v9206_v37 }
 0x890   : > { %v14498_v8 = vadd.f32 %v24773_v15, %v12294_v28  ;;  %16919 = vst [vmem:[%s21170_s4 + $0x230] sm:$0xff] %v16774_v59  ;;  %v13602_v15 = vor.u32 %v13601_v48, %v13598_v16  ;;  %v24887_v28 = vld [vmem:[%s21099_s25 + $0x198] sm:$0xff]  ;;  %v15470_v48 = vrot.slane %v24893_v41, 3 }
 0x891   : > { %19227 = vmatmul.msk.bf16.gmra.mxu1 %vm688_vm0, %v9881_v42 }
 0x892   : > { %19594 = vmatmul.msk.bf16.gmra.mxu2 %vm688_vm0, %v11570_v46  ;;  %v16191_v20 = vadd.f32 %v15933_v22, %v14498_v8  ;;  %20336 = vmatmul.msk.bf16.gmra.mxu0 %vm688_vm0, %v15467_v36  ;;  %v13603_v43 = vsel %vm13172_vm4, %v13593_v47, %v13602_v15  ;;  %v9209_v46 = vld [vmem:[%s21170_s4 + $0x258] sm:$0xff]  ;;  %v9884_v8 = vrot.slane %v24884_v34, 2  ;;  %v15471_v1 = vsel %vm15376_vm6, %v15468_v24, %v15470_v48 }
 0x893   : > { %19967 = vmatmul.msk.bf16.gmra.mxu3 %vm688_vm0, %v13603_v43 }
 0x894   : > { %v16630_v14 = vadd.f32 %v24846_v6, %v16191_v20  ;;  %v20927_v20 = vld [vmem:[%s21099_s25 + $0x1a8] sm:$0xff]  ;;  %v9885_v43 = vsel %vm9790_vm5, %v9882_v44, %v9884_v8 }
 0x895   : > { %v12039_v52 = vpop.f32.mrf.mxu2 }
 0x896   : > { %v12295_v60 = vadd.f32 %v12039_v52, %v10606_v53  ;;  %v16775_v26 = vmax.f32 %v16630_v14, 0.0  ;;  %v10352_v3 = vpop.f32.mrf.mxu1  ;;  %v24862_v63 = vpop.f32.mrf.mxu3  ;;  %v13614_v53 = vshrl.u32 %v20927_v20, 16  ;;  %v13617_v14 = vshll.u32 %v20927_v20, 16 }
 0x897   : > { %v15938_v9 = vpop.f32.mrf.mxu0  ;;  %v10607_v4 = vadd.f32 %v10352_v3, %v9207_v58 }
 0x898   : > { %v14499_v39 = vadd.f32 %v24791_v29, %v12295_v60  ;;  %16920 = vst [vmem:[%s21170_s4 + $0x238] sm:$0xff] %v16775_v26  ;;  %v13616_v0 = vrot.slane %v13614_v53, 2 }
 0x89a   : > { %v16192_v21 = vadd.f32 %v15936_v54, %v14499_v39  ;;  %v11573_v54 = vrot.slane %v24887_v28, 2  ;;  %v13619_v39 = vrot.slane %v13617_v14, 3  ;;  %v24959_v14 = vld [vmem:[%s21099_s25 + $0x1a8] sm:$0xff] }
 0x89c   : > { %v16631_v12 = vadd.f32 %v24846_v6, %v16192_v21  ;;  %v11574_v60 = vsel %vm9790_vm5, %v11571_v25, %v11573_v54  ;;  %v9210_v21 = vld [vmem:[%s21170_s4 + $0x260] sm:$0xff] }
 0x89d   : > { %v12041_v29 = vpop.f32.mrf.mxu2 }
 0x89e   : > { %v12296_v32 = vadd.f32 %v12041_v29, %v10607_v4  ;;  %v16776_v47 = vmax.f32 %v16631_v12, 0.0  ;;  %v10355_v45 = vpop.f32.mrf.mxu1  ;;  %v24877_v13 = vpop.f32.mrf.mxu3  ;;  %v24917_v29 = vld [vmem:[%s21099_s25 + $0x190] sm:$0xff] }
 0x89f   : > { %v15941_v31 = vpop.f32.mrf.mxu0  ;;  %v10608_v11 = vadd.f32 %v10355_v45, %v9208_v61 }
 0x8a0   : > { %v14500_v5 = vadd.f32 %v24806_v19, %v12296_v32  ;;  %16921 = vst [vmem:[%s21170_s4 + $0x240] sm:$0xff] %v16776_v47  ;;  %v13611_v19 = vor.u32 %v13610_v57, %v13607_v27  ;;  %v24920_v32 = vld [vmem:[%s21099_s25 + $0x1a0] sm:$0xff]  ;;  %v15472_v57 = vrot.slane %v24926_v18, 3 }
 0x8a1   : > { %19228 = vmatmul.msk.bf16.gmra.mxu1 %vm688_vm0, %v9883_v2 }
 0x8a2   : > { %19595 = vmatmul.msk.bf16.gmra.mxu2 %vm688_vm0, %v11572_v55  ;;  %v16193_v22 = vadd.f32 %v15938_v9, %v14500_v5  ;;  %20337 = vmatmul.msk.bf16.gmra.mxu0 %vm688_vm0, %v15469_v23  ;;  %v13612_v33 = vsel %vm13172_vm4, %v13602_v15, %v13611_v19  ;;  %v9211_v55 = vld [vmem:[%s21170_s4 + $0x268] sm:$0xff]  ;;  %v9886_v5 = vrot.slane %v24917_v29, 2  ;;  %v15473_v34 = vsel %vm15376_vm6, %v15470_v48, %v15472_v57 }
 0x8a3   : > { %19968 = vmatmul.msk.bf16.gmra.mxu3 %vm688_vm0, %v13612_v33 }
 0x8a4   : > { %v16632_v51 = vadd.f32 %v24846_v6, %v16193_v22  ;;  %v20928_v22 = vld [vmem:[%s21099_s25 + $0x1b0] sm:$0xff]  ;;  %v9887_v33 = vsel %vm9790_vm5, %v9884_v8, %v9886_v5 }
 0x8a5   : > { %v12044_v17 = vpop.f32.mrf.mxu2 }
 0x8a6   : > { %v12297_v56 = vadd.f32 %v12044_v17, %v10608_v11  ;;  %v16777_v7 = vmax.f32 %v16632_v51, 0.0  ;;  %v10357_v38 = vpop.f32.mrf.mxu1  ;;  %v24895_v42 = vpop.f32.mrf.mxu3  ;;  %v13623_v11 = vshrl.u32 %v20928_v22, 16  ;;  %v13626_v51 = vshll.u32 %v20928_v22, 16 }
 0x8a7   : > { %v15943_v62 = vpop.f32.mrf.mxu0  ;;  %v10609_v36 = vadd.f32 %v10357_v38, %v9209_v46 }
 0x8a8   : > { %v14501_v59 = vadd.f32 %v24824_v35, %v12297_v56  ;;  %16922 = vst [vmem:[%s21170_s4 + $0x248] sm:$0xff] %v16777_v7  ;;  %v13625_v28 = vrot.slane %v13623_v11, 2 }
 0x8aa   : > { %v16194_v50 = vadd.f32 %v15941_v31, %v14501_v59  ;;  %v11575_v31 = vrot.slane %v24920_v32, 2  ;;  %v13628_v59 = vrot.slane %v13626_v51, 3  ;;  %v24992_v51 = vld [vmem:[%s21099_s25 + $0x1b0] sm:$0xff] }
 0x8ac   : > { %v16633_v16 = vadd.f32 %v24846_v6, %v16194_v50  ;;  %v11576_v56 = vsel %vm9790_vm5, %v11573_v54, %v11575_v31  ;;  %v9212_v50 = vld [vmem:[%s21170_s4 + $0x270] sm:$0xff] }
 0x8ad   : > { %v12046_v35 = vpop.f32.mrf.mxu2 }
 0x8ae   : > { %v12298_v37 = vadd.f32 %v12046_v35, %v10609_v36  ;;  %v16778_v15 = vmax.f32 %v16633_v16, 0.0  ;;  %v10360_v52 = vpop.f32.mrf.mxu1  ;;  %v24910_v40 = vpop.f32.mrf.mxu3  ;;  %v24950_v35 = vld [vmem:[%s21099_s25 + $0x198] sm:$0xff] }
 0x8af   : > { %v15946_v3 = vpop.f32.mrf.mxu0  ;;  %v10610_v58 = vadd.f32 %v10360_v52, %v9210_v21 }
 0x8b0   : > { %v14502_v26 = vadd.f32 %v24839_v30, %v12298_v37  ;;  %16923 = vst [vmem:[%s21170_s4 + $0x250] sm:$0xff] %v16778_v15  ;;  %v13620_v30 = vor.u32 %v13619_v39, %v13616_v0  ;;  %v24953_v37 = vld [vmem:[%s21099_s25 + $0x1a8] sm:$0xff]  ;;  %v15474_v39 = vrot.slane %v24959_v14, 3 }
 0x8b1   : > { %19229 = vmatmul.msk.bf16.gmra.mxu1 %vm688_vm0, %v9885_v43 }
 0x8b2   : > { %19596 = vmatmul.msk.bf16.gmra.mxu2 %vm688_vm0, %v11574_v60  ;;  %v16195_v9 = vadd.f32 %v15943_v62, %v14502_v26  ;;  %20338 = vmatmul.msk.bf16.gmra.mxu0 %vm688_vm0, %v15471_v1  ;;  %v13621_v4 = vsel %vm13172_vm4, %v13611_v19, %v13620_v30  ;;  %v9213_v60 = vld [vmem:[%s21170_s4 + $0x278] sm:$0xff]  ;;  %v9888_v26 = vrot.slane %v24950_v35, 2  ;;  %v15475_v29 = vsel %vm15376_vm6, %v15472_v57, %v15474_v39 }
 0x8b3   : > { %19969 = vmatmul.msk.bf16.gmra.mxu3 %vm688_vm0, %v13621_v4 }
 0x8b4   : > { %v16634_v44 = vadd.f32 %v24846_v6, %v16195_v9  ;;  %v20929_v9 = vld [vmem:[%s21099_s25 + $0x1b8] sm:$0xff]  ;;  %v9889_v4 = vsel %vm9790_vm5, %v9886_v5, %v9888_v26 }
 0x8b5   : > { %v12049_v25 = vpop.f32.mrf.mxu2 }
 0x8b6   : > { %v12299_v12 = vadd.f32 %v12049_v25, %v10610_v58  ;;  %v16779_v24 = vmax.f32 %v16634_v44, 0.0  ;;  %v10362_v10 = vpop.f32.mrf.mxu1  ;;  %v24928_v2 = vpop.f32.mrf.mxu3  ;;  %v13632_v58 = vshrl.u32 %v20929_v9, 16  ;;  %v13635_v44 = vshll.u32 %v20929_v9, 16 }
 0x8b7   : > { %v15948_v49 = vpop.f32.mrf.mxu0  ;;  %v10611_v23 = vadd.f32 %v10362_v10, %v9211_v55 }
 0x8b8   : > { %v14503_v47 = vadd.f32 %v24862_v63, %v12299_v12  ;;  %16924 = vst [vmem:[%s21170_s4 + $0x258] sm:$0xff] %v16779_v24  ;;  %v13634_v32 = vrot.slane %v13632_v58, 2 }
 0x8ba   : > { %v16196_v45 = vadd.f32 %v15946_v3, %v14503_v47  ;;  %v11577_v3 = vrot.slane %v24953_v37, 2  ;;  %v13637_v47 = vrot.slane %v13635_v44, 3  ;;  %v25025_v44 = vld [vmem:[%s21099_s25 + $0x1b8] sm:$0xff] }
 0x8bc   : > { %v16635_v27 = vadd.f32 %v24846_v6, %v16196_v45  ;;  %v11578_v12 = vsel %vm9790_vm5, %v11575_v31, %v11577_v3  ;;  %v9214_v45 = vld [vmem:[%s21170_s4 + $0x280] sm:$0xff] }
 0x8bd   : > { %v12051_v63 = vpop.f32.mrf.mxu2 }
 0x8be   : > { %v12300_v61 = vadd.f32 %v12051_v63, %v10611_v23  ;;  %v16780_v19 = vmax.f32 %v16635_v27, 0.0  ;;  %v10365_v17 = vpop.f32.mrf.mxu1  ;;  %v24943_v41 = vpop.f32.mrf.mxu3  ;;  %v24983_v63 = vld [vmem:[%s21099_s25 + $0x1a0] sm:$0xff] }
 0x8bf   : > { %v15951_v38 = vpop.f32.mrf.mxu0  ;;  %v10612_v46 = vadd.f32 %v10365_v17, %v9212_v50 }
 0x8c0   : > { %v14504_v7 = vadd.f32 %v24877_v13, %v12300_v61  ;;  %16925 = vst [vmem:[%s21170_s4 + $0x260] sm:$0xff] %v16780_v19  ;;  %v13629_v13 = vor.u32 %v13628_v59, %v13625_v28  ;;  %v24986_v61 = vld [vmem:[%s21099_s25 + $0x1b0] sm:$0xff]  ;;  %v15476_v59 = vrot.slane %v24992_v51, 3 }
 0x8c1   : > { %19230 = vmatmul.msk.bf16.gmra.mxu1 %vm688_vm0, %v9887_v33 }
 0x8c2   : > { %19597 = vmatmul.msk.bf16.gmra.mxu2 %vm688_vm0, %v11576_v56  ;;  %v16197_v62 = vadd.f32 %v15948_v49, %v14504_v7  ;;  %20339 = vmatmul.msk.bf16.gmra.mxu0 %vm688_vm0, %v15473_v34  ;;  %v13630_v36 = vsel %vm13172_vm4, %v13620_v30, %v13629_v13  ;;  %v9215_v56 = vld [vmem:[%s21170_s4 + $0x288] sm:$0xff]  ;;  %v9890_v7 = vrot.slane %v24983_v63, 2  ;;  %v15477_v35 = vsel %vm15376_vm6, %v15474_v39, %v15476_v59 }
 0x8c3   : > { %19970 = vmatmul.msk.bf16.gmra.mxu3 %vm688_vm0, %v13630_v36 }
 0x8c4   : > { %v16636_v8 = vadd.f32 %v24846_v6, %v16197_v62  ;;  %v20930_v62 = vld [vmem:[%s21099_s25 + $0x1c0] sm:$0xff]  ;;  %v9891_v36 = vsel %vm9790_vm5, %v9888_v26, %v9890_v7 }
 0x8c5   : > { %v12054_v54 = vpop.f32.mrf.mxu2 }
 0x8c6   : > { %v12301_v16 = vadd.f32 %v12054_v54, %v10612_v46  ;;  %v16781_v48 = vmax.f32 %v16636_v8, 0.0  ;;  %v10367_v20 = vpop.f32.mrf.mxu1  ;;  %v24961_v43 = vpop.f32.mrf.mxu3  ;;  %v13641_v46 = vshrl.u32 %v20930_v62, 16  ;;  %v13644_v8 = vshll.u32 %v20930_v62, 16 }
 0x8c7   : > { %v15953_v53 = vpop.f32.mrf.mxu0  ;;  %v10613_v1 = vadd.f32 %v10367_v20, %v9213_v60 }
 0x8c8   : > { %v14505_v15 = vadd.f32 %v24895_v42, %v12301_v16  ;;  %16926 = vst [vmem:[%s21170_s4 + $0x268] sm:$0xff] %v16781_v48  ;;  %v13643_v37 = vrot.slane %v13641_v46, 2 }
 0x8ca   : > { %v16198_v52 = vadd.f32 %v15951_v38, %v14505_v15  ;;  %v11579_v38 = vrot.slane %v24986_v61, 2  ;;  %v13646_v15 = vrot.slane %v13644_v8, 3  ;;  %v25058_v8 = vld [vmem:[%s21099_s25 + $0x1c0] sm:$0xff] }
 0x8cc   : > { %v16637_v0 = vadd.f32 %v24846_v6, %v16198_v52  ;;  %v11580_v16 = vsel %vm9790_vm5, %v11577_v3, %v11579_v38  ;;  %v9216_v52 = vld [vmem:[%s21170_s4 + $0x290] sm:$0xff] }
 0x8cd   : > { %v12056_v42 = vpop.f32.mrf.mxu2 }
 0x8ce   : > { %v12302_v21 = vadd.f32 %v12056_v42, %v10613_v1  ;;  %v16782_v30 = vmax.f32 %v16637_v0, 0.0  ;;  %v10370_v25 = vpop.f32.mrf.mxu1  ;;  %v24976_v18 = vpop.f32.mrf.mxu3  ;;  %v25016_v42 = vld [vmem:[%s21099_s25 + $0x1a8] sm:$0xff] }
 0x8cf   : > { %v15956_v10 = vpop.f32.mrf.mxu0  ;;  %v10614_v55 = vadd.f32 %v10370_v25, %v9214_v45 }
 0x8d0   : > { %v14506_v24 = vadd.f32 %v24910_v40, %v12302_v21  ;;  %16927 = vst [vmem:[%s21170_s4 + $0x270] sm:$0xff] %v16782_v30  ;;  %v13638_v40 = vor.u32 %v13637_v47, %v13634_v32  ;;  %v25019_v21 = vld [vmem:[%s21099_s25 + $0x1b8] sm:$0xff]  ;;  %v15478_v47 = vrot.slane %v25025_v44, 3 }
 0x8d1   : > { %19231 = vmatmul.msk.bf16.gmra.mxu1 %vm688_vm0, %v9889_v4 }
 0x8d2   : > { %19598 = vmatmul.msk.bf16.gmra.mxu2 %vm688_vm0, %v11578_v12  ;;  %v16199_v49 = vadd.f32 %v15953_v53, %v14506_v24  ;;  %20340 = vmatmul.msk.bf16.gmra.mxu0 %vm688_vm0, %v15475_v29  ;;  %v13639_v23 = vsel %vm13172_vm4, %v13629_v13, %v13638_v40  ;;  %v9217_v12 = vld [vmem:[%s21170_s4 + $0x298] sm:$0xff]  ;;  %v9892_v24 = vrot.slane %v25016_v42, 2  ;;  %v15479_v63 = vsel %vm15376_vm6, %v15476_v59, %v15478_v47 }
 0x8d3   : > { %19971 = vmatmul.msk.bf16.gmra.mxu3 %vm688_vm0, %v13639_v23 }
 0x8d4   : > { %v16638_v5 = vadd.f32 %v24846_v6, %v16199_v49  ;;  %v20931_v49 = vld [vmem:[%s21099_s25 + $0x1c8] sm:$0xff]  ;;  %v9893_v23 = vsel %vm9790_vm5, %v9890_v7, %v9892_v24 }
 0x8d5   : > { %v12059_v31 = vpop.f32.mrf.mxu2 }
 0x8d6   : > { %v12303_v27 = vadd.f32 %v12059_v31, %v10614_v55  ;;  %v16783_v57 = vmax.f32 %v16638_v5, 0.0  ;;  %v10372_v22 = vpop.f32.mrf.mxu1  ;;  %v24994_v33 = vpop.f32.mrf.mxu3  ;;  %v13650_v55 = vshrl.u32 %v20931_v49, 16  ;;  %v13653_v5 = vshll.u32 %v20931_v49, 16 }
 0x8d7   : > { %v15958_v11 = vpop.f32.mrf.mxu0  ;;  %v10615_v34 = vadd.f32 %v10372_v22, %v9215_v56 }
 0x8d8   : > { %v14507_v19 = vadd.f32 %v24928_v2, %v12303_v27  ;;  %16928 = vst [vmem:[%s21170_s4 + $0x278] sm:$0xff] %v16783_v57  ;;  %v13652_v61 = vrot.slane %v13650_v55, 2 }
 0x8da   : > { %v16200_v17 = vadd.f32 %v15956_v10, %v14507_v19  ;;  %v11581_v10 = vrot.slane %v25019_v21, 2  ;;  %v13655_v19 = vrot.slane %v13653_v5, 3  ;;  %v25091_v5 = vld [vmem:[%s21099_s25 + $0x1c8] sm:$0xff] }
 0x8dc   : > { %v16639_v28 = vadd.f32 %v24846_v6, %v16200_v17  ;;  %v11582_v27 = vsel %vm9790_vm5, %v11579_v38, %v11581_v10  ;;  %v9218_v17 = vld [vmem:[%s21170_s4 + $0x2a0] sm:$0xff] }
 0x8dd   : > { %v12061_v2 = vpop.f32.mrf.mxu2 }
 0x8de   : > { %v12304_v50 = vadd.f32 %v12061_v2, %v10615_v34  ;;  %v16784_v13 = vmax.f32 %v16639_v28, 0.0  ;;  %v10375_v54 = vpop.f32.mrf.mxu1  ;;  %v25009_v14 = vpop.f32.mrf.mxu3  ;;  %v25049_v2 = vld [vmem:[%s21099_s25 + $0x1b0] sm:$0xff] }
 0x8df   : > { %v15961_v20 = vpop.f32.mrf.mxu0  ;;  %v10616_v60 = vadd.f32 %v10375_v54, %v9216_v52 }
 0x8e0   : > { %v14508_v48 = vadd.f32 %v24943_v41, %v12304_v50  ;;  %16929 = vst [vmem:[%s21170_s4 + $0x280] sm:$0xff] %v16784_v13  ;;  %v13647_v41 = vor.u32 %v13646_v15, %v13643_v37  ;;  %v25052_v50 = vld [vmem:[%s21099_s25 + $0x1c0] sm:$0xff]  ;;  %v15480_v15 = vrot.slane %v25058_v8, 3 }
 0x8e1   : > { %19232 = vmatmul.msk.bf16.gmra.mxu1 %vm688_vm0, %v9891_v36 }
 0x8e2   : > { %19599 = vmatmul.msk.bf16.gmra.mxu2 %vm688_vm0, %v11580_v16  ;;  %v16201_v53 = vadd.f32 %v15958_v11, %v14508_v48  ;;  %20341 = vmatmul.msk.bf16.gmra.mxu0 %vm688_vm0, %v15477_v35  ;;  %v13648_v1 = vsel %vm13172_vm4, %v13638_v40, %v13647_v41  ;;  %v9219_v16 = vld [vmem:[%s21170_s4 + $0x2a8] sm:$0xff]  ;;  %v9894_v48 = vrot.slane %v25049_v2, 2  ;;  %v15481_v42 = vsel %vm15376_vm6, %v15478_v47, %v15480_v15 }
 0x8e3   : > { %19972 = vmatmul.msk.bf16.gmra.mxu3 %vm688_vm0, %v13648_v1 }
 0x8e4   : > { %v16640_v26 = vadd.f32 %v24846_v6, %v16201_v53  ;;  %v20932_v53 = vld [vmem:[%s21099_s25 + $0x1d0] sm:$0xff]  ;;  %v9895_v1 = vsel %vm9790_vm5, %v9892_v24, %v9894_v48 }
 0x8e5   : > { %v12064_v3 = vpop.f32.mrf.mxu2 }
 0x8e6   : > { %v12305_v0 = vadd.f32 %v12064_v3, %v10616_v60  ;;  %v16785_v39 = vmax.f32 %v16640_v26, 0.0  ;;  %v10377_v9 = vpop.f32.mrf.mxu1  ;;  %v25027_v4 = vpop.f32.mrf.mxu3  ;;  %v13659_v60 = vshrl.u32 %v20932_v53, 16  ;;  %v13662_v26 = vshll.u32 %v20932_v53, 16 }
 0x8e7   : > { %v15963_v58 = vpop.f32.mrf.mxu0  ;;  %v10617_v29 = vadd.f32 %v10377_v9, %v9217_v12 }
 0x8e8   : > { %v14509_v30 = vadd.f32 %v24961_v43, %v12305_v0  ;;  %16930 = vst [vmem:[%s21170_s4 + $0x288] sm:$0xff] %v16785_v39  ;;  %v13661_v21 = vrot.slane %v13659_v60, 2 }
 0x8ea   : > { %v16202_v25 = vadd.f32 %v15961_v20, %v14509_v30  ;;  %v11583_v20 = vrot.slane %v25052_v50, 2  ;;  %v13664_v30 = vrot.slane %v13662_v26, 3  ;;  %v25124_v26 = vld [vmem:[%s21099_s25 + $0x1d0] sm:$0xff] }
 0x8ec   : > { %v16641_v32 = vadd.f32 %v24846_v6, %v16202_v25  ;;  %v11584_v0 = vsel %vm9790_vm5, %v11581_v10, %v11583_v20  ;;  %v9220_v25 = vld [vmem:[%s21170_s4 + $0x2b0] sm:$0xff] }
 0x8ed   : > { %v12066_v43 = vpop.f32.mrf.mxu2 }
 0x8ee   : > { %v12306_v45 = vadd.f32 %v12066_v43, %v10617_v29  ;;  %v16786_v40 = vmax.f32 %v16641_v32, 0.0  ;;  %v10380_v31 = vpop.f32.mrf.mxu1  ;;  %v25042_v51 = vpop.f32.mrf.mxu3  ;;  %v25082_v43 = vld [vmem:[%s21099_s25 + $0x1b8] sm:$0xff] }
 0x8ef   : > { %v15966_v22 = vpop.f32.mrf.mxu0  ;;  %v10618_v56 = vadd.f32 %v10380_v31, %v9218_v17 }
 0x8f0   : > { %v14510_v57 = vadd.f32 %v24976_v18, %v12306_v45  ;;  %16931 = vst [vmem:[%s21170_s4 + $0x290] sm:$0xff] %v16786_v40  ;;  %v13656_v18 = vor.u32 %v13655_v19, %v13652_v61  ;;  %v25085_v45 = vld [vmem:[%s21099_s25 + $0x1c8] sm:$0xff]  ;;  %v15482_v19 = vrot.slane %v25091_v5, 3 }
 0x8f1   : > { %19233 = vmatmul.msk.bf16.gmra.mxu1 %vm688_vm0, %v9893_v23 }
 0x8f2   : > { %19600 = vmatmul.msk.bf16.gmra.mxu2 %vm688_vm0, %v11582_v27  ;;  %v16203_v11 = vadd.f32 %v15963_v58, %v14510_v57  ;;  %20342 = vmatmul.msk.bf16.gmra.mxu0 %vm688_vm0, %v15479_v63  ;;  %v13657_v34 = vsel %vm13172_vm4, %v13647_v41, %v13656_v18  ;;  %v9221_v27 = vld [vmem:[%s21170_s4 + $0x2b8] sm:$0xff]  ;;  %v9896_v57 = vrot.slane %v25082_v43, 2  ;;  %v15483_v2 = vsel %vm15376_vm6, %v15480_v15, %v15482_v19 }
 0x8f3   : > { %19973 = vmatmul.msk.bf16.gmra.mxu3 %vm688_vm0, %v13657_v34 }
 0x8f4   : > { %v16642_v7 = vadd.f32 %v24846_v6, %v16203_v11  ;;  %v20933_v11 = vld [vmem:[%s21099_s25 + $0x1d8] sm:$0xff]  ;;  %v9897_v34 = vsel %vm9790_vm5, %v9894_v48, %v9896_v57 }
 0x8f5   : > { %v12069_v38 = vpop.f32.mrf.mxu2 }
 0x8f6   : > { %v12307_v28 = vadd.f32 %v12069_v38, %v10618_v56  ;;  %v16787_v59 = vmax.f32 %v16642_v7, 0.0  ;;  %v10382_v62 = vpop.f32.mrf.mxu1  ;;  %v25060_v36 = vpop.f32.mrf.mxu3  ;;  %v13668_v56 = vshrl.u32 %v20933_v11, 16  ;;  %v13671_v7 = vshll.u32 %v20933_v11, 16 }
 0x8f7   : > { %v15968_v46 = vpop.f32.mrf.mxu0  ;;  %v10619_v35 = vadd.f32 %v10382_v62, %v9219_v16 }
 0x8f8   : > { %v14511_v13 = vadd.f32 %v24994_v33, %v12307_v28  ;;  %16932 = vst [vmem:[%s21170_s4 + $0x298] sm:$0xff] %v16787_v59  ;;  %v13670_v50 = vrot.slane %v13668_v56, 2 }
 0x8fa   : > { %v16204_v54 = vadd.f32 %v15966_v22, %v14511_v13  ;;  %v11585_v22 = vrot.slane %v25085_v45, 2  ;;  %v13673_v13 = vrot.slane %v13671_v7, 3  ;;  %v25157_v7 = vld [vmem:[%s21099_s25 + $0x1d8] sm:$0xff] }
 0x8fc   : > { %v16643_v37 = vadd.f32 %v24846_v6, %v16204_v54  ;;  %v11586_v28 = vsel %vm9790_vm5, %v11583_v20, %v11585_v22  ;;  %v9222_v54 = vld [vmem:[%s21170_s4 + $0x2c0] sm:$0xff] }
 0x8fd   : > { %v12071_v33 = vpop.f32.mrf.mxu2 }
 0x8fe   : > { %v12308_v52 = vadd.f32 %v12071_v33, %v10619_v35  ;;  %v16788_v41 = vmax.f32 %v16643_v37, 0.0  ;;  %v10385_v3 = vpop.f32.mrf.mxu1  ;;  %v25075_v44 = vpop.f32.mrf.mxu3  ;;  %v25115_v33 = vld [vmem:[%s21099_s25 + $0x1c0] sm:$0xff] }
 0x8ff   : > { %v15971_v9 = vpop.f32.mrf.mxu0  ;;  %v10620_v12 = vadd.f32 %v10385_v3, %v9220_v25 }
 0x900   : > { %v14512_v39 = vadd.f32 %v25009_v14, %v12308_v52  ;;  %16933 = vst [vmem:[%s21170_s4 + $0x2a0] sm:$0xff] %v16788_v41  ;;  %v13665_v14 = vor.u32 %v13664_v30, %v13661_v21  ;;  %v25118_v52 = vld [vmem:[%s21099_s25 + $0x1d0] sm:$0xff]  ;;  %v15484_v30 = vrot.slane %v25124_v26, 3 }
 0x901   : > { %19234 = vmatmul.msk.bf16.gmra.mxu1 %vm688_vm0, %v9895_v1 }
 0x902   : > { %19601 = vmatmul.msk.bf16.gmra.mxu2 %vm688_vm0, %v11584_v0  ;;  %v16205_v58 = vadd.f32 %v15968_v46, %v14512_v39  ;;  %20343 = vmatmul.msk.bf16.gmra.mxu0 %vm688_vm0, %v15481_v42  ;;  %v13666_v29 = vsel %vm13172_vm4, %v13656_v18, %v13665_v14  ;;  %v9223_v0 = vld [vmem:[%s21170_s4 + $0x2c8] sm:$0xff]  ;;  %v9898_v39 = vrot.slane %v25115_v33, 2  ;;  %v15485_v43 = vsel %vm15376_vm6, %v15482_v19, %v15484_v30 }
 0x903   : > { %19974 = vmatmul.msk.bf16.gmra.mxu3 %vm688_vm0, %v13666_v29 }
 0x904   : > { %v16644_v24 = vadd.f32 %v24846_v6, %v16205_v58  ;;  %v20934_v58 = vld [vmem:[%s21099_s25 + $0x1e0] sm:$0xff]  ;;  %v9899_v29 = vsel %vm9790_vm5, %v9896_v57, %v9898_v39 }
 0x905   : > { %v12074_v10 = vpop.f32.mrf.mxu2 }
 0x906   : > { %v12309_v32 = vadd.f32 %v12074_v10, %v10620_v12  ;;  %v16789_v47 = vmax.f32 %v16644_v24, 0.0  ;;  %v10387_v49 = vpop.f32.mrf.mxu1  ;;  %v25093_v23 = vpop.f32.mrf.mxu3  ;;  %v13677_v12 = vshrl.u32 %v20934_v58, 16  ;;  %v13680_v24 = vshll.u32 %v20934_v58, 16 }
 0x907   : > { %v15973_v55 = vpop.f32.mrf.mxu0  ;;  %v10621_v63 = vadd.f32 %v10387_v49, %v9221_v27 }
 0x908   : > { %v14513_v40 = vadd.f32 %v25027_v4, %v12309_v32  ;;  %16934 = vst [vmem:[%s21170_s4 + $0x2a8] sm:$0xff] %v16789_v47  ;;  %v13679_v45 = vrot.slane %v13677_v12, 2 }
 0x90a   : > { %v16206_v31 = vadd.f32 %v15971_v9, %v14513_v40  ;;  %v11587_v9 = vrot.slane %v25118_v52, 2  ;;  %v13682_v40 = vrot.slane %v13680_v24, 3  ;;  %v25190_v24 = vld [vmem:[%s21099_s25 + $0x1e0] sm:$0xff] }
 0x90c   : > { %v16645_v61 = vadd.f32 %v24846_v6, %v16206_v31  ;;  %v11588_v32 = vsel %vm9790_vm5, %v11585_v22, %v11587_v9  ;;  %v9224_v31 = vld [vmem:[%s21170_s4 + $0x2d0] sm:$0xff] }
 0x90d   : > { %v12076_v4 = vpop.f32.mrf.mxu2 }
 0x90e   : > { %v12310_v17 = vadd.f32 %v12076_v4, %v10621_v63  ;;  %v16790_v18 = vmax.f32 %v16645_v61, 0.0  ;;  %v10390_v38 = vpop.f32.mrf.mxu1  ;;  %v25108_v8 = vpop.f32.mrf.mxu3  ;;  %v25148_v4 = vld [vmem:[%s21099_s25 + $0x1c8] sm:$0xff] }
 0x90f   : > { %v15976_v62 = vpop.f32.mrf.mxu0  ;;  %v10622_v16 = vadd.f32 %v10390_v38, %v9222_v54 }
 0x910   : > { %v14514_v59 = vadd.f32 %v25042_v51, %v12310_v17  ;;  %16935 = vst [vmem:[%s21170_s4 + $0x2b0] sm:$0xff] %v16790_v18  ;;  %v13674_v51 = vor.u32 %v13673_v13, %v13670_v50  ;;  %v25151_v17 = vld [vmem:[%s21099_s25 + $0x1d8] sm:$0xff]  ;;  %v15486_v13 = vrot.slane %v25157_v7, 3 }
 0x911   : > { %19235 = vmatmul.msk.bf16.gmra.mxu1 %vm688_vm0, %v9897_v34 }
 0x912   : > { %19602 = vmatmul.msk.bf16.gmra.mxu2 %vm688_vm0, %v11586_v28  ;;  %v16207_v46 = vadd.f32 %v15973_v55, %v14514_v59  ;;  %20344 = vmatmul.msk.bf16.gmra.mxu0 %vm688_vm0, %v15483_v2  ;;  %v13675_v35 = vsel %vm13172_vm4, %v13665_v14, %v13674_v51  ;;  %v9225_v28 = vld [vmem:[%s21170_s4 + $0x2d8] sm:$0xff]  ;;  %v9900_v59 = vrot.slane %v25148_v4, 2  ;;  %v15487_v33 = vsel %vm15376_vm6, %v15484_v30, %v15486_v13 }
 0x913   : > { %19975 = vmatmul.msk.bf16.gmra.mxu3 %vm688_vm0, %v13675_v35 }
 0x914   : > { %v16646_v48 = vadd.f32 %v24846_v6, %v16207_v46  ;;  %v20935_v46 = vld [vmem:[%s21099_s25 + $0x1e8] sm:$0xff]  ;;  %v9901_v35 = vsel %vm9790_vm5, %v9898_v39, %v9900_v59 }
 0x915   : > { %v12079_v20 = vpop.f32.mrf.mxu2 }
 0x916   : > { %v12311_v37 = vadd.f32 %v12079_v20, %v10622_v16  ;;  %v16791_v15 = vmax.f32 %v16646_v48, 0.0  ;;  %v10392_v53 = vpop.f32.mrf.mxu1  ;;  %v25126_v1 = vpop.f32.mrf.mxu3  ;;  %v13686_v16 = vshrl.u32 %v20935_v46, 16  ;;  %v13689_v48 = vshll.u32 %v20935_v46, 16 }
 0x917   : > { %v15978_v60 = vpop.f32.mrf.mxu0  ;;  %v10623_v42 = vadd.f32 %v10392_v53, %v9223_v0 }
 0x918   : > { %v14515_v41 = vadd.f32 %v25060_v36, %v12311_v37  ;;  %16936 = vst [vmem:[%s21170_s4 + $0x2b8] sm:$0xff] %v16791_v15  ;;  %v13688_v52 = vrot.slane %v13686_v16, 2 }
 0x91a   : > { %v16208_v3 = vadd.f32 %v15976_v62, %v14515_v41  ;;  %v11589_v62 = vrot.slane %v25151_v17, 2  ;;  %v13691_v41 = vrot.slane %v13689_v48, 3  ;;  %v25223_v48 = vld [vmem:[%s21099_s25 + $0x1e8] sm:$0xff] }
 0x91c   : > { %v16647_v21 = vadd.f32 %v24846_v6, %v16208_v3  ;;  %v11590_v37 = vsel %vm9790_vm5, %v11587_v9, %v11589_v62  ;;  %v9226_v3 = vld [vmem:[%s21170_s4 + $0x2e0] sm:$0xff] }
 0x91d   : > { %v12081_v36 = vpop.f32.mrf.mxu2 }
 0x91e   : > { %v12312_v25 = vadd.f32 %v12081_v36, %v10623_v42  ;;  %v16792_v14 = vmax.f32 %v16647_v21, 0.0  ;;  %v10395_v10 = vpop.f32.mrf.mxu1  ;;  %v25141_v5 = vpop.f32.mrf.mxu3  ;;  %v25181_v36 = vld [vmem:[%s21099_s25 + $0x1d0] sm:$0xff] }
 0x91f   : > { %v15981_v49 = vpop.f32.mrf.mxu0  ;;  %v10624_v27 = vadd.f32 %v10395_v10, %v9224_v31 }
 0x920   : > { %v14516_v47 = vadd.f32 %v25075_v44, %v12312_v25  ;;  %16937 = vst [vmem:[%s21170_s4 + $0x2c0] sm:$0xff] %v16792_v14  ;;  %v13683_v44 = vor.u32 %v13682_v40, %v13679_v45  ;;  %v25184_v25 = vld [vmem:[%s21099_s25 + $0x1e0] sm:$0xff]  ;;  %v15488_v40 = vrot.slane %v25190_v24, 3 }
 0x921   : > { %19236 = vmatmul.msk.bf16.gmra.mxu1 %vm688_vm0, %v9899_v29  ;;  %v9230_v24 = vld [vmem:[%s21170_s4 + $0x300] sm:$0xff] }
 0x922   : > { %19603 = vmatmul.msk.bf16.gmra.mxu2 %vm688_vm0, %v11588_v32  ;;  %v16209_v55 = vadd.f32 %v15978_v60, %v14516_v47  ;;  %20345 = vmatmul.msk.bf16.gmra.mxu0 %vm688_vm0, %v15485_v43  ;;  %v13684_v63 = vsel %vm13172_vm4, %v13674_v51, %v13683_v44  ;;  %v9227_v32 = vld [vmem:[%s21170_s4 + $0x2e8] sm:$0xff]  ;;  %v9902_v47 = vrot.slane %v25181_v36, 2  ;;  %v15489_v4 = vsel %vm15376_vm6, %v15486_v13, %v15488_v40 }
 0x923   : > { %19976 = vmatmul.msk.bf16.gmra.mxu3 %vm688_vm0, %v13684_v63 }
 0x924   : > { %v16648_v57 = vadd.f32 %v24846_v6, %v16209_v55  ;;  %v20936_v55 = vld [vmem:[%s21099_s25 + $0x1f0] sm:$0xff]  ;;  %v9903_v63 = vsel %vm9790_vm5, %v9900_v59, %v9902_v47 }
 0x925   : > { %v12084_v22 = vpop.f32.mrf.mxu2 }
 0x926   : > { %v12313_v61 = vadd.f32 %v12084_v22, %v10624_v27  ;;  %v16793_v19 = vmax.f32 %v16648_v57, 0.0  ;;  %v10397_v11 = vpop.f32.mrf.mxu1  ;;  %v25159_v34 = vpop.f32.mrf.mxu3  ;;  %v13695_v27 = vshrl.u32 %v20936_v55, 16  ;;  %v13698_v57 = vshll.u32 %v20936_v55, 16 }
 0x927   : > { %v15983_v56 = vpop.f32.mrf.mxu0  ;;  %v10625_v2 = vadd.f32 %v10397_v11, %v9225_v28 }
 0x928   : > { %v14517_v18 = vadd.f32 %v25093_v23, %v12313_v61  ;;  %16938 = vst [vmem:[%s21170_s4 + $0x2c8] sm:$0xff] %v16793_v19  ;;  %v13697_v17 = vrot.slane %v13695_v27, 2 }
 0x92a   : > { %v16210_v38 = vadd.f32 %v15981_v49, %v14517_v18  ;;  %v11591_v49 = vrot.slane %v25184_v25, 2  ;;  %v13700_v18 = vrot.slane %v13698_v57, 3  ;;  %v25261_v57 = vld [vmem:[%s21099_s25 + $0x1f0] sm:$0xff] }
 0x92c   : > { %v16649_v50 = vadd.f32 %v24846_v6, %v16210_v38  ;;  %v11592_v61 = vsel %vm9790_vm5, %v11589_v62, %v11591_v49  ;;  %v9228_v38 = vld [vmem:[%s21170_s4 + $0x2f0] sm:$0xff] }
 0x92d   : > { %v12086_v23 = vpop.f32.mrf.mxu2 }
 0x92e   : > { %v12314_v54 = vadd.f32 %v12086_v23, %v10625_v2  ;;  %v16794_v51 = vmax.f32 %v16649_v50, 0.0  ;;  %v10400_v20 = vpop.f32.mrf.mxu1  ;;  %v25174_v26 = vpop.f32.mrf.mxu3  ;;  %v25214_v23 = vld [vmem:[%s21099_s25 + $0x1d8] sm:$0xff] }
 0x92f   : > { %v15986_v53 = vpop.f32.mrf.mxu0  ;;  %v10626_v0 = vadd.f32 %v10400_v20, %v9226_v3 }
 0x930   : > { %v14518_v15 = vadd.f32 %v25108_v8, %v12314_v54  ;;  %16939 = vst [vmem:[%s21170_s4 + $0x2d0] sm:$0xff] %v16794_v51  ;;  %v13692_v8 = vor.u32 %v13691_v41, %v13688_v52  ;;  %v25217_v54 = vld [vmem:[%s21099_s25 + $0x1e8] sm:$0xff]  ;;  %v15490_v41 = vrot.slane %v25223_v48, 3 }
 0x931   : > { %19237 = vmatmul.msk.bf16.gmra.mxu1 %vm688_vm0, %v9901_v35 }
 0x932   : > { %19604 = vmatmul.msk.bf16.gmra.mxu2 %vm688_vm0, %v11590_v37  ;;  %v16211_v60 = vadd.f32 %v15983_v56, %v14518_v15  ;;  %20346 = vmatmul.msk.bf16.gmra.mxu0 %vm688_vm0, %v15487_v33  ;;  %v13693_v42 = vsel %vm13172_vm4, %v13683_v44, %v13692_v8  ;;  %v9229_v37 = vld [vmem:[%s21170_s4 + $0x2f8] sm:$0xff]  ;;  %v9904_v15 = vrot.slane %v25214_v23, 2 }
 0x933   : > { %19977 = vmatmul.msk.bf16.gmra.mxu3 %vm688_vm0, %v13693_v42 }
 0x934   : > { %v16650_v39 = vadd.f32 %v24846_v6, %v16211_v60  ;;  %v20937_v60 = vld [vmem:[%s21099_s25 + $0x1f8] sm:$0xff]  ;;  %v9905_v42 = vsel %vm9790_vm5, %v9902_v47, %v9904_v15 }
 0x935   : > { %v12089_v9 = vpop.f32.mrf.mxu2 }
 0x936   : > { %v12315_v21 = vadd.f32 %v12089_v9, %v10626_v0  ;;  %v16795_v30 = vmax.f32 %v16650_v39, 0.0  ;;  %v10402_v58 = vpop.f32.mrf.mxu1  ;;  %v25192_v29 = vpop.f32.mrf.mxu3  ;;  %v13704_v0 = vshrl.u32 %v20937_v60, 16  ;;  %v13707_v39 = vshll.u32 %v20937_v60, 16 }
 0x937   : > { %v15988_v12 = vpop.f32.mrf.mxu0  ;;  %v10627_v43 = vadd.f32 %v10402_v58, %v9227_v32  ;;  %v25247_v32 = vld [vmem:[%s25808_s2] ss:$0 sm:$0xff] }
 0x938   : > { %v14519_v14 = vadd.f32 %v25126_v1, %v12315_v21  ;;  %16940 = vst [vmem:[%s21170_s4 + $0x2d8] sm:$0xff] %v16795_v30  ;;  %v13706_v36 = vrot.slane %v13704_v0, 2  ;;  %v13709_v25 = vrot.slane %v13707_v39, 3  ;;  %v25294_v39 = vld [vmem:[%s21099_s25 + $0x1f8] sm:$0xff] }
 0x93a   : > { %v16212_v10 = vadd.f32 %v15986_v53, %v14519_v14  ;;  %v11593_v53 = vrot.slane %v25217_v54, 2 }
 0x93c   : > { %v16651_v45 = vadd.f32 %v24846_v6, %v16212_v10  ;;  %v11594_v21 = vsel %vm9790_vm5, %v11591_v49, %v11593_v53 }
 0x93d   : > { %v12091_v1 = vpop.f32.mrf.mxu2 }
 0x93e   : > { %v12316_v31 = vadd.f32 %v12091_v1, %v10627_v43  ;;  %v16796_v44 = vmax.f32 %v16651_v45, 0.0  ;;  %v10405_v22 = vpop.f32.mrf.mxu1  ;;  %v25207_v7 = vpop.f32.mrf.mxu3  ;;  %v25252_v1 = vld [vmem:[%s21099_s25 + $0x1e0] sm:$0xff] }
 0x93f   : > { %v15991_v11 = vpop.f32.mrf.mxu0  ;;  %v10628_v28 = vadd.f32 %v10405_v22, %v9228_v38 }
 0x940   : > { %v14520_v19 = vadd.f32 %v25141_v5, %v12316_v31  ;;  %16941 = vst [vmem:[%s21170_s4 + $0x2e0] sm:$0xff] %v16796_v44  ;;  %v13701_v5 = vor.u32 %v13700_v18, %v13697_v17  ;;  %v25255_v31 = vld [vmem:[%s21099_s25 + $0x1f0] sm:$0xff]  ;;  %v15492_v18 = vrot.slane %v25261_v57, 3 }
 0x941   : > { %19238 = vmatmul.msk.bf16.gmra.mxu1 %vm688_vm0, %v9903_v63 }
 0x942   : > { %19605 = vmatmul.msk.bf16.gmra.mxu2 %vm688_vm0, %v11592_v61  ;;  %v16213_v56 = vadd.f32 %v15988_v12, %v14520_v19  ;;  %20347 = vmatmul.msk.bf16.gmra.mxu0 %vm688_vm0, %v15489_v4  ;;  %v13702_v2 = vsel %vm13172_vm4, %v13692_v8, %v13701_v5  ;;  %v9231_v61 = vld [vmem:[%s21170_s4 + $0x308] sm:$0xff]  ;;  %v9906_v19 = vrot.slane %v25252_v1, 2  ;;  %v15493_v23 = vsel %vm15376_vm6, %v15490_v41, %v15492_v18 }
 0x943   : > { %19978 = vmatmul.msk.bf16.gmra.mxu3 %vm688_vm0, %v13702_v2 }
 0x944   : > { %v16652_v59 = vadd.f32 %v24846_v6, %v16213_v56  ;;  %v20938_v56 = vld [vmem:[%s21099_s25 + $0x200] sm:$0xff]  ;;  %v9907_v2 = vsel %vm9790_vm5, %v9904_v15, %v9906_v19 }
 0x945   : > { %v12094_v62 = vpop.f32.mrf.mxu2 }
 0x946   : > { %v12317_v50 = vadd.f32 %v12094_v62, %v10628_v28  ;;  %v16797_v13 = vmax.f32 %v16652_v59, 0.0  ;;  %v10407_v46 = vpop.f32.mrf.mxu1  ;;  %v25225_v35 = vpop.f32.mrf.mxu3  ;;  %v13713_v28 = vshrl.u32 %v20938_v56, 16  ;;  %v13716_v59 = vshll.u32 %v20938_v56, 16 }
 0x947   : > { %v15993_v16 = vpop.f32.mrf.mxu0  ;;  %v10629_v33 = vadd.f32 %v10407_v46, %v9229_v37 }
 0x948   : > { %v14521_v51 = vadd.f32 %v25159_v34, %v12317_v50  ;;  %16942 = vst [vmem:[%s21170_s4 + $0x2e8] sm:$0xff] %v16797_v13  ;;  %v13715_v54 = vrot.slane %v13713_v28, 2 }
 0x94a   : > { %v16214_v20 = vadd.f32 %v15991_v11, %v14521_v51  ;;  %v11595_v11 = vrot.slane %v25255_v31, 2  ;;  %v13718_v51 = vrot.slane %v13716_v59, 3  ;;  %v25327_v59 = vld [vmem:[%s21099_s25 + $0x200] sm:$0xff] }
 0x94c   : > { %v16653_v52 = vadd.f32 %v24846_v6, %v16214_v20  ;;  %v15491_v6 = vsel %vm15376_vm6, %v15488_v40, %v15490_v41  ;;  %v11596_v50 = vsel %vm9790_vm5, %v11593_v53, %v11595_v11  ;;  %v9232_v20 = vld [vmem:[%s21170_s4 + $0x310] sm:$0xff] }
 0x94d   : > { %v12096_v34 = vpop.f32.mrf.mxu2 }
 0x94e   : > { %v12318_v3 = vadd.f32 %v12096_v34, %v10629_v33  ;;  %v16798_v8 = vmax.f32 %v16653_v52, 0.0  ;;  %v10410_v9 = vpop.f32.mrf.mxu1  ;;  %v25240_v12 = vpop.f32.mrf.mxu3  ;;  %v25285_v34 = vld [vmem:[%s21099_s25 + $0x1e8] sm:$0xff] }
 0x94f   : > { %v15996_v58 = vpop.f32.mrf.mxu0  ;;  %v10630_v10 = vadd.f32 %v10410_v9, %v9230_v24 }
 0x950   : > { %v14522_v30 = vadd.f32 %v25174_v26, %v12318_v3  ;;  %16943 = vst [vmem:[%s21170_s4 + $0x2f0] sm:$0xff] %v16798_v8  ;;  %v13710_v26 = vor.u32 %v13709_v25, %v13706_v36  ;;  %v25288_v3 = vld [vmem:[%s21099_s25 + $0x1f8] sm:$0xff]  ;;  %v15494_v25 = vrot.slane %v25294_v39, 3 }
 0x951   : > { %19239 = vmatmul.msk.bf16.gmra.mxu1 %vm688_vm0, %v9905_v42 }
 0x952   : > { %19606 = vmatmul.msk.bf16.gmra.mxu2 %vm688_vm0, %v11594_v21  ;;  %v16215_v14 = vadd.f32 %v15993_v16, %v14522_v30  ;;  %20348 = vmatmul.msk.bf16.gmra.mxu0 %vm688_vm0, %v15491_v6  ;;  %v13711_v43 = vsel %vm13172_vm4, %v13701_v5, %v13710_v26  ;;  %v9233_v21 = vld [vmem:[%s21170_s4 + $0x318] sm:$0xff]  ;;  %v9908_v30 = vrot.slane %v25285_v34, 2  ;;  %v15495_v1 = vsel %vm15376_vm6, %v15492_v18, %v15494_v25 }
 0x953   : > { %19979 = vmatmul.msk.bf16.gmra.mxu3 %vm688_vm0, %v13711_v43 }
 0x954   : > { %v16654_v47 = vadd.f32 %v25247_v32, %v16215_v14  ;;  %v20939_v14 = vld [vmem:[%s21099_s25 + $0x208] sm:$0xff]  ;;  %v9909_v43 = vsel %vm9790_vm5, %v9906_v19, %v9908_v30 }
 0x955   : > { %v12099_v49 = vpop.f32.mrf.mxu2 }
 0x956   : > { %v12319_v45 = vadd.f32 %v12099_v49, %v10630_v10  ;;  %v16799_v40 = vmax.f32 %v16654_v47, 0.0  ;;  %v10412_v55 = vpop.f32.mrf.mxu1  ;;  %v25263_v63 = vpop.f32.mrf.mxu3  ;;  %v13722_v10 = vshrl.u32 %v20939_v14, 16  ;;  %v13725_v47 = vshll.u32 %v20939_v14, 16 }
 0x957   : > { %v15998_v27 = vpop.f32.mrf.mxu0  ;;  %v10631_v4 = vadd.f32 %v10412_v55, %v9231_v61 }
 0x958   : > { %v14523_v44 = vadd.f32 %v25192_v29, %v12319_v45  ;;  %16944 = vst [vmem:[%s21170_s4 + $0x2f8] sm:$0xff] %v16799_v40  ;;  %v13724_v31 = vrot.slane %v13722_v10, 2 }
 0x95a   : > { %v16216_v22 = vadd.f32 %v15996_v58, %v14523_v44  ;;  %v11597_v58 = vrot.slane %v25288_v3, 2  ;;  %v13727_v44 = vrot.slane %v13725_v47, 3  ;;  %v25360_v47 = vld [vmem:[%s21099_s25 + $0x208] sm:$0xff] }
 0x95c   : > { %v16655_v17 = vadd.f32 %v25247_v32, %v16216_v22  ;;  %v11598_v45 = vsel %vm9790_vm5, %v11595_v11, %v11597_v58  ;;  %v9234_v22 = vld [vmem:[%s21170_s4 + $0x320] sm:$0xff] }
 0x95d   : > { %v12101_v29 = vpop.f32.mrf.mxu2 }
 0x95e   : > { %v12320_v38 = vadd.f32 %v12101_v29, %v10631_v4  ;;  %v16800_v5 = vmax.f32 %v16655_v17, 0.0  ;;  %v10415_v62 = vpop.f32.mrf.mxu1  ;;  %v25278_v48 = vpop.f32.mrf.mxu3  ;;  %v25318_v29 = vld [vmem:[%s21099_s25 + $0x1f0] sm:$0xff] }
 0x95f   : > { %v16001_v46 = vpop.f32.mrf.mxu0  ;;  %v10632_v37 = vadd.f32 %v10415_v62, %v9232_v20 }
 0x960   : > { %v14524_v13 = vadd.f32 %v25207_v7, %v12320_v38  ;;  %16945 = vst [vmem:[%s21170_s4 + $0x300] sm:$0xff] %v16800_v5  ;;  %v13719_v7 = vor.u32 %v13718_v51, %v13715_v54  ;;  %v25321_v38 = vld [vmem:[%s21099_s25 + $0x200] sm:$0xff]  ;;  %v15496_v51 = vrot.slane %v25327_v59, 3 }
 0x961   : > { %19240 = vmatmul.msk.bf16.gmra.mxu1 %vm688_vm0, %v9907_v2 }
 0x962   : > { %19607 = vmatmul.msk.bf16.gmra.mxu2 %vm688_vm0, %v11596_v50  ;;  %v16217_v16 = vadd.f32 %v15998_v27, %v14524_v13  ;;  %20349 = vmatmul.msk.bf16.gmra.mxu0 %vm688_vm0, %v15493_v23  ;;  %v13720_v33 = vsel %vm13172_vm4, %v13710_v26, %v13719_v7  ;;  %v9235_v50 = vld [vmem:[%s21170_s4 + $0x328] sm:$0xff]  ;;  %v9910_v13 = vrot.slane %v25318_v29, 2  ;;  %v15497_v34 = vsel %vm15376_vm6, %v15494_v25, %v15496_v51 }
 0x963   : > { %19980 = vmatmul.msk.bf16.gmra.mxu3 %vm688_vm0, %v13720_v33 }
 0x964   : > { %v16656_v15 = vadd.f32 %v25247_v32, %v16217_v16  ;;  %v20940_v16 = vld [vmem:[%s21099_s25 + $0x210] sm:$0xff]  ;;  %v9911_v33 = vsel %vm9790_vm5, %v9908_v30, %v9910_v13 }
 0x965   : > { %v12104_v53 = vpop.f32.mrf.mxu2 }
 0x966   : > { %v12321_v52 = vadd.f32 %v12104_v53, %v10632_v37  ;;  %v16801_v41 = vmax.f32 %v16656_v15, 0.0  ;;  %v10417_v60 = vpop.f32.mrf.mxu1  ;;  %v25296_v42 = vpop.f32.mrf.mxu3  ;;  %v13731_v37 = vshrl.u32 %v20940_v16, 16  ;;  %v13734_v15 = vshll.u32 %v20940_v16, 16 }
 0x967   : > { %v16003_v0 = vpop.f32.mrf.mxu0  ;;  %v10633_v6 = vadd.f32 %v10417_v60, %v9233_v21 }
 0x968   : > { %v14525_v8 = vadd.f32 %v25225_v35, %v12321_v52  ;;  %16946 = vst [vmem:[%s21170_s4 + $0x308] sm:$0xff] %v16801_v41  ;;  %v13733_v3 = vrot.slane %v13731_v37, 2 }
 0x96a   : > { %v16218_v9 = vadd.f32 %v16001_v46, %v14525_v8  ;;  %v11599_v46 = vrot.slane %v25321_v38, 2  ;;  %v13736_v8 = vrot.slane %v13734_v15, 3  ;;  %v25393_v15 = vld [vmem:[%s21099_s25 + $0x210] sm:$0xff] }
 0x96c   : > { %v16657_v36 = vadd.f32 %v25247_v32, %v16218_v9  ;;  %v11600_v52 = vsel %vm9790_vm5, %v11597_v58, %v11599_v46  ;;  %v9236_v9 = vld [vmem:[%s21170_s4 + $0x330] sm:$0xff] }
 0x96d   : > { %v12106_v35 = vpop.f32.mrf.mxu2 }
 0x96e   : > { %v12322_v24 = vadd.f32 %v12106_v35, %v10633_v6  ;;  %v16802_v26 = vmax.f32 %v16657_v36, 0.0  ;;  %v10420_v49 = vpop.f32.mrf.mxu1  ;;  %v25311_v57 = vpop.f32.mrf.mxu3  ;;  %v25351_v35 = vld [vmem:[%s21099_s25 + $0x1f8] sm:$0xff] }
 0x96f   : > { %v16006_v55 = vpop.f32.mrf.mxu0  ;;  %v10634_v61 = vadd.f32 %v10420_v49, %v9234_v22 }
 0x970   : > { %v14526_v40 = vadd.f32 %v25240_v12, %v12322_v24  ;;  %16947 = vst [vmem:[%s21170_s4 + $0x310] sm:$0xff] %v16802_v26  ;;  %v13728_v12 = vor.u32 %v13727_v44, %v13724_v31  ;;  %v25354_v24 = vld [vmem:[%s21099_s25 + $0x208] sm:$0xff]  ;;  %v15498_v44 = vrot.slane %v25360_v47, 3 }
 0x971   : > { %19241 = vmatmul.msk.bf16.gmra.mxu1 %vm688_vm0, %v9909_v43 }
 0x972   : > { %19608 = vmatmul.msk.bf16.gmra.mxu2 %vm688_vm0, %v11598_v45  ;;  %v16219_v27 = vadd.f32 %v16003_v0, %v14526_v40  ;;  %20350 = vmatmul.msk.bf16.gmra.mxu0 %vm688_vm0, %v15495_v1  ;;  %v13729_v4 = vsel %vm13172_vm4, %v13719_v7, %v13728_v12  ;;  %v9237_v45 = vld [vmem:[%s21170_s4 + $0x338] sm:$0xff]  ;;  %v9912_v40 = vrot.slane %v25351_v35, 2  ;;  %v15499_v29 = vsel %vm15376_vm6, %v15496_v51, %v15498_v44 }
 0x973   : > { %19981 = vmatmul.msk.bf16.gmra.mxu3 %vm688_vm0, %v13729_v4 }
 0x974   : > { %v16658_v19 = vadd.f32 %v25247_v32, %v16219_v27  ;;  %v20941_v27 = vld [vmem:[%s21099_s25 + $0x218] sm:$0xff]  ;;  %v9913_v4 = vsel %vm9790_vm5, %v9910_v13, %v9912_v40 }
 0x975   : > { %v12109_v11 = vpop.f32.mrf.mxu2 }
 0x976   : > { %v12323_v17 = vadd.f32 %v12109_v11, %v10634_v61  ;;  %v16803_v18 = vmax.f32 %v16658_v19, 0.0  ;;  %v10422_v56 = vpop.f32.mrf.mxu1  ;;  %v25329_v2 = vpop.f32.mrf.mxu3  ;;  %v13740_v61 = vshrl.u32 %v20941_v27, 16  ;;  %v13743_v19 = vshll.u32 %v20941_v27, 16 }
 0x977   : > { %v16008_v28 = vpop.f32.mrf.mxu0  ;;  %v10635_v23 = vadd.f32 %v10422_v56, %v9235_v50 }
 0x978   : > { %v14527_v5 = vadd.f32 %v25263_v63, %v12323_v17  ;;  %16948 = vst [vmem:[%s21170_s4 + $0x318] sm:$0xff] %v16803_v18  ;;  %v13742_v38 = vrot.slane %v13740_v61, 2 }
 0x97a   : > { %v16220_v62 = vadd.f32 %v16006_v55, %v14527_v5  ;;  %v11601_v55 = vrot.slane %v25354_v24, 2  ;;  %v13745_v5 = vrot.slane %v13743_v19, 3  ;;  %v25426_v19 = vld [vmem:[%s21099_s25 + $0x218] sm:$0xff] }
 0x97c   : > { %v16659_v54 = vadd.f32 %v25247_v32, %v16220_v62  ;;  %v11602_v17 = vsel %vm9790_vm5, %v11599_v46, %v11601_v55  ;;  %v9238_v62 = vld [vmem:[%s21170_s4 + $0x340] sm:$0xff] }
 0x97d   : > { %v12111_v63 = vpop.f32.mrf.mxu2 }
 0x97e   : > { %v12324_v20 = vadd.f32 %v12111_v63, %v10635_v23  ;;  %v16804_v7 = vmax.f32 %v16659_v54, 0.0  ;;  %v10425_v53 = vpop.f32.mrf.mxu1  ;;  %v25344_v39 = vpop.f32.mrf.mxu3  ;;  %v25384_v63 = vld [vmem:[%s21099_s25 + $0x200] sm:$0xff] }
 0x97f   : > { %v16011_v60 = vpop.f32.mrf.mxu0  ;;  %v10636_v21 = vadd.f32 %v10425_v53, %v9236_v9 }
 0x980   : > { %v14528_v41 = vadd.f32 %v25278_v48, %v12324_v20  ;;  %16949 = vst [vmem:[%s21170_s4 + $0x320] sm:$0xff] %v16804_v7  ;;  %v13737_v48 = vor.u32 %v13736_v8, %v13733_v3  ;;  %v25387_v20 = vld [vmem:[%s21099_s25 + $0x210] sm:$0xff]  ;;  %v15500_v8 = vrot.slane %v25393_v15, 3 }
 0x981   : > { %19242 = vmatmul.msk.bf16.gmra.mxu1 %vm688_vm0, %v9911_v33 }
 0x982   : > { %19609 = vmatmul.msk.bf16.gmra.mxu2 %vm688_vm0, %v11600_v52  ;;  %v16221_v0 = vadd.f32 %v16008_v28, %v14528_v41  ;;  %20351 = vmatmul.msk.bf16.gmra.mxu0 %vm688_vm0, %v15497_v34  ;;  %v13738_v6 = vsel %vm13172_vm4, %v13728_v12, %v13737_v48  ;;  %v9239_v52 = vld [vmem:[%s21170_s4 + $0x348] sm:$0xff]  ;;  %v9914_v41 = vrot.slane %v25384_v63, 2  ;;  %v15501_v35 = vsel %vm15376_vm6, %v15498_v44, %v15500_v8 }
 0x983   : > { %19982 = vmatmul.msk.bf16.gmra.mxu3 %vm688_vm0, %v13738_v6 }
 0x984   : > { %v16660_v30 = vadd.f32 %v25247_v32, %v16221_v0  ;;  %v20942_v0 = vld [vmem:[%s21099_s25 + $0x220] sm:$0xff]  ;;  %v9915_v6 = vsel %vm9790_vm5, %v9912_v40, %v9914_v41 }
 0x985   : > { %v12114_v58 = vpop.f32.mrf.mxu2 }
 0x986   : > { %v12325_v36 = vadd.f32 %v12114_v58, %v10636_v21  ;;  %v16805_v25 = vmax.f32 %v16660_v30, 0.0  ;;  %v10427_v14 = vpop.f32.mrf.mxu1  ;;  %v25362_v43 = vpop.f32.mrf.mxu3  ;;  %v13749_v21 = vshrl.u32 %v20942_v0, 16  ;;  %v13752_v30 = vshll.u32 %v20942_v0, 16 }
 0x987   : > { %v16013_v10 = vpop.f32.mrf.mxu0  ;;  %v10637_v1 = vadd.f32 %v10427_v14, %v9237_v45 }
 0x988   : > { %v14529_v26 = vadd.f32 %v25296_v42, %v12325_v36  ;;  %16950 = vst [vmem:[%s21170_s4 + $0x328] sm:$0xff] %v16805_v25  ;;  %v13751_v24 = vrot.slane %v13749_v21, 2 }
 0x98a   : > { %v16222_v49 = vadd.f32 %v16011_v60, %v14529_v26  ;;  %v11603_v60 = vrot.slane %v25387_v20, 2  ;;  %v13754_v26 = vrot.slane %v13752_v30, 3  ;;  %v25459_v30 = vld [vmem:[%s21099_s25 + $0x220] sm:$0xff] }
 0x98c   : > { %v16661_v31 = vadd.f32 %v25247_v32, %v16222_v49  ;;  %v11604_v36 = vsel %vm9790_vm5, %v11601_v55, %v11603_v60  ;;  %v9240_v49 = vld [vmem:[%s21170_s4 + $0x350] sm:$0xff] }
 0x98d   : > { %v12116_v42 = vpop.f32.mrf.mxu2 }
 0x98e   : > { %v12326_v22 = vadd.f32 %v12116_v42, %v10637_v1  ;;  %v16806_v12 = vmax.f32 %v16661_v31, 0.0  ;;  %v10430_v11 = vpop.f32.mrf.mxu1  ;;  %v25377_v59 = vpop.f32.mrf.mxu3  ;;  %v25417_v42 = vld [vmem:[%s21099_s25 + $0x208] sm:$0xff] }
 0x98f   : > { %v16016_v56 = vpop.f32.mrf.mxu0  ;;  %v10638_v50 = vadd.f32 %v10430_v11, %v9238_v62 }
 0x990   : > { %v14530_v18 = vadd.f32 %v25311_v57, %v12326_v22  ;;  %16951 = vst [vmem:[%s21170_s4 + $0x330] sm:$0xff] %v16806_v12  ;;  %v13746_v57 = vor.u32 %v13745_v5, %v13742_v38  ;;  %v25420_v22 = vld [vmem:[%s21099_s25 + $0x218] sm:$0xff]  ;;  %v15502_v5 = vrot.slane %v25426_v19, 3 }
 0x991   : > { %19243 = vmatmul.msk.bf16.gmra.mxu1 %vm688_vm0, %v9913_v4 }
 0x992   : > { %19610 = vmatmul.msk.bf16.gmra.mxu2 %vm688_vm0, %v11602_v17  ;;  %v16223_v28 = vadd.f32 %v16013_v10, %v14530_v18  ;;  %20352 = vmatmul.msk.bf16.gmra.mxu0 %vm688_vm0, %v15499_v29  ;;  %v13747_v23 = vsel %vm13172_vm4, %v13737_v48, %v13746_v57  ;;  %v9241_v17 = vld [vmem:[%s21170_s4 + $0x358] sm:$0xff]  ;;  %v9916_v18 = vrot.slane %v25417_v42, 2  ;;  %v15503_v63 = vsel %vm15376_vm6, %v15500_v8, %v15502_v5 }
 0x993   : > { %19983 = vmatmul.msk.bf16.gmra.mxu3 %vm688_vm0, %v13747_v23 }
 0x994   : > { %v16662_v13 = vadd.f32 %v25247_v32, %v16223_v28  ;;  %v20943_v28 = vld [vmem:[%s21099_s25 + $0x228] sm:$0xff]  ;;  %v9917_v23 = vsel %vm9790_vm5, %v9914_v41, %v9916_v18 }
 0x995   : > { %v12119_v46 = vpop.f32.mrf.mxu2 }
 0x996   : > { %v12327_v54 = vadd.f32 %v12119_v46, %v10638_v50  ;;  %v16807_v51 = vmax.f32 %v16662_v13, 0.0  ;;  %v10432_v16 = vpop.f32.mrf.mxu1  ;;  %v25395_v33 = vpop.f32.mrf.mxu3  ;;  %v13758_v50 = vshrl.u32 %v20943_v28, 16  ;;  %v13761_v13 = vshll.u32 %v20943_v28, 16 }
 0x997   : > { %v16018_v37 = vpop.f32.mrf.mxu0  ;;  %v10639_v34 = vadd.f32 %v10432_v16, %v9239_v52 }
 0x998   : > { %v14531_v7 = vadd.f32 %v25329_v2, %v12327_v54  ;;  %16952 = vst [vmem:[%s21170_s4 + $0x338] sm:$0xff] %v16807_v51  ;;  %v13760_v20 = vrot.slane %v13758_v50, 2 }
 0x99a   : > { %v16224_v53 = vadd.f32 %v16016_v56, %v14531_v7  ;;  %v11605_v56 = vrot.slane %v25420_v22, 2  ;;  %v13763_v7 = vrot.slane %v13761_v13, 3  ;;  %v25492_v13 = vld [vmem:[%s21099_s25 + $0x228] sm:$0xff] }
 0x99c   : > { %v16663_v3 = vadd.f32 %v25247_v32, %v16224_v53  ;;  %v11606_v54 = vsel %vm9790_vm5, %v11603_v60, %v11605_v56  ;;  %v9242_v53 = vld [vmem:[%s21170_s4 + $0x360] sm:$0xff] }
 0x99d   : > { %v12121_v2 = vpop.f32.mrf.mxu2 }
 0x99e   : > { %v12328_v9 = vadd.f32 %v12121_v2, %v10639_v34  ;;  %v16808_v48 = vmax.f32 %v16663_v3, 0.0  ;;  %v10435_v58 = vpop.f32.mrf.mxu1  ;;  %v25410_v47 = vpop.f32.mrf.mxu3  ;;  %v25450_v2 = vld [vmem:[%s21099_s25 + $0x210] sm:$0xff] }
 0x99f   : > { %v16021_v14 = vpop.f32.mrf.mxu0  ;;  %v10640_v45 = vadd.f32 %v10435_v58, %v9240_v49 }
 0x9a0   : > { %v14532_v25 = vadd.f32 %v25344_v39, %v12328_v9  ;;  %16953 = vst [vmem:[%s21170_s4 + $0x340] sm:$0xff] %v16808_v48  ;;  %v13755_v39 = vor.u32 %v13754_v26, %v13751_v24  ;;  %v25453_v9 = vld [vmem:[%s21099_s25 + $0x220] sm:$0xff]  ;;  %v15504_v26 = vrot.slane %v25459_v30, 3 }
 0x9a1   : > { %19244 = vmatmul.msk.bf16.gmra.mxu1 %vm688_vm0, %v9915_v6 }
 0x9a2   : > { %19611 = vmatmul.msk.bf16.gmra.mxu2 %vm688_vm0, %v11604_v36  ;;  %v16225_v10 = vadd.f32 %v16018_v37, %v14532_v25  ;;  %20353 = vmatmul.msk.bf16.gmra.mxu0 %vm688_vm0, %v15501_v35  ;;  %v13756_v1 = vsel %vm13172_vm4, %v13746_v57, %v13755_v39  ;;  %v9243_v36 = vld [vmem:[%s21170_s4 + $0x368] sm:$0xff]  ;;  %v9918_v25 = vrot.slane %v25450_v2, 2  ;;  %v15505_v42 = vsel %vm15376_vm6, %v15502_v5, %v15504_v26 }
 0x9a3   : > { %19984 = vmatmul.msk.bf16.gmra.mxu3 %vm688_vm0, %v13756_v1 }
 0x9a4   : > { %v16664_v40 = vadd.f32 %v25247_v32, %v16225_v10  ;;  %v20944_v10 = vld [vmem:[%s21099_s25 + $0x230] sm:$0xff]  ;;  %v9919_v1 = vsel %vm9790_vm5, %v9916_v18, %v9918_v25 }
 0x9a5   : > { %v12124_v55 = vpop.f32.mrf.mxu2 }
 0x9a6   : > { %v12329_v31 = vadd.f32 %v12124_v55, %v10640_v45  ;;  %v16809_v44 = vmax.f32 %v16664_v40, 0.0  ;;  %v10437_v27 = vpop.f32.mrf.mxu1  ;;  %v25428_v4 = vpop.f32.mrf.mxu3  ;;  %v13767_v45 = vshrl.u32 %v20944_v10, 16  ;;  %v13770_v40 = vshll.u32 %v20944_v10, 16 }
 0x9a7   : > { %v16023_v61 = vpop.f32.mrf.mxu0  ;;  %v10641_v29 = vadd.f32 %v10437_v27, %v9241_v17 }
 0x9a8   : > { %v14533_v12 = vadd.f32 %v25362_v43, %v12329_v31  ;;  %16954 = vst [vmem:[%s21170_s4 + $0x348] sm:$0xff] %v16809_v44  ;;  %v13769_v22 = vrot.slane %v13767_v45, 2 }
 0x9aa   : > { %v16226_v11 = vadd.f32 %v16021_v14, %v14533_v12  ;;  %v11607_v14 = vrot.slane %v25453_v9, 2  ;;  %v13772_v12 = vrot.slane %v13770_v40, 3  ;;  %v25525_v40 = vld [vmem:[%s21099_s25 + $0x230] sm:$0xff] }
 0x9ac   : > { %v16665_v38 = vadd.f32 %v25247_v32, %v16226_v11  ;;  %v11608_v31 = vsel %vm9790_vm5, %v11605_v56, %v11607_v14  ;;  %v9244_v11 = vld [vmem:[%s21170_s4 + $0x370] sm:$0xff] }
 0x9ad   : > { %v12126_v43 = vpop.f32.mrf.mxu2 }
 0x9ae   : > { %v12330_v62 = vadd.f32 %v12126_v43, %v10641_v29  ;;  %v16810_v57 = vmax.f32 %v16665_v38, 0.0  ;;  %v10440_v46 = vpop.f32.mrf.mxu1  ;;  %v25443_v15 = vpop.f32.mrf.mxu3  ;;  %v25483_v43 = vld [vmem:[%s21099_s25 + $0x218] sm:$0xff] }
 0x9af   : > { %v16026_v16 = vpop.f32.mrf.mxu0  ;;  %v10642_v52 = vadd.f32 %v10440_v46, %v9242_v53 }
 0x9b0   : > { %v14534_v51 = vadd.f32 %v25377_v59, %v12330_v62  ;;  %16955 = vst [vmem:[%s21170_s4 + $0x350] sm:$0xff] %v16810_v57  ;;  %v13764_v59 = vor.u32 %v13763_v7, %v13760_v20  ;;  %v25486_v62 = vld [vmem:[%s21099_s25 + $0x228] sm:$0xff]  ;;  %v15506_v7 = vrot.slane %v25492_v13, 3 }
 0x9b1   : > { %19245 = vmatmul.msk.bf16.gmra.mxu1 %vm688_vm0, %v9917_v23 }
 0x9b2   : > { %19612 = vmatmul.msk.bf16.gmra.mxu2 %vm688_vm0, %v11606_v54  ;;  %v16227_v37 = vadd.f32 %v16023_v61, %v14534_v51  ;;  %20354 = vmatmul.msk.bf16.gmra.mxu0 %vm688_vm0, %v15503_v63  ;;  %v13765_v34 = vsel %vm13172_vm4, %v13755_v39, %v13764_v59  ;;  %v9245_v54 = vld [vmem:[%s21170_s4 + $0x378] sm:$0xff]  ;;  %v9920_v51 = vrot.slane %v25483_v43, 2  ;;  %v15507_v2 = vsel %vm15376_vm6, %v15504_v26, %v15506_v7 }
 0x9b3   : > { %19985 = vmatmul.msk.bf16.gmra.mxu3 %vm688_vm0, %v13765_v34 }
 0x9b4   : > { %v16666_v41 = vadd.f32 %v25247_v32, %v16227_v37  ;;  %v20945_v37 = vld [vmem:[%s21099_s25 + $0x238] sm:$0xff]  ;;  %v9921_v34 = vsel %vm9790_vm5, %v9918_v25, %v9920_v51 }
 0x9b5   : > { %v12129_v60 = vpop.f32.mrf.mxu2 }
 0x9b6   : > { %v12331_v3 = vadd.f32 %v12129_v60, %v10642_v52  ;;  %v16811_v8 = vmax.f32 %v16666_v41, 0.0  ;;  %v10442_v0 = vpop.f32.mrf.mxu1  ;;  %v25461_v6 = vpop.f32.mrf.mxu3  ;;  %v13776_v52 = vshrl.u32 %v20945_v37, 16  ;;  %v13779_v41 = vshll.u32 %v20945_v37, 16 }
 0x9b7   : > { %v16028_v21 = vpop.f32.mrf.mxu0  ;;  %v10643_v35 = vadd.f32 %v10442_v0, %v9243_v36 }
 0x9b8   : > { %v14535_v48 = vadd.f32 %v25395_v33, %v12331_v3  ;;  %16956 = vst [vmem:[%s21170_s4 + $0x358] sm:$0xff] %v16811_v8  ;;  %v13778_v9 = vrot.slane %v13776_v52, 2 }
 0x9ba   : > { %v16228_v58 = vadd.f32 %v16026_v16, %v14535_v48  ;;  %v11609_v16 = vrot.slane %v25486_v62, 2  ;;  %v13781_v48 = vrot.slane %v13779_v41, 3  ;;  %v25558_v41 = vld [vmem:[%s21099_s25 + $0x238] sm:$0xff] }
 0x9bc   : > { %v16667_v24 = vadd.f32 %v25247_v32, %v16228_v58  ;;  %v11610_v3 = vsel %vm9790_vm5, %v11607_v14, %v11609_v16  ;;  %v9246_v58 = vld [vmem:[%s21170_s4 + $0x380] sm:$0xff] }
 0x9bd   : > { %v12131_v33 = vpop.f32.mrf.mxu2 }
 0x9be   : > { %v12332_v49 = vadd.f32 %v12131_v33, %v10643_v35  ;;  %v16812_v39 = vmax.f32 %v16667_v24, 0.0  ;;  %v10445_v55 = vpop.f32.mrf.mxu1  ;;  %v25476_v19 = vpop.f32.mrf.mxu3  ;;  %v25516_v33 = vld [vmem:[%s21099_s25 + $0x220] sm:$0xff] }
 0x9bf   : > { %v16031_v27 = vpop.f32.mrf.mxu0  ;;  %v10644_v17 = vadd.f32 %v10445_v55, %v9244_v11 }
 0x9c0   : > { %v14536_v44 = vadd.f32 %v25410_v47, %v12332_v49  ;;  %16957 = vst [vmem:[%s21170_s4 + $0x360] sm:$0xff] %v16812_v39  ;;  %v13773_v47 = vor.u32 %v13772_v12, %v13769_v22  ;;  %v25519_v49 = vld [vmem:[%s21099_s25 + $0x230] sm:$0xff]  ;;  %v15508_v12 = vrot.slane %v25525_v40, 3 }
 0x9c1   : > { %19246 = vmatmul.msk.bf16.gmra.mxu1 %vm688_vm0, %v9919_v1 }
 0x9c2   : > { %19613 = vmatmul.msk.bf16.gmra.mxu2 %vm688_vm0, %v11608_v31  ;;  %v16229_v61 = vadd.f32 %v16028_v21, %v14536_v44  ;;  %20355 = vmatmul.msk.bf16.gmra.mxu0 %vm688_vm0, %v15505_v42  ;;  %v13774_v29 = vsel %vm13172_vm4, %v13764_v59, %v13773_v47  ;;  %v9247_v31 = vld [vmem:[%s21170_s4 + $0x388] sm:$0xff]  ;;  %v9922_v44 = vrot.slane %v25516_v33, 2  ;;  %v15509_v43 = vsel %vm15376_vm6, %v15506_v7, %v15508_v12 }
 0x9c3   : > { %19986 = vmatmul.msk.bf16.gmra.mxu3 %vm688_vm0, %v13774_v29 }
 0x9c4   : > { %v16668_v18 = vadd.f32 %v25247_v32, %v16229_v61  ;;  %v20946_v61 = vld [vmem:[%s21099_s25 + $0x240] sm:$0xff]  ;;  %v9923_v29 = vsel %vm9790_vm5, %v9920_v51, %v9922_v44 }
 0x9c5   : > { %v12134_v56 = vpop.f32.mrf.mxu2 }
 0x9c6   : > { %v12333_v38 = vadd.f32 %v12134_v56, %v10644_v17  ;;  %v16813_v5 = vmax.f32 %v16668_v18, 0.0  ;;  %v10447_v28 = vpop.f32.mrf.mxu1  ;;  %v25494_v23 = vpop.f32.mrf.mxu3  ;;  %v13785_v17 = vshrl.u32 %v20946_v61, 16  ;;  %v13788_v18 = vshll.u32 %v20946_v61, 16 }
 0x9c7   : > { %v16033_v50 = vpop.f32.mrf.mxu0  ;;  %v10645_v63 = vadd.f32 %v10447_v28, %v9245_v54 }
 0x9c8   : > { %v14537_v57 = vadd.f32 %v25428_v4, %v12333_v38  ;;  %16958 = vst [vmem:[%s21170_s4 + $0x368] sm:$0xff] %v16813_v5  ;;  %v13787_v62 = vrot.slane %v13785_v17, 2 }
 0x9ca   : > { %v16230_v46 = vadd.f32 %v16031_v27, %v14537_v57  ;;  %v11611_v27 = vrot.slane %v25519_v49, 2  ;;  %v13790_v57 = vrot.slane %v13788_v18, 3  ;;  %v25591_v18 = vld [vmem:[%s21099_s25 + $0x240] sm:$0xff] }
 0x9cc   : > { %v16669_v20 = vadd.f32 %v25247_v32, %v16230_v46  ;;  %v11612_v38 = vsel %vm9790_vm5, %v11609_v16, %v11611_v27  ;;  %v9248_v46 = vld [vmem:[%s21170_s4 + $0x390] sm:$0xff] }
 0x9cd   : > { %v12136_v4 = vpop.f32.mrf.mxu2 }
 0x9ce   : > { %v12334_v53 = vadd.f32 %v12136_v4, %v10645_v63  ;;  %v16814_v59 = vmax.f32 %v16669_v20, 0.0  ;;  %v10450_v60 = vpop.f32.mrf.mxu1  ;;  %v25509_v30 = vpop.f32.mrf.mxu3  ;;  %v25549_v4 = vld [vmem:[%s21099_s25 + $0x228] sm:$0xff] }
 0x9cf   : > { %v16036_v0 = vpop.f32.mrf.mxu0  ;;  %v10646_v36 = vadd.f32 %v10450_v60, %v9246_v58 }
 0x9d0   : > { %v14538_v8 = vadd.f32 %v25443_v15, %v12334_v53  ;;  %16959 = vst [vmem:[%s21170_s4 + $0x370] sm:$0xff] %v16814_v59  ;;  %v13782_v15 = vor.u32 %v13781_v48, %v13778_v9  ;;  %v25552_v53 = vld [vmem:[%s21099_s25 + $0x238] sm:$0xff]  ;;  %v15510_v48 = vrot.slane %v25558_v41, 3 }
 0x9d1   : > { %19247 = vmatmul.msk.bf16.gmra.mxu1 %vm688_vm0, %v9921_v34 }
 0x9d2   : > { %19614 = vmatmul.msk.bf16.gmra.mxu2 %vm688_vm0, %v11610_v3  ;;  %v16231_v21 = vadd.f32 %v16033_v50, %v14538_v8  ;;  %20356 = vmatmul.msk.bf16.gmra.mxu0 %vm688_vm0, %v15507_v2  ;;  %v13783_v35 = vsel %vm13172_vm4, %v13773_v47, %v13782_v15  ;;  %v9249_v3 = vld [vmem:[%s21170_s4 + $0x398] sm:$0xff]  ;;  %v9924_v8 = vrot.slane %v25549_v4, 2  ;;  %v15511_v33 = vsel %vm15376_vm6, %v15508_v12, %v15510_v48 }
 0x9d3   : > { %19987 = vmatmul.msk.bf16.gmra.mxu3 %vm688_vm0, %v13783_v35 }
 0x9d4   : > { %v16670_v25 = vadd.f32 %v25247_v32, %v16231_v21  ;;  %v20947_v21 = vld [vmem:[%s21099_s25 + $0x248] sm:$0xff]  ;;  %v9925_v35 = vsel %vm9790_vm5, %v9922_v44, %v9924_v8 }
 0x9d5   : > { %v12139_v14 = vpop.f32.mrf.mxu2 }
 0x9d6   : > { %v12335_v24 = vadd.f32 %v12139_v14, %v10646_v36  ;;  %v16815_v26 = vmax.f32 %v16670_v25, 0.0  ;;  %v10452_v10 = vpop.f32.mrf.mxu1  ;;  %v25527_v1 = vpop.f32.mrf.mxu3  ;;  %v13794_v36 = vshrl.u32 %v20947_v21, 16  ;;  %v13797_v25 = vshll.u32 %v20947_v21, 16 }
 0x9d7   : > { %v16038_v45 = vpop.f32.mrf.mxu0  ;;  %v10647_v42 = vadd.f32 %v10452_v10, %v9247_v31 }
 0x9d8   : > { %v14539_v39 = vadd.f32 %v25461_v6, %v12335_v24  ;;  %16960 = vst [vmem:[%s21170_s4 + $0x378] sm:$0xff] %v16815_v26  ;;  %v13796_v49 = vrot.slane %v13794_v36, 2 }
 0x9da   : > { %v16232_v55 = vadd.f32 %v16036_v0, %v14539_v39  ;;  %v11613_v0 = vrot.slane %v25552_v53, 2  ;;  %v13799_v39 = vrot.slane %v13797_v25, 3  ;;  %v25624_v25 = vld [vmem:[%s21099_s25 + $0x248] sm:$0xff] }
 0x9dc   : > { %v16671_v22 = vadd.f32 %v25247_v32, %v16232_v55  ;;  %v11614_v24 = vsel %vm9790_vm5, %v11611_v27, %v11613_v0  ;;  %v9250_v55 = vld [vmem:[%s21170_s4 + $0x3a0] sm:$0xff] }
 0x9dd   : > { %v12141_v6 = vpop.f32.mrf.mxu2 }
 0x9de   : > { %v12336_v11 = vadd.f32 %v12141_v6, %v10647_v42  ;;  %v16816_v47 = vmax.f32 %v16671_v22, 0.0  ;;  %v10455_v56 = vpop.f32.mrf.mxu1  ;;  %v25542_v13 = vpop.f32.mrf.mxu3  ;;  %v25582_v6 = vld [vmem:[%s21099_s25 + $0x230] sm:$0xff] }
 0x9df   : > { %v16041_v28 = vpop.f32.mrf.mxu0  ;;  %v10648_v54 = vadd.f32 %v10455_v56, %v9248_v46 }
 0x9e0   : > { %v14540_v5 = vadd.f32 %v25476_v19, %v12336_v11  ;;  %16961 = vst [vmem:[%s21170_s4 + $0x380] sm:$0xff] %v16816_v47  ;;  %v13791_v19 = vor.u32 %v13790_v57, %v13787_v62  ;;  %v25585_v11 = vld [vmem:[%s21099_s25 + $0x240] sm:$0xff]  ;;  %v15512_v57 = vrot.slane %v25591_v18, 3 }
 0x9e1   : > { %19248 = vmatmul.msk.bf16.gmra.mxu1 %vm688_vm0, %v9923_v29  ;;  %v9254_v18 = vld [vmem:[%s21170_s4 + $0x3c0] sm:$0xff] }
 0x9e2   : > { %19615 = vmatmul.msk.bf16.gmra.mxu2 %vm688_vm0, %v11612_v38  ;;  %v16233_v50 = vadd.f32 %v16038_v45, %v14540_v5  ;;  %20357 = vmatmul.msk.bf16.gmra.mxu0 %vm688_vm0, %v15509_v43  ;;  %v13792_v63 = vsel %vm13172_vm4, %v13782_v15, %v13791_v19  ;;  %v9251_v38 = vld [vmem:[%s21170_s4 + $0x3a8] sm:$0xff]  ;;  %v9926_v5 = vrot.slane %v25582_v6, 2  ;;  %v15513_v4 = vsel %vm15376_vm6, %v15510_v48, %v15512_v57 }
 0x9e3   : > { %19988 = vmatmul.msk.bf16.gmra.mxu3 %vm688_vm0, %v13792_v63 }
 0x9e4   : > { %v16672_v51 = vadd.f32 %v25247_v32, %v16233_v50  ;;  %v20948_v50 = vld [vmem:[%s21099_s25 + $0x250] sm:$0xff]  ;;  %v9927_v63 = vsel %vm9790_vm5, %v9924_v8, %v9926_v5 }
 0x9e5   : > { %v12144_v16 = vpop.f32.mrf.mxu2 }
 0x9e6   : > { %v12337_v20 = vadd.f32 %v12144_v16, %v10648_v54  ;;  %v16817_v7 = vmax.f32 %v16672_v51, 0.0  ;;  %v10457_v37 = vpop.f32.mrf.mxu1  ;;  %v25560_v34 = vpop.f32.mrf.mxu3  ;;  %v13803_v54 = vshrl.u32 %v20948_v50, 16  ;;  %v13806_v51 = vshll.u32 %v20948_v50, 16 }
 0x9e7   : > { %v16043_v52 = vpop.f32.mrf.mxu0  ;;  %v10649_v2 = vadd.f32 %v10457_v37, %v9249_v3 }
 0x9e8   : > { %v14541_v59 = vadd.f32 %v25494_v23, %v12337_v20  ;;  %16962 = vst [vmem:[%s21170_s4 + $0x388] sm:$0xff] %v16817_v7  ;;  %v13805_v53 = vrot.slane %v13803_v54, 2 }
 0x9ea   : > { %v16234_v60 = vadd.f32 %v16041_v28, %v14541_v59  ;;  %v11615_v28 = vrot.slane %v25585_v11, 2  ;;  %v13808_v59 = vrot.slane %v13806_v51, 3  ;;  %v25662_v51 = vld [vmem:[%s21099_s25 + $0x250] sm:$0xff] }
 0x9ec   : > { %v16673_v9 = vadd.f32 %v25247_v32, %v16234_v60  ;;  %v11616_v20 = vsel %vm9790_vm5, %v11613_v0, %v11615_v28  ;;  %v9252_v60 = vld [vmem:[%s21170_s4 + $0x3b0] sm:$0xff] }
 0x9ed   : > { %v12146_v23 = vpop.f32.mrf.mxu2 }
 0x9ee   : > { %v12338_v58 = vadd.f32 %v12146_v23, %v10649_v2  ;;  %v16818_v15 = vmax.f32 %v16673_v9, 0.0  ;;  %v10460_v14 = vpop.f32.mrf.mxu1  ;;  %v25575_v40 = vpop.f32.mrf.mxu3  ;;  %v25615_v23 = vld [vmem:[%s21099_s25 + $0x238] sm:$0xff] }
 0x9ef   : > { %v16046_v10 = vpop.f32.mrf.mxu0  ;;  %v10650_v31 = vadd.f32 %v10460_v14, %v9250_v55 }
 0x9f0   : > { %v14542_v26 = vadd.f32 %v25509_v30, %v12338_v58  ;;  %16963 = vst [vmem:[%s21170_s4 + $0x390] sm:$0xff] %v16818_v15  ;;  %v13800_v30 = vor.u32 %v13799_v39, %v13796_v49  ;;  %v25618_v58 = vld [vmem:[%s21099_s25 + $0x248] sm:$0xff]  ;;  %v15514_v39 = vrot.slane %v25624_v25, 3 }
 0x9f1   : > { %19249 = vmatmul.msk.bf16.gmra.mxu1 %vm688_vm0, %v9925_v35 }
 0x9f2   : > { %19616 = vmatmul.msk.bf16.gmra.mxu2 %vm688_vm0, %v11614_v24  ;;  %v16235_v45 = vadd.f32 %v16043_v52, %v14542_v26  ;;  %20358 = vmatmul.msk.bf16.gmra.mxu0 %vm688_vm0, %v15511_v33  ;;  %v13801_v42 = vsel %vm13172_vm4, %v13791_v19, %v13800_v30  ;;  %v9253_v24 = vld [vmem:[%s21170_s4 + $0x3b8] sm:$0xff]  ;;  %v9928_v26 = vrot.slane %v25615_v23, 2 }
 0x9f3   : > { %19989 = vmatmul.msk.bf16.gmra.mxu3 %vm688_vm0, %v13801_v42 }
 0x9f4   : > { %v16674_v44 = vadd.f32 %v25247_v32, %v16235_v45  ;;  %v20949_v45 = vld [vmem:[%s21099_s25 + $0x258] sm:$0xff]  ;;  %v9929_v42 = vsel %vm9790_vm5, %v9926_v5, %v9928_v26 }
 0x9f5   : > { %v12149_v27 = vpop.f32.mrf.mxu2 }
 0x9f6   : > { %v12339_v22 = vadd.f32 %v12149_v27, %v10650_v31  ;;  %v16819_v12 = vmax.f32 %v16674_v44, 0.0  ;;  %v10462_v61 = vpop.f32.mrf.mxu1  ;;  %v25593_v29 = vpop.f32.mrf.mxu3  ;;  %v13812_v31 = vshrl.u32 %v20949_v45, 16  ;;  %v13815_v44 = vshll.u32 %v20949_v45, 16 }
 0x9f7   : > { %v16048_v17 = vpop.f32.mrf.mxu0  ;;  %v10651_v43 = vadd.f32 %v10462_v61, %v9251_v38  ;;  %v25648_v38 = vld [vmem:[%s25808_s2] ss:$0 sm:$0xff] }
 0x9f8   : > { %v14543_v47 = vadd.f32 %v25527_v1, %v12339_v22  ;;  %16964 = vst [vmem:[%s21170_s4 + $0x398] sm:$0xff] %v16819_v12  ;;  %v13814_v6 = vrot.slane %v13812_v31, 2  ;;  %v13817_v11 = vrot.slane %v13815_v44, 3  ;;  %v25690_v31 = vld [vmem:[%s21099_s25 + $0x258] sm:$0xff] }
 0x9fa   : > { %v16236_v56 = vadd.f32 %v16046_v10, %v14543_v47  ;;  %v11617_v10 = vrot.slane %v25618_v58, 2 }
 0x9fc   : > { %v16675_v62 = vadd.f32 %v25247_v32, %v16236_v56  ;;  %v11618_v22 = vsel %vm9790_vm5, %v11615_v28, %v11617_v10 }
 0x9fd   : > { %v12151_v1 = vpop.f32.mrf.mxu2 }
 0x9fe   : > { %v12340_v46 = vadd.f32 %v12151_v1, %v10651_v43  ;;  %v16820_v19 = vmax.f32 %v16675_v62, 0.0  ;;  %v10465_v16 = vpop.f32.mrf.mxu1  ;;  %v25608_v41 = vpop.f32.mrf.mxu3  ;;  %v25653_v1 = vld [vmem:[%s21099_s25 + $0x240] sm:$0xff] }
 0x9ff   : > { %v16051_v37 = vpop.f32.mrf.mxu0  ;;  %v10652_v3 = vadd.f32 %v10465_v16, %v9252_v60 }
 0xa00   : > { %v14544_v7 = vadd.f32 %v25542_v13, %v12340_v46  ;;  %16965 = vst [vmem:[%s21170_s4 + $0x3a0] sm:$0xff] %v16820_v19  ;;  %v13809_v13 = vor.u32 %v13808_v59, %v13805_v53  ;;  %v25656_v46 = vld [vmem:[%s21099_s25 + $0x250] sm:$0xff] }
 0xa01   : > { %19250 = vmatmul.msk.bf16.gmra.mxu1 %vm688_vm0, %v9927_v63 }
 0xa02   : > { %19617 = vmatmul.msk.bf16.gmra.mxu2 %vm688_vm0, %v11616_v20  ;;  %v16237_v52 = vadd.f32 %v16048_v17, %v14544_v7  ;;  %20359 = vmatmul.msk.bf16.gmra.mxu0 %vm688_vm0, %v15513_v4  ;;  %v13810_v2 = vsel %vm13172_vm4, %v13800_v30, %v13809_v13  ;;  %v9255_v20 = vld [vmem:[%s21170_s4 + $0x3c8] sm:$0xff]  ;;  %v9930_v7 = vrot.slane %v25653_v1, 2  ;;  %v19915_v4 = vld [vmem:[%s21099_s25 + $0x260] sm:$0xf] }
 0xa03   : > { %19990 = vmatmul.msk.bf16.gmra.mxu3 %vm688_vm0, %v13810_v2 }
 0xa04   : > { %v16676_v8 = vadd.f32 %v25247_v32, %v16237_v52  ;;  %v15516_v52 = vrot.slane %v25662_v51, 3  ;;  %v9931_v2 = vsel %vm9790_vm5, %v9928_v26, %v9930_v7  ;;  %v9256_v26 = vld [vmem:[%s21170_s4 + $0x3d0] sm:$0xff]  ;;  %v9258_v51 = vld [vmem:[%s21170_s4 + $0x3e0] sm:$0xff] }
 0xa05   : > { %v12154_v0 = vpop.f32.mrf.mxu2 }
 0xa06   : > { %v12341_v9 = vadd.f32 %v12154_v0, %v10652_v3  ;;  %v16821_v48 = vmax.f32 %v16676_v8, 0.0  ;;  %v10467_v21 = vpop.f32.mrf.mxu1  ;;  %v25626_v35 = vpop.f32.mrf.mxu3 }
 0xa07   : > { %v16053_v36 = vpop.f32.mrf.mxu0  ;;  %v10653_v33 = vadd.f32 %v10467_v21, %v9253_v24 }
 0xa08   : > { %v14545_v15 = vadd.f32 %v25560_v34, %v12341_v9  ;;  %16966 = vst [vmem:[%s21170_s4 + $0x3a8] sm:$0xff] %v16821_v48 }
 0xa0a   : > { %v16238_v14 = vadd.f32 %v16051_v37, %v14545_v15  ;;  %v11619_v37 = vrot.slane %v25656_v46, 2  ;;  %v15517_v15 = vsel %vm15376_vm6, %v15514_v39, %v15516_v52 }
 0xa0c   : > { %v16677_v49 = vadd.f32 %v25247_v32, %v16238_v14  ;;  %v15515_v32 = vsel %vm15376_vm6, %v15512_v57, %v15514_v39  ;;  %v11620_v9 = vsel %vm9790_vm5, %v11617_v10, %v11619_v37 }
 0xa0d   : > { %v12156_v34 = vpop.f32.mrf.mxu2 }
 0xa0e   : > { %v12342_v55 = vadd.f32 %v12156_v34, %v10653_v33  ;;  %v16822_v30 = vmax.f32 %v16677_v49, 0.0  ;;  %v10470_v27 = vpop.f32.mrf.mxu1  ;;  %v25641_v17 = vpop.f32.mrf.mxu3 }
 0xa0f   : > { %v16056_v61 = vpop.f32.mrf.mxu0  ;;  %v10654_v56 = vadd.f32 %v10470_v27, %v9254_v18 }
 0xa10   : > { %v14546_v12 = vadd.f32 %v25575_v40, %v12342_v55  ;;  %16967 = vst [vmem:[%s21170_s4 + $0x3b0] sm:$0xff] %v16822_v30  ;;  %v13818_v40 = vor.u32 %v13817_v11, %v13814_v6  ;;  %v25687_v30 = vld [vmem:[%s21099_s25 + $0x248] sm:$0xff]  ;;  %v11621_v6 = vrot.slane %v25690_v31, 2 }
 0xa11   : > { %19251 = vmatmul.msk.bf16.gmra.mxu1 %vm688_vm0, %v9929_v42  ;;  %v25696_v42 = vld [vmem:[%s21099_s25 + $0x258] sm:$0xff] }
 0xa12   : > { %19618 = vmatmul.msk.bf16.gmra.mxu2 %vm688_vm0, %v11618_v22  ;;  %v16239_v47 = vadd.f32 %v16053_v36, %v14546_v12  ;;  %20360 = vmatmul.msk.bf16.gmra.mxu0 %vm688_vm0, %v15515_v32  ;;  %v13819_v43 = vsel %vm13172_vm4, %v13809_v13, %v13818_v40  ;;  %v9932_v32 = vrot.slane %v25687_v30, 2 }
 0xa13   : > { %19991 = vmatmul.msk.bf16.gmra.mxu3 %vm688_vm0, %v13819_v43  ;;  %v11622_v43 = vsel %vm9790_vm5, %v11619_v37, %v11621_v6 }
 0xa14   : > { %v16678_v5 = vadd.f32 %v25648_v38, %v16239_v47 }
 0xa15   : > { %v12159_v28 = vpop.f32.mrf.mxu2 }
 0xa16   : > { %v12343_v62 = vadd.f32 %v12159_v28, %v10654_v56  ;;  %v16823_v57 = vmax.f32 %v16678_v5, 0.0  ;;  %v10472_v50 = vpop.f32.mrf.mxu1  ;;  %v25664_v63 = vpop.f32.mrf.mxu3  ;;  %v9933_v28 = vsel %vm9790_vm5, %v9930_v7, %v9932_v32 }
 0xa17   : > { %v16058_v54 = vpop.f32.mrf.mxu0  ;;  %v10655_v53 = vadd.f32 %v10472_v50, %v9255_v20  ;;  %v11113_v50 = vld [vmem:[%s21099_s25 + $0x260] sm:$0xf] }
 0xa18   : > { %v14547_v19 = vadd.f32 %v25593_v29, %v12343_v62  ;;  %16968 = vst [vmem:[%s21170_s4 + $0x3b8] sm:$0xff] %v16823_v57  ;;  %v20950_v29 = vld [vmem:[%s21099_s25 + $0x260] sm:$0x10]  ;;  %v9423_v57 = vld [vmem:[%s21099_s25 + $0x250] sm:$0xf]  ;;  %v11406_v20 = vunpack.c.l.b16 %v11113_v50 }
 0xa19   : > { %v19916_v13 = vor.u32 %v20950_v29, %v19915_v4  ;;  %v20286_v4 = vld [vmem:[%s21099_s25 + $0x260] sm:$0xf] }
 0xa1a   : > { %v16240_v16 = vadd.f32 %v16056_v61, %v14547_v19  ;;  %v9257_v61 = vld [vmem:[%s21170_s4 + $0x3d8] sm:$0xff] }
 0xa1b   : > { %v13821_v48 = vshrl.u32 %v19916_v13, 16  ;;  %v13824_v21 = vshll.u32 %v19916_v13, 16  ;;  %v11479_v13 = vpack.c.b16 %v11406_v20, %v11406_v20 }
 0xa1c   : > { %v16679_v59 = vadd.f32 %v25648_v38, %v16240_v16  ;;  %v9716_v16 = vunpack.c.l.b16 %v9423_v57  ;;  %v9262_v57 = vld [vmem:[%s21170_s4 + $0x400] sm:$0xff] }
 0xa1d   : > { %v12161_v60 = vpop.f32.mrf.mxu2  ;;  %v13823_v36 = vrot.slane %v13821_v48, 2  ;;  %v13826_v25 = vrot.slane %v13824_v21, 3  ;;  %v9259_v48 = vld [vmem:[%s21170_s4 + $0x3e8] sm:$0xff] }
 0xa1e   : > { %v12344_v3 = vadd.f32 %v12161_v60, %v10655_v53  ;;  %v16824_v8 = vmax.f32 %v16679_v59, 0.0  ;;  %v10475_v0 = vpop.f32.mrf.mxu1  ;;  %v25680_v24 = vpop.f32.mrf.mxu3  ;;  %v21024_v53 = vld [vmem:[%s21099_s25 + $0x260] sm:$0x10]  ;;  %v9789_v60 = vpack.c.b16 %v9716_v16, %v9716_v16 }
 0xa1f   : > { %v16061_v58 = vpop.f32.mrf.mxu0  ;;  %v10656_v10 = vadd.f32 %v10475_v0, %v9256_v26  ;;  %v20287_v0 = vor.u32 %v21024_v53, %v20286_v4 }
 0xa20   : > { %v14548_v23 = vadd.f32 %v25608_v41, %v12344_v3  ;;  %16969 = vst [vmem:[%s21170_s4 + $0x3c0] sm:$0xff] %v16824_v8  ;;  %v13827_v41 = vor.u32 %v13826_v25, %v13823_v36  ;;  %v9934_v21 = vrot.slane %v9789_v60, 2 }
 0xa21   : > { %19252 = vmatmul.msk.bf16.gmra.mxu1 %vm688_vm0, %v9931_v2  ;;  %v15520_v36 = vrot.slane %v20287_v0, 3 }
 0xa22   : > { %19619 = vmatmul.msk.bf16.gmra.mxu2 %vm688_vm0, %v11620_v9  ;;  %v16241_v14 = vadd.f32 %v16058_v54, %v14548_v23  ;;  %20361 = vmatmul.msk.bf16.gmra.mxu0 %vm688_vm0, %v15517_v15  ;;  %v13828_v39 = vsel %vm13172_vm4, %v13818_v40, %v13827_v41  ;;  %v11623_v23 = vrot.slane %v11479_v13, 2 }
 0xa23   : > { %19992 = vmatmul.msk.bf16.gmra.mxu3 %vm688_vm0, %v13828_v39 }
 0xa24   : > { %v16680_v33 = vadd.f32 %v25648_v38, %v16241_v14 }
 0xa25   : > { %v12164_v49 = vpop.f32.mrf.mxu2 }
 0xa26   : > { %v12345_v45 = vadd.f32 %v12164_v49, %v10656_v10  ;;  %v16825_v34 = vmax.f32 %v16680_v33, 0.0  ;;  %v10477_v55 = vpop.f32.mrf.mxu1  ;;  %v25698_v12 = vpop.f32.mrf.mxu3  ;;  %v11624_v10 = vsel %vm9790_vm5, %v11621_v6, %v11623_v23 }
 0xa27   : > { %v16063_v27 = vpop.f32.mrf.mxu0  ;;  %v10657_v11 = vadd.f32 %v10477_v55, %v9257_v61  ;;  %v9260_v55 = vld [vmem:[%s21170_s4 + $0x3f0] sm:$0xff] }
 0xa28   : > { %v14549_v44 = vadd.f32 %v25626_v35, %v12345_v45  ;;  %16970 = vst [vmem:[%s21170_s4 + $0x3c8] sm:$0xff] %v16825_v34  ;;  %v15518_v35 = vrot.slane %v25696_v42, 3 }
 0xa2a   : > { %v16242_v22 = vadd.f32 %v16061_v58, %v14549_v44  ;;  %v15519_v46 = vsel %vm15376_vm6, %v15516_v52, %v15518_v35  ;;  %v15521_v39 = vsel %vm15376_vm6, %v15518_v35, %v15520_v36 }
 0xa2c   : > { %v16681_v47 = vadd.f32 %v25648_v38, %v16242_v22 }
 0xa2d   : > { %v12166_v18 = vpop.f32.mrf.mxu2 }
 0xa2e   : > { %v12346_v40 = vadd.f32 %v12166_v18, %v10657_v11  ;;  %v16826_v56 = vmax.f32 %v16681_v47, 0.0  ;;  %v10480_v5 = vpop.f32.mrf.mxu1  ;;  %v14380_v54 = vpop.f32.mrf.mxu3  ;;  %v9261_v11 = vld [vmem:[%s21170_s4 + $0x3f8] sm:$0xff] }
 0xa2f   : > { %v16066_v1 = vpop.f32.mrf.mxu0 }
 0xa30   : > { %v14550_v62 = vadd.f32 %v25641_v17, %v12346_v40  ;;  %16971 = vst [vmem:[%s21170_s4 + $0x3d0] sm:$0xff] %v16826_v56  ;;  %v10658_v17 = vadd.f32 %v10480_v5, %v9258_v51 }
 0xa31   : > { %19253 = vmatmul.msk.bf16.gmra.mxu1 %vm688_vm0, %v9933_v28 }
 0xa32   : > { %19620 = vmatmul.msk.bf16.gmra.mxu2 %vm688_vm0, %v11622_v43  ;;  %v16243_v19 = vadd.f32 %v16063_v27, %v14550_v62  ;;  %20362 = vmatmul.msk.bf16.gmra.mxu0 %vm688_vm0, %v15519_v46 }
 0xa33   : > { %19993 = vmatmul.msk.bf16.gmra.mxu3 %vm688_vm0, %v13827_v41 }
 0xa34   : > { %v16682_v7 = vadd.f32 %v25648_v38, %v16243_v19 }
 0xa35   : > { %v12169_v37 = vpop.f32.mrf.mxu2 }
 0xa36   : > { %v12347_v59 = vadd.f32 %v12169_v37, %v10658_v17  ;;  %v16827_v52 = vmax.f32 %v16682_v7, 0.0  ;;  %v10482_v29 = vpop.f32.mrf.mxu1  ;;  %v14383_v9 = vpop.f32.mrf.mxu3  ;;  %v9263_v37 = vld [vmem:[%s21170_s4 + $0x408] sm:$0xff] }
 0xa37   : > { %v16068_v8 = vpop.f32.mrf.mxu0  ;;  %v10659_v58 = vadd.f32 %v10482_v29, %v9259_v48 }
 0xa38   : > { %v14551_v3 = vadd.f32 %v25664_v63, %v12347_v59  ;;  %16972 = vst [vmem:[%s21170_s4 + $0x3d8] sm:$0xff] %v16827_v52  ;;  %v9935_v63 = vsel %vm9790_vm5, %v9932_v32, %v9934_v21 }
 0xa3a   : > { %v16244_v2 = vadd.f32 %v16066_v1, %v14551_v3 }
 0xa3c   : > { %v16683_v15 = vadd.f32 %v25648_v38, %v16244_v2  ;;  %v9264_v2 = vld [vmem:[%s21170_s4 + $0x410] sm:$0xff] }
 0xa3d   : > { %v12171_v25 = vpop.f32.mrf.mxu2 }
 0xa3e   : > { %v12348_v14 = vadd.f32 %v12171_v25, %v10659_v58  ;;  %v16828_v26 = vmax.f32 %v16683_v15, 0.0  ;;  %v10485_v41 = vpop.f32.mrf.mxu1  ;;  %v14385_v34 = vpop.f32.mrf.mxu3 }
 0xa3f   : > { %v16071_v49 = vpop.f32.mrf.mxu0  ;;  %v10660_v30 = vadd.f32 %v10485_v41, %v9260_v55  ;;  %v9265_v41 = vld [vmem:[%s21170_s4 + $0x418] sm:$0xff] }
 0xa40   : > { %v14552_v33 = vadd.f32 %v25680_v24, %v12348_v14  ;;  %16973 = vst [vmem:[%s21170_s4 + $0x3e0] sm:$0xff] %v16828_v26 }
 0xa41   : > { %19254 = vmatmul.msk.bf16.gmra.mxu1 %vm688_vm0, %v9935_v63 }
 0xa42   : > { %19621 = vmatmul.msk.bf16.gmra.mxu2 %vm688_vm0, %v11624_v10  ;;  %v16245_v45 = vadd.f32 %v16068_v8, %v14552_v33  ;;  %20363 = vmatmul.msk.bf16.gmra.mxu0 %vm688_vm0, %v15521_v39 }
 0xa44   : > { %v16684_v31 = vadd.f32 %v25648_v38, %v16245_v45 }
 0xa45   : > { %v12174_v44 = vpop.f32.mrf.mxu2 }
 0xa46   : > { %v12349_v24 = vadd.f32 %v12174_v44, %v10660_v30  ;;  %v16829_v27 = vmax.f32 %v16684_v31, 0.0  ;;  %v10487_v42 = vpop.f32.mrf.mxu1  ;;  %v14388_v6 = vpop.f32.mrf.mxu3  ;;  %v9266_v44 = vld [vmem:[%s21170_s4 + $0x420] sm:$0xff] }
 0xa47   : > { %v16073_v61 = vpop.f32.mrf.mxu0  ;;  %v10661_v47 = vadd.f32 %v10487_v42, %v9261_v11 }
 0xa48   : > { %v14553_v22 = vadd.f32 %v25698_v12, %v12349_v24  ;;  %16974 = vst [vmem:[%s21170_s4 + $0x3e8] sm:$0xff] %v16829_v27 }
 0xa4a   : > { %v16246_v32 = vadd.f32 %v16071_v49, %v14553_v22 }
 0xa4c   : > { %v16685_v35 = vadd.f32 %v25648_v38, %v16246_v32 }
 0xa4d   : > { %v12176_v18 = vpop.f32.mrf.mxu2 }
 0xa4e   : > { %v12350_v40 = vadd.f32 %v12176_v18, %v10661_v47  ;;  %v16830_v56 = vmax.f32 %v16685_v35, 0.0  ;;  %v10490_v5 = vpop.f32.mrf.mxu1  ;;  %v14390_v62 = vpop.f32.mrf.mxu3  ;;  %v9267_v18 = vld [vmem:[%s21170_s4 + $0x428] sm:$0xff] }
 0xa4f   : > { %v16076_v43 = vpop.f32.mrf.mxu0  ;;  %v10662_v50 = vadd.f32 %v10490_v5, %v9262_v57 }
 0xa50   : > { %v14554_v28 = vadd.f32 %v14380_v54, %v12350_v40  ;;  %16975 = vst [vmem:[%s21170_s4 + $0x3f0] sm:$0xff] %v16830_v56 }
 0xa51   : > { %19255 = vmatmul.msk.bf16.gmra.mxu1 %vm688_vm0, %v9934_v21 }
 0xa52   : > { %19622 = vmatmul.msk.bf16.gmra.mxu2 %vm688_vm0, %v11623_v23  ;;  %v16247_v12 = vadd.f32 %v16073_v61, %v14554_v28  ;;  %20364 = vmatmul.msk.bf16.gmra.mxu0 %vm688_vm0, %v15520_v36 }
 0xa54   : > { %v16686_v1 = vadd.f32 %v25648_v38, %v16247_v12 }
 0xa55   : > { %v12179_v46 = vpop.f32.mrf.mxu2 }
 0xa56   : > { %v12351_v19 = vadd.f32 %v12179_v46, %v10662_v50  ;;  %v16831_v54 = vmax.f32 %v16686_v1, 0.0  ;;  %v10492_v51 = vpop.f32.mrf.mxu1  ;;  %v14393_v7 = vpop.f32.mrf.mxu3  ;;  %v9268_v46 = vld [vmem:[%s21170_s4 + $0x430] sm:$0xff] }
 0xa57   : > { %v16078_v20 = vpop.f32.mrf.mxu0  ;;  %v10663_v4 = vadd.f32 %v10492_v51, %v9263_v37 }
 0xa58   : > { %v14555_v16 = vadd.f32 %v14383_v9, %v12351_v19  ;;  %16976 = vst [vmem:[%s21170_s4 + $0x3f8] sm:$0xff] %v16831_v54 }
 0xa5a   : > { %v16248_v17 = vadd.f32 %v16076_v43, %v14555_v16 }
 0xa5c   : > { %v16687_v53 = vadd.f32 %v25648_v38, %v16248_v17 }
 0xa5d   : > { %v12181_v59 = vpop.f32.mrf.mxu2 }
 0xa5e   : > { %v12352_v52 = vadd.f32 %v12181_v59, %v10663_v4  ;;  %v16832_v29 = vmax.f32 %v16687_v53, 0.0  ;;  %v10495_v60 = vpop.f32.mrf.mxu1  ;;  %v14395_v0 = vpop.f32.mrf.mxu3  ;;  %v9269_v59 = vld [vmem:[%s21170_s4 + $0x438] sm:$0xff] }
 0xa5f   : > { %v16081_v3 = vpop.f32.mrf.mxu0  ;;  %v10664_v9 = vadd.f32 %v10495_v60, %v9264_v2 }
 0xa60   : > { %v14556_v13 = vadd.f32 %v14385_v34, %v12352_v52  ;;  %16977 = vst [vmem:[%s21170_s4 + $0x400] sm:$0xff] %v16832_v29 }
 0xa62   : > { %v16249_v8 = vadd.f32 %v16078_v20, %v14556_v13 }
 0xa64   : > { %v16688_v48 = vadd.f32 %v25648_v38, %v16249_v8 }
 0xa65   : > { %v12184_v21 = vpop.f32.mrf.mxu2 }
 0xa66   : > { %v12353_v23 = vadd.f32 %v12184_v21, %v10664_v9  ;;  %v16833_v58 = vmax.f32 %v16688_v48, 0.0  ;;  %v10497_v15 = vpop.f32.mrf.mxu1  ;;  %v14398_v26 = vpop.f32.mrf.mxu3  ;;  %v9270_v21 = vld [vmem:[%s21170_s4 + $0x440] sm:$0xff] }
 0xa67   : > { %v16083_v25 = vpop.f32.mrf.mxu0  ;;  %v10665_v63 = vadd.f32 %v10497_v15, %v9265_v41 }
 0xa68   : > { %v14557_v36 = vadd.f32 %v14388_v6, %v12353_v23  ;;  %16978 = vst [vmem:[%s21170_s4 + $0x408] sm:$0xff] %v16833_v58 }
 0xa6a   : > { %v16250_v14 = vadd.f32 %v16081_v3, %v14557_v36 }
 0xa6c   : > { %v16689_v10 = vadd.f32 %v25648_v38, %v16250_v14 }
 0xa6d   : > { %v12186_v33 = vpop.f32.mrf.mxu2 }
 0xa6e   : > { %v12354_v49 = vadd.f32 %v12186_v33, %v10665_v63  ;;  %v16834_v39 = vmax.f32 %v16689_v10, 0.0  ;;  %v10500_v45 = vpop.f32.mrf.mxu1  ;;  %v14400_v31 = vpop.f32.mrf.mxu3  ;;  %v9271_v33 = vld [vmem:[%s21170_s4 + $0x448] sm:$0xff] }
 0xa6f   : > { %v16086_v55 = vpop.f32.mrf.mxu0  ;;  %v10666_v24 = vadd.f32 %v10500_v45, %v9266_v44 }
 0xa70   : > { %v14558_v34 = vadd.f32 %v14390_v62, %v12354_v49  ;;  %16979 = vst [vmem:[%s21170_s4 + $0x410] sm:$0xff] %v16834_v39 }
 0xa72   : > { %v16251_v30 = vadd.f32 %v16083_v25, %v14558_v34 }
 0xa74   : > { %v16690_v27 = vadd.f32 %v25648_v38, %v16251_v30 }
 0xa75   : > { %v12189_v42 = vpop.f32.mrf.mxu2 }
 0xa76   : > { %v12355_v22 = vadd.f32 %v12189_v42, %v10666_v24  ;;  %v16835_v61 = vmax.f32 %v16690_v27, 0.0  ;;  %v10502_v32 = vpop.f32.mrf.mxu1  ;;  %v14403_v35 = vpop.f32.mrf.mxu3  ;;  %v9272_v42 = vld [vmem:[%s21170_s4 + $0x450] sm:$0xff] }
 0xa77   : > { %v16088_v11 = vpop.f32.mrf.mxu0  ;;  %v10667_v40 = vadd.f32 %v10502_v32, %v9267_v18 }
 0xa78   : > { %v14559_v6 = vadd.f32 %v14393_v7, %v12355_v22  ;;  %16980 = vst [vmem:[%s21170_s4 + $0x418] sm:$0xff] %v16835_v61 }
 0xa7a   : > { %v16252_v47 = vadd.f32 %v16086_v55, %v14559_v6 }
 0xa7c   : > { %v16691_v56 = vadd.f32 %v25648_v38, %v16252_v47 }
 0xa7d   : > { %v12191_v5 = vpop.f32.mrf.mxu2 }
 0xa7e   : > { %v12356_v28 = vadd.f32 %v12191_v5, %v10667_v40  ;;  %v16836_v43 = vmax.f32 %v16691_v56, 0.0  ;;  %v10505_v12 = vpop.f32.mrf.mxu1  ;;  %v14405_v1 = vpop.f32.mrf.mxu3  ;;  %v9273_v5 = vld [vmem:[%s21170_s4 + $0x458] sm:$0xff] }
 0xa7f   : > { %v16091_v57 = vpop.f32.mrf.mxu0  ;;  %v10668_v19 = vadd.f32 %v10505_v12, %v9268_v46 }
 0xa80   : > { %v14560_v62 = vadd.f32 %v14395_v0, %v12356_v28  ;;  %16981 = vst [vmem:[%s21170_s4 + $0x420] sm:$0xff] %v16836_v43 }
 0xa82   : > { %v16253_v50 = vadd.f32 %v16088_v11, %v14560_v62 }
 0xa84   : > { %v16692_v54 = vadd.f32 %v25648_v38, %v16253_v50 }
 0xa85   : > { %v12194_v51 = vpop.f32.mrf.mxu2 }
 0xa86   : > { %v12357_v16 = vadd.f32 %v12194_v51, %v10668_v19  ;;  %v16837_v20 = vmax.f32 %v16692_v54, 0.0  ;;  %v10507_v17 = vpop.f32.mrf.mxu1  ;;  %v14408_v53 = vpop.f32.mrf.mxu3  ;;  %v9274_v54 = vld [vmem:[%s21170_s4 + $0x460] sm:$0xff] }
 0xa87   : > { %v16093_v37 = vpop.f32.mrf.mxu0  ;;  %v10669_v52 = vadd.f32 %v10507_v17, %v9269_v59 }
 0xa88   : > { %v14561_v7 = vadd.f32 %v14398_v26, %v12357_v16  ;;  %16982 = vst [vmem:[%s21170_s4 + $0x428] sm:$0xff] %v16837_v20 }
 0xa8a   : > { %v16254_v4 = vadd.f32 %v16091_v57, %v14561_v7 }
 0xa8c   : > { %v16693_v29 = vadd.f32 %v25648_v38, %v16254_v4 }
 0xa8d   : > { %v12196_v60 = vpop.f32.mrf.mxu2 }
 0xa8e   : > { %v12358_v13 = vadd.f32 %v12196_v60, %v10669_v52  ;;  %v16838_v3 = vmax.f32 %v16693_v29, 0.0  ;;  %v10510_v8 = vpop.f32.mrf.mxu1  ;;  %v14410_v48 = vpop.f32.mrf.mxu3  ;;  %v9275_v29 = vld [vmem:[%s21170_s4 + $0x468] sm:$0xff] }
 0xa8f   : > { %v16096_v2 = vpop.f32.mrf.mxu0  ;;  %v10670_v23 = vadd.f32 %v10510_v8, %v9270_v21 }
 0xa90   : > { %v14562_v0 = vadd.f32 %v14400_v31, %v12358_v13  ;;  %16983 = vst [vmem:[%s21170_s4 + $0x430] sm:$0xff] %v16838_v3 }
 0xa92   : > { %v16255_v9 = vadd.f32 %v16093_v37, %v14562_v0 }
 0xa94   : > { %v16694_v58 = vadd.f32 %v25648_v38, %v16255_v9 }
 0xa95   : > { %v12199_v15 = vpop.f32.mrf.mxu2 }
 0xa96   : > { %v12359_v36 = vadd.f32 %v12199_v15, %v10670_v23  ;;  %v16839_v25 = vmax.f32 %v16694_v58, 0.0  ;;  %v10512_v14 = vpop.f32.mrf.mxu1  ;;  %v14413_v10 = vpop.f32.mrf.mxu3  ;;  %v9276_v58 = vld [vmem:[%s21170_s4 + $0x470] sm:$0xff] }
 0xa97   : > { %v16098_v41 = vpop.f32.mrf.mxu0  ;;  %v10671_v49 = vadd.f32 %v10512_v14, %v9271_v33 }
 0xa98   : > { %v14563_v26 = vadd.f32 %v14403_v35, %v12359_v36  ;;  %16984 = vst [vmem:[%s21170_s4 + $0x438] sm:$0xff] %v16839_v25 }
 0xa9a   : > { %v16256_v63 = vadd.f32 %v16096_v2, %v14563_v26 }
 0xa9c   : > { %v16695_v39 = vadd.f32 %v25648_v38, %v16256_v63 }
 0xa9d   : > { %v12201_v45 = vpop.f32.mrf.mxu2 }
 0xa9e   : > { %v12360_v34 = vadd.f32 %v12201_v45, %v10671_v49  ;;  %v16840_v55 = vmax.f32 %v16695_v39, 0.0  ;;  %v10515_v30 = vpop.f32.mrf.mxu1  ;;  %v14415_v27 = vpop.f32.mrf.mxu3  ;;  %v9277_v39 = vld [vmem:[%s21170_s4 + $0x478] sm:$0xff] }
 0xa9f   : > { %v16101_v44 = vpop.f32.mrf.mxu0  ;;  %v10672_v22 = vadd.f32 %v10515_v30, %v9272_v42 }
 0xaa0   : > { %v14564_v31 = vadd.f32 %v14405_v1, %v12360_v34  ;;  %16985 = vst [vmem:[%s21170_s4 + $0x440] sm:$0xff] %v16840_v55 }
 0xaa2   : > { %v16257_v24 = vadd.f32 %v16098_v41, %v14564_v31 }
 0xaa4   : > { %v16696_v61 = vadd.f32 %v25648_v38, %v16257_v24 }
 0xaa5   : > { %v12204_v32 = vpop.f32.mrf.mxu2 }
 0xaa6   : > { %v12361_v6 = vadd.f32 %v12204_v32, %v10672_v22  ;;  %v16841_v11 = vmax.f32 %v16696_v61, 0.0  ;;  %v10517_v47 = vpop.f32.mrf.mxu1  ;;  %v14418_v56 = vpop.f32.mrf.mxu3 }
 0xaa7   : > { %v16103_v18 = vpop.f32.mrf.mxu0  ;;  %v10673_v28 = vadd.f32 %v10517_v47, %v9273_v5 }
 0xaa8   : > { %v14565_v35 = vadd.f32 %v14408_v53, %v12361_v6  ;;  %16986 = vst [vmem:[%s21170_s4 + $0x448] sm:$0xff] %v16841_v11 }
 0xaaa   : > { %v16258_v40 = vadd.f32 %v16101_v44, %v14565_v35  ;;  %v9278_v44 = vld [vmem:[%s21170_s4 + $0x480] sm:$0xf] }
 0xaac   : > { %v16697_v43 = vadd.f32 %v25648_v38, %v16258_v40 }
 0xaad   : > { %v12206_v12 = vpop.f32.mrf.mxu2 }
 0xaae   : > { %v12362_v62 = vadd.f32 %v12206_v12, %v10673_v28  ;;  %v16842_v57 = vmax.f32 %v16697_v43, 0.0  ;;  %v10520_v50 = vpop.f32.mrf.mxu1  ;;  %v14420_v20 = vpop.f32.mrf.mxu3 }
 0xaaf   : > { %v16106_v46 = vpop.f32.mrf.mxu0  ;;  %v10674_v51 = vadd.f32 %v10520_v50, %v9274_v54 }
 0xab0   : > { %v14566_v1 = vadd.f32 %v14410_v48, %v12362_v62  ;;  %16987 = vst [vmem:[%s21170_s4 + $0x450] sm:$0xff] %v16842_v57 }
 0xab2   : > { %v16259_v19 = vadd.f32 %v16103_v18, %v14566_v1 }
 0xab4   : > { %v16698_v16 = vadd.f32 %v25648_v38, %v16259_v19 }
 0xab5   : > { %v12209_v17 = vpop.f32.mrf.mxu2 }
 0xab6   : > { %v12363_v7 = vadd.f32 %v12209_v17, %v10674_v51  ;;  %v16843_v37 = vmax.f32 %v16698_v16, 0.0  ;;  %v10522_v4 = vpop.f32.mrf.mxu1  ;;  %v14423_v3 = vpop.f32.mrf.mxu3 }
 0xab7   : > { %v16108_v59 = vpop.f32.mrf.mxu0  ;;  %v10675_v60 = vadd.f32 %v10522_v4, %v9275_v29 }
 0xab8   : > { %v14567_v53 = vadd.f32 %v14413_v10, %v12363_v7  ;;  %16988 = vst [vmem:[%s21170_s4 + $0x458] sm:$0xff] %v16843_v37 }
 0xaba   : > { %v16260_v52 = vadd.f32 %v16106_v46, %v14567_v53 }
 0xabc   : > { %v16699_v13 = vadd.f32 %v25648_v38, %v16260_v52 }
 0xabd   : > { %v12211_v8 = vpop.f32.mrf.mxu2 }
 0xabe   : > { %v12364_v0 = vadd.f32 %v12211_v8, %v10675_v60  ;;  %v16844_v2 = vmax.f32 %v16699_v13, 0.0  ;;  %v10525_v9 = vpop.f32.mrf.mxu1  ;;  %v14425_v25 = vpop.f32.mrf.mxu3 }
 0xabf   : > { %v16111_v21 = vpop.f32.mrf.mxu0  ;;  %v10676_v15 = vadd.f32 %v10525_v9, %v9276_v58 }
 0xac0   : > { %v14568_v48 = vadd.f32 %v14415_v27, %v12364_v0  ;;  %16989 = vst [vmem:[%s21170_s4 + $0x460] sm:$0xff] %v16844_v2 }
 0xac2   : > { %v16261_v23 = vadd.f32 %v16108_v59, %v14568_v48 }
 0xac4   : > { %v16700_v36 = vadd.f32 %v25648_v38, %v16261_v23 }
 0xac5   : > { %v12214_v14 = vpop.f32.mrf.mxu2 }
 0xac6   : > { %v12365_v26 = vadd.f32 %v12214_v14, %v10676_v15  ;;  %v16845_v41 = vmax.f32 %v16700_v36, 0.0  ;;  %v10527_v63 = vpop.f32.mrf.mxu1 }
 0xac7   : > { %v16113_v33 = vpop.f32.mrf.mxu0  ;;  %v10677_v45 = vadd.f32 %v10527_v63, %v9277_v39 }
 0xac8   : > { %v14569_v10 = vadd.f32 %v14418_v56, %v12365_v26  ;;  %16990 = vst [vmem:[%s21170_s4 + $0x468] sm:$0xff] %v16845_v41 }
 0xaca   : > { %v16262_v49 = vadd.f32 %v16111_v21, %v14569_v10 }
 0xacc   : > { %v16701_v34 = vadd.f32 %v25648_v38, %v16262_v49 }
 0xacd   : > { %v12216_v55 = vpop.f32.mrf.mxu2 }
 0xace   : > { %v12366_v30 = vadd.f32 %v12216_v55, %v10677_v45  ;;  %v16846_v31 = vmax.f32 %v16701_v34, 0.0  ;;  %v10530_v24 = vpop.f32.mrf.mxu1 }
 0xacf   : > { %v10678_v27 = vadd.f32 %v10530_v24, %v9278_v44  ;;  %v16116_v22 = vpop.f32.mrf.mxu0 }
 0xad0   : > { %v14570_v42 = vadd.f32 %v14420_v20, %v12366_v30  ;;  %16991 = vst [vmem:[%s21170_s4 + $0x470] sm:$0xff] %v16846_v31 }
 0xad1   : > { %10823 = vst [vmem:[%s21170_s4 + $0x480] sm:$0xf] %v10678_v27 }
 0xad2   : > { %v16263_v61 = vadd.f32 %v16113_v33, %v14570_v42 }
 0xad4   : > { %v16702_v32 = vadd.f32 %v25648_v38, %v16263_v61 }
 0xad5   : > { %v12219_v6 = vpop.f32.mrf.mxu2 }
 0xad6   : > { %v16847_v11 = vmax.f32 %v16702_v32, 0.0  ;;  %v10532_v47 = vpop.f32.mrf.mxu1 }
 0xad7   : > { %v16118_v35 = vpop.f32.mrf.mxu0 }
 0xad8   : > { %16992 = vst [vmem:[%s21170_s4 + $0x478] sm:$0xff] %v16847_v11  ;;  %v10968_v18 = vld [vmem:[%s21170_s4 + $0x480] sm:$0xf] }
 0xad9   : > { %v12367_v40 = vadd.f32 %v12219_v6, %v10968_v18 }
 0xadb   : > { %12512 = vst [vmem:[%s21170_s4 + $0x480] sm:$0xf] %v12367_v40 }
 0xadd   : > { %v12221_v56 = vpop.f32.mrf.mxu2 }
 0xae2   : > { %v12657_v5 = vld [vmem:[%s21170_s4 + $0x480] sm:$0xf] }
 0xae3   : > { %v14571_v28 = vadd.f32 %v14423_v3, %v12657_v5 }
 0xae5   : > { %14716 = vst [vmem:[%s21170_s4 + $0x480] sm:$0xf] %v14571_v28 }
 0xaec   : > { %v14861_v43 = vld [vmem:[%s21170_s4 + $0x480] sm:$0xf] }
 0xaed   : > { %v16264_v12 = vadd.f32 %v16116_v22, %v14861_v43 }
 0xaef   : > { %16409 = vst [vmem:[%s21170_s4 + $0x480] sm:$0xf] %v16264_v12 }
 0xaf6   : > { %v16554_v62 = vld [vmem:[%s21170_s4 + $0x480] sm:$0xf] }
 0xaf7   : > { %v16703_v57 = vadd.f32 %v25648_v38, %v16554_v62 }
 0xaf9   : > { %v16848_v50 = vmax.f32 %v16703_v57, 0.0 }
 0xafb   : > { %16993 = vst [vmem:[%s21170_s4 + $0x480] sm:$0xf] %v16848_v50 }
 0xafc PF: > { %s13_s12 = sadd.s32 1, %s21051_s12  }
 0xafd   : > { %p10_p4 = scmp.ge.s32.totalorder %s13_s12, 10  }
 0xaff   :  { %12 = sbr.rel (!%p10_p4) target bundleno = 1 (0x1), region = 70 }

</bundles_post_ra>
